<compile_context>
chip_gen: v7x
topology: tpu7x:2x2x1
jax: 0.10.0
libtpu: 0.0.40
codegen_flags: <defaults>
</compile_context>

<pallas_src>
import functools
import math

import jax
import jax.numpy as jnp
from jax.experimental import pallas as pl
from jax.experimental.pallas import tpu as pltpu

LANE = 128
SUBLANE = 8


# -----------------------------------------------------------------------------
# helpers
# -----------------------------------------------------------------------------
def _round_up(x, m):
    return (x + m - 1) // m * m


def _pick_time_block(S, cap=32):
    """Largest time block that divides S and keeps block dims legal."""
    if S <= cap:
        return S
    for t in range(cap - cap % 8, 7, -8):        # multiples of 8 <= cap
        if S % t == 0:
            return t
    return S                                     # fallback: whole sequence


def _pick_batch_block(b_pad):
    if b_pad <= 128:
        return b_pad
    for d in range(128, 7, -8):                  # multiples of 8
        if b_pad % d == 0:
            return d
    return b_pad


# -----------------------------------------------------------------------------
# Fused Pallas kernel: all LSTM layers + FC head
# -----------------------------------------------------------------------------
def _fused_lstm_kernel(x_ref, *refs, num_layers, t_blk, H):
    """grid = (batch_blocks, time_blocks).

    refs layout:
      per layer l: wx_l (in_pad, 4H), wh_l (H, 4H), b_l (1, 4H)
      h0 (L, b_blk, H), c0 (L, b_blk, H), w_fc (H, O), b_fc (1, O)
      out (b_blk, O)
      scratch: xbuf (b_blk, t_blk, H), h_sc (L, b_blk, H), c_sc (L, b_blk, H)
    """
    nl = num_layers
    wx_refs = refs[0:3 * nl:3]
    wh_refs = refs[1:3 * nl:3]
    b_refs = refs[2:3 * nl:3]
    (h0_ref, c0_ref, wfc_ref, bfc_ref,
     out_ref, xbuf, h_sc, c_sc) = refs[3 * nl:]

    tb = pl.program_id(1)
    b_blk = h_sc.shape[1]

    @pl.when(tb == 0)
    def _():
        h_sc[...] = h0_ref[...].astype(jnp.float32)
        c_sc[...] = c0_ref[...].astype(jnp.float32)

    h_last = None
    for l in range(nl):                          # static unroll over layers
        last_layer = (l == nl - 1)
        x_in = x_ref[...] if l == 0 else xbuf[...]
        in_pad = x_in.shape[-1]
        # One tall MXU matmul for the whole time block (bias folded in).
        x2d = x_in.astype(jnp.float32).reshape(b_blk * t_blk, in_pad)
        gx = (jnp.dot(x2d, wx_refs[l][...],
                      preferred_element_type=jnp.float32)
              + b_refs[l][...]).reshape(b_blk, t_blk, 4 * H)

        wh = wh_refs[l][...]
        h = h_sc[l]
        c = c_sc[l]
        for k in range(t_blk):                   # static unroll over time
            gates = gx[:, k, :] + jnp.dot(h, wh,
                                          preferred_element_type=jnp.float32)
            # PyTorch gate order i, f, g, o; each gate is a 128-lane slab.
            i_g = jax.nn.sigmoid(gates[:, 0 * H:1 * H])
            f_g = jax.nn.sigmoid(gates[:, 1 * H:2 * H])
            g_g = jnp.tanh(gates[:, 2 * H:3 * H])
            o_g = jax.nn.sigmoid(gates[:, 3 * H:4 * H])
            c = f_g * c + i_g * g_g
            h = o_g * jnp.tanh(c)
            if not last_layer:
                xbuf[:, k, :] = h                # stays in VMEM for layer l+1
        h_sc[l] = h
        c_sc[l] = c
        h_last = h

    @pl.when(tb == pl.num_programs(1) - 1)
    def _():
        out_ref[...] = (jnp.dot(h_last, wfc_ref[...],
                                preferred_element_type=jnp.float32)
                        + bfc_ref[...]).astype(out_ref.dtype)


# -----------------------------------------------------------------------------
# Model forward (eval mode)
# -----------------------------------------------------------------------------
@functools.partial(jax.jit, static_argnames=("num_layers", "output_size"))
def lstm_model_forward(packed, x_bsi, h0, c0, *, num_layers, output_size):
    """LSTMModel.forward(x, h0, c0): x (B,S,I) batch-first, h0/c0 (L,B,H)."""
    B, S, I = x_bsi.shape
    H = h0.shape[-1]
    H_pad = _round_up(H, LANE)
    I_pad = _round_up(I, LANE)
    O_pad = _round_up(output_size, LANE)
    B_pad = _round_up(B, SUBLANE)
    b_blk = _pick_batch_block(B_pad)
    t_blk = _pick_time_block(S)

    # Zero-pad to vreg granules; padded lanes/rows stay exactly zero through
    # the recurrence (zero weight rows/cols + zero-initialized padded h0/c0).
    x = jnp.zeros((B_pad, S, I_pad), jnp.float32).at[:B, :, :I].set(x_bsi)
    h0p = jnp.zeros((num_layers, B_pad, H_pad), jnp.float32).at[:, :B, :H].set(h0)
    c0p = jnp.zeros((num_layers, B_pad, H_pad), jnp.float32).at[:, :B, :H].set(c0)

    in_specs = [pl.BlockSpec((b_blk, t_blk, I_pad), lambda b, t: (b, t, 0))]
    operands = [x]
    for l in range(num_layers):
        in_pad = I_pad if l == 0 else H_pad
        in_specs += [
            pl.BlockSpec((in_pad, 4 * H_pad), lambda b, t: (0, 0)),
            pl.BlockSpec((H_pad, 4 * H_pad), lambda b, t: (0, 0)),
            pl.BlockSpec((1, 4 * H_pad), lambda b, t: (0, 0)),
        ]
        operands += [packed[f"wx_{l}"], packed[f"wh_{l}"], packed[f"b_{l}"]]
    in_specs += [
        pl.BlockSpec((num_layers, b_blk, H_pad), lambda b, t: (0, b, 0)),
        pl.BlockSpec((num_layers, b_blk, H_pad), lambda b, t: (0, b, 0)),
        pl.BlockSpec((H_pad, O_pad), lambda b, t: (0, 0)),
        pl.BlockSpec((1, O_pad), lambda b, t: (0, 0)),
    ]
    operands += [h0p, c0p, packed["w_fc"], packed["b_fc"]]

    kernel = functools.partial(_fused_lstm_kernel,
                               num_layers=num_layers, t_blk=t_blk, H=H_pad)
    out_padded = pl.pallas_call(
        kernel,
        out_shape=jax.ShapeDtypeStruct((B_pad, O_pad), jnp.float32),
        grid_spec=pltpu.PrefetchScalarGridSpec(
            num_scalar_prefetch=0,
            grid=(B_pad // b_blk, S // t_blk),
            in_specs=in_specs,
            out_specs=pl.BlockSpec((b_blk, O_pad), lambda b, t: (b, 0)),
            scratch_shapes=[
                pltpu.VMEM((b_blk, t_blk, H_pad), jnp.float32),      # xbuf
                pltpu.VMEM((num_layers, b_blk, H_pad), jnp.float32),  # h carry
                pltpu.VMEM((num_layers, b_blk, H_pad), jnp.float32),  # c carry
            ],
        ),
        compiler_params=pltpu.CompilerParams(
            dimension_semantics=("parallel", "arbitrary")),
    )(*operands)
    return out_padded[:B, :output_size]


# -----------------------------------------------------------------------------
# Parameters: raw PyTorch layout + packed/padded kernel layout
# -----------------------------------------------------------------------------
def init_raw_params(key, input_size, hidden_size, num_layers, output_size):
    """PyTorch-style U(-1/sqrt(H), 1/sqrt(H)) init, PyTorch weight layout."""
    params = {}
    bound = 1.0 / math.sqrt(hidden_size)
    for l in range(num_layers):
        in_dim = input_size if l == 0 else hidden_size
        key, k1, k2, k3, k4 = jax.random.split(key, 5)
        params[f"w_ih_{l}"] = jax.random.uniform(
            k1, (4 * hidden_size, in_dim), jnp.float32, -bound, bound)
        params[f"w_hh_{l}"] = jax.random.uniform(
            k2, (4 * hidden_size, hidden_size), jnp.float32, -bound, bound)
        params[f"b_ih_{l}"] = jax.random.uniform(
            k3, (4 * hidden_size,), jnp.float32, -bound, bound)
        params[f"b_hh_{l}"] = jax.random.uniform(
            k4, (4 * hidden_size,), jnp.float32, -bound, bound)
    key, k1, k2 = jax.random.split(key, 3)
    params["w_fc"] = jax.random.uniform(
        k1, (output_size, hidden_size), jnp.float32, -bound, bound)
    params["b_fc"] = jax.random.uniform(
        k2, (output_size,), jnp.float32, -bound, bound)
    return params


def _pad_gate_cols(wT, H, H_pad):
    """(K, 4H) i,f,g,o -> (K, 4*H_pad): each gate in its own lane-aligned slab."""
    K = wT.shape[0]
    out = jnp.zeros((K, 4 * H_pad), wT.dtype)
    for g in range(4):
        out = out.at[:, g * H_pad:g * H_pad + H].set(wT[:, g * H:(g + 1) * H])
    return out


def pack_params(raw, input_size, hidden_size, num_layers, output_size):
    """Pad/transpose per-layer weights: wx (in_pad, 4H_pad), wh (H_pad, 4H_pad)."""
    H = hidden_size
    H_pad = _round_up(H, LANE)
    I_pad = _round_up(input_size, LANE)
    O_pad = _round_up(output_size, LANE)
    packed = {}
    for l in range(num_layers):
        in_dim = input_size if l == 0 else hidden_size
        in_pad = I_pad if l == 0 else H_pad
        wx = jnp.zeros((in_pad, 4 * H_pad), jnp.float32)
        packed[f"wx_{l}"] = wx.at[:in_dim, :].set(
            _pad_gate_cols(raw[f"w_ih_{l}"].T, H, H_pad))
        wh = jnp.zeros((H_pad, 4 * H_pad), jnp.float32)
        packed[f"wh_{l}"] = wh.at[:H, :].set(
            _pad_gate_cols(raw[f"w_hh_{l}"].T, H, H_pad))
        packed[f"b_{l}"] = _pad_gate_cols(
            (raw[f"b_ih_{l}"] + raw[f"b_hh_{l}"])[None, :], H, H_pad)  # (1, 4H_pad)
    wfcT = jnp.zeros((H_pad, O_pad), jnp.float32)
    packed["w_fc"] = wfcT.at[:H, :output_size].set(raw["w_fc"].T)
    packed["b_fc"] = jnp.zeros((1, O_pad), jnp.float32).at[0, :output_size].set(
        raw["b_fc"])
    return packed


# -----------------------------------------------------------------------------
# Pure-JAX reference for correctness
# -----------------------------------------------------------------------------
def reference_forward(raw, x_bsi, h0, c0, num_layers, hidden_size):
    H = hidden_size
    x = x_bsi
    S = x.shape[1]
    for l in range(num_layers):
        h = h0[l]
        c = c0[l]
        wihT = raw[f"w_ih_{l}"].T
        whhT = raw[f"w_hh_{l}"].T
        b = (raw[f"b_ih_{l}"] + raw[f"b_hh_{l}"])[None, :]
        outs = []
        for t in range(S):
            gates = x[:, t, :] @ wihT + h @ whhT + b
            i_g = jax.nn.sigmoid(gates[:, 0 * H:1 * H])
            f_g = jax.nn.sigmoid(gates[:, 1 * H:2 * H])
            g_g = jnp.tanh(gates[:, 2 * H:3 * H])
            o_g = jax.nn.sigmoid(gates[:, 3 * H:4 * H])
            c = f_g * c + i_g * g_g
            h = o_g * jnp.tanh(c)
            outs.append(h)
        x = jnp.stack(outs, axis=1)
        # TODO(synk): nn.LSTM inter-layer dropout is train-only; eval forward is identity.
    return x[:, -1, :] @ raw["w_fc"].T + raw["b_fc"][None, :]


if __name__ == "__main__":
    batch, seq = 2, 8
    input_size, hidden_size, num_layers, output_size = 8, 32, 2, 4

    key = jax.random.PRNGKey(0)
    kx, kh, kc, kp = jax.random.split(key, 4)

    x = jax.random.normal(kx, (batch, seq, input_size), jnp.float32)
    h0 = jax.random.normal(kh, (num_layers, batch, hidden_size), jnp.float32)
    c0 = jax.random.normal(kc, (num_layers, batch, hidden_size), jnp.float32)

    raw = init_raw_params(kp, input_size, hidden_size, num_layers, output_size)
    packed = pack_params(raw, input_size, hidden_size, num_layers, output_size)

    out = lstm_model_forward(packed, x, h0, c0,
                             num_layers=num_layers, output_size=output_size)
    out = jax.block_until_ready(out)

    ref = reference_forward(raw, x, h0, c0, num_layers, hidden_size)
    assert out.shape == (batch, output_size)
    assert jnp.allclose(out, ref, atol=2e-2, rtol=2e-2)

    print("KERNEL_OK")
</pallas_src>

<mosaic_0001>
module attributes {stable_mosaic.version = 11 : i64} {
  func.func @_fused_lstm_kernel(%arg0: i32, %arg1: i32, %arg2: memref<8x8x128xf32, #tpu.memory_space<vmem>>, %arg3: memref<128x512xf32, #tpu.memory_space<vmem>>, %arg4: memref<128x512xf32, #tpu.memory_space<vmem>>, %arg5: memref<1x512xf32, #tpu.memory_space<vmem>>, %arg6: memref<128x512xf32, #tpu.memory_space<vmem>>, %arg7: memref<128x512xf32, #tpu.memory_space<vmem>>, %arg8: memref<1x512xf32, #tpu.memory_space<vmem>>, %arg9: memref<2x8x128xf32, #tpu.memory_space<vmem>>, %arg10: memref<2x8x128xf32, #tpu.memory_space<vmem>>, %arg11: memref<128x128xf32, #tpu.memory_space<vmem>>, %arg12: memref<1x128xf32, #tpu.memory_space<vmem>>, %arg13: memref<8x128xf32, #tpu.memory_space<vmem>>, %arg14: memref<8x8x128xf32, #tpu.memory_space<vmem>>, %arg15: memref<2x8x128xf32, #tpu.memory_space<vmem>>, %arg16: memref<2x8x128xf32, #tpu.memory_space<vmem>>) attributes {dimension_semantics = [#tpu.dimension_semantics<parallel>, #tpu.dimension_semantics<arbitrary>], iteration_bounds = array<i64: 1, 1>, scalar_prefetch = 0 : i64, scratch_operands = 3 : i64, tpu.core_type = #tpu.core_type<tc>, window_params = [{transform_indices = @transform_0, window_bounds = array<i64: 8, 8, 128>}, {pipeline_mode = #tpu.pipeline_mode<synchronous>, transform_indices = @transform_1, window_bounds = array<i64: 128, 512>}, {pipeline_mode = #tpu.pipeline_mode<synchronous>, transform_indices = @transform_2, window_bounds = array<i64: 128, 512>}, {pipeline_mode = #tpu.pipeline_mode<synchronous>, transform_indices = @transform_3, window_bounds = array<i64: 1, 512>}, {pipeline_mode = #tpu.pipeline_mode<synchronous>, transform_indices = @transform_4, window_bounds = array<i64: 128, 512>}, {pipeline_mode = #tpu.pipeline_mode<synchronous>, transform_indices = @transform_5, window_bounds = array<i64: 128, 512>}, {pipeline_mode = #tpu.pipeline_mode<synchronous>, transform_indices = @transform_6, window_bounds = array<i64: 1, 512>}, {transform_indices = @transform_7, window_bounds = array<i64: 2, 8, 128>}, {transform_indices = @transform_8, window_bounds = array<i64: 2, 8, 128>}, {pipeline_mode = #tpu.pipeline_mode<synchronous>, transform_indices = @transform_9, window_bounds = array<i64: 128, 128>}, {pipeline_mode = #tpu.pipeline_mode<synchronous>, transform_indices = @transform_10, window_bounds = array<i64: 1, 128>}, {transform_indices = @transform_11, window_bounds = array<i64: 8, 128>}]} {
    %c0_i32 = arith.constant 0 : i32
    %0 = arith.cmpi eq, %arg1, %c0_i32 : i32
    %1 = arith.extui %0 : i1 to i32
    %c0_i32_0 = arith.constant 0 : i32
    %2 = arith.cmpi ne, %1, %c0_i32_0 : i32
    scf.if %2 {
      %c0_126 = arith.constant 0 : index
      %c0_127 = arith.constant 0 : index
      %c0_128 = arith.constant 0 : index
      %532 = vector.load %arg9[%c0_126, %c0_127, %c0_128] : memref<2x8x128xf32, #tpu.memory_space<vmem>>, vector<2x8x128xf32>
      %c0_129 = arith.constant 0 : index
      %c0_130 = arith.constant 0 : index
      %c0_131 = arith.constant 0 : index
      %533 = vector.load %arg15[%c0_129, %c0_130, %c0_131] : memref<2x8x128xf32, #tpu.memory_space<vmem>>, vector<2x8x128xf32>
      tpu.vector_store %arg15[%c0_129, %c0_130, %c0_131], %532 {strides = array<i32>} : memref<2x8x128xf32, #tpu.memory_space<vmem>>, vector<2x8x128xf32>,
      %c0_132 = arith.constant 0 : index
      %c0_133 = arith.constant 0 : index
      %c0_134 = arith.constant 0 : index
      %534 = vector.load %arg10[%c0_132, %c0_133, %c0_134] : memref<2x8x128xf32, #tpu.memory_space<vmem>>, vector<2x8x128xf32>
      %c0_135 = arith.constant 0 : index
      %c0_136 = arith.constant 0 : index
      %c0_137 = arith.constant 0 : index
      %535 = vector.load %arg16[%c0_135, %c0_136, %c0_137] : memref<2x8x128xf32, #tpu.memory_space<vmem>>, vector<2x8x128xf32>
      tpu.vector_store %arg16[%c0_135, %c0_136, %c0_137], %534 {strides = array<i32>} : memref<2x8x128xf32, #tpu.memory_space<vmem>>, vector<2x8x128xf32>,
    } else {
    }
    %c0 = arith.constant 0 : index
    %c0_1 = arith.constant 0 : index
    %c0_2 = arith.constant 0 : index
    %3 = vector.load %arg2[%c0, %c0_1, %c0_2] : memref<8x8x128xf32, #tpu.memory_space<vmem>>, vector<8x8x128xf32>
    %4 = vector.shape_cast %3 : vector<8x8x128xf32> to vector<64x128xf32>
    %c0_3 = arith.constant 0 : index
    %c0_4 = arith.constant 0 : index
    %5 = vector.load %arg3[%c0_3, %c0_4] : memref<128x512xf32, #tpu.memory_space<vmem>>, vector<128x512xf32>
    %cst = arith.constant dense<0.000000e+00> : vector<64x512xf32>
    %6 = tpu.matmul %4, %5, %cst {dimension_numbers = #tpu.dot_dimension_numbers<[1], [0], [0], [1], [0, 0, 1, 1], [], []>} : vector<64x128xf32>, vector<128x512xf32>, vector<64x512xf32> -> vector<64x512xf32>
    %c0_5 = arith.constant 0 : index
    %c0_6 = arith.constant 0 : index
    %7 = vector.load %arg5[%c0_5, %c0_6] : memref<1x512xf32, #tpu.memory_space<vmem>>, vector<1x512xf32>
    %8 = vector.broadcast %7 : vector<1x512xf32> to vector<64x512xf32>
    %9 = arith.addf %6, %8 : vector<64x512xf32>
    %10 = vector.shape_cast %9 : vector<64x512xf32> to vector<8x8x512xf32>
    %c0_7 = arith.constant 0 : index
    %c0_8 = arith.constant 0 : index
    %11 = vector.load %arg4[%c0_7, %c0_8] : memref<128x512xf32, #tpu.memory_space<vmem>>, vector<128x512xf32>
    %c0_9 = arith.constant 0 : index
    %c0_10 = arith.constant 0 : index
    %c0_11 = arith.constant 0 : index
    %12 = vector.load %arg15[%c0_9, %c0_10, %c0_11] : memref<2x8x128xf32, #tpu.memory_space<vmem>>, vector<1x8x128xf32>
    %13 = vector.shape_cast %12 : vector<1x8x128xf32> to vector<8x128xf32>
    %c0_12 = arith.constant 0 : index
    %c0_13 = arith.constant 0 : index
    %c0_14 = arith.constant 0 : index
    %14 = vector.load %arg16[%c0_12, %c0_13, %c0_14] : memref<2x8x128xf32, #tpu.memory_space<vmem>>, vector<1x8x128xf32>
    %15 = vector.shape_cast %14 : vector<1x8x128xf32> to vector<8x128xf32>
    %16 = vector.extract_strided_slice %10 {offsets = [0, 0, 0], sizes = [8, 1, 512], strides = [1, 1, 1]} : vector<8x8x512xf32> to vector<8x1x512xf32>
    %17 = vector.shape_cast %16 : vector<8x1x512xf32> to vector<8x512xf32>
    %cst_15 = arith.constant dense<0.000000e+00> : vector<8x512xf32>
    %18 = tpu.matmul %13, %11, %cst_15 {dimension_numbers = #tpu.dot_dimension_numbers<[1], [0], [0], [1], [0, 0, 1, 1], [], []>} : vector<8x128xf32>, vector<128x512xf32>, vector<8x512xf32> -> vector<8x512xf32>
    %19 = arith.addf %17, %18 : vector<8x512xf32>
    %20 = vector.extract_strided_slice %19 {offsets = [0, 0], sizes = [8, 128], strides = [1, 1]} : vector<8x512xf32> to vector<8x128xf32>
    %21 = arith.negf %20 : vector<8x128xf32>
    %22 = math.exp %21 : vector<8x128xf32>
    %cst_16 = arith.constant 1.000000e+00 : f32
    %23 = vector.broadcast %cst_16 : f32 to vector<8x128xf32>
    %24 = arith.addf %23, %22 : vector<8x128xf32>
    %25 = arith.divf %23, %24 : vector<8x128xf32>
    %26 = vector.extract_strided_slice %19 {offsets = [0, 128], sizes = [8, 128], strides = [1, 1]} : vector<8x512xf32> to vector<8x128xf32>
    %27 = arith.negf %26 : vector<8x128xf32>
    %28 = math.exp %27 : vector<8x128xf32>
    %cst_17 = arith.constant 1.000000e+00 : f32
    %29 = vector.broadcast %cst_17 : f32 to vector<8x128xf32>
    %30 = arith.addf %29, %28 : vector<8x128xf32>
    %31 = arith.divf %29, %30 : vector<8x128xf32>
    %32 = vector.extract_strided_slice %19 {offsets = [0, 256], sizes = [8, 128], strides = [1, 1]} : vector<8x512xf32> to vector<8x128xf32>
    %33 = math.tanh %32 : vector<8x128xf32>
    %34 = vector.extract_strided_slice %19 {offsets = [0, 384], sizes = [8, 128], strides = [1, 1]} : vector<8x512xf32> to vector<8x128xf32>
    %35 = arith.negf %34 : vector<8x128xf32>
    %36 = math.exp %35 : vector<8x128xf32>
    %cst_18 = arith.constant 1.000000e+00 : f32
    %37 = vector.broadcast %cst_18 : f32 to vector<8x128xf32>
    %38 = arith.addf %37, %36 : vector<8x128xf32>
    %39 = arith.divf %37, %38 : vector<8x128xf32>
    %40 = arith.mulf %31, %15 : vector<8x128xf32>
    %41 = arith.mulf %25, %33 : vector<8x128xf32>
    %42 = arith.addf %40, %41 : vector<8x128xf32>
    %43 = math.tanh %42 : vector<8x128xf32>
    %44 = arith.mulf %39, %43 : vector<8x128xf32>
    %c0_19 = arith.constant 0 : index
    %c0_20 = arith.constant 0 : index
    %c0_21 = arith.constant 0 : index
    %45 = vector.load %arg14[%c0_19, %c0_20, %c0_21] : memref<8x8x128xf32, #tpu.memory_space<vmem>>, vector<8x1x128xf32>
    %46 = vector.shape_cast %45 : vector<8x1x128xf32> to vector<8x128xf32>
    %47 = vector.shape_cast %44 : vector<8x128xf32> to vector<8x1x128xf32>
    tpu.vector_store %arg14[%c0_19, %c0_20, %c0_21], %47 {strides = array<i32>} : memref<8x8x128xf32, #tpu.memory_space<vmem>>, vector<8x1x128xf32>,
    %48 = vector.extract_strided_slice %10 {offsets = [0, 1, 0], sizes = [8, 1, 512], strides = [1, 1, 1]} : vector<8x8x512xf32> to vector<8x1x512xf32>
    %49 = vector.shape_cast %48 : vector<8x1x512xf32> to vector<8x512xf32>
    %cst_22 = arith.constant dense<0.000000e+00> : vector<8x512xf32>
    %50 = tpu.matmul %44, %11, %cst_22 {dimension_numbers = #tpu.dot_dimension_numbers<[1], [0], [0], [1], [0, 0, 1, 1], [], []>} : vector<8x128xf32>, vector<128x512xf32>, vector<8x512xf32> -> vector<8x512xf32>
    %51 = arith.addf %49, %50 : vector<8x512xf32>
    %52 = vector.extract_strided_slice %51 {offsets = [0, 0], sizes = [8, 128], strides = [1, 1]} : vector<8x512xf32> to vector<8x128xf32>
    %53 = arith.negf %52 : vector<8x128xf32>
    %54 = math.exp %53 : vector<8x128xf32>
    %cst_23 = arith.constant 1.000000e+00 : f32
    %55 = vector.broadcast %cst_23 : f32 to vector<8x128xf32>
    %56 = arith.addf %55, %54 : vector<8x128xf32>
    %57 = arith.divf %55, %56 : vector<8x128xf32>
    %58 = vector.extract_strided_slice %51 {offsets = [0, 128], sizes = [8, 128], strides = [1, 1]} : vector<8x512xf32> to vector<8x128xf32>
    %59 = arith.negf %58 : vector<8x128xf32>
    %60 = math.exp %59 : vector<8x128xf32>
    %cst_24 = arith.constant 1.000000e+00 : f32
    %61 = vector.broadcast %cst_24 : f32 to vector<8x128xf32>
    %62 = arith.addf %61, %60 : vector<8x128xf32>
    %63 = arith.divf %61, %62 : vector<8x128xf32>
    %64 = vector.extract_strided_slice %51 {offsets = [0, 256], sizes = [8, 128], strides = [1, 1]} : vector<8x512xf32> to vector<8x128xf32>
    %65 = math.tanh %64 : vector<8x128xf32>
    %66 = vector.extract_strided_slice %51 {offsets = [0, 384], sizes = [8, 128], strides = [1, 1]} : vector<8x512xf32> to vector<8x128xf32>
    %67 = arith.negf %66 : vector<8x128xf32>
    %68 = math.exp %67 : vector<8x128xf32>
    %cst_25 = arith.constant 1.000000e+00 : f32
    %69 = vector.broadcast %cst_25 : f32 to vector<8x128xf32>
    %70 = arith.addf %69, %68 : vector<8x128xf32>
    %71 = arith.divf %69, %70 : vector<8x128xf32>
    %72 = arith.mulf %63, %42 : vector<8x128xf32>
    %73 = arith.mulf %57, %65 : vector<8x128xf32>
    %74 = arith.addf %72, %73 : vector<8x128xf32>
    %75 = math.tanh %74 : vector<8x128xf32>
    %76 = arith.mulf %71, %75 : vector<8x128xf32>
    %c0_26 = arith.constant 0 : index
    %c1 = arith.constant 1 : index
    %c0_27 = arith.constant 0 : index
    %77 = vector.load %arg14[%c0_26, %c1, %c0_27] : memref<8x8x128xf32, #tpu.memory_space<vmem>>, vector<8x1x128xf32>
    %78 = vector.shape_cast %77 : vector<8x1x128xf32> to vector<8x128xf32>
    %79 = vector.shape_cast %76 : vector<8x128xf32> to vector<8x1x128xf32>
    tpu.vector_store %arg14[%c0_26, %c1, %c0_27], %79 {strides = array<i32>} : memref<8x8x128xf32, #tpu.memory_space<vmem>>, vector<8x1x128xf32>,
    %80 = vector.extract_strided_slice %10 {offsets = [0, 2, 0], sizes = [8, 1, 512], strides = [1, 1, 1]} : vector<8x8x512xf32> to vector<8x1x512xf32>
    %81 = vector.shape_cast %80 : vector<8x1x512xf32> to vector<8x512xf32>
    %cst_28 = arith.constant dense<0.000000e+00> : vector<8x512xf32>
    %82 = tpu.matmul %76, %11, %cst_28 {dimension_numbers = #tpu.dot_dimension_numbers<[1], [0], [0], [1], [0, 0, 1, 1], [], []>} : vector<8x128xf32>, vector<128x512xf32>, vector<8x512xf32> -> vector<8x512xf32>
    %83 = arith.addf %81, %82 : vector<8x512xf32>
    %84 = vector.extract_strided_slice %83 {offsets = [0, 0], sizes = [8, 128], strides = [1, 1]} : vector<8x512xf32> to vector<8x128xf32>
    %85 = arith.negf %84 : vector<8x128xf32>
    %86 = math.exp %85 : vector<8x128xf32>
    %cst_29 = arith.constant 1.000000e+00 : f32
    %87 = vector.broadcast %cst_29 : f32 to vector<8x128xf32>
    %88 = arith.addf %87, %86 : vector<8x128xf32>
    %89 = arith.divf %87, %88 : vector<8x128xf32>
    %90 = vector.extract_strided_slice %83 {offsets = [0, 128], sizes = [8, 128], strides = [1, 1]} : vector<8x512xf32> to vector<8x128xf32>
    %91 = arith.negf %90 : vector<8x128xf32>
    %92 = math.exp %91 : vector<8x128xf32>
    %cst_30 = arith.constant 1.000000e+00 : f32
    %93 = vector.broadcast %cst_30 : f32 to vector<8x128xf32>
    %94 = arith.addf %93, %92 : vector<8x128xf32>
    %95 = arith.divf %93, %94 : vector<8x128xf32>
    %96 = vector.extract_strided_slice %83 {offsets = [0, 256], sizes = [8, 128], strides = [1, 1]} : vector<8x512xf32> to vector<8x128xf32>
    %97 = math.tanh %96 : vector<8x128xf32>
    %98 = vector.extract_strided_slice %83 {offsets = [0, 384], sizes = [8, 128], strides = [1, 1]} : vector<8x512xf32> to vector<8x128xf32>
    %99 = arith.negf %98 : vector<8x128xf32>
    %100 = math.exp %99 : vector<8x128xf32>
    %cst_31 = arith.constant 1.000000e+00 : f32
    %101 = vector.broadcast %cst_31 : f32 to vector<8x128xf32>
    %102 = arith.addf %101, %100 : vector<8x128xf32>
    %103 = arith.divf %101, %102 : vector<8x128xf32>
    %104 = arith.mulf %95, %74 : vector<8x128xf32>
    %105 = arith.mulf %89, %97 : vector<8x128xf32>
    %106 = arith.addf %104, %105 : vector<8x128xf32>
    %107 = math.tanh %106 : vector<8x128xf32>
    %108 = arith.mulf %103, %107 : vector<8x128xf32>
    %c0_32 = arith.constant 0 : index
    %c2 = arith.constant 2 : index
    %c0_33 = arith.constant 0 : index
    %109 = vector.load %arg14[%c0_32, %c2, %c0_33] : memref<8x8x128xf32, #tpu.memory_space<vmem>>, vector<8x1x128xf32>
    %110 = vector.shape_cast %109 : vector<8x1x128xf32> to vector<8x128xf32>
    %111 = vector.shape_cast %108 : vector<8x128xf32> to vector<8x1x128xf32>
    tpu.vector_store %arg14[%c0_32, %c2, %c0_33], %111 {strides = array<i32>} : memref<8x8x128xf32, #tpu.memory_space<vmem>>, vector<8x1x128xf32>,
    %112 = vector.extract_strided_slice %10 {offsets = [0, 3, 0], sizes = [8, 1, 512], strides = [1, 1, 1]} : vector<8x8x512xf32> to vector<8x1x512xf32>
    %113 = vector.shape_cast %112 : vector<8x1x512xf32> to vector<8x512xf32>
    %cst_34 = arith.constant dense<0.000000e+00> : vector<8x512xf32>
    %114 = tpu.matmul %108, %11, %cst_34 {dimension_numbers = #tpu.dot_dimension_numbers<[1], [0], [0], [1], [0, 0, 1, 1], [], []>} : vector<8x128xf32>, vector<128x512xf32>, vector<8x512xf32> -> vector<8x512xf32>
    %115 = arith.addf %113, %114 : vector<8x512xf32>
    %116 = vector.extract_strided_slice %115 {offsets = [0, 0], sizes = [8, 128], strides = [1, 1]} : vector<8x512xf32> to vector<8x128xf32>
    %117 = arith.negf %116 : vector<8x128xf32>
    %118 = math.exp %117 : vector<8x128xf32>
    %cst_35 = arith.constant 1.000000e+00 : f32
    %119 = vector.broadcast %cst_35 : f32 to vector<8x128xf32>
    %120 = arith.addf %119, %118 : vector<8x128xf32>
    %121 = arith.divf %119, %120 : vector<8x128xf32>
    %122 = vector.extract_strided_slice %115 {offsets = [0, 128], sizes = [8, 128], strides = [1, 1]} : vector<8x512xf32> to vector<8x128xf32>
    %123 = arith.negf %122 : vector<8x128xf32>
    %124 = math.exp %123 : vector<8x128xf32>
    %cst_36 = arith.constant 1.000000e+00 : f32
    %125 = vector.broadcast %cst_36 : f32 to vector<8x128xf32>
    %126 = arith.addf %125, %124 : vector<8x128xf32>
    %127 = arith.divf %125, %126 : vector<8x128xf32>
    %128 = vector.extract_strided_slice %115 {offsets = [0, 256], sizes = [8, 128], strides = [1, 1]} : vector<8x512xf32> to vector<8x128xf32>
    %129 = math.tanh %128 : vector<8x128xf32>
    %130 = vector.extract_strided_slice %115 {offsets = [0, 384], sizes = [8, 128], strides = [1, 1]} : vector<8x512xf32> to vector<8x128xf32>
    %131 = arith.negf %130 : vector<8x128xf32>
    %132 = math.exp %131 : vector<8x128xf32>
    %cst_37 = arith.constant 1.000000e+00 : f32
    %133 = vector.broadcast %cst_37 : f32 to vector<8x128xf32>
    %134 = arith.addf %133, %132 : vector<8x128xf32>
    %135 = arith.divf %133, %134 : vector<8x128xf32>
    %136 = arith.mulf %127, %106 : vector<8x128xf32>
    %137 = arith.mulf %121, %129 : vector<8x128xf32>
    %138 = arith.addf %136, %137 : vector<8x128xf32>
    %139 = math.tanh %138 : vector<8x128xf32>
    %140 = arith.mulf %135, %139 : vector<8x128xf32>
    %c0_38 = arith.constant 0 : index
    %c3 = arith.constant 3 : index
    %c0_39 = arith.constant 0 : index
    %141 = vector.load %arg14[%c0_38, %c3, %c0_39] : memref<8x8x128xf32, #tpu.memory_space<vmem>>, vector<8x1x128xf32>
    %142 = vector.shape_cast %141 : vector<8x1x128xf32> to vector<8x128xf32>
    %143 = vector.shape_cast %140 : vector<8x128xf32> to vector<8x1x128xf32>
    tpu.vector_store %arg14[%c0_38, %c3, %c0_39], %143 {strides = array<i32>} : memref<8x8x128xf32, #tpu.memory_space<vmem>>, vector<8x1x128xf32>,
    %144 = vector.extract_strided_slice %10 {offsets = [0, 4, 0], sizes = [8, 1, 512], strides = [1, 1, 1]} : vector<8x8x512xf32> to vector<8x1x512xf32>
    %145 = vector.shape_cast %144 : vector<8x1x512xf32> to vector<8x512xf32>
    %cst_40 = arith.constant dense<0.000000e+00> : vector<8x512xf32>
    %146 = tpu.matmul %140, %11, %cst_40 {dimension_numbers = #tpu.dot_dimension_numbers<[1], [0], [0], [1], [0, 0, 1, 1], [], []>} : vector<8x128xf32>, vector<128x512xf32>, vector<8x512xf32> -> vector<8x512xf32>
    %147 = arith.addf %145, %146 : vector<8x512xf32>
    %148 = vector.extract_strided_slice %147 {offsets = [0, 0], sizes = [8, 128], strides = [1, 1]} : vector<8x512xf32> to vector<8x128xf32>
    %149 = arith.negf %148 : vector<8x128xf32>
    %150 = math.exp %149 : vector<8x128xf32>
    %cst_41 = arith.constant 1.000000e+00 : f32
    %151 = vector.broadcast %cst_41 : f32 to vector<8x128xf32>
    %152 = arith.addf %151, %150 : vector<8x128xf32>
    %153 = arith.divf %151, %152 : vector<8x128xf32>
    %154 = vector.extract_strided_slice %147 {offsets = [0, 128], sizes = [8, 128], strides = [1, 1]} : vector<8x512xf32> to vector<8x128xf32>
    %155 = arith.negf %154 : vector<8x128xf32>
    %156 = math.exp %155 : vector<8x128xf32>
    %cst_42 = arith.constant 1.000000e+00 : f32
    %157 = vector.broadcast %cst_42 : f32 to vector<8x128xf32>
    %158 = arith.addf %157, %156 : vector<8x128xf32>
    %159 = arith.divf %157, %158 : vector<8x128xf32>
    %160 = vector.extract_strided_slice %147 {offsets = [0, 256], sizes = [8, 128], strides = [1, 1]} : vector<8x512xf32> to vector<8x128xf32>
    %161 = math.tanh %160 : vector<8x128xf32>
    %162 = vector.extract_strided_slice %147 {offsets = [0, 384], sizes = [8, 128], strides = [1, 1]} : vector<8x512xf32> to vector<8x128xf32>
    %163 = arith.negf %162 : vector<8x128xf32>
    %164 = math.exp %163 : vector<8x128xf32>
    %cst_43 = arith.constant 1.000000e+00 : f32
    %165 = vector.broadcast %cst_43 : f32 to vector<8x128xf32>
    %166 = arith.addf %165, %164 : vector<8x128xf32>
    %167 = arith.divf %165, %166 : vector<8x128xf32>
    %168 = arith.mulf %159, %138 : vector<8x128xf32>
    %169 = arith.mulf %153, %161 : vector<8x128xf32>
    %170 = arith.addf %168, %169 : vector<8x128xf32>
    %171 = math.tanh %170 : vector<8x128xf32>
    %172 = arith.mulf %167, %171 : vector<8x128xf32>
    %c0_44 = arith.constant 0 : index
    %c4 = arith.constant 4 : index
    %c0_45 = arith.constant 0 : index
    %173 = vector.load %arg14[%c0_44, %c4, %c0_45] : memref<8x8x128xf32, #tpu.memory_space<vmem>>, vector<8x1x128xf32>
    %174 = vector.shape_cast %173 : vector<8x1x128xf32> to vector<8x128xf32>
    %175 = vector.shape_cast %172 : vector<8x128xf32> to vector<8x1x128xf32>
    tpu.vector_store %arg14[%c0_44, %c4, %c0_45], %175 {strides = array<i32>} : memref<8x8x128xf32, #tpu.memory_space<vmem>>, vector<8x1x128xf32>,
    %176 = vector.extract_strided_slice %10 {offsets = [0, 5, 0], sizes = [8, 1, 512], strides = [1, 1, 1]} : vector<8x8x512xf32> to vector<8x1x512xf32>
    %177 = vector.shape_cast %176 : vector<8x1x512xf32> to vector<8x512xf32>
    %cst_46 = arith.constant dense<0.000000e+00> : vector<8x512xf32>
    %178 = tpu.matmul %172, %11, %cst_46 {dimension_numbers = #tpu.dot_dimension_numbers<[1], [0], [0], [1], [0, 0, 1, 1], [], []>} : vector<8x128xf32>, vector<128x512xf32>, vector<8x512xf32> -> vector<8x512xf32>
    %179 = arith.addf %177, %178 : vector<8x512xf32>
    %180 = vector.extract_strided_slice %179 {offsets = [0, 0], sizes = [8, 128], strides = [1, 1]} : vector<8x512xf32> to vector<8x128xf32>
    %181 = arith.negf %180 : vector<8x128xf32>
    %182 = math.exp %181 : vector<8x128xf32>
    %cst_47 = arith.constant 1.000000e+00 : f32
    %183 = vector.broadcast %cst_47 : f32 to vector<8x128xf32>
    %184 = arith.addf %183, %182 : vector<8x128xf32>
    %185 = arith.divf %183, %184 : vector<8x128xf32>
    %186 = vector.extract_strided_slice %179 {offsets = [0, 128], sizes = [8, 128], strides = [1, 1]} : vector<8x512xf32> to vector<8x128xf32>
    %187 = arith.negf %186 : vector<8x128xf32>
    %188 = math.exp %187 : vector<8x128xf32>
    %cst_48 = arith.constant 1.000000e+00 : f32
    %189 = vector.broadcast %cst_48 : f32 to vector<8x128xf32>
    %190 = arith.addf %189, %188 : vector<8x128xf32>
    %191 = arith.divf %189, %190 : vector<8x128xf32>
    %192 = vector.extract_strided_slice %179 {offsets = [0, 256], sizes = [8, 128], strides = [1, 1]} : vector<8x512xf32> to vector<8x128xf32>
    %193 = math.tanh %192 : vector<8x128xf32>
    %194 = vector.extract_strided_slice %179 {offsets = [0, 384], sizes = [8, 128], strides = [1, 1]} : vector<8x512xf32> to vector<8x128xf32>
    %195 = arith.negf %194 : vector<8x128xf32>
    %196 = math.exp %195 : vector<8x128xf32>
    %cst_49 = arith.constant 1.000000e+00 : f32
    %197 = vector.broadcast %cst_49 : f32 to vector<8x128xf32>
    %198 = arith.addf %197, %196 : vector<8x128xf32>
    %199 = arith.divf %197, %198 : vector<8x128xf32>
    %200 = arith.mulf %191, %170 : vector<8x128xf32>
    %201 = arith.mulf %185, %193 : vector<8x128xf32>
    %202 = arith.addf %200, %201 : vector<8x128xf32>
    %203 = math.tanh %202 : vector<8x128xf32>
    %204 = arith.mulf %199, %203 : vector<8x128xf32>
    %c0_50 = arith.constant 0 : index
    %c5 = arith.constant 5 : index
    %c0_51 = arith.constant 0 : index
    %205 = vector.load %arg14[%c0_50, %c5, %c0_51] : memref<8x8x128xf32, #tpu.memory_space<vmem>>, vector<8x1x128xf32>
    %206 = vector.shape_cast %205 : vector<8x1x128xf32> to vector<8x128xf32>
    %207 = vector.shape_cast %204 : vector<8x128xf32> to vector<8x1x128xf32>
    tpu.vector_store %arg14[%c0_50, %c5, %c0_51], %207 {strides = array<i32>} : memref<8x8x128xf32, #tpu.memory_space<vmem>>, vector<8x1x128xf32>,
    %208 = vector.extract_strided_slice %10 {offsets = [0, 6, 0], sizes = [8, 1, 512], strides = [1, 1, 1]} : vector<8x8x512xf32> to vector<8x1x512xf32>
    %209 = vector.shape_cast %208 : vector<8x1x512xf32> to vector<8x512xf32>
    %cst_52 = arith.constant dense<0.000000e+00> : vector<8x512xf32>
    %210 = tpu.matmul %204, %11, %cst_52 {dimension_numbers = #tpu.dot_dimension_numbers<[1], [0], [0], [1], [0, 0, 1, 1], [], []>} : vector<8x128xf32>, vector<128x512xf32>, vector<8x512xf32> -> vector<8x512xf32>
    %211 = arith.addf %209, %210 : vector<8x512xf32>
    %212 = vector.extract_strided_slice %211 {offsets = [0, 0], sizes = [8, 128], strides = [1, 1]} : vector<8x512xf32> to vector<8x128xf32>
    %213 = arith.negf %212 : vector<8x128xf32>
    %214 = math.exp %213 : vector<8x128xf32>
    %cst_53 = arith.constant 1.000000e+00 : f32
    %215 = vector.broadcast %cst_53 : f32 to vector<8x128xf32>
    %216 = arith.addf %215, %214 : vector<8x128xf32>
    %217 = arith.divf %215, %216 : vector<8x128xf32>
    %218 = vector.extract_strided_slice %211 {offsets = [0, 128], sizes = [8, 128], strides = [1, 1]} : vector<8x512xf32> to vector<8x128xf32>
    %219 = arith.negf %218 : vector<8x128xf32>
    %220 = math.exp %219 : vector<8x128xf32>
    %cst_54 = arith.constant 1.000000e+00 : f32
    %221 = vector.broadcast %cst_54 : f32 to vector<8x128xf32>
    %222 = arith.addf %221, %220 : vector<8x128xf32>
    %223 = arith.divf %221, %222 : vector<8x128xf32>
    %224 = vector.extract_strided_slice %211 {offsets = [0, 256], sizes = [8, 128], strides = [1, 1]} : vector<8x512xf32> to vector<8x128xf32>
    %225 = math.tanh %224 : vector<8x128xf32>
    %226 = vector.extract_strided_slice %211 {offsets = [0, 384], sizes = [8, 128], strides = [1, 1]} : vector<8x512xf32> to vector<8x128xf32>
    %227 = arith.negf %226 : vector<8x128xf32>
    %228 = math.exp %227 : vector<8x128xf32>
    %cst_55 = arith.constant 1.000000e+00 : f32
    %229 = vector.broadcast %cst_55 : f32 to vector<8x128xf32>
    %230 = arith.addf %229, %228 : vector<8x128xf32>
    %231 = arith.divf %229, %230 : vector<8x128xf32>
    %232 = arith.mulf %223, %202 : vector<8x128xf32>
    %233 = arith.mulf %217, %225 : vector<8x128xf32>
    %234 = arith.addf %232, %233 : vector<8x128xf32>
    %235 = math.tanh %234 : vector<8x128xf32>
    %236 = arith.mulf %231, %235 : vector<8x128xf32>
    %c0_56 = arith.constant 0 : index
    %c6 = arith.constant 6 : index
    %c0_57 = arith.constant 0 : index
    %237 = vector.load %arg14[%c0_56, %c6, %c0_57] : memref<8x8x128xf32, #tpu.memory_space<vmem>>, vector<8x1x128xf32>
    %238 = vector.shape_cast %237 : vector<8x1x128xf32> to vector<8x128xf32>
    %239 = vector.shape_cast %236 : vector<8x128xf32> to vector<8x1x128xf32>
    tpu.vector_store %arg14[%c0_56, %c6, %c0_57], %239 {strides = array<i32>} : memref<8x8x128xf32, #tpu.memory_space<vmem>>, vector<8x1x128xf32>,
    %240 = vector.extract_strided_slice %10 {offsets = [0, 7, 0], sizes = [8, 1, 512], strides = [1, 1, 1]} : vector<8x8x512xf32> to vector<8x1x512xf32>
    %241 = vector.shape_cast %240 : vector<8x1x512xf32> to vector<8x512xf32>
    %cst_58 = arith.constant dense<0.000000e+00> : vector<8x512xf32>
    %242 = tpu.matmul %236, %11, %cst_58 {dimension_numbers = #tpu.dot_dimension_numbers<[1], [0], [0], [1], [0, 0, 1, 1], [], []>} : vector<8x128xf32>, vector<128x512xf32>, vector<8x512xf32> -> vector<8x512xf32>
    %243 = arith.addf %241, %242 : vector<8x512xf32>
    %244 = vector.extract_strided_slice %243 {offsets = [0, 0], sizes = [8, 128], strides = [1, 1]} : vector<8x512xf32> to vector<8x128xf32>
    %245 = arith.negf %244 : vector<8x128xf32>
    %246 = math.exp %245 : vector<8x128xf32>
    %cst_59 = arith.constant 1.000000e+00 : f32
    %247 = vector.broadcast %cst_59 : f32 to vector<8x128xf32>
    %248 = arith.addf %247, %246 : vector<8x128xf32>
    %249 = arith.divf %247, %248 : vector<8x128xf32>
    %250 = vector.extract_strided_slice %243 {offsets = [0, 128], sizes = [8, 128], strides = [1, 1]} : vector<8x512xf32> to vector<8x128xf32>
    %251 = arith.negf %250 : vector<8x128xf32>
    %252 = math.exp %251 : vector<8x128xf32>
    %cst_60 = arith.constant 1.000000e+00 : f32
    %253 = vector.broadcast %cst_60 : f32 to vector<8x128xf32>
    %254 = arith.addf %253, %252 : vector<8x128xf32>
    %255 = arith.divf %253, %254 : vector<8x128xf32>
    %256 = vector.extract_strided_slice %243 {offsets = [0, 256], sizes = [8, 128], strides = [1, 1]} : vector<8x512xf32> to vector<8x128xf32>
    %257 = math.tanh %256 : vector<8x128xf32>
    %258 = vector.extract_strided_slice %243 {offsets = [0, 384], sizes = [8, 128], strides = [1, 1]} : vector<8x512xf32> to vector<8x128xf32>
    %259 = arith.negf %258 : vector<8x128xf32>
    %260 = math.exp %259 : vector<8x128xf32>
    %cst_61 = arith.constant 1.000000e+00 : f32
    %261 = vector.broadcast %cst_61 : f32 to vector<8x128xf32>
    %262 = arith.addf %261, %260 : vector<8x128xf32>
    %263 = arith.divf %261, %262 : vector<8x128xf32>
    %264 = arith.mulf %255, %234 : vector<8x128xf32>
    %265 = arith.mulf %249, %257 : vector<8x128xf32>
    %266 = arith.addf %264, %265 : vector<8x128xf32>
    %267 = math.tanh %266 : vector<8x128xf32>
    %268 = arith.mulf %263, %267 : vector<8x128xf32>
    %c0_62 = arith.constant 0 : index
    %c7 = arith.constant 7 : index
    %c0_63 = arith.constant 0 : index
    %269 = vector.load %arg14[%c0_62, %c7, %c0_63] : memref<8x8x128xf32, #tpu.memory_space<vmem>>, vector<8x1x128xf32>
    %270 = vector.shape_cast %269 : vector<8x1x128xf32> to vector<8x128xf32>
    %271 = vector.shape_cast %268 : vector<8x128xf32> to vector<8x1x128xf32>
    tpu.vector_store %arg14[%c0_62, %c7, %c0_63], %271 {strides = array<i32>} : memref<8x8x128xf32, #tpu.memory_space<vmem>>, vector<8x1x128xf32>,
    %c0_64 = arith.constant 0 : index
    %c0_65 = arith.constant 0 : index
    %c0_66 = arith.constant 0 : index
    %272 = vector.load %arg15[%c0_64, %c0_65, %c0_66] : memref<2x8x128xf32, #tpu.memory_space<vmem>>, vector<1x8x128xf32>
    %273 = vector.shape_cast %272 : vector<1x8x128xf32> to vector<8x128xf32>
    %274 = vector.shape_cast %268 : vector<8x128xf32> to vector<1x8x128xf32>
    tpu.vector_store %arg15[%c0_64, %c0_65, %c0_66], %274 {strides = array<i32>} : memref<2x8x128xf32, #tpu.memory_space<vmem>>, vector<1x8x128xf32>,
    %c0_67 = arith.constant 0 : index
    %c0_68 = arith.constant 0 : index
    %c0_69 = arith.constant 0 : index
    %275 = vector.load %arg16[%c0_67, %c0_68, %c0_69] : memref<2x8x128xf32, #tpu.memory_space<vmem>>, vector<1x8x128xf32>
    %276 = vector.shape_cast %275 : vector<1x8x128xf32> to vector<8x128xf32>
    %277 = vector.shape_cast %266 : vector<8x128xf32> to vector<1x8x128xf32>
    tpu.vector_store %arg16[%c0_67, %c0_68, %c0_69], %277 {strides = array<i32>} : memref<2x8x128xf32, #tpu.memory_space<vmem>>, vector<1x8x128xf32>,
    %c0_70 = arith.constant 0 : index
    %c0_71 = arith.constant 0 : index
    %c0_72 = arith.constant 0 : index
    %278 = vector.load %arg14[%c0_70, %c0_71, %c0_72] : memref<8x8x128xf32, #tpu.memory_space<vmem>>, vector<8x8x128xf32>
    %279 = vector.shape_cast %278 : vector<8x8x128xf32> to vector<64x128xf32>
    %c0_73 = arith.constant 0 : index
    %c0_74 = arith.constant 0 : index
    %280 = vector.load %arg6[%c0_73, %c0_74] : memref<128x512xf32, #tpu.memory_space<vmem>>, vector<128x512xf32>
    %cst_75 = arith.constant dense<0.000000e+00> : vector<64x512xf32>
    %281 = tpu.matmul %279, %280, %cst_75 {dimension_numbers = #tpu.dot_dimension_numbers<[1], [0], [0], [1], [0, 0, 1, 1], [], []>} : vector<64x128xf32>, vector<128x512xf32>, vector<64x512xf32> -> vector<64x512xf32>
    %c0_76 = arith.constant 0 : index
    %c0_77 = arith.constant 0 : index
    %282 = vector.load %arg8[%c0_76, %c0_77] : memref<1x512xf32, #tpu.memory_space<vmem>>, vector<1x512xf32>
    %283 = vector.broadcast %282 : vector<1x512xf32> to vector<64x512xf32>
    %284 = arith.addf %281, %283 : vector<64x512xf32>
    %285 = vector.shape_cast %284 : vector<64x512xf32> to vector<8x8x512xf32>
    %c0_78 = arith.constant 0 : index
    %c0_79 = arith.constant 0 : index
    %286 = vector.load %arg7[%c0_78, %c0_79] : memref<128x512xf32, #tpu.memory_space<vmem>>, vector<128x512xf32>
    %c1_80 = arith.constant 1 : index
    %c0_81 = arith.constant 0 : index
    %c0_82 = arith.constant 0 : index
    %287 = vector.load %arg15[%c1_80, %c0_81, %c0_82] : memref<2x8x128xf32, #tpu.memory_space<vmem>>, vector<1x8x128xf32>
    %288 = vector.shape_cast %287 : vector<1x8x128xf32> to vector<8x128xf32>
    %c1_83 = arith.constant 1 : index
    %c0_84 = arith.constant 0 : index
    %c0_85 = arith.constant 0 : index
    %289 = vector.load %arg16[%c1_83, %c0_84, %c0_85] : memref<2x8x128xf32, #tpu.memory_space<vmem>>, vector<1x8x128xf32>
    %290 = vector.shape_cast %289 : vector<1x8x128xf32> to vector<8x128xf32>
    %291 = vector.extract_strided_slice %285 {offsets = [0, 0, 0], sizes = [8, 1, 512], strides = [1, 1, 1]} : vector<8x8x512xf32> to vector<8x1x512xf32>
    %292 = vector.shape_cast %291 : vector<8x1x512xf32> to vector<8x512xf32>
    %cst_86 = arith.constant dense<0.000000e+00> : vector<8x512xf32>
    %293 = tpu.matmul %288, %286, %cst_86 {dimension_numbers = #tpu.dot_dimension_numbers<[1], [0], [0], [1], [0, 0, 1, 1], [], []>} : vector<8x128xf32>, vector<128x512xf32>, vector<8x512xf32> -> vector<8x512xf32>
    %294 = arith.addf %292, %293 : vector<8x512xf32>
    %295 = vector.extract_strided_slice %294 {offsets = [0, 0], sizes = [8, 128], strides = [1, 1]} : vector<8x512xf32> to vector<8x128xf32>
    %296 = arith.negf %295 : vector<8x128xf32>
    %297 = math.exp %296 : vector<8x128xf32>
    %cst_87 = arith.constant 1.000000e+00 : f32
    %298 = vector.broadcast %cst_87 : f32 to vector<8x128xf32>
    %299 = arith.addf %298, %297 : vector<8x128xf32>
    %300 = arith.divf %298, %299 : vector<8x128xf32>
    %301 = vector.extract_strided_slice %294 {offsets = [0, 128], sizes = [8, 128], strides = [1, 1]} : vector<8x512xf32> to vector<8x128xf32>
    %302 = arith.negf %301 : vector<8x128xf32>
    %303 = math.exp %302 : vector<8x128xf32>
    %cst_88 = arith.constant 1.000000e+00 : f32
    %304 = vector.broadcast %cst_88 : f32 to vector<8x128xf32>
    %305 = arith.addf %304, %303 : vector<8x128xf32>
    %306 = arith.divf %304, %305 : vector<8x128xf32>
    %307 = vector.extract_strided_slice %294 {offsets = [0, 256], sizes = [8, 128], strides = [1, 1]} : vector<8x512xf32> to vector<8x128xf32>
    %308 = math.tanh %307 : vector<8x128xf32>
    %309 = vector.extract_strided_slice %294 {offsets = [0, 384], sizes = [8, 128], strides = [1, 1]} : vector<8x512xf32> to vector<8x128xf32>
    %310 = arith.negf %309 : vector<8x128xf32>
    %311 = math.exp %310 : vector<8x128xf32>
    %cst_89 = arith.constant 1.000000e+00 : f32
    %312 = vector.broadcast %cst_89 : f32 to vector<8x128xf32>
    %313 = arith.addf %312, %311 : vector<8x128xf32>
    %314 = arith.divf %312, %313 : vector<8x128xf32>
    %315 = arith.mulf %306, %290 : vector<8x128xf32>
    %316 = arith.mulf %300, %308 : vector<8x128xf32>
    %317 = arith.addf %315, %316 : vector<8x128xf32>
    %318 = math.tanh %317 : vector<8x128xf32>
    %319 = arith.mulf %314, %318 : vector<8x128xf32>
    %320 = vector.extract_strided_slice %285 {offsets = [0, 1, 0], sizes = [8, 1, 512], strides = [1, 1, 1]} : vector<8x8x512xf32> to vector<8x1x512xf32>
    %321 = vector.shape_cast %320 : vector<8x1x512xf32> to vector<8x512xf32>
    %cst_90 = arith.constant dense<0.000000e+00> : vector<8x512xf32>
    %322 = tpu.matmul %319, %286, %cst_90 {dimension_numbers = #tpu.dot_dimension_numbers<[1], [0], [0], [1], [0, 0, 1, 1], [], []>} : vector<8x128xf32>, vector<128x512xf32>, vector<8x512xf32> -> vector<8x512xf32>
    %323 = arith.addf %321, %322 : vector<8x512xf32>
    %324 = vector.extract_strided_slice %323 {offsets = [0, 0], sizes = [8, 128], strides = [1, 1]} : vector<8x512xf32> to vector<8x128xf32>
    %325 = arith.negf %324 : vector<8x128xf32>
    %326 = math.exp %325 : vector<8x128xf32>
    %cst_91 = arith.constant 1.000000e+00 : f32
    %327 = vector.broadcast %cst_91 : f32 to vector<8x128xf32>
    %328 = arith.addf %327, %326 : vector<8x128xf32>
    %329 = arith.divf %327, %328 : vector<8x128xf32>
    %330 = vector.extract_strided_slice %323 {offsets = [0, 128], sizes = [8, 128], strides = [1, 1]} : vector<8x512xf32> to vector<8x128xf32>
    %331 = arith.negf %330 : vector<8x128xf32>
    %332 = math.exp %331 : vector<8x128xf32>
    %cst_92 = arith.constant 1.000000e+00 : f32
    %333 = vector.broadcast %cst_92 : f32 to vector<8x128xf32>
    %334 = arith.addf %333, %332 : vector<8x128xf32>
    %335 = arith.divf %333, %334 : vector<8x128xf32>
    %336 = vector.extract_strided_slice %323 {offsets = [0, 256], sizes = [8, 128], strides = [1, 1]} : vector<8x512xf32> to vector<8x128xf32>
    %337 = math.tanh %336 : vector<8x128xf32>
    %338 = vector.extract_strided_slice %323 {offsets = [0, 384], sizes = [8, 128], strides = [1, 1]} : vector<8x512xf32> to vector<8x128xf32>
    %339 = arith.negf %338 : vector<8x128xf32>
    %340 = math.exp %339 : vector<8x128xf32>
    %cst_93 = arith.constant 1.000000e+00 : f32
    %341 = vector.broadcast %cst_93 : f32 to vector<8x128xf32>
    %342 = arith.addf %341, %340 : vector<8x128xf32>
    %343 = arith.divf %341, %342 : vector<8x128xf32>
    %344 = arith.mulf %335, %317 : vector<8x128xf32>
    %345 = arith.mulf %329, %337 : vector<8x128xf32>
    %346 = arith.addf %344, %345 : vector<8x128xf32>
    %347 = math.tanh %346 : vector<8x128xf32>
    %348 = arith.mulf %343, %347 : vector<8x128xf32>
    %349 = vector.extract_strided_slice %285 {offsets = [0, 2, 0], sizes = [8, 1, 512], strides = [1, 1, 1]} : vector<8x8x512xf32> to vector<8x1x512xf32>
    %350 = vector.shape_cast %349 : vector<8x1x512xf32> to vector<8x512xf32>
    %cst_94 = arith.constant dense<0.000000e+00> : vector<8x512xf32>
    %351 = tpu.matmul %348, %286, %cst_94 {dimension_numbers = #tpu.dot_dimension_numbers<[1], [0], [0], [1], [0, 0, 1, 1], [], []>} : vector<8x128xf32>, vector<128x512xf32>, vector<8x512xf32> -> vector<8x512xf32>
    %352 = arith.addf %350, %351 : vector<8x512xf32>
    %353 = vector.extract_strided_slice %352 {offsets = [0, 0], sizes = [8, 128], strides = [1, 1]} : vector<8x512xf32> to vector<8x128xf32>
    %354 = arith.negf %353 : vector<8x128xf32>
    %355 = math.exp %354 : vector<8x128xf32>
    %cst_95 = arith.constant 1.000000e+00 : f32
    %356 = vector.broadcast %cst_95 : f32 to vector<8x128xf32>
    %357 = arith.addf %356, %355 : vector<8x128xf32>
    %358 = arith.divf %356, %357 : vector<8x128xf32>
    %359 = vector.extract_strided_slice %352 {offsets = [0, 128], sizes = [8, 128], strides = [1, 1]} : vector<8x512xf32> to vector<8x128xf32>
    %360 = arith.negf %359 : vector<8x128xf32>
    %361 = math.exp %360 : vector<8x128xf32>
    %cst_96 = arith.constant 1.000000e+00 : f32
    %362 = vector.broadcast %cst_96 : f32 to vector<8x128xf32>
    %363 = arith.addf %362, %361 : vector<8x128xf32>
    %364 = arith.divf %362, %363 : vector<8x128xf32>
    %365 = vector.extract_strided_slice %352 {offsets = [0, 256], sizes = [8, 128], strides = [1, 1]} : vector<8x512xf32> to vector<8x128xf32>
    %366 = math.tanh %365 : vector<8x128xf32>
    %367 = vector.extract_strided_slice %352 {offsets = [0, 384], sizes = [8, 128], strides = [1, 1]} : vector<8x512xf32> to vector<8x128xf32>
    %368 = arith.negf %367 : vector<8x128xf32>
    %369 = math.exp %368 : vector<8x128xf32>
    %cst_97 = arith.constant 1.000000e+00 : f32
    %370 = vector.broadcast %cst_97 : f32 to vector<8x128xf32>
    %371 = arith.addf %370, %369 : vector<8x128xf32>
    %372 = arith.divf %370, %371 : vector<8x128xf32>
    %373 = arith.mulf %364, %346 : vector<8x128xf32>
    %374 = arith.mulf %358, %366 : vector<8x128xf32>
    %375 = arith.addf %373, %374 : vector<8x128xf32>
    %376 = math.tanh %375 : vector<8x128xf32>
    %377 = arith.mulf %372, %376 : vector<8x128xf32>
    %378 = vector.extract_strided_slice %285 {offsets = [0, 3, 0], sizes = [8, 1, 512], strides = [1, 1, 1]} : vector<8x8x512xf32> to vector<8x1x512xf32>
    %379 = vector.shape_cast %378 : vector<8x1x512xf32> to vector<8x512xf32>
    %cst_98 = arith.constant dense<0.000000e+00> : vector<8x512xf32>
    %380 = tpu.matmul %377, %286, %cst_98 {dimension_numbers = #tpu.dot_dimension_numbers<[1], [0], [0], [1], [0, 0, 1, 1], [], []>} : vector<8x128xf32>, vector<128x512xf32>, vector<8x512xf32> -> vector<8x512xf32>
    %381 = arith.addf %379, %380 : vector<8x512xf32>
    %382 = vector.extract_strided_slice %381 {offsets = [0, 0], sizes = [8, 128], strides = [1, 1]} : vector<8x512xf32> to vector<8x128xf32>
    %383 = arith.negf %382 : vector<8x128xf32>
    %384 = math.exp %383 : vector<8x128xf32>
    %cst_99 = arith.constant 1.000000e+00 : f32
    %385 = vector.broadcast %cst_99 : f32 to vector<8x128xf32>
    %386 = arith.addf %385, %384 : vector<8x128xf32>
    %387 = arith.divf %385, %386 : vector<8x128xf32>
    %388 = vector.extract_strided_slice %381 {offsets = [0, 128], sizes = [8, 128], strides = [1, 1]} : vector<8x512xf32> to vector<8x128xf32>
    %389 = arith.negf %388 : vector<8x128xf32>
    %390 = math.exp %389 : vector<8x128xf32>
    %cst_100 = arith.constant 1.000000e+00 : f32
    %391 = vector.broadcast %cst_100 : f32 to vector<8x128xf32>
    %392 = arith.addf %391, %390 : vector<8x128xf32>
    %393 = arith.divf %391, %392 : vector<8x128xf32>
    %394 = vector.extract_strided_slice %381 {offsets = [0, 256], sizes = [8, 128], strides = [1, 1]} : vector<8x512xf32> to vector<8x128xf32>
    %395 = math.tanh %394 : vector<8x128xf32>
    %396 = vector.extract_strided_slice %381 {offsets = [0, 384], sizes = [8, 128], strides = [1, 1]} : vector<8x512xf32> to vector<8x128xf32>
    %397 = arith.negf %396 : vector<8x128xf32>
    %398 = math.exp %397 : vector<8x128xf32>
    %cst_101 = arith.constant 1.000000e+00 : f32
    %399 = vector.broadcast %cst_101 : f32 to vector<8x128xf32>
    %400 = arith.addf %399, %398 : vector<8x128xf32>
    %401 = arith.divf %399, %400 : vector<8x128xf32>
    %402 = arith.mulf %393, %375 : vector<8x128xf32>
    %403 = arith.mulf %387, %395 : vector<8x128xf32>
    %404 = arith.addf %402, %403 : vector<8x128xf32>
    %405 = math.tanh %404 : vector<8x128xf32>
    %406 = arith.mulf %401, %405 : vector<8x128xf32>
    %407 = vector.extract_strided_slice %285 {offsets = [0, 4, 0], sizes = [8, 1, 512], strides = [1, 1, 1]} : vector<8x8x512xf32> to vector<8x1x512xf32>
    %408 = vector.shape_cast %407 : vector<8x1x512xf32> to vector<8x512xf32>
    %cst_102 = arith.constant dense<0.000000e+00> : vector<8x512xf32>
    %409 = tpu.matmul %406, %286, %cst_102 {dimension_numbers = #tpu.dot_dimension_numbers<[1], [0], [0], [1], [0, 0, 1, 1], [], []>} : vector<8x128xf32>, vector<128x512xf32>, vector<8x512xf32> -> vector<8x512xf32>
    %410 = arith.addf %408, %409 : vector<8x512xf32>
    %411 = vector.extract_strided_slice %410 {offsets = [0, 0], sizes = [8, 128], strides = [1, 1]} : vector<8x512xf32> to vector<8x128xf32>
    %412 = arith.negf %411 : vector<8x128xf32>
    %413 = math.exp %412 : vector<8x128xf32>
    %cst_103 = arith.constant 1.000000e+00 : f32
    %414 = vector.broadcast %cst_103 : f32 to vector<8x128xf32>
    %415 = arith.addf %414, %413 : vector<8x128xf32>
    %416 = arith.divf %414, %415 : vector<8x128xf32>
    %417 = vector.extract_strided_slice %410 {offsets = [0, 128], sizes = [8, 128], strides = [1, 1]} : vector<8x512xf32> to vector<8x128xf32>
    %418 = arith.negf %417 : vector<8x128xf32>
    %419 = math.exp %418 : vector<8x128xf32>
    %cst_104 = arith.constant 1.000000e+00 : f32
    %420 = vector.broadcast %cst_104 : f32 to vector<8x128xf32>
    %421 = arith.addf %420, %419 : vector<8x128xf32>
    %422 = arith.divf %420, %421 : vector<8x128xf32>
    %423 = vector.extract_strided_slice %410 {offsets = [0, 256], sizes = [8, 128], strides = [1, 1]} : vector<8x512xf32> to vector<8x128xf32>
    %424 = math.tanh %423 : vector<8x128xf32>
    %425 = vector.extract_strided_slice %410 {offsets = [0, 384], sizes = [8, 128], strides = [1, 1]} : vector<8x512xf32> to vector<8x128xf32>
    %426 = arith.negf %425 : vector<8x128xf32>
    %427 = math.exp %426 : vector<8x128xf32>
    %cst_105 = arith.constant 1.000000e+00 : f32
    %428 = vector.broadcast %cst_105 : f32 to vector<8x128xf32>
    %429 = arith.addf %428, %427 : vector<8x128xf32>
    %430 = arith.divf %428, %429 : vector<8x128xf32>
    %431 = arith.mulf %422, %404 : vector<8x128xf32>
    %432 = arith.mulf %416, %424 : vector<8x128xf32>
    %433 = arith.addf %431, %432 : vector<8x128xf32>
    %434 = math.tanh %433 : vector<8x128xf32>
    %435 = arith.mulf %430, %434 : vector<8x128xf32>
    %436 = vector.extract_strided_slice %285 {offsets = [0, 5, 0], sizes = [8, 1, 512], strides = [1, 1, 1]} : vector<8x8x512xf32> to vector<8x1x512xf32>
    %437 = vector.shape_cast %436 : vector<8x1x512xf32> to vector<8x512xf32>
    %cst_106 = arith.constant dense<0.000000e+00> : vector<8x512xf32>
    %438 = tpu.matmul %435, %286, %cst_106 {dimension_numbers = #tpu.dot_dimension_numbers<[1], [0], [0], [1], [0, 0, 1, 1], [], []>} : vector<8x128xf32>, vector<128x512xf32>, vector<8x512xf32> -> vector<8x512xf32>
    %439 = arith.addf %437, %438 : vector<8x512xf32>
    %440 = vector.extract_strided_slice %439 {offsets = [0, 0], sizes = [8, 128], strides = [1, 1]} : vector<8x512xf32> to vector<8x128xf32>
    %441 = arith.negf %440 : vector<8x128xf32>
    %442 = math.exp %441 : vector<8x128xf32>
    %cst_107 = arith.constant 1.000000e+00 : f32
    %443 = vector.broadcast %cst_107 : f32 to vector<8x128xf32>
    %444 = arith.addf %443, %442 : vector<8x128xf32>
    %445 = arith.divf %443, %444 : vector<8x128xf32>
    %446 = vector.extract_strided_slice %439 {offsets = [0, 128], sizes = [8, 128], strides = [1, 1]} : vector<8x512xf32> to vector<8x128xf32>
    %447 = arith.negf %446 : vector<8x128xf32>
    %448 = math.exp %447 : vector<8x128xf32>
    %cst_108 = arith.constant 1.000000e+00 : f32
    %449 = vector.broadcast %cst_108 : f32 to vector<8x128xf32>
    %450 = arith.addf %449, %448 : vector<8x128xf32>
    %451 = arith.divf %449, %450 : vector<8x128xf32>
    %452 = vector.extract_strided_slice %439 {offsets = [0, 256], sizes = [8, 128], strides = [1, 1]} : vector<8x512xf32> to vector<8x128xf32>
    %453 = math.tanh %452 : vector<8x128xf32>
    %454 = vector.extract_strided_slice %439 {offsets = [0, 384], sizes = [8, 128], strides = [1, 1]} : vector<8x512xf32> to vector<8x128xf32>
    %455 = arith.negf %454 : vector<8x128xf32>
    %456 = math.exp %455 : vector<8x128xf32>
    %cst_109 = arith.constant 1.000000e+00 : f32
    %457 = vector.broadcast %cst_109 : f32 to vector<8x128xf32>
    %458 = arith.addf %457, %456 : vector<8x128xf32>
    %459 = arith.divf %457, %458 : vector<8x128xf32>
    %460 = arith.mulf %451, %433 : vector<8x128xf32>
    %461 = arith.mulf %445, %453 : vector<8x128xf32>
    %462 = arith.addf %460, %461 : vector<8x128xf32>
    %463 = math.tanh %462 : vector<8x128xf32>
    %464 = arith.mulf %459, %463 : vector<8x128xf32>
    %465 = vector.extract_strided_slice %285 {offsets = [0, 6, 0], sizes = [8, 1, 512], strides = [1, 1, 1]} : vector<8x8x512xf32> to vector<8x1x512xf32>
    %466 = vector.shape_cast %465 : vector<8x1x512xf32> to vector<8x512xf32>
    %cst_110 = arith.constant dense<0.000000e+00> : vector<8x512xf32>
    %467 = tpu.matmul %464, %286, %cst_110 {dimension_numbers = #tpu.dot_dimension_numbers<[1], [0], [0], [1], [0, 0, 1, 1], [], []>} : vector<8x128xf32>, vector<128x512xf32>, vector<8x512xf32> -> vector<8x512xf32>
    %468 = arith.addf %466, %467 : vector<8x512xf32>
    %469 = vector.extract_strided_slice %468 {offsets = [0, 0], sizes = [8, 128], strides = [1, 1]} : vector<8x512xf32> to vector<8x128xf32>
    %470 = arith.negf %469 : vector<8x128xf32>
    %471 = math.exp %470 : vector<8x128xf32>
    %cst_111 = arith.constant 1.000000e+00 : f32
    %472 = vector.broadcast %cst_111 : f32 to vector<8x128xf32>
    %473 = arith.addf %472, %471 : vector<8x128xf32>
    %474 = arith.divf %472, %473 : vector<8x128xf32>
    %475 = vector.extract_strided_slice %468 {offsets = [0, 128], sizes = [8, 128], strides = [1, 1]} : vector<8x512xf32> to vector<8x128xf32>
    %476 = arith.negf %475 : vector<8x128xf32>
    %477 = math.exp %476 : vector<8x128xf32>
    %cst_112 = arith.constant 1.000000e+00 : f32
    %478 = vector.broadcast %cst_112 : f32 to vector<8x128xf32>
    %479 = arith.addf %478, %477 : vector<8x128xf32>
    %480 = arith.divf %478, %479 : vector<8x128xf32>
    %481 = vector.extract_strided_slice %468 {offsets = [0, 256], sizes = [8, 128], strides = [1, 1]} : vector<8x512xf32> to vector<8x128xf32>
    %482 = math.tanh %481 : vector<8x128xf32>
    %483 = vector.extract_strided_slice %468 {offsets = [0, 384], sizes = [8, 128], strides = [1, 1]} : vector<8x512xf32> to vector<8x128xf32>
    %484 = arith.negf %483 : vector<8x128xf32>
    %485 = math.exp %484 : vector<8x128xf32>
    %cst_113 = arith.constant 1.000000e+00 : f32
    %486 = vector.broadcast %cst_113 : f32 to vector<8x128xf32>
    %487 = arith.addf %486, %485 : vector<8x128xf32>
    %488 = arith.divf %486, %487 : vector<8x128xf32>
    %489 = arith.mulf %480, %462 : vector<8x128xf32>
    %490 = arith.mulf %474, %482 : vector<8x128xf32>
    %491 = arith.addf %489, %490 : vector<8x128xf32>
    %492 = math.tanh %491 : vector<8x128xf32>
    %493 = arith.mulf %488, %492 : vector<8x128xf32>
    %494 = vector.extract_strided_slice %285 {offsets = [0, 7, 0], sizes = [8, 1, 512], strides = [1, 1, 1]} : vector<8x8x512xf32> to vector<8x1x512xf32>
    %495 = vector.shape_cast %494 : vector<8x1x512xf32> to vector<8x512xf32>
    %cst_114 = arith.constant dense<0.000000e+00> : vector<8x512xf32>
    %496 = tpu.matmul %493, %286, %cst_114 {dimension_numbers = #tpu.dot_dimension_numbers<[1], [0], [0], [1], [0, 0, 1, 1], [], []>} : vector<8x128xf32>, vector<128x512xf32>, vector<8x512xf32> -> vector<8x512xf32>
    %497 = arith.addf %495, %496 : vector<8x512xf32>
    %498 = vector.extract_strided_slice %497 {offsets = [0, 0], sizes = [8, 128], strides = [1, 1]} : vector<8x512xf32> to vector<8x128xf32>
    %499 = arith.negf %498 : vector<8x128xf32>
    %500 = math.exp %499 : vector<8x128xf32>
    %cst_115 = arith.constant 1.000000e+00 : f32
    %501 = vector.broadcast %cst_115 : f32 to vector<8x128xf32>
    %502 = arith.addf %501, %500 : vector<8x128xf32>
    %503 = arith.divf %501, %502 : vector<8x128xf32>
    %504 = vector.extract_strided_slice %497 {offsets = [0, 128], sizes = [8, 128], strides = [1, 1]} : vector<8x512xf32> to vector<8x128xf32>
    %505 = arith.negf %504 : vector<8x128xf32>
    %506 = math.exp %505 : vector<8x128xf32>
    %cst_116 = arith.constant 1.000000e+00 : f32
    %507 = vector.broadcast %cst_116 : f32 to vector<8x128xf32>
    %508 = arith.addf %507, %506 : vector<8x128xf32>
    %509 = arith.divf %507, %508 : vector<8x128xf32>
    %510 = vector.extract_strided_slice %497 {offsets = [0, 256], sizes = [8, 128], strides = [1, 1]} : vector<8x512xf32> to vector<8x128xf32>
    %511 = math.tanh %510 : vector<8x128xf32>
    %512 = vector.extract_strided_slice %497 {offsets = [0, 384], sizes = [8, 128], strides = [1, 1]} : vector<8x512xf32> to vector<8x128xf32>
    %513 = arith.negf %512 : vector<8x128xf32>
    %514 = math.exp %513 : vector<8x128xf32>
    %cst_117 = arith.constant 1.000000e+00 : f32
    %515 = vector.broadcast %cst_117 : f32 to vector<8x128xf32>
    %516 = arith.addf %515, %514 : vector<8x128xf32>
    %517 = arith.divf %515, %516 : vector<8x128xf32>
    %518 = arith.mulf %509, %491 : vector<8x128xf32>
    %519 = arith.mulf %503, %511 : vector<8x128xf32>
    %520 = arith.addf %518, %519 : vector<8x128xf32>
    %521 = math.tanh %520 : vector<8x128xf32>
    %522 = arith.mulf %517, %521 : vector<8x128xf32>
    %c1_118 = arith.constant 1 : index
    %c0_119 = arith.constant 0 : index
    %c0_120 = arith.constant 0 : index
    %523 = vector.load %arg15[%c1_118, %c0_119, %c0_120] : memref<2x8x128xf32, #tpu.memory_space<vmem>>, vector<1x8x128xf32>
    %524 = vector.shape_cast %523 : vector<1x8x128xf32> to vector<8x128xf32>
    %525 = vector.shape_cast %522 : vector<8x128xf32> to vector<1x8x128xf32>
    tpu.vector_store %arg15[%c1_118, %c0_119, %c0_120], %525 {strides = array<i32>} : memref<2x8x128xf32, #tpu.memory_space<vmem>>, vector<1x8x128xf32>,
    %c1_121 = arith.constant 1 : index
    %c0_122 = arith.constant 0 : index
    %c0_123 = arith.constant 0 : index
    %526 = vector.load %arg16[%c1_121, %c0_122, %c0_123] : memref<2x8x128xf32, #tpu.memory_space<vmem>>, vector<1x8x128xf32>
    %527 = vector.shape_cast %526 : vector<1x8x128xf32> to vector<8x128xf32>
    %528 = vector.shape_cast %520 : vector<8x128xf32> to vector<1x8x128xf32>
    tpu.vector_store %arg16[%c1_121, %c0_122, %c0_123], %528 {strides = array<i32>} : memref<2x8x128xf32, #tpu.memory_space<vmem>>, vector<1x8x128xf32>,
    %c0_i32_124 = arith.constant 0 : i32
    %529 = arith.cmpi eq, %arg1, %c0_i32_124 : i32
    %530 = arith.extui %529 : i1 to i32
    %c0_i32_125 = arith.constant 0 : i32
    %531 = arith.cmpi ne, %530, %c0_i32_125 : i32
    scf.if %531 {
      %c0_126 = arith.constant 0 : index
      %c0_127 = arith.constant 0 : index
      %532 = vector.load %arg11[%c0_126, %c0_127] : memref<128x128xf32, #tpu.memory_space<vmem>>, vector<128x128xf32>
      %cst_128 = arith.constant dense<0.000000e+00> : vector<8x128xf32>
      %533 = tpu.matmul %522, %532, %cst_128 {dimension_numbers = #tpu.dot_dimension_numbers<[1], [0], [0], [1], [0, 0, 1, 1], [], []>} : vector<8x128xf32>, vector<128x128xf32>, vector<8x128xf32> -> vector<8x128xf32>
      %c0_129 = arith.constant 0 : index
      %c0_130 = arith.constant 0 : index
      %534 = vector.load %arg12[%c0_129, %c0_130] : memref<1x128xf32, #tpu.memory_space<vmem>>, vector<1x128xf32>
      %535 = vector.broadcast %534 : vector<1x128xf32> to vector<8x128xf32>
      %536 = arith.addf %533, %535 : vector<8x128xf32>
      %c0_131 = arith.constant 0 : index
      %c0_132 = arith.constant 0 : index
      %537 = vector.load %arg13[%c0_131, %c0_132] : memref<8x128xf32, #tpu.memory_space<vmem>>, vector<8x128xf32>
      tpu.vector_store %arg13[%c0_131, %c0_132], %536 {strides = array<i32>} : memref<8x128xf32, #tpu.memory_space<vmem>>, vector<8x128xf32>,
    } else {
    }
    return
  }
  func.func @transform_0(%arg0: i32, %arg1: i32) -> (i32, i32, i32) {
    %c0_i32 = arith.constant 0 : i32
    %c0_i32_0 = arith.constant 0 : i32
    return %arg0, %arg1, %c0_i32 : i32, i32, i32
  }
  func.func @transform_1(%arg0: i32, %arg1: i32) -> (i32, i32) {
    %c0_i32 = arith.constant 0 : i32
    %c0_i32_0 = arith.constant 0 : i32
    %c0_i32_1 = arith.constant 0 : i32
    return %c0_i32, %c0_i32_0 : i32, i32
  }
  func.func @transform_2(%arg0: i32, %arg1: i32) -> (i32, i32) {
    %c0_i32 = arith.constant 0 : i32
    %c0_i32_0 = arith.constant 0 : i32
    %c0_i32_1 = arith.constant 0 : i32
    return %c0_i32, %c0_i32_0 : i32, i32
  }
  func.func @transform_3(%arg0: i32, %arg1: i32) -> (i32, i32) {
    %c0_i32 = arith.constant 0 : i32
    %c0_i32_0 = arith.constant 0 : i32
    %c0_i32_1 = arith.constant 0 : i32
    return %c0_i32, %c0_i32_0 : i32, i32
  }
  func.func @transform_4(%arg0: i32, %arg1: i32) -> (i32, i32) {
    %c0_i32 = arith.constant 0 : i32
    %c0_i32_0 = arith.constant 0 : i32
    %c0_i32_1 = arith.constant 0 : i32
    return %c0_i32, %c0_i32_0 : i32, i32
  }
  func.func @transform_5(%arg0: i32, %arg1: i32) -> (i32, i32) {
    %c0_i32 = arith.constant 0 : i32
    %c0_i32_0 = arith.constant 0 : i32
    %c0_i32_1 = arith.constant 0 : i32
    return %c0_i32, %c0_i32_0 : i32, i32
  }
  func.func @transform_6(%arg0: i32, %arg1: i32) -> (i32, i32) {
    %c0_i32 = arith.constant 0 : i32
    %c0_i32_0 = arith.constant 0 : i32
    %c0_i32_1 = arith.constant 0 : i32
    return %c0_i32, %c0_i32_0 : i32, i32
  }
  func.func @transform_7(%arg0: i32, %arg1: i32) -> (i32, i32, i32) {
    %c0_i32 = arith.constant 0 : i32
    %c0_i32_0 = arith.constant 0 : i32
    %c0_i32_1 = arith.constant 0 : i32
    return %c0_i32, %arg0, %c0_i32_0 : i32, i32, i32
  }
  func.func @transform_8(%arg0: i32, %arg1: i32) -> (i32, i32, i32) {
    %c0_i32 = arith.constant 0 : i32
    %c0_i32_0 = arith.constant 0 : i32
    %c0_i32_1 = arith.constant 0 : i32
    return %c0_i32, %arg0, %c0_i32_0 : i32, i32, i32
  }
  func.func @transform_9(%arg0: i32, %arg1: i32) -> (i32, i32) {
    %c0_i32 = arith.constant 0 : i32
    %c0_i32_0 = arith.constant 0 : i32
    %c0_i32_1 = arith.constant 0 : i32
    return %c0_i32, %c0_i32_0 : i32, i32
  }
  func.func @transform_10(%arg0: i32, %arg1: i32) -> (i32, i32) {
    %c0_i32 = arith.constant 0 : i32
    %c0_i32_0 = arith.constant 0 : i32
    %c0_i32_1 = arith.constant 0 : i32
    return %c0_i32, %c0_i32_0 : i32, i32
  }
  func.func @transform_11(%arg0: i32, %arg1: i32) -> (i32, i32) {
    %c0_i32 = arith.constant 0 : i32
    %c0_i32_0 = arith.constant 0 : i32
    return %arg0, %c0_i32 : i32, i32
  }
}

</mosaic_0001>

<bundles_post_ra>
// kernel: lstm_model_forward.1
= control target key start
LH: loop header
LB: loop body
LE: loop exit
PB: predicated region body
PF: predicated region fallthrough
CT: control target
= control target key end

     0   :  { %16 = vsyncpa [#allocation6], 0  ;;  %s15843_s0 = inlined_call_operand.vmem [shape: f32[8,8,128], index: 0, kind: input, shape index: {}]   ;;  %s15844_s1 = inlined_call_operand.hbm [shape: f32[128,512], index: 1, kind: input, shape index: {}]   ;;  %s15845_s2 = inlined_call_operand.hbm [shape: f32[128,512], index: 2, kind: input, shape index: {}]   ;;  %s15846_s3 = inlined_call_operand.hbm [shape: f32[1,512], index: 3, kind: input, shape index: {}]   ;;  %s15847_s4 = inlined_call_operand.hbm [shape: f32[128,512], index: 4, kind: input, shape index: {}]   ;;  %s15848_s5 = inlined_call_operand.hbm [shape: f32[128,512], index: 5, kind: input, shape index: {}]   ;;  %s15849_s6 = inlined_call_operand.hbm [shape: f32[1,512], index: 6, kind: input, shape index: {}]   ;;  %s15850_s7 = inlined_call_operand.vmem [shape: f32[2,8,128], index: 7, kind: input, shape index: {}]   ;;  %s15851_s8 = inlined_call_operand.vmem [shape: f32[2,8,128], index: 8, kind: input, shape index: {}]   ;;  %s15852_s9 = inlined_call_operand.vmem [shape: f32[128,128], index: 9, kind: input, shape index: {}]   ;;  %s15853_s10 = inlined_call_operand.vmem [shape: f32[1,128], index: 10, kind: input, shape index: {}]   ;;  %s15854_s11 = inlined_call_operand.vmem [shape: f32[8,128], index: 11, kind: output, shape index: {}]  }
   0x1   :  { %17 = vsyncpa [#allocation8], 0 }
   0x2   :  { %18 = vsyncpa [#allocation11], 0 }
   0x3   :  { %19 = vsyncpa [#allocation14], 0  ;;  %s12575_s17 = smov [#allocation7]   ;;  %s12576_s19 = smov [#allocation10]  }
   0x4   :  { %s39_s18 = sshll.u32 %s12575_s17, 4  ;;  %s61_s20 = sshll.u32 %s12576_s19, 4  ;;  %s40_s18 = int_to_ptr.vmem [resolvable:$true] %s39_s18  ;;  %s12646_s20 = int_to_ptr.vmem [resolvable:$true] %s61_s20 }
   0x5   :  { %s12435_s23 = scalar_lea.hbm %s15845_s2, 8192 }
   0x6   :  { %p12436_p0 = scmp.ne.s32.totalorder %s15845_s2, %s12435_s23  ;;  %p12439_p1 = scmp.lt.u32.totalorder %s12435_s23, %s15845_s2 }
   0x8   :  { %p12441_p2 = pnand %p12439_p1, %p12436_p0 }
   0xa   :  { %12444 = shalt.err (!%p12441_p2)
}
   0xb   :  { %s12445_s28 = scalar_lea.vmem %s40_s18, 8192  ;;  %p12450_p4 = scmp.lt.s32.totalorder %s40_s18, %s40_s18 }
   0xc   :  { %p12446_p3 = scmp.ne.s32.totalorder %s40_s18, %s12445_s28  ;;  %p12451_p5 = scmp.lt.s32.totalorder %s12445_s28, %s12445_s28 }
   0xe   :  { %p12452_p6 = por %p12451_p5, %p12450_p4 }
  0x10   :  { %p12453_p7 = pnand %p12452_p6, %p12446_p3 }
  0x12   :  { %12456 = shalt.err (!%p12453_p7)
}
  0x13   :  { %s12577_s29 = smov 512   ;;  %s12578_s30 = smov 32  }
  0x14   :  { %45 = dma.hbm_to_vmem [thread:$0]  %s15845_s2, 8192, %s40_s18, [#allocation8], %s12577_s29, %s12577_s29, %s12578_s30  }
  0x15   :  { %s12457_s16 = scalar_lea.hbm %s15847_s4, 8192 }
  0x16   :  { %p12458_p8 = scmp.ne.s32.totalorder %s15847_s4, %s12457_s16  ;;  %p12461_p9 = scmp.lt.u32.totalorder %s12457_s16, %s15847_s4 }
  0x18   :  { %p12463_p10 = pnand %p12461_p9, %p12458_p8 }
  0x1a   :  { %12466 = shalt.err (!%p12463_p10)
}
  0x1b   :  { %s12467_s23 = scalar_lea.vmem %s12646_s20, 8192  ;;  %p12472_p12 = scmp.lt.s32.totalorder %s12646_s20, %s12646_s20 }
  0x1c   :  { %p12468_p11 = scmp.ne.s32.totalorder %s12646_s20, %s12467_s23  ;;  %p12473_p13 = scmp.lt.s32.totalorder %s12467_s23, %s12467_s23 }
  0x1e   :  { %p12474_p0 = por %p12473_p13, %p12472_p12 }
  0x20   :  { %p12475_p1 = pnand %p12474_p0, %p12468_p11 }
  0x22   :  { %12478 = shalt.err (!%p12475_p1)
}
  0x23   :  { %67 = dma.hbm_to_vmem [thread:$0]  %s15847_s4, 8192, %s12646_s20, [#allocation11], %s12577_s29, %s12577_s29, %s12578_s30  }
  0x24   :  { %s12579_s24 = smov [#allocation5]   ;;  %s12580_s26 = smov [#allocation9]  }
  0x25   :  { %s27_s25 = sshll.u32 %s12579_s24, 4  ;;  %s52_s27 = sshll.u32 %s12580_s26, 4  ;;  %s28_s25 = int_to_ptr.vmem [resolvable:$true] %s27_s25  ;;  %s53_s27 = int_to_ptr.vmem [resolvable:$true] %s52_s27 }
  0x26   :  { %s12479_s13 = scalar_lea.hbm %s15844_s1, 8192 }
  0x27   :  { %p12480_p2 = scmp.ne.s32.totalorder %s15844_s1, %s12479_s13  ;;  %p12483_p3 = scmp.lt.u32.totalorder %s12479_s13, %s15844_s1 }
  0x29   :  { %p12485_p4 = pnand %p12483_p3, %p12480_p2 }
  0x2b   :  { %12488 = shalt.err (!%p12485_p4)
}
  0x2c   :  { %s12489_s4 = scalar_lea.vmem %s28_s25, 8192  ;;  %p12494_p6 = scmp.lt.s32.totalorder %s28_s25, %s28_s25 }
  0x2d   :  { %p12490_p5 = scmp.ne.s32.totalorder %s28_s25, %s12489_s4  ;;  %p12495_p7 = scmp.lt.s32.totalorder %s12489_s4, %s12489_s4 }
  0x2f   :  { %p12496_p8 = por %p12495_p7, %p12494_p6 }
  0x31   :  { %p12497_p9 = pnand %p12496_p8, %p12490_p5 }
  0x33   :  { %12500 = shalt.err (!%p12497_p9)
}
  0x34   :  { %33 = dma.hbm_to_vmem [thread:$0]  %s15844_s1, 8192, %s28_s25, [#allocation6], %s12577_s29, %s12577_s29, %s12578_s30  }
  0x35   :  { %s12501_s23 = scalar_lea.hbm %s15846_s3, 64 }
  0x36   :  { %p12502_p10 = scmp.ne.s32.totalorder %s15846_s3, %s12501_s23  ;;  %p12505_p11 = scmp.lt.u32.totalorder %s12501_s23, %s15846_s3 }
  0x38   :  { %p12507_p12 = pnand %p12505_p11, %p12502_p10 }
  0x3a   :  { %12510 = shalt.err (!%p12507_p12)
}
  0x3b   :  { %s12511_s28 = scalar_lea.vmem %s53_s27, 64  ;;  %p12516_p0 = scmp.lt.s32.totalorder %s53_s27, %s53_s27 }
  0x3c   :  { %p12512_p13 = scmp.ne.s32.totalorder %s53_s27, %s12511_s28  ;;  %p12517_p1 = scmp.lt.s32.totalorder %s12511_s28, %s12511_s28 }
  0x3e   :  { %p12518_p2 = por %p12517_p1, %p12516_p0 }
  0x40   :  { %p12519_p3 = pnand %p12518_p2, %p12512_p13 }
  0x42   :  { %12522 = shalt.err (!%p12519_p3)
}
  0x43   :  { %55 = dma.hbm_to_vmem [thread:$0]  %s15846_s3, 64, %s53_s27, [#allocation8]  }
  0x44   :  { %s12581_s12 = smov [#allocation12]   ;;  %s12582_s14 = smov [#allocation13]  }
  0x45   :  { %s73_s13 = sshll.u32 %s12581_s12, 4  ;;  %s86_s15 = sshll.u32 %s12582_s14, 4  ;;  %s74_s13 = int_to_ptr.vmem [resolvable:$true] %s73_s13  ;;  %s87_s15 = int_to_ptr.vmem [resolvable:$true] %s86_s15 }
  0x46   :  { %s12523_s4 = scalar_lea.hbm %s15848_s5, 8192 }
  0x47   :  { %p12524_p4 = scmp.ne.s32.totalorder %s15848_s5, %s12523_s4  ;;  %p12527_p5 = scmp.lt.u32.totalorder %s12523_s4, %s15848_s5 }
  0x49   :  { %p12529_p6 = pnand %p12527_p5, %p12524_p4 }
  0x4b   :  { %12532 = shalt.err (!%p12529_p6)
}
  0x4c   :  { %s12533_s3 = scalar_lea.vmem %s74_s13, 8192  ;;  %p12538_p8 = scmp.lt.s32.totalorder %s74_s13, %s74_s13 }
  0x4d   :  { %p12534_p7 = scmp.ne.s32.totalorder %s74_s13, %s12533_s3  ;;  %p12539_p9 = scmp.lt.s32.totalorder %s12533_s3, %s12533_s3 }
  0x4f   :  { %p12540_p10 = por %p12539_p9, %p12538_p8 }
  0x51   :  { %p12541_p11 = pnand %p12540_p10, %p12534_p7 }
  0x53   :  { %12544 = shalt.err (!%p12541_p11)
}
  0x54   :  { %79 = dma.hbm_to_vmem [thread:$0]  %s15848_s5, 8192, %s74_s13, [#allocation11], %s12577_s29, %s12577_s29, %s12578_s30  }
  0x55   :  { %s12545_s24 = scalar_lea.hbm %s15849_s6, 64 }
  0x56   :  { %p12546_p12 = scmp.ne.s32.totalorder %s15849_s6, %s12545_s24  ;;  %p12549_p13 = scmp.lt.u32.totalorder %s12545_s24, %s15849_s6 }
  0x58   :  { %p12551_p0 = pnand %p12549_p13, %p12546_p12 }
  0x5a   :  { %12554 = shalt.err (!%p12551_p0)
}
  0x5b   :  { %s12555_s12 = scalar_lea.vmem %s87_s15, 64  ;;  %p12560_p2 = scmp.lt.s32.totalorder %s87_s15, %s87_s15 }
  0x5c   :  { %p12556_p1 = scmp.ne.s32.totalorder %s87_s15, %s12555_s12  ;;  %p12561_p3 = scmp.lt.s32.totalorder %s12555_s12, %s12555_s12 }
  0x5e   :  { %p12562_p4 = por %p12561_p3, %p12560_p2 }
  0x60   :  { %p12563_p5 = pnand %p12562_p4, %p12556_p1 }
  0x62   :  { %12566 = shalt.err (!%p12563_p5)
}
  0x63   :  { %89 = dma.hbm_to_vmem [thread:$0]  %s15849_s6, 64, %s87_s15, [#allocation14]  }
  0x64   :  { %12567 = dma.done.wait [#allocation6], 8192  }
  0x65   :  { %12568 = vsyncadd [#allocation6], 4294959104 }
  0x66   :  { %12569 = dma.done.wait [#allocation8], 8256  }
  0x67   :  { %12570 = vsyncadd [#allocation8], 4294959040 }
  0x68   :  { %12571 = dma.done.wait [#allocation11], 16384  }
  0x69   :  { %12572 = vsyncadd [#allocation11], 4294950912 }
  0x6a   :  { %12573 = dma.done.wait [#allocation14], 64  }
  0x6b   :  { %12574 = vsyncadd [#allocation14], 4294967232  ;;  %v15855_v0 = vmov 0.0   ;;  %v137_v1 = vld [vmem:[#allocation5 + $0x8] sm:$0xff]  ;;  %v139_v3 = vld [vmem:[#allocation5 + $0x18] sm:$0xff]  ;;  %vm977_vm0 = vcmask 1041409  }
  0x6c   :  { %286 = vmatprep.mubr.f32.mxu0 %v15855_v0  ;;  %399 = vmatprep.mubr.f32.mxu1 %v15855_v0  ;;  %v141_v2 = vld [vmem:[#allocation5 + $0x28] sm:$0xff]  ;;  %v143_v5 = vld [vmem:[#allocation5 + $0x38] sm:$0xff]  ;;  %v136_v6 = vld [vmem:[#allocation5] sm:$0xff]  ;;  %vm980_vm1 = vcmask 1042434   ;;  %vm983_vm2 = vcmask 1043459   ;;  %vm986_vm3 = vcmask 1044484  }
  0x6d   :  { %v9200_v4 = vpack.c.bf16 %v141_v2, %v137_v1  ;;  %v140_v7 = vld [vmem:[#allocation5 + $0x20] sm:$0xff]  ;;  %v9232_v8 = vpack.c.bf16 %v143_v5, %v139_v3  ;;  %v138_v10 = vld [vmem:[#allocation5 + $0x10] sm:$0xff]  ;;  %v145_v12 = vld [vmem:[#allocation5 + $0x48] sm:$0xff]  ;;  %vm989_vm4 = vcmask 1045509   ;;  %vm992_vm5 = vcmask 1046534  }
  0x6e   :  { %v9202_v9 = vpack.c.bf16 %v140_v7, %v136_v6  ;;  %v142_v11 = vld [vmem:[#allocation5 + $0x30] sm:$0xff]  ;;  %v149_v14 = vld [vmem:[#allocation5 + $0x68] sm:$0xff]  ;;  %v147_v15 = vld [vmem:[#allocation5 + $0x58] sm:$0xff]  ;;  %vm995_vm6 = vcmask 1047559   ;;  %vm12585_vm7 = vmmov 0  }
  0x6f   :  { %9201 = vmatprep.subr.bf16.mxu0 %v9200_v4  ;;  %v9234_v13 = vpack.c.bf16 %v142_v11, %v138_v10  ;;  %v151_v16 = vld [vmem:[#allocation5 + $0x78] sm:$0xff]  ;;  %9233 = vmatprep.subr.bf16.mxu1 %v9232_v8  ;;  %v9204_v17 = vpack.c.bf16 %v149_v14, %v145_v12  ;;  %v144_v19 = vld [vmem:[#allocation5 + $0x40] sm:$0xff]  ;;  %v146_v21 = vld [vmem:[#allocation5 + $0x50] sm:$0xff] }
  0x70   :  { %9203 = vmatpush1.bf16.msra.mxu0 %v9202_v9  ;;  %v9236_v18 = vpack.c.bf16 %v151_v16, %v147_v15  ;;  %v148_v20 = vld [vmem:[#allocation5 + $0x60] sm:$0xff]  ;;  %v150_v23 = vld [vmem:[#allocation5 + $0x70] sm:$0xff]  ;;  %v153_v24 = vld [vmem:[#allocation5 + $0x88] sm:$0xff] }
  0x71   :  { %9235 = vmatpush1.bf16.msra.mxu1 %v9234_v13  ;;  %v9206_v22 = vpack.c.bf16 %v148_v20, %v144_v19  ;;  %v157_v25 = vld [vmem:[#allocation5 + $0xa8] sm:$0xff]  ;;  %9205 = vmatprep.subr.bf16.mxu0 %v9204_v17  ;;  %v9238_v26 = vpack.c.bf16 %v150_v23, %v146_v21  ;;  %v155_v28 = vld [vmem:[#allocation5 + $0x98] sm:$0xff]  ;;  %v152_v30 = vld [vmem:[#allocation5 + $0x80] sm:$0xff] }
  0x72   :  { %9237 = vmatprep.subr.bf16.mxu1 %v9236_v18  ;;  %v9208_v27 = vpack.c.bf16 %v157_v25, %v153_v24  ;;  %v159_v29 = vld [vmem:[#allocation5 + $0xb8] sm:$0xff]  ;;  %v156_v32 = vld [vmem:[#allocation5 + $0xa0] sm:$0xff]  ;;  %v154_v33 = vld [vmem:[#allocation5 + $0x90] sm:$0xff] }
  0x73   :  { %v9240_v31 = vpack.c.bf16 %v159_v29, %v155_v28  ;;  %v158_v34 = vld [vmem:[#allocation5 + $0xb0] sm:$0xff]  ;;  %v9210_v35 = vpack.c.bf16 %v156_v32, %v152_v30  ;;  %v161_v36 = vld [vmem:[#allocation5 + $0xc8] sm:$0xff]  ;;  %v163_v38 = vld [vmem:[#allocation5 + $0xd8] sm:$0xff] }
  0x74   :  { %9207 = vmatpush1.bf16.msra.mxu0 %v9206_v22  ;;  %v165_v37 = vld [vmem:[#allocation5 + $0xe8] sm:$0xff]  ;;  %v9242_v39 = vpack.c.bf16 %v158_v34, %v154_v33  ;;  %v167_v41 = vld [vmem:[#allocation5 + $0xf8] sm:$0xff]  ;;  %v160_v42 = vld [vmem:[#allocation5 + $0xc0] sm:$0xff] }
  0x75   :  { %9239 = vmatpush1.bf16.msra.mxu1 %v9238_v26  ;;  %9209 = vmatprep.subr.bf16.mxu0 %v9208_v27  ;;  %v9212_v40 = vpack.c.bf16 %v165_v37, %v161_v36  ;;  %v164_v43 = vld [vmem:[#allocation5 + $0xe0] sm:$0xff]  ;;  %v9244_v44 = vpack.c.bf16 %v167_v41, %v163_v38  ;;  %v162_v45 = vld [vmem:[#allocation5 + $0xd0] sm:$0xff]  ;;  %v169_v47 = vld [vmem:[#allocation5 + $0x108] sm:$0xff] }
  0x76   :  { %9241 = vmatprep.subr.bf16.mxu1 %v9240_v31  ;;  %v166_v46 = vld [vmem:[#allocation5 + $0xf0] sm:$0xff]  ;;  %v173_v48 = vld [vmem:[#allocation5 + $0x128] sm:$0xff]  ;;  %v171_v49 = vld [vmem:[#allocation5 + $0x118] sm:$0xff]  ;;  %v9214_v51 = vpack.c.bf16 %v164_v43, %v160_v42 }
  0x77   :  { %v175_v50 = vld [vmem:[#allocation5 + $0x138] sm:$0xff]  ;;  %v9246_v52 = vpack.c.bf16 %v166_v46, %v162_v45  ;;  %v9216_v53 = vpack.c.bf16 %v173_v48, %v169_v47  ;;  %v168_v54 = vld [vmem:[#allocation5 + $0x100] sm:$0xff]  ;;  %v170_v56 = vld [vmem:[#allocation5 + $0x110] sm:$0xff] }
  0x78   :  { %9211 = vmatpush1.bf16.msra.mxu0 %v9210_v35  ;;  %v172_v55 = vld [vmem:[#allocation5 + $0x120] sm:$0xff]  ;;  %v9248_v57 = vpack.c.bf16 %v175_v50, %v171_v49  ;;  %v174_v58 = vld [vmem:[#allocation5 + $0x130] sm:$0xff]  ;;  %v177_v59 = vld [vmem:[#allocation5 + $0x148] sm:$0xff] }
  0x79   :  { %9243 = vmatpush1.bf16.msra.mxu1 %v9242_v39  ;;  %9213 = vmatprep.subr.bf16.mxu0 %v9212_v40  ;;  %v181_v60 = vld [vmem:[#allocation5 + $0x168] sm:$0xff]  ;;  %v179_v61 = vld [vmem:[#allocation5 + $0x158] sm:$0xff]  ;;  %v9218_v63 = vpack.c.bf16 %v172_v55, %v168_v54  ;;  %v9250_v1 = vpack.c.bf16 %v174_v58, %v170_v56  ;;  %v176_v3 = vld [vmem:[#allocation5 + $0x140] sm:$0xff] }
  0x7a   :  { %9245 = vmatprep.subr.bf16.mxu1 %v9244_v44  ;;  %v183_v62 = vld [vmem:[#allocation5 + $0x178] sm:$0xff]  ;;  %v9220_v2 = vpack.c.bf16 %v181_v60, %v177_v59  ;;  %v180_v4 = vld [vmem:[#allocation5 + $0x160] sm:$0xff]  ;;  %v178_v5 = vld [vmem:[#allocation5 + $0x150] sm:$0xff] }
  0x7b   :  { %v9252_v6 = vpack.c.bf16 %v183_v62, %v179_v61  ;;  %v182_v7 = vld [vmem:[#allocation5 + $0x170] sm:$0xff]  ;;  %v185_v8 = vld [vmem:[#allocation5 + $0x188] sm:$0xff]  ;;  %v187_v10 = vld [vmem:[#allocation5 + $0x198] sm:$0xff]  ;;  %v9222_v12 = vpack.c.bf16 %v180_v4, %v176_v3 }
  0x7c   :  { %9215 = vmatpush1.bf16.msra.mxu0 %v9214_v51  ;;  %v189_v9 = vld [vmem:[#allocation5 + $0x1a8] sm:$0xff]  ;;  %v191_v11 = vld [vmem:[#allocation5 + $0x1b8] sm:$0xff]  ;;  %v9254_v13 = vpack.c.bf16 %v182_v7, %v178_v5  ;;  %v184_v15 = vld [vmem:[#allocation5 + $0x180] sm:$0xff] }
  0x7d   :  { %9247 = vmatpush1.bf16.msra.mxu1 %v9246_v52  ;;  %9217 = vmatprep.subr.bf16.mxu0 %v9216_v53  ;;  %v9224_v14 = vpack.c.bf16 %v189_v9, %v185_v8  ;;  %v188_v16 = vld [vmem:[#allocation5 + $0x1a0] sm:$0xff]  ;;  %v186_v17 = vld [vmem:[#allocation5 + $0x190] sm:$0xff]  ;;  %v9256_v18 = vpack.c.bf16 %v191_v11, %v187_v10  ;;  %v193_v20 = vld [vmem:[#allocation5 + $0x1c8] sm:$0xff] }
  0x7e   :  { %9249 = vmatprep.subr.bf16.mxu1 %v9248_v57  ;;  %v190_v19 = vld [vmem:[#allocation5 + $0x1b0] sm:$0xff]  ;;  %v197_v21 = vld [vmem:[#allocation5 + $0x1e8] sm:$0xff]  ;;  %v195_v22 = vld [vmem:[#allocation5 + $0x1d8] sm:$0xff]  ;;  %v9226_v24 = vpack.c.bf16 %v188_v16, %v184_v15 }
  0x7f   :  { %v199_v23 = vld [vmem:[#allocation5 + $0x1f8] sm:$0xff]  ;;  %v9258_v25 = vpack.c.bf16 %v190_v19, %v186_v17  ;;  %v9228_v26 = vpack.c.bf16 %v197_v21, %v193_v20  ;;  %v192_v27 = vld [vmem:[#allocation5 + $0x1c0] sm:$0xff]  ;;  %v194_v29 = vld [vmem:[#allocation5 + $0x1d0] sm:$0xff] }
  0x80   :  { %9219 = vmatpush1.bf16.msra.mxu0 %v9218_v63  ;;  %v196_v28 = vld [vmem:[#allocation5 + $0x1e0] sm:$0xff]  ;;  %v9260_v30 = vpack.c.bf16 %v199_v23, %v195_v22  ;;  %v198_v31 = vld [vmem:[#allocation5 + $0x1f0] sm:$0xff]  ;;  %v449_v32 = vld [vmem:[#allocation7 + $0x8] sm:$0xff] }
  0x81   :  { %9251 = vmatpush1.bf16.msra.mxu1 %v9250_v1  ;;  %9221 = vmatprep.subr.bf16.mxu0 %v9220_v2  ;;  %v453_v33 = vld [vmem:[#allocation7 + $0x28] sm:$0xff]  ;;  %v451_v34 = vld [vmem:[#allocation7 + $0x18] sm:$0xff]  ;;  %v9230_v36 = vpack.c.bf16 %v196_v28, %v192_v27  ;;  %v9262_v37 = vpack.c.bf16 %v198_v31, %v194_v29  ;;  %v448_v39 = vld [vmem:[#allocation7] sm:$0xff] }
  0x82   :  { %9253 = vmatprep.subr.bf16.mxu1 %v9252_v6  ;;  %v455_v35 = vld [vmem:[#allocation7 + $0x38] sm:$0xff]  ;;  %v12739_v38 = vpack.c.bf16 %v453_v33, %v449_v32  ;;  %v452_v40 = vld [vmem:[#allocation7 + $0x20] sm:$0xff]  ;;  %v450_v42 = vld [vmem:[#allocation7 + $0x10] sm:$0xff] }
  0x83   :  { %v12741_v41 = vpack.c.bf16 %v455_v35, %v451_v34  ;;  %v454_v43 = vld [vmem:[#allocation7 + $0x30] sm:$0xff]  ;;  %v457_v44 = vld [vmem:[#allocation7 + $0x48] sm:$0xff]  ;;  %v128_v46 = vld [vmem:[%s15843_s0] sm:$0xff]  ;;  %v12746_v47 = vpack.c.bf16 %v452_v40, %v448_v39 }
  0x84   :  { %9223 = vmatpush1.bf16.msra.mxu0 %v9222_v12  ;;  %16087 = vst [vmem:[#allocation19_spill] sm:$0xff] %v12739_v38  ;;  %v461_v45 = vld [vmem:[#allocation7 + $0x68] sm:$0xff]  ;;  %v459_v48 = vld [vmem:[#allocation7 + $0x58] sm:$0xff]  ;;  %v12749_v50 = vpack.c.bf16 %v454_v43, %v450_v42  ;;  %v456_v51 = vld [vmem:[#allocation7 + $0x40] sm:$0xff] }
  0x85   :  { %9255 = vmatpush1.bf16.msra.mxu1 %v9254_v13  ;;  %9225 = vmatprep.subr.bf16.mxu0 %v9224_v14  ;;  %16088 = vst [vmem:[#allocation20_spill] sm:$0xff] %v12741_v41  ;;  %v463_v49 = vld [vmem:[#allocation7 + $0x78] sm:$0xff]  ;;  %v460_v52 = vld [vmem:[#allocation7 + $0x60] sm:$0xff]  ;;  %v12752_v53 = vpack.c.bf16 %v461_v45, %v457_v44  ;;  %v458_v54 = vld [vmem:[#allocation7 + $0x50] sm:$0xff] }
  0x86   :  { %9257 = vmatprep.subr.bf16.mxu1 %v9256_v18  ;;  %v462_v55 = vld [vmem:[#allocation7 + $0x70] sm:$0xff]  ;;  %v12754_v56 = vpack.c.bf16 %v463_v49, %v459_v48  ;;  %v465_v57 = vld [vmem:[#allocation7 + $0x88] sm:$0xff]  ;;  %v12760_v60 = vpack.c.bf16 %v460_v52, %v456_v51  ;;  %v467_v61 = vld [vmem:[#allocation7 + $0x98] sm:$0xff] }
  0x87   :  { %v469_v58 = vld [vmem:[#allocation7 + $0xa8] sm:$0xff]  ;;  %v471_v62 = vld [vmem:[#allocation7 + $0xb8] sm:$0xff]  ;;  %v12764_v63 = vpack.c.bf16 %v462_v55, %v458_v54  ;;  %v464_v1 = vld [vmem:[#allocation7 + $0x80] sm:$0xff] }
  0x88   :  { %9227 = vmatpush1.bf16.msra.mxu0 %v9226_v24  ;;  %v129_v59 = vld [vmem:[%s15843_s0 + $0x8] sm:$0xff]  ;;  %v468_v2 = vld [vmem:[#allocation7 + $0xa0] sm:$0xff]  ;;  %v12768_v3 = vpack.c.bf16 %v469_v58, %v465_v57  ;;  %v466_v4 = vld [vmem:[#allocation7 + $0x90] sm:$0xff]  ;;  %v12771_v6 = vpack.c.bf16 %v471_v62, %v467_v61 }
  0x89   :  { %9259 = vmatpush1.bf16.msra.mxu1 %v9258_v25  ;;  %9229 = vmatprep.subr.bf16.mxu0 %v9228_v26  ;;  %16089 = vst [vmem:[#allocation21_spill] sm:$0xff] %v12764_v63  ;;  %v470_v5 = vld [vmem:[#allocation7 + $0xb0] sm:$0xff]  ;;  %v473_v7 = vld [vmem:[#allocation7 + $0xc8] sm:$0xff]  ;;  %v12777_v10 = vpack.c.bf16 %v468_v2, %v464_v1  ;;  %v475_v11 = vld [vmem:[#allocation7 + $0xd8] sm:$0xff] }
  0x8a   :  { %9261 = vmatprep.subr.bf16.mxu1 %v9260_v30  ;;  %16090 = vst [vmem:[#allocation22_spill] sm:$0xff] %v12768_v3  ;;  %16091 = vst [vmem:[#allocation23_spill] sm:$0xff] %v12771_v6  ;;  %v477_v8 = vld [vmem:[#allocation7 + $0xe8] sm:$0xff]  ;;  %v130_v9 = vld [vmem:[%s15843_s0 + $0x10] sm:$0xff]  ;;  %v12781_v13 = vpack.c.bf16 %v470_v5, %v466_v4 }
  0x8b   :  { %16092 = vst [vmem:[#allocation24_spill] sm:$0xff] %v12777_v10  ;;  %v479_v12 = vld [vmem:[#allocation7 + $0xf8] sm:$0xff]  ;;  %v472_v14 = vld [vmem:[#allocation7 + $0xc0] sm:$0xff]  ;;  %v12785_v16 = vpack.c.bf16 %v477_v8, %v473_v7  ;;  %v474_v17 = vld [vmem:[#allocation7 + $0xd0] sm:$0xff] }
  0x8c   :  { %9231 = vmatpush1.bf16.msra.mxu0 %v9230_v36  ;;  %16093 = vst [vmem:[#allocation25_spill] sm:$0xff] %v12781_v13  ;;  %v476_v15 = vld [vmem:[#allocation7 + $0xe0] sm:$0xff]  ;;  %v478_v18 = vld [vmem:[#allocation7 + $0xf0] sm:$0xff]  ;;  %v12788_v19 = vpack.c.bf16 %v479_v12, %v475_v11  ;;  %v481_v20 = vld [vmem:[#allocation7 + $0x108] sm:$0xff] }
  0x8d   :  { %9263 = vmatpush1.bf16.msra.mxu1 %v9262_v37  ;;  %9265 = vmatprep.subr.bf16.mxu0 %v12739_v38  ;;  %16094 = vst [vmem:[#allocation26_spill] sm:$0xff] %v12785_v16  ;;  %v485_v21 = vld [vmem:[#allocation7 + $0x128] sm:$0xff]  ;;  %v131_v22 = vld [vmem:[%s15843_s0 + $0x18] sm:$0xff]  ;;  %v12794_v23 = vpack.c.bf16 %v476_v15, %v472_v14  ;;  %v12798_v26 = vpack.c.bf16 %v478_v18, %v474_v17  ;;  %v480_v27 = vld [vmem:[#allocation7 + $0x100] sm:$0xff] }
  0x8e   :  { %9297 = vmatprep.subr.bf16.mxu1 %v12741_v41  ;;  %16095 = vst [vmem:[#allocation27_spill] sm:$0xff] %v12788_v19  ;;  %v483_v24 = vld [vmem:[#allocation7 + $0x118] sm:$0xff]  ;;  %v484_v28 = vld [vmem:[#allocation7 + $0x120] sm:$0xff]  ;;  %v12807_v30 = vpack.c.bf16 %v485_v21, %v481_v20  ;;  %v482_v31 = vld [vmem:[#allocation7 + $0x110] sm:$0xff] }
  0x8f   :  { %287 = vmatmul.mubr.f32.vlgmr.msra.gmra.mrb[0].mxu0 %v128_v46  ;;  %16096 = vst [vmem:[#allocation28_spill] sm:$0xff] %v12794_v23  ;;  %v487_v25 = vld [vmem:[#allocation7 + $0x138] sm:$0xff]  ;;  %16097 = vst [vmem:[#allocation29_spill] sm:$0xff] %v12798_v26  ;;  %v12803_v29 = vld [vmem:[%s15850_s7] sm:$0xff]  ;;  %v12816_v37 = vpack.c.bf16 %v484_v28, %v480_v27 }
  0x90   :  { %400 = vmatmul.mubr.f32.vlgmr.msra.gmra.mrb[0].mxu1 %v128_v46  ;;  %9267 = vmatpush1.bf16.msra.mxu0 %v12746_v47  ;;  %16098 = vst [vmem:[#allocation30_spill] sm:$0xff] %v12807_v30  ;;  %v486_v32 = vld [vmem:[#allocation7 + $0x130] sm:$0xff]  ;;  %v12810_v33 = vpack.c.bf16 %v487_v25, %v483_v24  ;;  %v489_v34 = vld [vmem:[#allocation7 + $0x148] sm:$0xff]  ;;  %v132_v36 = vld [vmem:[%s15843_s0 + $0x20] sm:$0xff] }
  0x91   :  { %9299 = vmatpush1.bf16.msra.mxu1 %v12749_v50  ;;  %292 = vmatprep.mubr.f32.mxu0 %v15855_v0  ;;  %v493_v35 = vld [vmem:[#allocation7 + $0x168] sm:$0xff]  ;;  %16100 = vst [vmem:[#allocation32_spill] sm:$0xff] %v12816_v37  ;;  %v491_v39 = vld [vmem:[#allocation7 + $0x158] sm:$0xff]  ;;  %v12820_v42 = vpack.c.bf16 %v486_v32, %v482_v31  ;;  %v488_v43 = vld [vmem:[#allocation7 + $0x140] sm:$0xff] }
  0x92   :  { %405 = vmatprep.mubr.f32.mxu1 %v15855_v0  ;;  %9269 = vmatprep.subr.bf16.mxu0 %v12752_v53  ;;  %16099 = vst [vmem:[#allocation31_spill] sm:$0xff] %v12810_v33  ;;  %v495_v40 = vld [vmem:[#allocation7 + $0x178] sm:$0xff]  ;;  %v492_v44 = vld [vmem:[#allocation7 + $0x160] sm:$0xff]  ;;  %v12824_v45 = vpack.c.bf16 %v493_v35, %v489_v34  ;;  %v490_v46 = vld [vmem:[#allocation7 + $0x150] sm:$0xff] }
  0x93   :  { %293 = vmatmul.mubr.f32.gmra.mrb[2].mxu0 %v129_v59  ;;  %9301 = vmatprep.subr.bf16.mxu1 %v12754_v56  ;;  %16101 = vst [vmem:[#allocation33_spill] sm:$0xff] %v12820_v42  ;;  %v494_v48 = vld [vmem:[#allocation7 + $0x170] sm:$0xff]  ;;  %v12827_v49 = vpack.c.bf16 %v495_v40, %v491_v39  ;;  %v497_v51 = vld [vmem:[#allocation7 + $0x188] sm:$0xff]  ;;  %v12833_v55 = vpack.c.bf16 %v492_v44, %v488_v43  ;;  %v499_v57 = vld [vmem:[#allocation7 + $0x198] sm:$0xff] }
  0x94   :  { %406 = vmatmul.mubr.f32.gmra.mrb[2].mxu1 %v129_v59  ;;  %9271 = vmatpush1.bf16.msra.mxu0 %v12760_v60  ;;  %16102 = vst [vmem:[#allocation34_spill] sm:$0xff] %v12824_v45  ;;  %v501_v52 = vld [vmem:[#allocation7 + $0x1a8] sm:$0xff]  ;;  %v503_v58 = vld [vmem:[#allocation7 + $0x1b8] sm:$0xff]  ;;  %v12837_v59 = vpack.c.bf16 %v494_v48, %v490_v46  ;;  %v496_v61 = vld [vmem:[#allocation7 + $0x180] sm:$0xff] }
  0x95   :  { %9303 = vmatpush1.bf16.msra.mxu1 %v12764_v63  ;;  %298 = vmatprep.mubr.f32.mxu0 %v15855_v0  ;;  %16103 = vst [vmem:[#allocation35_spill] sm:$0xff] %v12827_v49  ;;  %v133_v54 = vld [vmem:[%s15843_s0 + $0x28] sm:$0xff]  ;;  %16104 = vst [vmem:[#allocation36_spill] sm:$0xff] %v12833_v55  ;;  %v500_v62 = vld [vmem:[#allocation7 + $0x1a0] sm:$0xff]  ;;  %v12841_v1 = vpack.c.bf16 %v501_v52, %v497_v51  ;;  %v12844_v5 = vpack.c.bf16 %v503_v58, %v499_v57 }
  0x96   :  { %411 = vmatprep.mubr.f32.mxu1 %v15855_v0  ;;  %9273 = vmatprep.subr.bf16.mxu0 %v12768_v3  ;;  %16105 = vst [vmem:[#allocation37_spill] sm:$0xff] %v12837_v59  ;;  %v498_v2 = vld [vmem:[#allocation7 + $0x190] sm:$0xff]  ;;  %v505_v7 = vld [vmem:[#allocation7 + $0x1c8] sm:$0xff]  ;;  %v12850_v11 = vpack.c.bf16 %v500_v62, %v496_v61  ;;  %v507_v12 = vld [vmem:[#allocation7 + $0x1d8] sm:$0xff]  ;;  %v202_v61 = vlaneseq }
  0x97   :  { %299 = vmatmul.mubr.f32.gmra.mrb[4].mxu0 %v130_v9  ;;  %9305 = vmatprep.subr.bf16.mxu1 %v12771_v6  ;;  %16106 = vst [vmem:[#allocation38_spill] sm:$0xff] %v12841_v1  ;;  %v502_v4 = vld [vmem:[#allocation7 + $0x1b0] sm:$0xff]  ;;  %16107 = vst [vmem:[#allocation39_spill] sm:$0xff] %v12844_v5  ;;  %v509_v8 = vld [vmem:[#allocation7 + $0x1e8] sm:$0xff] }
  0x98   :  { %412 = vmatmul.mubr.f32.gmra.mrb[4].mxu1 %v130_v9  ;;  %9275 = vmatpush1.bf16.msra.mxu0 %v12777_v10  ;;  %v134_v9 = vld [vmem:[%s15843_s0 + $0x30] sm:$0xff]  ;;  %16108 = vst [vmem:[#allocation40_spill] sm:$0xff] %v12850_v11  ;;  %v511_v14 = vld [vmem:[#allocation7 + $0x1f8] sm:$0xff]  ;;  %v12854_v15 = vpack.c.bf16 %v502_v4, %v498_v2  ;;  %v504_v17 = vld [vmem:[#allocation7 + $0x1c0] sm:$0xff]  ;;  %v12858_v20 = vpack.c.bf16 %v509_v8, %v505_v7  ;;  %v12953_v8 = vshrl.u32 %v202_v61, 7 }
  0x99   :  { %9307 = vmatpush1.bf16.msra.mxu1 %v12781_v13  ;;  %304 = vmatprep.mubr.f32.mxu0 %v15855_v0  ;;  %v508_v18 = vld [vmem:[#allocation7 + $0x1e0] sm:$0xff]  ;;  %v506_v21 = vld [vmem:[#allocation7 + $0x1d0] sm:$0xff]  ;;  %v12861_v24 = vpack.c.bf16 %v511_v14, %v507_v12  ;;  %v135_v25 = vld [vmem:[%s15843_s0 + $0x38] sm:$0xff] }
  0x9a   :  { %417 = vmatprep.mubr.f32.mxu1 %v15855_v0  ;;  %9277 = vmatprep.subr.bf16.mxu0 %v12785_v16  ;;  %16109 = vst [vmem:[#allocation41_spill] sm:$0xff] %v12854_v15  ;;  %16110 = vst [vmem:[#allocation42_spill] sm:$0xff] %v12858_v20  ;;  %v12867_v27 = vpack.c.bf16 %v508_v18, %v504_v17  ;;  %v15879_v18 = vsub.s32 0, %v12953_v8  ;;  %v15889_v61 = vsub.s32 2, %v12953_v8 }
  0x9b   :  { %305 = vmatmul.mubr.f32.gmra.mrb[6].mxu0 %v131_v22  ;;  %9309 = vmatprep.subr.bf16.mxu1 %v12788_v19  ;;  %16111 = vst [vmem:[#allocation43_spill] sm:$0xff] %v12861_v24  ;;  %16114 = vst [vmem:[#allocation46_spill] sm:$0xff] %v12953_v8 }
  0x9c   :  { %418 = vmatmul.mubr.f32.gmra.mrb[6].mxu1 %v131_v22  ;;  %9279 = vmatpush1.bf16.msra.mxu0 %v12794_v23  ;;  %v510_v22 = vld [vmem:[#allocation7 + $0x1f0] sm:$0xff]  ;;  %16112 = vst [vmem:[#allocation44_spill] sm:$0xff] %v12867_v27 }
  0x9d   :  { %9311 = vmatpush1.bf16.msra.mxu1 %v12798_v26  ;;  %310 = vmatprep.mubr.f32.mxu0 %v15855_v0  ;;  %v12871_v28 = vpack.c.bf16 %v510_v22, %v506_v21  ;;  %v200_v21 = vld [vmem:[#allocation9] sm:$0xf] }
  0x9e   :  { %423 = vmatprep.mubr.f32.mxu1 %v15855_v0  ;;  %9281 = vmatprep.subr.bf16.mxu0 %v12807_v30 }
  0x9f   :  { %311 = vmatmul.mubr.f32.gmra.mrb[8].mxu0 %v132_v36  ;;  %9313 = vmatprep.subr.bf16.mxu1 %v12810_v33  ;;  %16113 = vst [vmem:[#allocation45_spill] sm:$0xff] %v12871_v28 }
  0xa0   :  { %424 = vmatmul.mubr.f32.gmra.mrb[8].mxu1 %v132_v36  ;;  %9283 = vmatpush1.bf16.msra.mxu0 %v12816_v37 }
  0xa1   :  { %9315 = vmatpush1.bf16.msra.mxu1 %v12820_v42  ;;  %316 = vmatprep.mubr.f32.mxu0 %v15855_v0 }
  0xa2   :  { %429 = vmatprep.mubr.f32.mxu1 %v15855_v0  ;;  %9285 = vmatprep.subr.bf16.mxu0 %v12824_v45 }
  0xa3   :  { %317 = vmatmul.mubr.f32.gmra.mrb[10].mxu0 %v133_v54  ;;  %9317 = vmatprep.subr.bf16.mxu1 %v12827_v49 }
  0xa4   :  { %430 = vmatmul.mubr.f32.gmra.mrb[10].mxu1 %v133_v54  ;;  %9287 = vmatpush1.bf16.msra.mxu0 %v12833_v55 }
  0xa5   :  { %9319 = vmatpush1.bf16.msra.mxu1 %v12837_v59  ;;  %322 = vmatprep.mubr.f32.mxu0 %v15855_v0 }
  0xa6   :  { %435 = vmatprep.mubr.f32.mxu1 %v15855_v0  ;;  %9289 = vmatprep.subr.bf16.mxu0 %v12841_v1 }
  0xa7   :  { %323 = vmatmul.mubr.f32.gmra.mrb[12].mxu0 %v134_v9  ;;  %9321 = vmatprep.subr.bf16.mxu1 %v12844_v5 }
  0xa8   :  { %436 = vmatmul.mubr.f32.gmra.mrb[12].mxu1 %v134_v9  ;;  %9291 = vmatpush1.bf16.msra.mxu0 %v12850_v11 }
  0xa9   :  { %9323 = vmatpush1.bf16.msra.mxu1 %v12854_v15  ;;  %328 = vmatprep.mubr.f32.mxu0 %v15855_v0 }
  0xaa   :  { %441 = vmatprep.mubr.f32.mxu1 %v15855_v0  ;;  %9293 = vmatprep.subr.bf16.mxu0 %v12858_v20 }
  0xab   :  { %329 = vmatmul.mubr.f32.gmra.mrb[14].mxu0 %v135_v25  ;;  %9325 = vmatprep.subr.bf16.mxu1 %v12861_v24 }
  0xac   :  { %442 = vmatmul.mubr.f32.gmra.mrb[14].mxu1 %v135_v25  ;;  %9295 = vmatpush1.bf16.msra.mxu0 %v12867_v27 }
  0xad   :  { %9327 = vmatpush1.bf16.msra.mxu1 %v12871_v28  ;;  %578 = vmatprep.mubr.f32.mxu0 %v15855_v0 }
  0xae   :  { %649 = vmatprep.mubr.f32.mxu1 %v15855_v0  ;;  %9329 = vmatprep.subr.bf16.mxu0 %v12739_v38 }
  0xaf   :  { %579 = vmatmul.mubr.f32.vlgmr.msra.gmra.mrb[16].mxu0 %v12803_v29  ;;  %9361 = vmatprep.subr.bf16.mxu1 %v12741_v41 }
  0xb0   :  { %650 = vmatmul.mubr.f32.vlgmr.msra.gmra.mrb[16].mxu1 %v12803_v29  ;;  %9331 = vmatpush1.bf16.msra.mxu0 %v12746_v47  ;;  %v12921_v29 = vld [vmem:[%s15851_s8] sm:$0xff] }
  0xb1   :  { %9363 = vmatpush1.bf16.msra.mxu1 %v12749_v50  ;;  %9333 = vmatprep.subr.bf16.mxu0 %v12752_v53 }
  0xb2   :  { %9365 = vmatprep.subr.bf16.mxu1 %v12754_v56  ;;  %1062 = vmatprep.mubr.f32.mxu0 %v15855_v0 }
  0xb3   :  { %1133 = vmatprep.mubr.f32.mxu1 %v15855_v0 }
  0xb4   :  { %9335 = vmatpush1.bf16.msra.mxu0 %v12760_v60 }
  0xb5   :  { %9367 = vmatpush1.bf16.msra.mxu1 %v12764_v63  ;;  %9337 = vmatprep.subr.bf16.mxu0 %v12768_v3 }
  0xb6   :  { %9369 = vmatprep.subr.bf16.mxu1 %v12771_v6 }
  0xb8   :  { %9339 = vmatpush1.bf16.msra.mxu0 %v12777_v10 }
  0xb9   :  { %9371 = vmatpush1.bf16.msra.mxu1 %v12781_v13  ;;  %9341 = vmatprep.subr.bf16.mxu0 %v12785_v16 }
  0xba   :  { %9373 = vmatprep.subr.bf16.mxu1 %v12788_v19 }
  0xbc   :  { %9343 = vmatpush1.bf16.msra.mxu0 %v12794_v23 }
  0xbd   :  { %9375 = vmatpush1.bf16.msra.mxu1 %v12798_v26  ;;  %9345 = vmatprep.subr.bf16.mxu0 %v12807_v30 }
  0xbe   :  { %9377 = vmatprep.subr.bf16.mxu1 %v12810_v33 }
  0xc0   :  { %9347 = vmatpush1.bf16.msra.mxu0 %v12816_v37 }
  0xc1   :  { %9379 = vmatpush1.bf16.msra.mxu1 %v12820_v42  ;;  %9349 = vmatprep.subr.bf16.mxu0 %v12824_v45 }
  0xc2   :  { %9381 = vmatprep.subr.bf16.mxu1 %v12827_v49 }
  0xc4   :  { %9351 = vmatpush1.bf16.msra.mxu0 %v12833_v55 }
  0xc5   :  { %9383 = vmatpush1.bf16.msra.mxu1 %v12837_v59  ;;  %9353 = vmatprep.subr.bf16.mxu0 %v12841_v1 }
  0xc6   :  { %9385 = vmatprep.subr.bf16.mxu1 %v12844_v5 }
  0xc8   :  { %9355 = vmatpush1.bf16.msra.mxu0 %v12850_v11  ;;  %v12982_v11 = vrot.slane %v200_v21, %v15889_v61 }
  0xc9   :  { %9387 = vmatpush1.bf16.msra.mxu1 %v12854_v15  ;;  %9357 = vmatprep.subr.bf16.mxu0 %v12858_v20 }
  0xca   :  { %9389 = vmatprep.subr.bf16.mxu1 %v12861_v24 }
  0xcc   :  { %9359 = vmatpush1.bf16.msra.mxu0 %v12867_v27 }
  0xcd   :  { %9391 = vmatpush1.bf16.msra.mxu1 %v12871_v28  ;;  %9393 = vmatprep.subr.bf16.mxu0 %v12739_v38  ;;  %v205_v28 = vrot.slane %v200_v21, %v15879_v18 }
  0xce   :  { %9425 = vmatprep.subr.bf16.mxu1 %v12741_v41  ;;  %v15886_v41 = vsub.s32 1, %v12953_v8 }
  0xd0   :  { %v12978_v15 = vrot.slane %v200_v21, %v15886_v41 }
 0x162   :  { %v288_v31 = vpop.f32.mrb[0].mxu0 }
 0x163   :  { %v12923_v32 = vpop.f32.mrb[1].mxu0  ;;  %v12925_v34 = vpop.f32.mrb[0].mxu1  ;;  %v12987_v59 = vadd.f32 %v288_v31, %v205_v28 }
 0x164   :  { %v12927_v35 = vpop.f32.mrb[1].mxu1 }
 0x165   :  { %16115 = vst [vmem:[#allocation47_spill] sm:$0xff] %v12987_v59 }
 0x166   :  { %v294_v36 = vpop.f32.mrb[2].mxu0 }
 0x167   :  { %v12929_v39 = vpop.f32.mrb[3].mxu0  ;;  %v12931_v40 = vpop.f32.mrb[2].mxu1  ;;  %v12989_v18 = vadd.f32 %v294_v36, %v205_v28 }
 0x168   :  { %v12933_v43 = vpop.f32.mrb[3].mxu1 }
 0x169   :  { %16116 = vst [vmem:[#allocation48_spill] sm:$0xff] %v12989_v18 }
 0x16a   :  { %v300_v44 = vpop.f32.mrb[4].mxu0 }
 0x16b   :  { %v12935_v46 = vpop.f32.mrb[5].mxu0  ;;  %v12937_v48 = vpop.f32.mrb[4].mxu1  ;;  %v12991_v55 = vadd.f32 %v300_v44, %v205_v28 }
 0x16c   :  { %v12939_v51 = vpop.f32.mrb[5].mxu1 }
 0x16d   :  { %16117 = vst [vmem:[#allocation49_spill] sm:$0xff] %v12991_v55 }
 0x16e   :  { %v306_v52 = vpop.f32.mrb[6].mxu0 }
 0x16f   :  { %v12941_v54 = vpop.f32.mrb[7].mxu0  ;;  %v12943_v57 = vpop.f32.mrb[6].mxu1  ;;  %v12993_v49 = vadd.f32 %v306_v52, %v205_v28 }
 0x170   :  { %v12945_v58 = vpop.f32.mrb[7].mxu1 }
 0x171   :  { %16118 = vst [vmem:[#allocation50_spill] sm:$0xff] %v12993_v49 }
 0x172   :  { %v312_v62 = vpop.f32.mrb[8].mxu0 }
 0x173   :  { %v12947_v2 = vpop.f32.mrb[9].mxu0  ;;  %v12949_v4 = vpop.f32.mrb[8].mxu1  ;;  %v12995_v45 = vadd.f32 %v312_v62, %v205_v28 }
 0x174   :  { %v12951_v7 = vpop.f32.mrb[9].mxu1 }
 0x175   :  { %16119 = vst [vmem:[#allocation51_spill] sm:$0xff] %v12995_v45 }
 0x176   :  { %v318_v9 = vpop.f32.mrb[10].mxu0 }
 0x177   :  { %v12955_v12 = vpop.f32.mrb[11].mxu0  ;;  %v12957_v14 = vpop.f32.mrb[10].mxu1  ;;  %v12997_v41 = vadd.f32 %v318_v9, %v205_v28 }
 0x178   :  { %v12959_v17 = vpop.f32.mrb[11].mxu1 }
 0x179   :  { %16120 = vst [vmem:[#allocation52_spill] sm:$0xff] %v12997_v41 }
 0x17a   :  { %v324_v22 = vpop.f32.mrb[12].mxu0 }
 0x17b   :  { %v12962_v25 = vpop.f32.mrb[13].mxu0  ;;  %v12964_v0 = vpop.f32.mrb[12].mxu1  ;;  %v12999_v42 = vadd.f32 %v324_v22, %v205_v28 }
 0x17c   :  { %v12968_v38 = vpop.f32.mrb[13].mxu1 }
 0x17d   :  { %16121 = vst [vmem:[#allocation53_spill] sm:$0xff] %v12999_v42 }
 0x17e   :  { %v330_v27 = vpop.f32.mrb[14].mxu0 }
 0x17f   :  { %v12972_v24 = vpop.f32.mrb[15].mxu0  ;;  %v12974_v20 = vpop.f32.mrb[14].mxu1  ;;  %v13001_v61 = vadd.f32 %v330_v27, %v205_v28 }
 0x180   :  { %v12985_v1 = vpop.f32.mrb[15].mxu1 }
 0x181   :  { %16122 = vst [vmem:[#allocation54_spill] sm:$0xff] %v13001_v61 }
 0x182   :  { %v580_v37 = vpop.f32.mrb[16].mxu0 }
 0x183   :  { %v660_v5 = vrot.slane %v580_v37, 1  ;;  %v664_v33 = vrot.slane %v580_v37, 2  ;;  %v668_v30 = vrot.slane %v580_v37, 3  ;;  %v672_v31 = vrot.slane %v580_v37, 4  ;;  %v13003_v26 = vpop.f32.mrb[16].mxu1  ;;  %v13005_v36 = vpop.f32.mrb[17].mxu0 }
 0x184   :  { %v676_v44 = vrot.slane %v580_v37, 5  ;;  %v680_v52 = vrot.slane %v580_v37, 6  ;;  %v684_v23 = vrot.slane %v580_v37, 7  ;;  %v720_v62 = vadd.f32 %v580_v37, %v12987_v59  ;;  %v13008_v9 = vpop.f32.mrb[17].mxu1 }
 0x185   :  { %v724_v22 = vadd.f32 %v660_v5, %v12989_v18  ;;  %v728_v27 = vadd.f32 %v664_v33, %v12991_v55  ;;  %v732_v28 = vadd.f32 %v668_v30, %v12993_v49  ;;  %v736_v19 = vadd.f32 %v672_v31, %v12995_v45 }
 0x186   :  { %v740_v16 = vadd.f32 %v676_v44, %v12997_v41  ;;  %v744_v13 = vadd.f32 %v680_v52, %v12999_v42  ;;  %v8763_v10 = vmul.f32 -1.442695, %v720_v62  ;;  %v748_v6 = vadd.f32 %v684_v23, %v13001_v61 }
 0x187   :  { %v8764_v3 = vmul.f32 -1.442695, %v724_v22  ;;  %v8765_v63 = vmul.f32 -1.442695, %v728_v27  ;;  %v8766_v37 = vmul.f32 -1.442695, %v732_v28  ;;  %v13019_v59 = vadd.f32 %v12923_v32, %v12978_v15 }
 0x188   :  { %v16124_v33 = vsub.s32 3, %v12953_v8  ;;  %10387 = vpow2.f32 %v8763_v10  ;;  %v8767_v30 = vmul.f32 -1.442695, %v736_v19  ;;  %v13027_v31 = vadd.f32 %v12925_v34, %v12982_v11 }
 0x189   :  { %16123 = vst [vmem:[#allocation55_spill] sm:$0xff] %v13019_v59  ;;  %10389 = vpow2.f32 %v8764_v3  ;;  %v8768_v44 = vmul.f32 -1.442695, %v740_v16  ;;  %v662_v23 = vrot.slane %v13003_v26, 1  ;;  %v13032_v52 = vadd.f32 %v12931_v40, %v12982_v11 }
 0x18a   :  { %v13023_v5 = vrot.slane %v200_v21, %v16124_v33  ;;  %16125 = vst [vmem:[#allocation56_spill] sm:$0xff] %v13027_v31  ;;  %10391 = vpow2.f32 %v8765_v63  ;;  %v8769_v32 = vmul.f32 -1.442695, %v744_v13  ;;  %v666_v62 = vrot.slane %v13003_v26, 2 }
 0x18b   :  { %16126 = vst [vmem:[#allocation57_spill] sm:$0xff] %v13032_v52  ;;  %v13037_v10 = vadd.f32 %v12937_v48, %v12982_v11  ;;  %10393 = vpow2.f32 %v8766_v37  ;;  %v8770_v19 = vmul.f32 -1.442695, %v748_v6  ;;  %v670_v34 = vrot.slane %v13003_v26, 3 }
 0x18c   :  { %v13042_v3 = vadd.f32 %v12949_v4, %v12982_v11  ;;  %10395 = vpow2.f32 %v8767_v30  ;;  %v674_v16 = vrot.slane %v13003_v26, 4  ;;  %v722_v63 = vadd.f32 %v13003_v26, %v13027_v31 }
 0x18d   :  { %16127 = vst [vmem:[#allocation58_spill] sm:$0xff] %v13037_v10  ;;  %v13049_v13 = vadd.f32 %v12927_v35, %v13023_v5  ;;  %v13053_v40 = vadd.f32 %v12943_v57, %v12982_v11  ;;  %10397 = vpow2.f32 %v8768_v44  ;;  %v726_v6 = vadd.f32 %v662_v23, %v13032_v52 }
 0x18e   :  { %16128 = vst [vmem:[#allocation59_spill] sm:$0xff] %v13042_v3  ;;  %v13058_v48 = vadd.f32 %v12929_v39, %v12978_v15  ;;  %v13062_v4 = vadd.f32 %v12933_v43, %v13023_v5  ;;  %10399 = vpow2.f32 %v8769_v32  ;;  %v730_v21 = vadd.f32 %v666_v62, %v13037_v10 }
 0x18f   :  { %16129 = vst [vmem:[#allocation60_spill] sm:$0xff] %v13049_v13  ;;  %16130 = vst [vmem:[#allocation61_spill] sm:$0xff] %v13053_v40  ;;  %v13067_v35 = vadd.f32 %v12935_v46, %v12978_v15  ;;  %v13071_v57 = vadd.f32 %v12939_v51, %v13023_v5  ;;  %10401 = vpow2.f32 %v8770_v19  ;;  %v734_v22 = vadd.f32 %v670_v34, %v13053_v40 }
 0x190   :  { %16131 = vst [vmem:[#allocation62_spill] sm:$0xff] %v13058_v48  ;;  %16132 = vst [vmem:[#allocation63_spill] sm:$0xff] %v13062_v4  ;;  %v13076_v39 = vadd.f32 %v12941_v54, %v12978_v15  ;;  %v13080_v43 = vadd.f32 %v12945_v58, %v13023_v5  ;;  %v738_v27 = vadd.f32 %v674_v16, %v13042_v3  ;;  %10403 = vtanh.f32 %v722_v63 }
 0x191   :  { %16133 = vst [vmem:[#allocation64_spill] sm:$0xff] %v13067_v35  ;;  %16134 = vst [vmem:[#allocation65_spill] sm:$0xff] %v13071_v57  ;;  %v13085_v46 = vadd.f32 %v12947_v2, %v12978_v15  ;;  %v13089_v51 = vadd.f32 %v12957_v14, %v12982_v11  ;;  %v678_v28 = vrot.slane %v13003_v26, 5  ;;  %10405 = vtanh.f32 %v726_v6 }
 0x192   :  { %16135 = vst [vmem:[#allocation66_spill] sm:$0xff] %v13076_v39  ;;  %v10388_v54 = vpop.eup %10387  ;;  %v13094_v37 = vadd.f32 %v12951_v7, %v13023_v5  ;;  %v13098_v58 = vadd.f32 %v12964_v0, %v12982_v11  ;;  %v682_v33 = vrot.slane %v13003_v26, 6  ;;  %10407 = vtanh.f32 %v730_v21 }
 0x193   :  { %16136 = vst [vmem:[#allocation67_spill] sm:$0xff] %v13085_v46  ;;  %16137 = vst [vmem:[#allocation68_spill] sm:$0xff] %v13089_v51  ;;  %v10390_v2 = vpop.eup %10389  ;;  %v13103_v14 = vadd.f32 %v12955_v12, %v12978_v15  ;;  %v13107_v30 = vadd.f32 %v12962_v25, %v12978_v15  ;;  %v776_v44 = vadd.f32 1.0, %v10388_v54  ;;  %10409 = vtanh.f32 %v734_v22 }
 0x194   :  { %16138 = vst [vmem:[#allocation69_spill] sm:$0xff] %v13098_v58  ;;  %v10392_v7 = vpop.eup %10391  ;;  %v13111_v23 = vadd.f32 %v12974_v20, %v12982_v11  ;;  %v777_v0 = vadd.f32 1.0, %v10390_v2  ;;  %v686_v32 = vrot.slane %v13003_v26, 7  ;;  %10411 = vtanh.f32 %v738_v27 }
 0x195   :  { %16139 = vst [vmem:[#allocation70_spill] sm:$0xff] %v13103_v14  ;;  %16140 = vst [vmem:[#allocation71_spill] sm:$0xff] %v13107_v30  ;;  %v10394_v62 = vpop.eup %10393  ;;  %v778_v19 = vadd.f32 1.0, %v10392_v7  ;;  %10413 = vrcp.f32 %v776_v44  ;;  %v742_v12 = vadd.f32 %v678_v28, %v13089_v51  ;;  %v661_v34 = vrot.slane %v13005_v36, 1 }
 0x196   :  { %16141 = vst [vmem:[#allocation72_spill] sm:$0xff] %v13111_v23  ;;  %v10396_v25 = vpop.eup %10395  ;;  %v779_v16 = vadd.f32 1.0, %v10394_v62  ;;  %10415 = vrcp.f32 %v777_v0  ;;  %v746_v63 = vadd.f32 %v682_v33, %v13098_v58  ;;  %v665_v6 = vrot.slane %v13005_v36, 2 }
 0x197   :  { %v10398_v11 = vpop.eup %10397  ;;  %v780_v20 = vadd.f32 1.0, %v10396_v25  ;;  %10417 = vrcp.f32 %v778_v19  ;;  %v669_v26 = vrot.slane %v13005_v36, 3  ;;  %v673_v21 = vrot.slane %v13005_v36, 4 }
 0x198   :  { %v10400_v22 = vpop.eup %10399  ;;  %v781_v27 = vadd.f32 1.0, %v10398_v11  ;;  %10419 = vrcp.f32 %v779_v16  ;;  %v677_v28 = vrot.slane %v13005_v36, 5  ;;  %v721_v54 = vadd.f32 %v13005_v36, %v13019_v59 }
 0x199   :  { %v10402_v2 = vpop.eup %10401  ;;  %v782_v44 = vadd.f32 1.0, %v10400_v22  ;;  %10421 = vrcp.f32 %v780_v20  ;;  %v681_v33 = vrot.slane %v13005_v36, 6  ;;  %v725_v7 = vadd.f32 %v661_v34, %v13058_v48 }
 0x19a   :  { %v10404_v0 = vpop.eup %10403  ;;  %v783_v62 = vadd.f32 1.0, %v10402_v2  ;;  %10423 = vrcp.f32 %v781_v27  ;;  %v685_v19 = vrot.slane %v13005_v36, 7  ;;  %v729_v25 = vadd.f32 %v665_v6, %v13067_v35 }
 0x19b   :  { %v10406_v16 = vpop.eup %10405  ;;  %10425 = vrcp.f32 %v782_v44  ;;  %v750_v11 = vadd.f32 %v686_v32, %v13111_v23  ;;  %v733_v8 = vadd.f32 %v669_v26, %v13076_v39  ;;  %v737_v22 = vadd.f32 %v673_v21, %v13085_v46 }
 0x19c   :  { %v10408_v20 = vpop.eup %10407  ;;  %v13132_v59 = vadd.f32 %v12972_v24, %v12978_v15  ;;  %10427 = vrcp.f32 %v783_v62  ;;  %v741_v34 = vadd.f32 %v677_v28, %v13103_v14  ;;  %v8771_v27 = vmul.f32 -1.442695, %v721_v54 }
 0x19d   :  { %v10410_v36 = vpop.eup %10409  ;;  %10429 = vtanh.f32 %v742_v12  ;;  %v745_v6 = vadd.f32 %v681_v33, %v13107_v30  ;;  %v8772_v2 = vmul.f32 -1.442695, %v725_v7  ;;  %v663_v32 = vrot.slane %v13008_v9, 1 }
 0x19e   :  { %16142 = vst [vmem:[#allocation73_spill] sm:$0xff] %v13132_v59  ;;  %v10412_v44 = vpop.eup %10411  ;;  %10431 = vtanh.f32 %v746_v63  ;;  %v749_v26 = vadd.f32 %v685_v19, %v13132_v59  ;;  %v8773_v21 = vmul.f32 -1.442695, %v729_v25  ;;  %v667_v46 = vrot.slane %v13008_v9, 2 }
 0x19f   :  { %v10414_v15 = vpop.eup %10413  ;;  %10433 = vtanh.f32 %v750_v11  ;;  %v8774_v24 = vmul.f32 -1.442695, %v733_v8  ;;  %v8775_v62 = vmul.f32 -1.442695, %v737_v22  ;;  %v671_v28 = vrot.slane %v13008_v9, 3 }
 0x1a0   :  { %v10416_v54 = vpop.eup %10415  ;;  %v13140_v12 = vmul.f32 %v10414_v15, %v10404_v0  ;;  %10435 = vpow2.f32 %v8771_v27  ;;  %v675_v33 = vrot.slane %v13008_v9, 4  ;;  %v723_v63 = vadd.f32 %v13008_v9, %v13049_v13 }
 0x1a1   :  { %v10418_v7 = vpop.eup %10417  ;;  %v13145_v19 = vmul.f32 %v10416_v54, %v10406_v16  ;;  %10437 = vpow2.f32 %v8772_v2  ;;  %v8776_v25 = vmul.f32 -1.442695, %v741_v34  ;;  %v727_v11 = vadd.f32 %v663_v32, %v13062_v4 }
 0x1a2   :  { %v10420_v8 = vpop.eup %10419  ;;  %v13148_v22 = vmul.f32 %v10418_v7, %v10408_v20  ;;  %10439 = vpow2.f32 %v8773_v21  ;;  %v8777_v59 = vmul.f32 -1.442695, %v745_v6  ;;  %v731_v0 = vadd.f32 %v667_v46, %v13071_v57 }
 0x1a3   :  { %v10422_v27 = vpop.eup %10421  ;;  %v13151_v15 = vmul.f32 %v10420_v8, %v10410_v36  ;;  %10441 = vpow2.f32 %v8774_v24  ;;  %v8778_v30 = vmul.f32 -1.442695, %v749_v26  ;;  %v735_v13 = vadd.f32 %v671_v28, %v13080_v43 }
 0x1a4   :  { %v10424_v16 = vpop.eup %10423  ;;  %10443 = vpow2.f32 %v8775_v62  ;;  %v739_v34 = vadd.f32 %v675_v33, %v13094_v37  ;;  %v8779_v2 = vmul.f32 -1.442695, %v723_v63  ;;  %v13155_v32 = vmul.f32 %v10422_v27, %v10412_v44 }
 0x1a5   :  { %v10426_v20 = vpop.eup %10425  ;;  %10445 = vpow2.f32 %v8776_v25  ;;  %v8780_v21 = vmul.f32 -1.442695, %v727_v11  ;;  %v8781_v46 = vmul.f32 -1.442695, %v731_v0  ;;  %v8782_v36 = vmul.f32 -1.442695, %v735_v13 }
 0x1a6   :  { %v10428_v6 = vpop.eup %10427  ;;  %10447 = vpow2.f32 %v8777_v59  ;;  %v8783_v26 = vmul.f32 -1.442695, %v739_v34  ;;  %v13161_v33 = vadd.f32 %v12959_v17, %v13023_v5  ;;  %v679_v44 = vrot.slane %v13008_v9, 5 }
 0x1a7   :  { %v10430_v54 = vpop.eup %10429  ;;  %10449 = vpow2.f32 %v8778_v30  ;;  %v13168_v30 = vadd.f32 %v12968_v38, %v13023_v5  ;;  %v683_v13 = vrot.slane %v13008_v9, 6  ;;  %v13175_v17 = vadd.f32 %v12985_v1, %v13023_v5 }
 0x1a8   :  { %v10432_v24 = vpop.eup %10431  ;;  %10451 = vpow2.f32 %v8779_v2  ;;  %v13157_v28 = vmul.f32 %v10430_v54, %v10424_v16  ;;  %v687_v8 = vrot.slane %v13008_v9, 7  ;;  %v743_v34 = vadd.f32 %v679_v44, %v13161_v33 }
 0x1a9   :  { %v10434_v62 = vpop.eup %10433  ;;  %10453 = vpow2.f32 %v8780_v21  ;;  %v13164_v63 = vmul.f32 %v10432_v24, %v10426_v20  ;;  %v747_v21 = vadd.f32 %v683_v13, %v13168_v30 }
 0x1aa   :  { %v10436_v59 = vpop.eup %10435  ;;  %10455 = vpow2.f32 %v8781_v46  ;;  %v13171_v7 = vmul.f32 %v10434_v62, %v10428_v6  ;;  %v751_v5 = vadd.f32 %v687_v8, %v13175_v17  ;;  %v8784_v24 = vmul.f32 -1.442695, %v743_v34 }
 0x1ab   :  { %v10438_v25 = vpop.eup %10437  ;;  %v824_v11 = vadd.f32 1.0, %v10436_v59  ;;  %10457 = vpow2.f32 %v8782_v36  ;;  %v8785_v44 = vmul.f32 -1.442695, %v747_v21  ;;  %v905_v8 = vrot.slane %v12921_v29, 1 }
 0x1ac   :  { %v10440_v0 = vpop.eup %10439  ;;  %v825_v27 = vadd.f32 1.0, %v10438_v25  ;;  %10459 = vpow2.f32 %v8783_v26  ;;  %v8786_v25 = vmul.f32 -1.442695, %v751_v5  ;;  %v906_v34 = vrot.slane %v12921_v29, 2 }
 0x1ad   :  { %v10442_v16 = vpop.eup %10441  ;;  %v826_v38 = vadd.f32 1.0, %v10440_v0  ;;  %10461 = vrcp.f32 %v824_v11  ;;  %v907_v21 = vrot.slane %v12921_v29, 3 }
 0x1ae   :  { %v10444_v2 = vpop.eup %10443  ;;  %v827_v20 = vadd.f32 1.0, %v10442_v16  ;;  %10463 = vrcp.f32 %v825_v27 }
 0x1af   :  { %v10446_v6 = vpop.eup %10445  ;;  %v828_v1 = vadd.f32 1.0, %v10444_v2  ;;  %10465 = vrcp.f32 %v826_v38 }
 0x1b0   :  { %v10448_v9 = vpop.eup %10447  ;;  %v829_v46 = vadd.f32 1.0, %v10446_v6  ;;  %10467 = vrcp.f32 %v827_v20 }
 0x1b1   :  { %v10450_v54 = vpop.eup %10449  ;;  %v830_v36 = vadd.f32 1.0, %v10448_v9  ;;  %10469 = vrcp.f32 %v828_v1  ;;  %v908_v9 = vrot.slane %v12921_v29, 4 }
 0x1b2   :  { %v10452_v26 = vpop.eup %10451  ;;  %v831_v62 = vadd.f32 1.0, %v10450_v54  ;;  %10471 = vrcp.f32 %v829_v46 }
 0x1b3   :  { %v10454_v59 = vpop.eup %10453  ;;  %10473 = vrcp.f32 %v830_v36  ;;  %v880_v11 = vadd.f32 1.0, %v10452_v26  ;;  %v909_v36 = vrot.slane %v12921_v29, 5  ;;  %v910_v26 = vrot.slane %v12921_v29, 6 }
 0x1b4   :  { %v10456_v13 = vpop.eup %10455  ;;  %10475 = vrcp.f32 %v831_v62  ;;  %v881_v27 = vadd.f32 1.0, %v10454_v59 }
 0x1b5   :  { %v10458_v0 = vpop.eup %10457  ;;  %10477 = vpow2.f32 %v8784_v24  ;;  %v882_v38 = vadd.f32 1.0, %v10456_v13 }
 0x1b6   :  { %v10460_v16 = vpop.eup %10459  ;;  %10479 = vpow2.f32 %v8785_v44  ;;  %v883_v20 = vadd.f32 1.0, %v10458_v0 }
 0x1b7   :  { %v10462_v2 = vpop.eup %10461  ;;  %10481 = vpow2.f32 %v8786_v25  ;;  %v884_v5 = vadd.f32 1.0, %v10460_v16  ;;  %v911_v25 = vrot.slane %v12921_v29, 7 }
 0x1b8   :  { %v10464_v6 = vpop.eup %10463  ;;  %v920_v1 = vmul.f32 %v10462_v2, %v12921_v29  ;;  %10483 = vrcp.f32 %v880_v11 }
 0x1b9   :  { %v10466_v46 = vpop.eup %10465  ;;  %v921_v54 = vmul.f32 %v10464_v6, %v905_v8  ;;  %10485 = vrcp.f32 %v881_v27 }
 0x1ba   :  { %v10468_v24 = vpop.eup %10467  ;;  %10487 = vrcp.f32 %v882_v38  ;;  %v922_v62 = vmul.f32 %v10466_v46, %v906_v34  ;;  %v13189_v44 = vadd.f32 %v13140_v12, %v920_v1 }
 0x1bb   :  { %v10470_v59 = vpop.eup %10469  ;;  %10489 = vrcp.f32 %v883_v20  ;;  %v923_v13 = vmul.f32 %v10468_v24, %v907_v21  ;;  %v13193_v11 = vadd.f32 %v13145_v19, %v921_v54 }
 0x1bc   :  { %v10472_v0 = vpop.eup %10471  ;;  %10491 = vrcp.f32 %v884_v5  ;;  %v924_v8 = vmul.f32 %v10470_v59, %v908_v9  ;;  %v13196_v27 = vadd.f32 %v13148_v22, %v922_v62 }
 0x1bd   :  { %v10474_v16 = vpop.eup %10473  ;;  %v925_v38 = vmul.f32 %v10472_v0, %v909_v36  ;;  %v13199_v34 = vadd.f32 %v13151_v15, %v923_v13  ;;  %10493 = vtanh.f32 %v13189_v44 }
 0x1be   :  { %v10476_v12 = vpop.eup %10475  ;;  %v926_v2 = vmul.f32 %v10474_v16, %v910_v26  ;;  %v13203_v29 = vadd.f32 %v13155_v32, %v924_v8  ;;  %10495 = vtanh.f32 %v13193_v11 }
 0x1bf   :  { %v10478_v19 = vpop.eup %10477  ;;  %v927_v20 = vmul.f32 %v10476_v12, %v911_v25  ;;  %v13207_v21 = vadd.f32 %v13157_v28, %v925_v38  ;;  %10497 = vtanh.f32 %v13196_v27 }
 0x1c0   :  { %v10480_v22 = vpop.eup %10479  ;;  %v885_v6 = vadd.f32 1.0, %v10478_v19  ;;  %v13211_v15 = vadd.f32 %v13164_v63, %v926_v2  ;;  %10499 = vtanh.f32 %v13199_v34 }
 0x1c1   :  { %v10482_v1 = vpop.eup %10481  ;;  %v886_v5 = vadd.f32 1.0, %v10480_v22  ;;  %v13215_v32 = vadd.f32 %v13171_v7, %v927_v20  ;;  %10501 = vtanh.f32 %v13203_v29 }
 0x1c2   :  { %v10484_v9 = vpop.eup %10483  ;;  %v887_v46 = vadd.f32 1.0, %v10482_v1  ;;  %10503 = vrcp.f32 %v885_v6 }
 0x1c3   :  { %v10486_v28 = vpop.eup %10485  ;;  %10505 = vrcp.f32 %v886_v5 }
 0x1c4   :  { %v10488_v54 = vpop.eup %10487  ;;  %10507 = vrcp.f32 %v887_v46 }
 0x1c5   :  { %v10490_v36 = vpop.eup %10489  ;;  %10509 = vtanh.f32 %v13207_v21 }
 0x1c6   :  { %v10492_v63 = vpop.eup %10491  ;;  %10511 = vtanh.f32 %v13211_v15 }
 0x1c7   :  { %v10494_v24 = vpop.eup %10493  ;;  %10513 = vtanh.f32 %v13215_v32 }
 0x1c8   :  { %v10496_v7 = vpop.eup %10495  ;;  %v952_v26 = vmul.f32 %v10494_v24, %v10484_v9 }
 0x1c9   :  { %v10498_v62 = vpop.eup %10497  ;;  %v953_v59 = vmul.f32 %v10496_v7, %v10486_v28 }
 0x1ca   :  { %v10500_v25 = vpop.eup %10499  ;;  %v954_v13 = vmul.f32 %v10498_v62, %v10488_v54  ;;  %960 = vst [vmem:[#allocation2] sm:$0x1] %v952_v26 }
 0x1cb   :  { %v10502_v0 = vpop.eup %10501  ;;  %v955_v8 = vmul.f32 %v10500_v25, %v10490_v36  ;;  %961 = vst [vmem:[#allocation2 + $0x8] sm:$0x1] %v953_v59  ;;  %v976_v16 = vrot.slane %v953_v59, 7 }
 0x1cc   :  { %v10504_v38 = vpop.eup %10503  ;;  %v956_v12 = vmul.f32 %v10502_v0, %v10492_v63  ;;  %962 = vst [vmem:[#allocation2 + $0x10] sm:$0x1] %v954_v13  ;;  %v979_v2 = vrot.slane %v954_v13, 6 }
 0x1cd   :  { %v10506_v19 = vpop.eup %10505  ;;  %963 = vst [vmem:[#allocation2 + $0x18] sm:$0x1] %v955_v8  ;;  %v978_v20 = vsel %vm977_vm0, %v976_v16, %v952_v26  ;;  %v982_v22 = vrot.slane %v955_v8, 5  ;;  %v16143_v8 = vmov 0.0   ;;  %v16144_v16 = vld [vmem:[#allocation21_spill] sm:$0xff] }
 0x1ce   :  { %v10508_v6 = vpop.eup %10507  ;;  %964 = vst [vmem:[#allocation2 + $0x20] sm:$0x1] %v956_v12  ;;  %v981_v1 = vsel %vm980_vm1, %v979_v2, %v978_v20  ;;  %v985_v5 = vrot.slane %v956_v12, 4  ;;  %v16146_v12 = vld [vmem:[#allocation23_spill] sm:$0xff]  ;;  %v16147_v2 = vld [vmem:[#allocation24_spill] sm:$0xff]  ;;  %v16149_v20 = vld [vmem:[#allocation26_spill] sm:$0xff] }
 0x1cf   :  { %v10510_v9 = vpop.eup %10509  ;;  %v984_v46 = vsel %vm983_vm2, %v982_v22, %v981_v1  ;;  %v16150_v22 = vld [vmem:[#allocation27_spill] sm:$0xff]  ;;  %v16152_v1 = vld [vmem:[#allocation29_spill] sm:$0xff] }
 0x1d0   :  { %v10512_v28 = vpop.eup %10511  ;;  %v957_v54 = vmul.f32 %v10510_v9, %v10504_v38  ;;  %v987_v36 = vsel %vm986_vm3, %v985_v5, %v984_v46  ;;  %v16145_v38 = vld [vmem:[#allocation22_spill] sm:$0xff]  ;;  %v16154_v9 = vld [vmem:[#allocation31_spill] sm:$0xff]  ;;  %v16155_v46 = vld [vmem:[#allocation32_spill] sm:$0xff] }
 0x1d1   :  { %v10514_v63 = vpop.eup %10513  ;;  %v958_v24 = vmul.f32 %v10512_v28, %v10506_v19  ;;  %v16148_v19 = vld [vmem:[#allocation25_spill] sm:$0xff]  ;;  %v16153_v5 = vld [vmem:[#allocation30_spill] sm:$0xff] }
 0x1d2   :  { %v959_v7 = vmul.f32 %v10514_v63, %v10508_v6  ;;  %965 = vst [vmem:[#allocation2 + $0x28] sm:$0x1] %v957_v54  ;;  %v988_v26 = vrot.slane %v957_v54, 3  ;;  %v16151_v6 = vld [vmem:[#allocation28_spill] sm:$0xff]  ;;  %v16156_v28 = vld [vmem:[#allocation33_spill] sm:$0xff]  ;;  %v16157_v54 = vld [vmem:[#allocation34_spill] sm:$0xff] }
 0x1d3   :  { %966 = vst [vmem:[#allocation2 + $0x30] sm:$0x1] %v958_v24  ;;  %v991_v62 = vrot.slane %v958_v24, 2  ;;  %v16159_v63 = vld [vmem:[#allocation36_spill] sm:$0xff]  ;;  %v16160_v24 = vld [vmem:[#allocation37_spill] sm:$0xff] }
 0x1d4   :  { %967 = vst [vmem:[#allocation2 + $0x38] sm:$0x1] %v959_v7  ;;  %v990_v59 = vsel %vm989_vm4, %v988_v26, %v987_v36  ;;  %v994_v25 = vrot.slane %v959_v7, 1  ;;  %v16158_v36 = vld [vmem:[#allocation35_spill] sm:$0xff]  ;;  %v16161_v7 = vld [vmem:[#allocation38_spill] sm:$0xff] }
 0x1d5   :  { %v993_v13 = vsel %vm992_vm5, %v991_v62, %v990_v59  ;;  %v16162_v26 = vld [vmem:[#allocation39_spill] sm:$0xff]  ;;  %v16163_v62 = vld [vmem:[#allocation40_spill] sm:$0xff]  ;;  %v16164_v59 = vld [vmem:[#allocation41_spill] sm:$0xff] }
 0x1d6   :  { %v996_v0 = vsel %vm995_vm6, %v994_v25, %v993_v13  ;;  %v16165_v25 = vld [vmem:[#allocation42_spill] sm:$0xff]  ;;  %v16166_v13 = vld [vmem:[#allocation43_spill] sm:$0xff] }
 0x1d7   :  { %1063 = vmatmul.mubr.f32.vlgmr.msra.gmra.mrb[18].mxu0 %v996_v0  ;;  %1134 = vmatmul.mubr.f32.vlgmr.msra.gmra.mrb[18].mxu1 %v996_v0  ;;  %v16167_v0 = vld [vmem:[#allocation44_spill] sm:$0xff] }
 0x1d8   :  { %9395 = vmatpush1.bf16.msra.mxu0 %v12746_v47  ;;  %9427 = vmatpush1.bf16.msra.mxu1 %v12749_v50 }
 0x1d9   :  { %9397 = vmatprep.subr.bf16.mxu0 %v12752_v53  ;;  %9429 = vmatprep.subr.bf16.mxu1 %v12754_v56 }
 0x1da   :  { %1547 = vmatprep.mubr.f32.mxu0 %v16143_v8  ;;  %1618 = vmatprep.mubr.f32.mxu1 %v16143_v8 }
 0x1dc   :  { %9399 = vmatpush1.bf16.msra.mxu0 %v12760_v60  ;;  %9431 = vmatpush1.bf16.msra.mxu1 %v16144_v16 }
 0x1dd   :  { %9401 = vmatprep.subr.bf16.mxu0 %v16145_v38  ;;  %9433 = vmatprep.subr.bf16.mxu1 %v16146_v12 }
 0x1e0   :  { %9403 = vmatpush1.bf16.msra.mxu0 %v16147_v2  ;;  %9435 = vmatpush1.bf16.msra.mxu1 %v16148_v19 }
 0x1e1   :  { %9405 = vmatprep.subr.bf16.mxu0 %v16149_v20  ;;  %9437 = vmatprep.subr.bf16.mxu1 %v16150_v22 }
 0x1e4   :  { %9407 = vmatpush1.bf16.msra.mxu0 %v16151_v6  ;;  %9439 = vmatpush1.bf16.msra.mxu1 %v16152_v1 }
 0x1e5   :  { %9409 = vmatprep.subr.bf16.mxu0 %v16153_v5  ;;  %9441 = vmatprep.subr.bf16.mxu1 %v16154_v9  ;;  %v16171_v5 = vld [vmem:[#allocation47_spill] sm:$0xff] }
 0x1e8   :  { %9411 = vmatpush1.bf16.msra.mxu0 %v16155_v46  ;;  %9443 = vmatpush1.bf16.msra.mxu1 %v16156_v28 }
 0x1e9   :  { %9413 = vmatprep.subr.bf16.mxu0 %v16157_v54  ;;  %9445 = vmatprep.subr.bf16.mxu1 %v16158_v36  ;;  %v16168_v54 = vld [vmem:[#allocation45_spill] sm:$0xff]  ;;  %v16169_v36 = vld [vmem:[#allocation19_spill] sm:$0xff] }
 0x1ec   :  { %9415 = vmatpush1.bf16.msra.mxu0 %v16159_v63  ;;  %9447 = vmatpush1.bf16.msra.mxu1 %v16160_v24  ;;  %v16170_v63 = vld [vmem:[#allocation20_spill] sm:$0xff] }
 0x1ed   :  { %9417 = vmatprep.subr.bf16.mxu0 %v16161_v7  ;;  %9449 = vmatprep.subr.bf16.mxu1 %v16162_v26 }
 0x1f0   :  { %9419 = vmatpush1.bf16.msra.mxu0 %v16163_v62  ;;  %9451 = vmatpush1.bf16.msra.mxu1 %v16164_v59 }
 0x1f1   :  { %9421 = vmatprep.subr.bf16.mxu0 %v16165_v25  ;;  %9453 = vmatprep.subr.bf16.mxu1 %v16166_v13 }
 0x1f4   :  { %9423 = vmatpush1.bf16.msra.mxu0 %v16167_v0  ;;  %9455 = vmatpush1.bf16.msra.mxu1 %v16168_v54 }
 0x1f5   :  { %9457 = vmatprep.subr.bf16.mxu0 %v16169_v36  ;;  %9489 = vmatprep.subr.bf16.mxu1 %v16170_v63 }
 0x2aa   :  { %v1064_v24 = vpop.f32.mrb[18].mxu0  ;;  %v13262_v7 = vpop.f32.mrb[18].mxu1 }
 0x2ab   :  { %v1144_v26 = vrot.slane %v1064_v24, 7  ;;  %v1148_v28 = vrot.slane %v1064_v24, 1  ;;  %v1152_v62 = vrot.slane %v1064_v24, 2  ;;  %v1156_v46 = vrot.slane %v1064_v24, 3  ;;  %v13264_v59 = vpop.f32.mrb[19].mxu0  ;;  %v13266_v25 = vpop.f32.mrb[19].mxu1 }
 0x2ac   :  { %v1160_v13 = vrot.slane %v1064_v24, 4  ;;  %v1164_v9 = vrot.slane %v1064_v24, 5  ;;  %v1168_v0 = vrot.slane %v1064_v24, 6  ;;  %v1208_v54 = vadd.f32 %v1064_v24, %v12989_v18 }
 0x2ad   :  { %v1204_v36 = vadd.f32 %v1144_v26, %v16171_v5  ;;  %v1212_v63 = vadd.f32 %v1148_v28, %v12991_v55  ;;  %v1216_v1 = vadd.f32 %v1152_v62, %v12993_v49  ;;  %v1220_v6 = vadd.f32 %v1156_v46, %v12995_v45 }
 0x2ae   :  { %v1224_v22 = vadd.f32 %v1160_v13, %v12997_v41  ;;  %v1228_v20 = vadd.f32 %v1164_v9, %v12999_v42  ;;  %v8788_v19 = vmul.f32 -1.442695, %v1208_v54  ;;  %v1232_v2 = vadd.f32 %v1168_v0, %v13001_v61 }
 0x2af   :  { %v8787_v12 = vmul.f32 -1.442695, %v1204_v36  ;;  %v8789_v38 = vmul.f32 -1.442695, %v1212_v63  ;;  %v8790_v16 = vmul.f32 -1.442695, %v1216_v1 }
 0x2b0   :  { %10515 = vpow2.f32 %v8788_v19  ;;  %v8791_v24 = vmul.f32 -1.442695, %v1220_v6  ;;  %v8792_v26 = vmul.f32 -1.442695, %v1224_v22  ;;  %v1146_v28 = vrot.slane %v13262_v7, 7 }
 0x2b1   :  { %10517 = vpow2.f32 %v8787_v12  ;;  %v8793_v62 = vmul.f32 -1.442695, %v1228_v20  ;;  %v1150_v46 = vrot.slane %v13262_v7, 1  ;;  %v8794_v13 = vmul.f32 -1.442695, %v1232_v2 }
 0x2b2   :  { %10519 = vpow2.f32 %v8789_v38  ;;  %v1154_v9 = vrot.slane %v13262_v7, 2  ;;  %v1158_v54 = vrot.slane %v13262_v7, 3  ;;  %v1206_v36 = vadd.f32 %v1146_v28, %v13027_v31 }
 0x2b3   :  { %10521 = vpow2.f32 %v8790_v16  ;;  %v1210_v12 = vadd.f32 %v13262_v7, %v13032_v52  ;;  %v1214_v19 = vadd.f32 %v1150_v46, %v13037_v10  ;;  %v1162_v2 = vrot.slane %v13262_v7, 4 }
 0x2b4   :  { %10523 = vpow2.f32 %v8791_v24  ;;  %v1218_v38 = vadd.f32 %v1154_v9, %v13053_v40  ;;  %v1222_v16 = vadd.f32 %v1158_v54, %v13042_v3  ;;  %v1166_v22 = vrot.slane %v13262_v7, 5 }
 0x2b5   :  { %10525 = vpow2.f32 %v8792_v26  ;;  %v1145_v24 = vrot.slane %v13264_v59, 7  ;;  %v1226_v46 = vadd.f32 %v1162_v2, %v13089_v51  ;;  %v16172_v2 = vld [vmem:[#allocation55_spill] sm:$0xff] }
 0x2b6   :  { %10527 = vpow2.f32 %v8793_v62  ;;  %v1170_v62 = vrot.slane %v13262_v7, 6  ;;  %v1230_v54 = vadd.f32 %v1166_v22, %v13098_v58  ;;  %v1161_v7 = vrot.slane %v13264_v59, 4 }
 0x2b7   :  { %10529 = vpow2.f32 %v8794_v13  ;;  %v1165_v22 = vrot.slane %v13264_v59, 5  ;;  %v1169_v58 = vrot.slane %v13264_v59, 6 }
 0x2b8   :  { %10531 = vtanh.f32 %v1206_v36  ;;  %v1149_v36 = vrot.slane %v13264_v59, 1  ;;  %v1234_v51 = vadd.f32 %v1170_v62, %v13111_v23 }
 0x2b9   :  { %10533 = vtanh.f32 %v1210_v12 }
 0x2ba   :  { %v10516_v20 = vpop.eup %10515  ;;  %10535 = vtanh.f32 %v1214_v19 }
 0x2bb   :  { %v10518_v6 = vpop.eup %10517  ;;  %v1261_v1 = vadd.f32 1.0, %v10516_v20  ;;  %10537 = vtanh.f32 %v1218_v38  ;;  %v1153_v38 = vrot.slane %v13264_v59, 2 }
 0x2bc   :  { %v10520_v63 = vpop.eup %10519  ;;  %v1260_v0 = vadd.f32 1.0, %v10518_v6  ;;  %10539 = vtanh.f32 %v1222_v16  ;;  %v1157_v16 = vrot.slane %v13264_v59, 3 }
 0x2bd   :  { %v10522_v26 = vpop.eup %10521  ;;  %v1262_v28 = vadd.f32 1.0, %v10520_v63  ;;  %10541 = vrcp.f32 %v1261_v1  ;;  %v1205_v1 = vadd.f32 %v1145_v24, %v16172_v2  ;;  %v1217_v24 = vadd.f32 %v1153_v38, %v13076_v39 }
 0x2be   :  { %v10524_v13 = vpop.eup %10523  ;;  %v1263_v9 = vadd.f32 1.0, %v10522_v26  ;;  %10543 = vrcp.f32 %v1260_v0  ;;  %v1209_v26 = vadd.f32 %v13264_v59, %v13058_v48  ;;  %v1147_v48 = vrot.slane %v13266_v25, 7  ;;  %v16174_v59 = vld [vmem:[#allocation71_spill] sm:$0xff] }
 0x2bf   :  { %v10526_v12 = vpop.eup %10525  ;;  %v1264_v19 = vadd.f32 1.0, %v10524_v13  ;;  %10545 = vrcp.f32 %v1262_v28  ;;  %v8795_v3 = vmul.f32 -1.442695, %v1205_v1  ;;  %v1151_v38 = vrot.slane %v13266_v25, 1 }
 0x2c0   :  { %v10528_v20 = vpop.eup %10527  ;;  %v1265_v6 = vadd.f32 1.0, %v10526_v12  ;;  %10547 = vrcp.f32 %v1263_v9  ;;  %v1213_v12 = vadd.f32 %v1149_v36, %v13067_v35  ;;  %v8796_v36 = vmul.f32 -1.442695, %v1209_v26 }
 0x2c1   :  { %v10530_v63 = vpop.eup %10529  ;;  %v1266_v0 = vadd.f32 1.0, %v10528_v20  ;;  %10549 = vrcp.f32 %v1264_v19  ;;  %v16173_v20 = vld [vmem:[#allocation67_spill] sm:$0xff] }
 0x2c2   :  { %v10532_v28 = vpop.eup %10531  ;;  %v1267_v13 = vadd.f32 1.0, %v10530_v63  ;;  %10551 = vrcp.f32 %v1265_v6  ;;  %v1221_v19 = vadd.f32 %v1157_v16, %v16173_v20  ;;  %v1225_v6 = vadd.f32 %v1161_v7, %v13103_v14 }
 0x2c3   :  { %v10534_v9 = vpop.eup %10533  ;;  %10553 = vrcp.f32 %v1266_v0  ;;  %v1229_v63 = vadd.f32 %v1165_v22, %v16174_v59  ;;  %v16175_v0 = vld [vmem:[#allocation73_spill] sm:$0xff]  ;;  %v8797_v23 = vmul.f32 -1.442695, %v1213_v12  ;;  %v1155_v20 = vrot.slane %v13266_v25, 2  ;;  %v16176_v22 = vld [vmem:[#allocation60_spill] sm:$0xff] }
 0x2c4   :  { %v10536_v2 = vpop.eup %10535  ;;  %10555 = vrcp.f32 %v1267_v13  ;;  %v1233_v62 = vadd.f32 %v1169_v58, %v16175_v0  ;;  %v8798_v13 = vmul.f32 -1.442695, %v1217_v24  ;;  %v8799_v1 = vmul.f32 -1.442695, %v1221_v19 }
 0x2c5   :  { %v10538_v40 = vpop.eup %10537  ;;  %10557 = vtanh.f32 %v1226_v46  ;;  %v1159_v7 = vrot.slane %v13266_v25, 3  ;;  %v1207_v26 = vadd.f32 %v1147_v48, %v16176_v22  ;;  %v8800_v58 = vmul.f32 -1.442695, %v1225_v6 }
 0x2c6   :  { %v10540_v35 = vpop.eup %10539  ;;  %10559 = vtanh.f32 %v1230_v54  ;;  %v8801_v19 = vmul.f32 -1.442695, %v1229_v63  ;;  %v8802_v48 = vmul.f32 -1.442695, %v1233_v62 }
 0x2c7   :  { %v10542_v16 = vpop.eup %10541  ;;  %10561 = vtanh.f32 %v1234_v51  ;;  %v1211_v51 = vadd.f32 %v13266_v25, %v13062_v4  ;;  %v1223_v6 = vadd.f32 %v1159_v7, %v13094_v37  ;;  %v1163_v7 = vrot.slane %v13266_v25, 4 }
 0x2c8   :  { %v10544_v39 = vpop.eup %10543  ;;  %v13311_v46 = vmul.f32 %v10542_v16, %v10534_v9  ;;  %10563 = vpow2.f32 %v8795_v3  ;;  %v1215_v9 = vadd.f32 %v1151_v38, %v13071_v57 }
 0x2c9   :  { %v10546_v54 = vpop.eup %10545  ;;  %v13315_v59 = vmul.f32 %v10544_v39, %v10532_v28  ;;  %10565 = vpow2.f32 %v8796_v36  ;;  %v1219_v39 = vadd.f32 %v1155_v20, %v13080_v43  ;;  %v8803_v36 = vmul.f32 -1.442695, %v1207_v26 }
 0x2ca   :  { %v10548_v12 = vpop.eup %10547  ;;  %v13319_v24 = vmul.f32 %v10546_v54, %v10536_v2  ;;  %10567 = vpow2.f32 %v8797_v23  ;;  %v8804_v23 = vmul.f32 -1.442695, %v1211_v51  ;;  %v8805_v38 = vmul.f32 -1.442695, %v1215_v9 }
 0x2cb   :  { %v10550_v3 = vpop.eup %10549  ;;  %v13322_v16 = vmul.f32 %v10548_v12, %v10538_v40  ;;  %10569 = vpow2.f32 %v8798_v13  ;;  %v8806_v40 = vmul.f32 -1.442695, %v1219_v39  ;;  %v8807_v62 = vmul.f32 -1.442695, %v1223_v6 }
 0x2cc   :  { %v10552_v28 = vpop.eup %10551  ;;  %10571 = vpow2.f32 %v8799_v1  ;;  %v13326_v4 = vmul.f32 %v10550_v3, %v10540_v35  ;;  %v1171_v9 = vrot.slane %v13266_v25, 6  ;;  %v1227_v6 = vadd.f32 %v1163_v7, %v13161_v33 }
 0x2cd   :  { %v10554_v2 = vpop.eup %10553  ;;  %10573 = vpow2.f32 %v8800_v58  ;;  %v1167_v58 = vrot.slane %v13266_v25, 5 }
 0x2ce   :  { %v10556_v63 = vpop.eup %10555  ;;  %10575 = vpow2.f32 %v8801_v19 }
 0x2cf   :  { %v10558_v54 = vpop.eup %10557  ;;  %10577 = vpow2.f32 %v8802_v48 }
 0x2d0   :  { %v10560_v13 = vpop.eup %10559  ;;  %10579 = vpow2.f32 %v8803_v36  ;;  %v13328_v20 = vmul.f32 %v10558_v54, %v10552_v28  ;;  %v1235_v54 = vadd.f32 %v1171_v9, %v13175_v17 }
 0x2d1   :  { %v10562_v1 = vpop.eup %10561  ;;  %10581 = vpow2.f32 %v8804_v23  ;;  %v13331_v35 = vmul.f32 %v10560_v13, %v10554_v2  ;;  %v1231_v23 = vadd.f32 %v1167_v58, %v13168_v30 }
 0x2d2   :  { %v10564_v26 = vpop.eup %10563  ;;  %10583 = vpow2.f32 %v8805_v38  ;;  %v13334_v51 = vmul.f32 %v10562_v1, %v10556_v63  ;;  %v8808_v1 = vmul.f32 -1.442695, %v1227_v6  ;;  %v1397_v6 = vrot.slane %v13193_v11, 7 }
 0x2d3   :  { %v10566_v12 = vpop.eup %10565  ;;  %v1308_v19 = vadd.f32 1.0, %v10564_v26  ;;  %10585 = vpow2.f32 %v8806_v40  ;;  %v8809_v7 = vmul.f32 -1.442695, %v1231_v23 }
 0x2d4   :  { %v10568_v3 = vpop.eup %10567  ;;  %v1309_v48 = vadd.f32 1.0, %v10566_v12  ;;  %10587 = vpow2.f32 %v8807_v62 }
 0x2d5   :  { %v10570_v39 = vpop.eup %10569  ;;  %v1310_v28 = vadd.f32 1.0, %v10568_v3  ;;  %10589 = vrcp.f32 %v1308_v19  ;;  %v8810_v3 = vmul.f32 -1.442695, %v1235_v54 }
 0x2d6   :  { %v10572_v36 = vpop.eup %10571  ;;  %v1311_v2 = vadd.f32 1.0, %v10570_v39  ;;  %10591 = vrcp.f32 %v1309_v48 }
 0x2d7   :  { %v10574_v63 = vpop.eup %10573  ;;  %v1312_v38 = vadd.f32 1.0, %v10572_v36  ;;  %10593 = vrcp.f32 %v1310_v28  ;;  %v1396_v36 = vrot.slane %v13189_v44, 7  ;;  %v1400_v44 = vrot.slane %v13203_v29, 7 }
 0x2d8   :  { %v10576_v25 = vpop.eup %10575  ;;  %v1313_v40 = vadd.f32 1.0, %v10574_v63  ;;  %10595 = vrcp.f32 %v1311_v2 }
 0x2d9   :  { %v10578_v13 = vpop.eup %10577  ;;  %v1314_v62 = vadd.f32 1.0, %v10576_v25  ;;  %10597 = vrcp.f32 %v1312_v38  ;;  %v1398_v25 = vrot.slane %v13196_v27, 7 }
 0x2da   :  { %v10580_v26 = vpop.eup %10579  ;;  %v1315_v12 = vadd.f32 1.0, %v10578_v13  ;;  %10599 = vrcp.f32 %v1313_v40 }
 0x2db   :  { %v10582_v19 = vpop.eup %10581  ;;  %10601 = vrcp.f32 %v1314_v62  ;;  %v1364_v48 = vadd.f32 1.0, %v10580_v26  ;;  %v1399_v62 = vrot.slane %v13199_v34, 7  ;;  %v1402_v34 = vrot.slane %v13211_v15, 7 }
 0x2dc   :  { %v10584_v58 = vpop.eup %10583  ;;  %10603 = vrcp.f32 %v1315_v12  ;;  %v1365_v9 = vadd.f32 1.0, %v10582_v19  ;;  %v1401_v19 = vrot.slane %v13207_v21, 7 }
 0x2dd   :  { %v10586_v39 = vpop.eup %10585  ;;  %10605 = vpow2.f32 %v8808_v1  ;;  %v1366_v2 = vadd.f32 1.0, %v10584_v58 }
 0x2de   :  { %v10588_v28 = vpop.eup %10587  ;;  %10607 = vpow2.f32 %v8809_v7  ;;  %v1367_v38 = vadd.f32 1.0, %v10586_v39 }
 0x2df   :  { %v10590_v63 = vpop.eup %10589  ;;  %10609 = vpow2.f32 %v8810_v3  ;;  %v1368_v40 = vadd.f32 1.0, %v10588_v28 }
 0x2e0   :  { %v10592_v23 = vpop.eup %10591  ;;  %v1412_v54 = vmul.f32 %v10590_v63, %v1396_v36  ;;  %10611 = vrcp.f32 %v1364_v48 }
 0x2e1   :  { %v10594_v13 = vpop.eup %10593  ;;  %v1413_v1 = vmul.f32 %v10592_v23, %v1397_v6  ;;  %10613 = vrcp.f32 %v1365_v9 }
 0x2e2   :  { %v10596_v26 = vpop.eup %10595  ;;  %10615 = vrcp.f32 %v1366_v2  ;;  %v1414_v12 = vmul.f32 %v10594_v13, %v1398_v25  ;;  %v13346_v11 = vadd.f32 %v13315_v59, %v1412_v54  ;;  %v1403_v59 = vrot.slane %v13215_v32, 7 }
 0x2e3   :  { %v10598_v7 = vpop.eup %10597  ;;  %10617 = vrcp.f32 %v1367_v38  ;;  %v1415_v27 = vmul.f32 %v10596_v26, %v1399_v62  ;;  %v13350_v3 = vadd.f32 %v13311_v46, %v1413_v1 }
 0x2e4   :  { %v10600_v58 = vpop.eup %10599  ;;  %10619 = vrcp.f32 %v1368_v40  ;;  %v1416_v48 = vmul.f32 %v10598_v7, %v1400_v44  ;;  %v13354_v29 = vadd.f32 %v13319_v24, %v1414_v12 }
 0x2e5   :  { %v10602_v39 = vpop.eup %10601  ;;  %v1417_v9 = vmul.f32 %v10600_v58, %v1401_v19  ;;  %v13358_v28 = vadd.f32 %v13322_v16, %v1415_v27  ;;  %10621 = vtanh.f32 %v13346_v11 }
 0x2e6   :  { %v10604_v21 = vpop.eup %10603  ;;  %v1418_v46 = vmul.f32 %v10602_v39, %v1402_v34  ;;  %v13362_v36 = vadd.f32 %v13326_v4, %v1416_v48  ;;  %10623 = vtanh.f32 %v13350_v3 }
 0x2e7   :  { %v10606_v15 = vpop.eup %10605  ;;  %v1419_v2 = vmul.f32 %v10604_v21, %v1403_v59  ;;  %v13366_v24 = vadd.f32 %v13328_v20, %v1417_v9  ;;  %10625 = vtanh.f32 %v13354_v29 }
 0x2e8   :  { %v10608_v32 = vpop.eup %10607  ;;  %v1369_v63 = vadd.f32 1.0, %v10606_v15  ;;  %v13370_v16 = vadd.f32 %v13331_v35, %v1418_v46  ;;  %10627 = vtanh.f32 %v13358_v28 }
 0x2e9   :  { %v10610_v6 = vpop.eup %10609  ;;  %v1370_v38 = vadd.f32 1.0, %v10608_v32  ;;  %v13374_v4 = vadd.f32 %v13334_v51, %v1419_v2  ;;  %10629 = vtanh.f32 %v13362_v36 }
 0x2ea   :  { %v10612_v23 = vpop.eup %10611  ;;  %v1371_v25 = vadd.f32 1.0, %v10610_v6  ;;  %10631 = vrcp.f32 %v1369_v63 }
 0x2eb   :  { %v10614_v20 = vpop.eup %10613  ;;  %10633 = vrcp.f32 %v1370_v38 }
 0x2ec   :  { %v10616_v54 = vpop.eup %10615  ;;  %10635 = vrcp.f32 %v1371_v25 }
 0x2ed   :  { %v10618_v40 = vpop.eup %10617  ;;  %10637 = vtanh.f32 %v13366_v24 }
 0x2ee   :  { %v10620_v35 = vpop.eup %10619  ;;  %10639 = vtanh.f32 %v13370_v16 }
 0x2ef   :  { %v10622_v13 = vpop.eup %10621  ;;  %10641 = vtanh.f32 %v13374_v4 }
 0x2f0   :  { %v10624_v51 = vpop.eup %10623  ;;  %v1444_v62 = vmul.f32 %v10622_v13, %v10612_v23 }
 0x2f1   :  { %v10626_v1 = vpop.eup %10625  ;;  %v1445_v26 = vmul.f32 %v10624_v51, %v10614_v20 }
 0x2f2   :  { %v10628_v44 = vpop.eup %10627  ;;  %v1446_v12 = vmul.f32 %v10626_v1, %v10616_v54  ;;  %1452 = vst [vmem:[#allocation2] sm:$0x2] %v1444_v62  ;;  %v1468_v7 = vrot.slane %v1444_v62, 1  ;;  %v16177_v1 = vld [vmem:[#allocation21_spill] sm:$0xff] }
 0x2f3   :  { %v10630_v19 = vpop.eup %10629  ;;  %v1447_v27 = vmul.f32 %v10628_v44, %v10618_v40  ;;  %1453 = vst [vmem:[#allocation2 + $0x8] sm:$0x2] %v1445_v26  ;;  %v16179_v44 = vld [vmem:[#allocation23_spill] sm:$0xff] }
 0x2f4   :  { %v10632_v58 = vpop.eup %10631  ;;  %v1448_v34 = vmul.f32 %v10630_v19, %v10620_v35  ;;  %1454 = vst [vmem:[#allocation2 + $0x10] sm:$0x2] %v1446_v12  ;;  %v1469_v48 = vsel %vm977_vm0, %v1445_v26, %v1468_v7  ;;  %v1470_v39 = vrot.slane %v1446_v12, 7  ;;  %v16178_v26 = vld [vmem:[#allocation22_spill] sm:$0xff]  ;;  %v16180_v12 = vld [vmem:[#allocation24_spill] sm:$0xff]  ;;  %v16181_v7 = vld [vmem:[#allocation25_spill] sm:$0xff] }
 0x2f5   :  { %v10634_v59 = vpop.eup %10633  ;;  %1455 = vst [vmem:[#allocation2 + $0x18] sm:$0x2] %v1447_v27  ;;  %v1472_v9 = vrot.slane %v1447_v27, 6  ;;  %v16182_v19 = vld [vmem:[#allocation26_spill] sm:$0xff]  ;;  %v16183_v27 = vld [vmem:[#allocation27_spill] sm:$0xff] }
 0x2f6   :  { %v10636_v21 = vpop.eup %10635  ;;  %1456 = vst [vmem:[#allocation2 + $0x20] sm:$0x2] %v1448_v34  ;;  %v1471_v46 = vsel %vm980_vm1, %v1470_v39, %v1469_v48  ;;  %v1474_v15 = vrot.slane %v1448_v34, 5  ;;  %v16185_v34 = vld [vmem:[#allocation29_spill] sm:$0xff]  ;;  %v16186_v48 = vld [vmem:[#allocation30_spill] sm:$0xff]  ;;  %v16187_v39 = vld [vmem:[#allocation31_spill] sm:$0xff] }
 0x2f7   :  { %v10638_v2 = vpop.eup %10637  ;;  %v1473_v32 = vsel %vm983_vm2, %v1472_v9, %v1471_v46  ;;  %v16189_v9 = vld [vmem:[#allocation33_spill] sm:$0xff]  ;;  %v16191_v46 = vld [vmem:[#allocation35_spill] sm:$0xff] }
 0x2f8   :  { %v10640_v63 = vpop.eup %10639  ;;  %v1449_v6 = vmul.f32 %v10638_v2, %v10632_v58  ;;  %v1475_v38 = vsel %vm986_vm3, %v1474_v15, %v1473_v32  ;;  %v16184_v58 = vld [vmem:[#allocation28_spill] sm:$0xff]  ;;  %v16193_v2 = vld [vmem:[#allocation37_spill] sm:$0xff]  ;;  %v16194_v32 = vld [vmem:[#allocation38_spill] sm:$0xff] }
 0x2f9   :  { %v10642_v23 = vpop.eup %10641  ;;  %v1450_v25 = vmul.f32 %v10640_v63, %v10634_v59  ;;  %v16188_v59 = vld [vmem:[#allocation32_spill] sm:$0xff]  ;;  %v16195_v63 = vld [vmem:[#allocation39_spill] sm:$0xff] }
 0x2fa   :  { %v1451_v20 = vmul.f32 %v10642_v23, %v10636_v21  ;;  %1457 = vst [vmem:[#allocation2 + $0x28] sm:$0x2] %v1449_v6  ;;  %v1476_v54 = vrot.slane %v1449_v6, 4  ;;  %v16190_v21 = vld [vmem:[#allocation34_spill] sm:$0xff]  ;;  %v16192_v15 = vld [vmem:[#allocation36_spill] sm:$0xff] }
 0x2fb   :  { %1458 = vst [vmem:[#allocation2 + $0x30] sm:$0x2] %v1450_v25  ;;  %v1478_v40 = vrot.slane %v1450_v25, 3  ;;  %v16196_v6 = vld [vmem:[#allocation40_spill] sm:$0xff]  ;;  %v16198_v23 = vld [vmem:[#allocation42_spill] sm:$0xff]  ;;  %v16199_v25 = vld [vmem:[#allocation43_spill] sm:$0xff] }
 0x2fc   :  { %1459 = vst [vmem:[#allocation2 + $0x38] sm:$0x2] %v1451_v20  ;;  %v1477_v35 = vsel %vm989_vm4, %v1476_v54, %v1475_v38  ;;  %v1480_v13 = vrot.slane %v1451_v20, 2  ;;  %v16197_v38 = vld [vmem:[#allocation41_spill] sm:$0xff]  ;;  %v16200_v20 = vld [vmem:[#allocation44_spill] sm:$0xff] }
 0x2fd   :  { %v1479_v51 = vsel %vm992_vm5, %v1478_v40, %v1477_v35  ;;  %v16201_v54 = vld [vmem:[#allocation45_spill] sm:$0xff]  ;;  %v16202_v40 = vld [vmem:[#allocation19_spill] sm:$0xff]  ;;  %v16203_v35 = vld [vmem:[#allocation20_spill] sm:$0xff] }
 0x2fe   :  { %v1481_v62 = vsel %vm995_vm6, %v1480_v13, %v1479_v51 }
 0x2ff   :  { %1548 = vmatmul.mubr.f32.vlgmr.msra.gmra.mrb[20].mxu0 %v1481_v62  ;;  %1619 = vmatmul.mubr.f32.vlgmr.msra.gmra.mrb[20].mxu1 %v1481_v62 }
 0x300   :  { %9459 = vmatpush1.bf16.msra.mxu0 %v12746_v47  ;;  %9491 = vmatpush1.bf16.msra.mxu1 %v12749_v50 }
 0x301   :  { %9461 = vmatprep.subr.bf16.mxu0 %v12752_v53  ;;  %9493 = vmatprep.subr.bf16.mxu1 %v12754_v56 }
 0x302   :  { %2032 = vmatprep.mubr.f32.mxu0 %v16143_v8  ;;  %2103 = vmatprep.mubr.f32.mxu1 %v16143_v8 }
 0x304   :  { %9463 = vmatpush1.bf16.msra.mxu0 %v12760_v60  ;;  %9495 = vmatpush1.bf16.msra.mxu1 %v16177_v1 }
 0x305   :  { %9465 = vmatprep.subr.bf16.mxu0 %v16178_v26  ;;  %9497 = vmatprep.subr.bf16.mxu1 %v16179_v44 }
 0x308   :  { %9467 = vmatpush1.bf16.msra.mxu0 %v16180_v12  ;;  %9499 = vmatpush1.bf16.msra.mxu1 %v16181_v7 }
 0x309   :  { %9469 = vmatprep.subr.bf16.mxu0 %v16182_v19  ;;  %9501 = vmatprep.subr.bf16.mxu1 %v16183_v27 }
 0x30c   :  { %9471 = vmatpush1.bf16.msra.mxu0 %v16184_v58  ;;  %9503 = vmatpush1.bf16.msra.mxu1 %v16185_v34 }
 0x30d   :  { %9473 = vmatprep.subr.bf16.mxu0 %v16186_v48  ;;  %9505 = vmatprep.subr.bf16.mxu1 %v16187_v39 }
 0x310   :  { %9475 = vmatpush1.bf16.msra.mxu0 %v16188_v59  ;;  %9507 = vmatpush1.bf16.msra.mxu1 %v16189_v9 }
 0x311   :  { %9477 = vmatprep.subr.bf16.mxu0 %v16190_v21  ;;  %9509 = vmatprep.subr.bf16.mxu1 %v16191_v46 }
 0x314   :  { %9479 = vmatpush1.bf16.msra.mxu0 %v16192_v15  ;;  %9511 = vmatpush1.bf16.msra.mxu1 %v16193_v2 }
 0x315   :  { %9481 = vmatprep.subr.bf16.mxu0 %v16194_v32  ;;  %9513 = vmatprep.subr.bf16.mxu1 %v16195_v63 }
 0x318   :  { %9483 = vmatpush1.bf16.msra.mxu0 %v16196_v6  ;;  %9515 = vmatpush1.bf16.msra.mxu1 %v16197_v38 }
 0x319   :  { %9485 = vmatprep.subr.bf16.mxu0 %v16198_v23  ;;  %9517 = vmatprep.subr.bf16.mxu1 %v16199_v25 }
 0x31c   :  { %9487 = vmatpush1.bf16.msra.mxu0 %v16200_v20  ;;  %9519 = vmatpush1.bf16.msra.mxu1 %v16201_v54 }
 0x31d   :  { %9521 = vmatprep.subr.bf16.mxu0 %v16202_v40  ;;  %9553 = vmatprep.subr.bf16.mxu1 %v16203_v35 }
 0x3d2   :  { %v1549_v13 = vpop.f32.mrb[20].mxu0  ;;  %v13421_v51 = vpop.f32.mrb[20].mxu1 }
 0x3d3   :  { %v1629_v62 = vrot.slane %v1549_v13, 6  ;;  %v1633_v63 = vrot.slane %v1549_v13, 7  ;;  %v1637_v6 = vrot.slane %v1549_v13, 1  ;;  %v1641_v32 = vrot.slane %v1549_v13, 2  ;;  %v13423_v38 = vpop.f32.mrb[21].mxu0  ;;  %v13425_v23 = vpop.f32.mrb[21].mxu1 }
 0x3d4   :  { %v1645_v25 = vrot.slane %v1549_v13, 3  ;;  %v1649_v2 = vrot.slane %v1549_v13, 4  ;;  %v1653_v20 = vrot.slane %v1549_v13, 5  ;;  %v1697_v54 = vadd.f32 %v1549_v13, %v12991_v55 }
 0x3d5   :  { %v1689_v40 = vadd.f32 %v1629_v62, %v16171_v5  ;;  %v1693_v35 = vadd.f32 %v1633_v63, %v12989_v18  ;;  %v1701_v15 = vadd.f32 %v1637_v6, %v12993_v49  ;;  %v1705_v46 = vadd.f32 %v1641_v32, %v12995_v45 }
 0x3d6   :  { %v1709_v21 = vadd.f32 %v1645_v25, %v12997_v41  ;;  %v1713_v9 = vadd.f32 %v1649_v2, %v12999_v42  ;;  %v8813_v59 = vmul.f32 -1.442695, %v1697_v54  ;;  %v1717_v39 = vadd.f32 %v1653_v20, %v13001_v61  ;;  %v16211_v61 = vld [vmem:[#allocation72_spill] sm:$0xff] }
 0x3d7   :  { %v8811_v48 = vmul.f32 -1.442695, %v1689_v40  ;;  %v8812_v34 = vmul.f32 -1.442695, %v1693_v35  ;;  %v8814_v58 = vmul.f32 -1.442695, %v1701_v15 }
 0x3d8   :  { %10643 = vpow2.f32 %v8813_v59  ;;  %v8815_v13 = vmul.f32 -1.442695, %v1705_v46  ;;  %v8816_v62 = vmul.f32 -1.442695, %v1709_v21  ;;  %v1631_v63 = vrot.slane %v13421_v51, 6  ;;  %v16204_v21 = vld [vmem:[#allocation61_spill] sm:$0xff] }
 0x3d9   :  { %10645 = vpow2.f32 %v8811_v48  ;;  %v1635_v6 = vrot.slane %v13421_v51, 7  ;;  %v8817_v32 = vmul.f32 -1.442695, %v1713_v9  ;;  %v8818_v25 = vmul.f32 -1.442695, %v1717_v39  ;;  %v16205_v9 = vld [vmem:[#allocation59_spill] sm:$0xff] }
 0x3da   :  { %10647 = vpow2.f32 %v8812_v34  ;;  %v1639_v2 = vrot.slane %v13421_v51, 1  ;;  %v1643_v20 = vrot.slane %v13421_v51, 2  ;;  %v1691_v54 = vadd.f32 %v1631_v63, %v13027_v31  ;;  %v16210_v31 = vld [vmem:[#allocation64_spill] sm:$0xff] }
 0x3db   :  { %10649 = vpow2.f32 %v8814_v58  ;;  %v1695_v59 = vadd.f32 %v1635_v6, %v13032_v52  ;;  %v1699_v48 = vadd.f32 %v13421_v51, %v13037_v10  ;;  %v1647_v46 = vrot.slane %v13421_v51, 3  ;;  %v16208_v10 = vld [vmem:[#allocation55_spill] sm:$0xff] }
 0x3dc   :  { %10651 = vpow2.f32 %v8815_v13  ;;  %v1703_v34 = vadd.f32 %v1639_v2, %v16204_v21  ;;  %v1707_v58 = vadd.f32 %v1643_v20, %v16205_v9  ;;  %v1651_v15 = vrot.slane %v13421_v51, 4  ;;  %v16207_v9 = vld [vmem:[#allocation69_spill] sm:$0xff] }
 0x3dd   :  { %10653 = vpow2.f32 %v8816_v62  ;;  %v1630_v63 = vrot.slane %v13423_v38, 6  ;;  %v1634_v2 = vrot.slane %v13423_v38, 7 }
 0x3de   :  { %10655 = vpow2.f32 %v8817_v32 }
 0x3df   :  { %10657 = vpow2.f32 %v8818_v25  ;;  %v1655_v25 = vrot.slane %v13421_v51, 5  ;;  %v1646_v51 = vrot.slane %v13423_v38, 3  ;;  %v1690_v52 = vadd.f32 %v1630_v63, %v16208_v10  ;;  %v16212_v63 = vld [vmem:[#allocation66_spill] sm:$0xff] }
 0x3e0   :  { %10659 = vtanh.f32 %v1691_v54 }
 0x3e1   :  { %10661 = vtanh.f32 %v1695_v59  ;;  %v16206_v59 = vld [vmem:[#allocation68_spill] sm:$0xff]  ;;  %v1719_v42 = vadd.f32 %v1655_v25, %v16211_v61  ;;  %v8819_v45 = vmul.f32 -1.442695, %v1690_v52 }
 0x3e2   :  { %v10644_v39 = vpop.eup %10643  ;;  %10663 = vtanh.f32 %v1699_v48  ;;  %v1711_v48 = vadd.f32 %v1647_v46, %v16206_v59  ;;  %v1650_v46 = vrot.slane %v13423_v38, 4  ;;  %v1654_v59 = vrot.slane %v13423_v38, 5 }
 0x3e3   :  { %v10646_v40 = vpop.eup %10645  ;;  %v1747_v35 = vadd.f32 1.0, %v10644_v39  ;;  %10665 = vtanh.f32 %v1703_v34  ;;  %v1715_v39 = vadd.f32 %v1651_v15, %v16207_v9  ;;  %v16209_v15 = vld [vmem:[#allocation62_spill] sm:$0xff] }
 0x3e4   :  { %v10648_v13 = vpop.eup %10647  ;;  %v1745_v62 = vadd.f32 1.0, %v10646_v40  ;;  %10667 = vtanh.f32 %v1707_v58  ;;  %v1638_v58 = vrot.slane %v13423_v38, 1  ;;  %v1642_v40 = vrot.slane %v13423_v38, 2 }
 0x3e5   :  { %v10650_v6 = vpop.eup %10649  ;;  %v1746_v32 = vadd.f32 1.0, %v10648_v13  ;;  %10669 = vrcp.f32 %v1747_v35  ;;  %v1694_v9 = vadd.f32 %v1634_v2, %v16209_v15  ;;  %v1632_v2 = vrot.slane %v13425_v23, 6 }
 0x3e6   :  { %v10652_v20 = vpop.eup %10651  ;;  %v1748_v54 = vadd.f32 1.0, %v10650_v6  ;;  %10671 = vrcp.f32 %v1745_v62  ;;  %v1702_v10 = vadd.f32 %v1638_v58, %v16212_v63  ;;  %v1718_v58 = vadd.f32 %v1654_v59, %v16175_v0 }
 0x3e7   :  { %v10654_v34 = vpop.eup %10653  ;;  %v1749_v21 = vadd.f32 1.0, %v10652_v20  ;;  %10673 = vrcp.f32 %v1746_v32  ;;  %v8820_v15 = vmul.f32 -1.442695, %v1694_v9  ;;  %v1644_v9 = vrot.slane %v13425_v23, 2 }
 0x3e8   :  { %v10656_v13 = vpop.eup %10655  ;;  %v1750_v35 = vadd.f32 1.0, %v10654_v34  ;;  %10675 = vrcp.f32 %v1748_v54  ;;  %v1698_v34 = vadd.f32 %v13423_v38, %v16210_v31  ;;  %v1636_v38 = vrot.slane %v13425_v23, 7 }
 0x3e9   :  { %v10658_v6 = vpop.eup %10657  ;;  %v1751_v62 = vadd.f32 1.0, %v10656_v13  ;;  %10677 = vrcp.f32 %v1749_v21  ;;  %v16213_v13 = vld [vmem:[#allocation67_spill] sm:$0xff] }
 0x3ea   :  { %v10660_v20 = vpop.eup %10659  ;;  %v1752_v32 = vadd.f32 1.0, %v10658_v6  ;;  %10679 = vrcp.f32 %v1750_v35  ;;  %v1706_v21 = vadd.f32 %v1642_v40, %v16213_v13  ;;  %v1710_v35 = vadd.f32 %v1646_v51, %v13103_v14 }
 0x3eb   :  { %v10662_v54 = vpop.eup %10661  ;;  %10681 = vrcp.f32 %v1751_v62  ;;  %v16214_v62 = vld [vmem:[#allocation71_spill] sm:$0xff]  ;;  %v8821_v63 = vmul.f32 -1.442695, %v1698_v34  ;;  %v1640_v13 = vrot.slane %v13425_v23, 1  ;;  %v1692_v51 = vadd.f32 %v1632_v2, %v16176_v22 }
 0x3ec   :  { %v10664_v41 = vpop.eup %10663  ;;  %10683 = vrcp.f32 %v1752_v32  ;;  %v1714_v25 = vadd.f32 %v1650_v46, %v16214_v62  ;;  %v8822_v32 = vmul.f32 -1.442695, %v1702_v10  ;;  %v8823_v52 = vmul.f32 -1.442695, %v1706_v21  ;;  %v16215_v46 = vld [vmem:[#allocation63_spill] sm:$0xff] }
 0x3ed   :  { %v10666_v6 = vpop.eup %10665  ;;  %10685 = vtanh.f32 %v1711_v48  ;;  %v8824_v59 = vmul.f32 -1.442695, %v1710_v35  ;;  %v1696_v34 = vadd.f32 %v1636_v38, %v16215_v46  ;;  %v8826_v2 = vmul.f32 -1.442695, %v1718_v58 }
 0x3ee   :  { %v10668_v31 = vpop.eup %10667  ;;  %10687 = vtanh.f32 %v1715_v39  ;;  %v8825_v21 = vmul.f32 -1.442695, %v1714_v25  ;;  %v8827_v35 = vmul.f32 -1.442695, %v1692_v51 }
 0x3ef   :  { %v10670_v40 = vpop.eup %10669  ;;  %10689 = vtanh.f32 %v1719_v42 }
 0x3f0   :  { %v10672_v61 = vpop.eup %10671  ;;  %v13470_v48 = vmul.f32 %v10670_v40, %v10664_v41  ;;  %10691 = vpow2.f32 %v8819_v45  ;;  %v1700_v41 = vadd.f32 %v13425_v23, %v13071_v57 }
 0x3f1   :  { %v10674_v39 = vpop.eup %10673  ;;  %v13474_v14 = vmul.f32 %v10672_v61, %v10660_v20  ;;  %10693 = vpow2.f32 %v8820_v15  ;;  %v1704_v61 = vadd.f32 %v1640_v13, %v13080_v43  ;;  %v1708_v15 = vadd.f32 %v1644_v9, %v13094_v37 }
 0x3f2   :  { %v10676_v42 = vpop.eup %10675  ;;  %v13477_v10 = vmul.f32 %v10674_v39, %v10662_v54  ;;  %10695 = vpow2.f32 %v8821_v63  ;;  %v8828_v63 = vmul.f32 -1.442695, %v1696_v34  ;;  %v8829_v39 = vmul.f32 -1.442695, %v1700_v41 }
 0x3f3   :  { %v10678_v45 = vpop.eup %10677  ;;  %v13481_v40 = vmul.f32 %v10676_v42, %v10666_v6  ;;  %10697 = vpow2.f32 %v8822_v32  ;;  %v8830_v6 = vmul.f32 -1.442695, %v1704_v61  ;;  %v8831_v58 = vmul.f32 -1.442695, %v1708_v15 }
 0x3f4   :  { %v10680_v20 = vpop.eup %10679  ;;  %10699 = vpow2.f32 %v8823_v52  ;;  %v13485_v38 = vmul.f32 %v10678_v45, %v10668_v31  ;;  %v1648_v9 = vrot.slane %v13425_v23, 3  ;;  %v1656_v41 = vrot.slane %v13425_v23, 5 }
 0x3f5   :  { %v10682_v54 = vpop.eup %10681  ;;  %10701 = vpow2.f32 %v8824_v59  ;;  %v1652_v59 = vrot.slane %v13425_v23, 4 }
 0x3f6   :  { %v10684_v25 = vpop.eup %10683  ;;  %10703 = vpow2.f32 %v8825_v21 }
 0x3f7   :  { %v10686_v57 = vpop.eup %10685  ;;  %10705 = vpow2.f32 %v8826_v2 }
 0x3f8   :  { %v10688_v32 = vpop.eup %10687  ;;  %10707 = vpow2.f32 %v8827_v35  ;;  %v13487_v13 = vmul.f32 %v10686_v57, %v10680_v20  ;;  %v1712_v20 = vadd.f32 %v1648_v9, %v13161_v33 }
 0x3f9   :  { %v10690_v52 = vpop.eup %10689  ;;  %10709 = vpow2.f32 %v8828_v63  ;;  %v13490_v31 = vmul.f32 %v10688_v32, %v10682_v54  ;;  %v1716_v54 = vadd.f32 %v1652_v59, %v13168_v30 }
 0x3fa   :  { %v10692_v51 = vpop.eup %10691  ;;  %10711 = vpow2.f32 %v8829_v39  ;;  %v13493_v34 = vmul.f32 %v10690_v52, %v10684_v25  ;;  %v1720_v39 = vadd.f32 %v1656_v41, %v13175_v17  ;;  %v8832_v52 = vmul.f32 -1.442695, %v1712_v20 }
 0x3fb   :  { %v10694_v42 = vpop.eup %10693  ;;  %v1793_v21 = vadd.f32 1.0, %v10692_v51  ;;  %10713 = vpow2.f32 %v8830_v6  ;;  %v8833_v9 = vmul.f32 -1.442695, %v1716_v54  ;;  %v1882_v20 = vrot.slane %v13350_v3, 7 }
 0x3fc   :  { %v10696_v45 = vpop.eup %10695  ;;  %v1794_v57 = vadd.f32 1.0, %v10694_v42  ;;  %10715 = vpow2.f32 %v8831_v58 }
 0x3fd   :  { %v10698_v2 = vpop.eup %10697  ;;  %v1795_v61 = vadd.f32 1.0, %v10696_v45  ;;  %10717 = vrcp.f32 %v1793_v21  ;;  %v8834_v45 = vmul.f32 -1.442695, %v1720_v39  ;;  %v1883_v39 = vrot.slane %v13354_v29, 7 }
 0x3fe   :  { %v10700_v15 = vpop.eup %10699  ;;  %v1796_v35 = vadd.f32 1.0, %v10698_v2  ;;  %10719 = vrcp.f32 %v1794_v57 }
 0x3ff   :  { %v10702_v63 = vpop.eup %10701  ;;  %v1797_v25 = vadd.f32 1.0, %v10700_v15  ;;  %10721 = vrcp.f32 %v1795_v61  ;;  %v1881_v15 = vrot.slane %v13346_v11, 7  ;;  %v1885_v11 = vrot.slane %v13362_v36, 7 }
 0x400   :  { %v10704_v23 = vpop.eup %10703  ;;  %v1798_v6 = vadd.f32 1.0, %v10702_v63  ;;  %10723 = vrcp.f32 %v1796_v35 }
 0x401   :  { %v10706_v32 = vpop.eup %10705  ;;  %v1799_v58 = vadd.f32 1.0, %v10704_v23  ;;  %10725 = vrcp.f32 %v1797_v25 }
 0x402   :  { %v10708_v51 = vpop.eup %10707  ;;  %v1800_v42 = vadd.f32 1.0, %v10706_v32  ;;  %10727 = vrcp.f32 %v1798_v6 }
 0x403   :  { %v10710_v21 = vpop.eup %10709  ;;  %10729 = vrcp.f32 %v1799_v58  ;;  %v1849_v57 = vadd.f32 1.0, %v10708_v51  ;;  %v1884_v58 = vrot.slane %v13358_v28, 7  ;;  %v1887_v28 = vrot.slane %v13370_v16, 7 }
 0x404   :  { %v10712_v59 = vpop.eup %10711  ;;  %10731 = vrcp.f32 %v1800_v42  ;;  %v1850_v41 = vadd.f32 1.0, %v10710_v21  ;;  %v1886_v21 = vrot.slane %v13366_v24, 7 }
 0x405   :  { %v10714_v2 = vpop.eup %10713  ;;  %10733 = vpow2.f32 %v8832_v52  ;;  %v1851_v35 = vadd.f32 1.0, %v10712_v59 }
 0x406   :  { %v10716_v61 = vpop.eup %10715  ;;  %10735 = vpow2.f32 %v8833_v9  ;;  %v1852_v25 = vadd.f32 1.0, %v10714_v2 }
 0x407   :  { %v10718_v63 = vpop.eup %10717  ;;  %10737 = vpow2.f32 %v8834_v45  ;;  %v1853_v6 = vadd.f32 1.0, %v10716_v61 }
 0x408   :  { %v10720_v54 = vpop.eup %10719  ;;  %v1897_v23 = vmul.f32 %v10718_v63, %v1881_v15  ;;  %10739 = vrcp.f32 %v1849_v57 }
 0x409   :  { %v10722_v32 = vpop.eup %10721  ;;  %v1898_v52 = vmul.f32 %v10720_v54, %v1882_v20  ;;  %10741 = vrcp.f32 %v1850_v41 }
 0x40a   :  { %v10724_v51 = vpop.eup %10723  ;;  %10743 = vrcp.f32 %v1851_v35  ;;  %v1899_v42 = vmul.f32 %v10722_v32, %v1883_v39  ;;  %v13505_v3 = vadd.f32 %v13474_v14, %v1897_v23  ;;  %v1888_v14 = vrot.slane %v13374_v4, 7 }
 0x40b   :  { %v10726_v9 = vpop.eup %10725  ;;  %10745 = vrcp.f32 %v1852_v25  ;;  %v1900_v45 = vmul.f32 %v10724_v51, %v1884_v58  ;;  %v13509_v29 = vadd.f32 %v13477_v10, %v1898_v52 }
 0x40c   :  { %v10728_v59 = vpop.eup %10727  ;;  %10747 = vrcp.f32 %v1853_v6  ;;  %v1901_v57 = vmul.f32 %v10726_v9, %v1885_v11  ;;  %v13513_v36 = vadd.f32 %v13470_v48, %v1899_v42 }
 0x40d   :  { %v10730_v2 = vpop.eup %10729  ;;  %v1902_v41 = vmul.f32 %v10728_v59, %v1886_v21  ;;  %v13517_v61 = vadd.f32 %v13481_v40, %v1900_v45  ;;  %10749 = vtanh.f32 %v13505_v3 }
 0x40e   :  { %v10732_v24 = vpop.eup %10731  ;;  %v1903_v10 = vmul.f32 %v10730_v2, %v1887_v28  ;;  %v13521_v15 = vadd.f32 %v13485_v38, %v1901_v57  ;;  %10751 = vtanh.f32 %v13509_v29 }
 0x40f   :  { %v10734_v16 = vpop.eup %10733  ;;  %v1904_v35 = vmul.f32 %v10732_v24, %v1888_v14  ;;  %v13525_v48 = vadd.f32 %v13487_v13, %v1902_v41  ;;  %10753 = vtanh.f32 %v13513_v36 }
 0x410   :  { %v10736_v4 = vpop.eup %10735  ;;  %v1854_v63 = vadd.f32 1.0, %v10734_v16  ;;  %v13529_v40 = vadd.f32 %v13490_v31, %v1903_v10  ;;  %10755 = vtanh.f32 %v13517_v61 }
 0x411   :  { %v10738_v20 = vpop.eup %10737  ;;  %v1855_v25 = vadd.f32 1.0, %v10736_v4  ;;  %v13533_v38 = vadd.f32 %v13493_v34, %v1904_v35  ;;  %10757 = vtanh.f32 %v13521_v15 }
 0x412   :  { %v10740_v54 = vpop.eup %10739  ;;  %v1856_v23 = vadd.f32 1.0, %v10738_v20  ;;  %10759 = vrcp.f32 %v1854_v63 }
 0x413   :  { %v10742_v13 = vpop.eup %10741  ;;  %10761 = vrcp.f32 %v1855_v25 }
 0x414   :  { %v10744_v6 = vpop.eup %10743  ;;  %10763 = vrcp.f32 %v1856_v23 }
 0x415   :  { %v10746_v39 = vpop.eup %10745  ;;  %10765 = vtanh.f32 %v13525_v48 }
 0x416   :  { %v10748_v31 = vpop.eup %10747  ;;  %10767 = vtanh.f32 %v13529_v40 }
 0x417   :  { %v10750_v32 = vpop.eup %10749  ;;  %10769 = vtanh.f32 %v13533_v38 }
 0x418   :  { %v10752_v34 = vpop.eup %10751  ;;  %v1929_v58 = vmul.f32 %v10750_v32, %v10740_v54 }
 0x419   :  { %v10754_v52 = vpop.eup %10753  ;;  %v1930_v51 = vmul.f32 %v10752_v34, %v10742_v13 }
 0x41a   :  { %v10756_v11 = vpop.eup %10755  ;;  %v1931_v42 = vmul.f32 %v10754_v52, %v10744_v6  ;;  %1937 = vst [vmem:[#allocation2] sm:$0x4] %v1929_v58  ;;  %v1953_v9 = vrot.slane %v1929_v58, 2  ;;  %v16216_v52 = vld [vmem:[#allocation28_spill] sm:$0xff] }
 0x41b   :  { %v10758_v21 = vpop.eup %10757  ;;  %v1932_v45 = vmul.f32 %v10756_v11, %v10746_v39  ;;  %1938 = vst [vmem:[#allocation2 + $0x8] sm:$0x4] %v1930_v51  ;;  %v1954_v59 = vrot.slane %v1930_v51, 1  ;;  %v16217_v51 = vld [vmem:[#allocation29_spill] sm:$0xff]  ;;  %v16218_v11 = vld [vmem:[#allocation30_spill] sm:$0xff] }
 0x41c   :  { %v10760_v28 = vpop.eup %10759  ;;  %v1933_v57 = vmul.f32 %v10758_v21, %v10748_v31  ;;  %1939 = vst [vmem:[#allocation2 + $0x10] sm:$0x4] %v1931_v42  ;;  %v16221_v21 = vld [vmem:[#allocation33_spill] sm:$0xff] }
 0x41d   :  { %v10762_v2 = vpop.eup %10761  ;;  %1940 = vst [vmem:[#allocation2 + $0x18] sm:$0x4] %v1932_v45  ;;  %v1955_v14 = vsel %vm977_vm0, %v1954_v59, %v1953_v9  ;;  %v1957_v41 = vrot.slane %v1932_v45, 7  ;;  %v16220_v9 = vld [vmem:[#allocation32_spill] sm:$0xff]  ;;  %v16222_v45 = vld [vmem:[#allocation34_spill] sm:$0xff]  ;;  %v16223_v59 = vld [vmem:[#allocation35_spill] sm:$0xff] }
 0x41e   :  { %v10764_v24 = vpop.eup %10763  ;;  %1941 = vst [vmem:[#allocation2 + $0x20] sm:$0x4] %v1933_v57  ;;  %v1956_v10 = vsel %vm980_vm1, %v1931_v42, %v1955_v14  ;;  %v1959_v16 = vrot.slane %v1933_v57, 6  ;;  %v16219_v42 = vld [vmem:[#allocation31_spill] sm:$0xff]  ;;  %v16225_v57 = vld [vmem:[#allocation37_spill] sm:$0xff] }
 0x41f   :  { %v10766_v35 = vpop.eup %10765  ;;  %v1958_v4 = vsel %vm983_vm2, %v1957_v41, %v1956_v10  ;;  %v16227_v14 = vld [vmem:[#allocation39_spill] sm:$0xff]  ;;  %v16228_v41 = vld [vmem:[#allocation40_spill] sm:$0xff]  ;;  %v16230_v10 = vld [vmem:[#allocation42_spill] sm:$0xff] }
 0x420   :  { %v10768_v63 = vpop.eup %10767  ;;  %v1934_v20 = vmul.f32 %v10766_v35, %v10760_v28  ;;  %v1960_v25 = vsel %vm986_vm3, %v1959_v16, %v1958_v4  ;;  %v16224_v28 = vld [vmem:[#allocation36_spill] sm:$0xff]  ;;  %v16231_v16 = vld [vmem:[#allocation43_spill] sm:$0xff]  ;;  %v16233_v4 = vld [vmem:[#allocation45_spill] sm:$0xff] }
 0x421   :  { %v10770_v54 = vpop.eup %10769  ;;  %v1935_v23 = vmul.f32 %v10768_v63, %v10762_v2  ;;  %v16226_v2 = vld [vmem:[#allocation38_spill] sm:$0xff]  ;;  %v16232_v35 = vld [vmem:[#allocation44_spill] sm:$0xff]  ;;  %v16234_v63 = vld [vmem:[#allocation19_spill] sm:$0xff] }
 0x422   :  { %v1936_v13 = vmul.f32 %v10770_v54, %v10764_v24  ;;  %1942 = vst [vmem:[#allocation2 + $0x28] sm:$0x4] %v1934_v20  ;;  %v1961_v6 = vrot.slane %v1934_v20, 5  ;;  %v16229_v24 = vld [vmem:[#allocation41_spill] sm:$0xff]  ;;  %v16235_v20 = vld [vmem:[#allocation20_spill] sm:$0xff] }
 0x423   :  { %1943 = vst [vmem:[#allocation2 + $0x30] sm:$0x4] %v1935_v23  ;;  %v1963_v39 = vrot.slane %v1935_v23, 4 }
 0x424   :  { %1944 = vst [vmem:[#allocation2 + $0x38] sm:$0x4] %v1936_v13  ;;  %v1962_v31 = vsel %vm989_vm4, %v1961_v6, %v1960_v25  ;;  %v1965_v32 = vrot.slane %v1936_v13, 3 }
 0x425   :  { %v1964_v34 = vsel %vm992_vm5, %v1963_v39, %v1962_v31 }
 0x426   :  { %v1966_v58 = vsel %vm995_vm6, %v1965_v32, %v1964_v34 }
 0x427   :  { %2033 = vmatmul.mubr.f32.vlgmr.msra.gmra.mrb[22].mxu0 %v1966_v58  ;;  %2104 = vmatmul.mubr.f32.vlgmr.msra.gmra.mrb[22].mxu1 %v1966_v58 }
 0x428   :  { %9523 = vmatpush1.bf16.msra.mxu0 %v12746_v47  ;;  %9555 = vmatpush1.bf16.msra.mxu1 %v12749_v50 }
 0x429   :  { %9525 = vmatprep.subr.bf16.mxu0 %v12752_v53  ;;  %9557 = vmatprep.subr.bf16.mxu1 %v12754_v56 }
 0x42a   :  { %2517 = vmatprep.mubr.f32.mxu0 %v16143_v8  ;;  %2588 = vmatprep.mubr.f32.mxu1 %v16143_v8 }
 0x42c   :  { %9527 = vmatpush1.bf16.msra.mxu0 %v12760_v60  ;;  %9559 = vmatpush1.bf16.msra.mxu1 %v16177_v1 }
 0x42d   :  { %9529 = vmatprep.subr.bf16.mxu0 %v16178_v26  ;;  %9561 = vmatprep.subr.bf16.mxu1 %v16179_v44 }
 0x430   :  { %9531 = vmatpush1.bf16.msra.mxu0 %v16180_v12  ;;  %9563 = vmatpush1.bf16.msra.mxu1 %v16181_v7 }
 0x431   :  { %9533 = vmatprep.subr.bf16.mxu0 %v16182_v19  ;;  %9565 = vmatprep.subr.bf16.mxu1 %v16183_v27 }
 0x434   :  { %9535 = vmatpush1.bf16.msra.mxu0 %v16216_v52  ;;  %9567 = vmatpush1.bf16.msra.mxu1 %v16217_v51 }
 0x435   :  { %9537 = vmatprep.subr.bf16.mxu0 %v16218_v11  ;;  %9569 = vmatprep.subr.bf16.mxu1 %v16219_v42 }
 0x438   :  { %9539 = vmatpush1.bf16.msra.mxu0 %v16220_v9  ;;  %9571 = vmatpush1.bf16.msra.mxu1 %v16221_v21 }
 0x439   :  { %9541 = vmatprep.subr.bf16.mxu0 %v16222_v45  ;;  %9573 = vmatprep.subr.bf16.mxu1 %v16223_v59  ;;  %v16239_v59 = vld [vmem:[#allocation54_spill] sm:$0xff] }
 0x43c   :  { %9543 = vmatpush1.bf16.msra.mxu0 %v16224_v28  ;;  %9575 = vmatpush1.bf16.msra.mxu1 %v16225_v57 }
 0x43d   :  { %9545 = vmatprep.subr.bf16.mxu0 %v16226_v2  ;;  %9577 = vmatprep.subr.bf16.mxu1 %v16227_v14  ;;  %v16238_v2 = vld [vmem:[#allocation53_spill] sm:$0xff] }
 0x440   :  { %9547 = vmatpush1.bf16.msra.mxu0 %v16228_v41  ;;  %9579 = vmatpush1.bf16.msra.mxu1 %v16229_v24  ;;  %v16237_v41 = vld [vmem:[#allocation52_spill] sm:$0xff] }
 0x441   :  { %9549 = vmatprep.subr.bf16.mxu0 %v16230_v10  ;;  %9581 = vmatprep.subr.bf16.mxu1 %v16231_v16  ;;  %v16236_v10 = vld [vmem:[#allocation51_spill] sm:$0xff] }
 0x444   :  { %9551 = vmatpush1.bf16.msra.mxu0 %v16232_v35  ;;  %9583 = vmatpush1.bf16.msra.mxu1 %v16233_v4 }
 0x445   :  { %9585 = vmatprep.subr.bf16.mxu0 %v16234_v63  ;;  %9617 = vmatprep.subr.bf16.mxu1 %v16235_v20 }
 0x4fa   :  { %v2034_v25 = vpop.f32.mrb[22].mxu0  ;;  %v13580_v54 = vpop.f32.mrb[22].mxu1 }
 0x4fb   :  { %v2114_v23 = vrot.slane %v2034_v25, 5  ;;  %v2118_v13 = vrot.slane %v2034_v25, 6  ;;  %v2122_v6 = vrot.slane %v2034_v25, 7  ;;  %v2126_v39 = vrot.slane %v2034_v25, 1  ;;  %v13582_v31 = vpop.f32.mrb[23].mxu0  ;;  %v13584_v32 = vpop.f32.mrb[23].mxu1 }
 0x4fc   :  { %v2130_v34 = vrot.slane %v2034_v25, 2  ;;  %v2134_v58 = vrot.slane %v2034_v25, 3  ;;  %v2138_v35 = vrot.slane %v2034_v25, 4  ;;  %v2186_v4 = vadd.f32 %v2034_v25, %v12993_v49 }
 0x4fd   :  { %v2174_v63 = vadd.f32 %v2114_v23, %v16171_v5  ;;  %v2178_v20 = vadd.f32 %v2118_v13, %v12989_v18  ;;  %v2182_v16 = vadd.f32 %v2122_v6, %v12991_v55  ;;  %v2190_v24 = vadd.f32 %v2126_v39, %v16236_v10 }
 0x4fe   :  { %v2194_v14 = vadd.f32 %v2130_v34, %v16237_v41  ;;  %v2198_v57 = vadd.f32 %v2134_v58, %v16238_v2  ;;  %v8838_v28 = vmul.f32 -1.442695, %v2186_v4  ;;  %v2202_v45 = vadd.f32 %v2138_v35, %v16239_v59  ;;  %v16240_v4 = vld [vmem:[#allocation56_spill] sm:$0xff]  ;;  %v16248_v2 = vld [vmem:[#allocation55_spill] sm:$0xff] }
 0x4ff   :  { %v8835_v21 = vmul.f32 -1.442695, %v2174_v63  ;;  %v8836_v9 = vmul.f32 -1.442695, %v2178_v20  ;;  %v8837_v42 = vmul.f32 -1.442695, %v2182_v16 }
 0x500   :  { %10771 = vpow2.f32 %v8838_v28  ;;  %v8839_v25 = vmul.f32 -1.442695, %v2190_v24  ;;  %v8840_v23 = vmul.f32 -1.442695, %v2194_v14  ;;  %v2116_v13 = vrot.slane %v13580_v54, 5  ;;  %v16241_v28 = vld [vmem:[#allocation57_spill] sm:$0xff] }
 0x501   :  { %10773 = vpow2.f32 %v8835_v21  ;;  %v2120_v6 = vrot.slane %v13580_v54, 6  ;;  %v8841_v39 = vmul.f32 -1.442695, %v2198_v57  ;;  %v2124_v34 = vrot.slane %v13580_v54, 7  ;;  %v16242_v21 = vld [vmem:[#allocation58_spill] sm:$0xff]  ;;  %v16243_v16 = vld [vmem:[#allocation61_spill] sm:$0xff] }
 0x502   :  { %10775 = vpow2.f32 %v8836_v9  ;;  %v8842_v58 = vmul.f32 -1.442695, %v2202_v45  ;;  %v2128_v35 = vrot.slane %v13580_v54, 1  ;;  %v2176_v63 = vadd.f32 %v2116_v13, %v16240_v4  ;;  %v16244_v57 = vld [vmem:[#allocation59_spill] sm:$0xff] }
 0x503   :  { %10777 = vpow2.f32 %v8837_v42  ;;  %v2180_v24 = vadd.f32 %v2120_v6, %v16241_v28  ;;  %v2184_v14 = vadd.f32 %v2124_v34, %v16242_v21  ;;  %v2188_v9 = vadd.f32 %v13580_v54, %v16243_v16 }
 0x504   :  { %10779 = vpow2.f32 %v8839_v25  ;;  %v2192_v20 = vadd.f32 %v2128_v35, %v16244_v57  ;;  %v2132_v45 = vrot.slane %v13580_v54, 2  ;;  %v2140_v34 = vrot.slane %v13580_v54, 4 }
 0x505   :  { %10781 = vpow2.f32 %v8840_v23  ;;  %v2136_v23 = vrot.slane %v13580_v54, 3  ;;  %v2123_v21 = vrot.slane %v13582_v31, 7 }
 0x506   :  { %10783 = vpow2.f32 %v8841_v39 }
 0x507   :  { %10785 = vpow2.f32 %v8842_v58  ;;  %v2115_v58 = vrot.slane %v13582_v31, 5 }
 0x508   :  { %10787 = vtanh.f32 %v2176_v63  ;;  %v2119_v63 = vrot.slane %v13582_v31, 6 }
 0x509   :  { %10789 = vtanh.f32 %v2180_v24  ;;  %v2175_v41 = vadd.f32 %v2115_v58, %v16248_v2 }
 0x50a   :  { %v10772_v42 = vpop.eup %10771  ;;  %10791 = vtanh.f32 %v2184_v14  ;;  %v16245_v14 = vld [vmem:[#allocation68_spill] sm:$0xff] }
 0x50b   :  { %v10774_v25 = vpop.eup %10773  ;;  %v2233_v13 = vadd.f32 1.0, %v10772_v42  ;;  %10793 = vtanh.f32 %v2188_v9  ;;  %v2196_v42 = vadd.f32 %v2132_v45, %v16245_v14  ;;  %v2131_v45 = vrot.slane %v13582_v31, 2  ;;  %v16249_v14 = vld [vmem:[#allocation62_spill] sm:$0xff] }
 0x50c   :  { %v10776_v6 = vpop.eup %10775  ;;  %v2230_v39 = vadd.f32 1.0, %v10774_v25  ;;  %10795 = vtanh.f32 %v2192_v20  ;;  %v16246_v25 = vld [vmem:[#allocation69_spill] sm:$0xff]  ;;  %v2127_v20 = vrot.slane %v13582_v31, 1  ;;  %v2179_v49 = vadd.f32 %v2119_v63, %v16249_v14 }
 0x50d   :  { %v10778_v16 = vpop.eup %10777  ;;  %v2231_v35 = vadd.f32 1.0, %v10776_v6  ;;  %10797 = vrcp.f32 %v2233_v13  ;;  %v2200_v54 = vadd.f32 %v2136_v23, %v16246_v25  ;;  %v16247_v13 = vld [vmem:[#allocation72_spill] sm:$0xff]  ;;  %v2135_v23 = vrot.slane %v13582_v31, 3 }
 0x50e   :  { %v10780_v24 = vpop.eup %10779  ;;  %v2232_v57 = vadd.f32 1.0, %v10778_v16  ;;  %10799 = vrcp.f32 %v2230_v39  ;;  %v2204_v6 = vadd.f32 %v2140_v34, %v16247_v13  ;;  %v16250_v25 = vld [vmem:[#allocation64_spill] sm:$0xff]  ;;  %v16251_v34 = vld [vmem:[#allocation66_spill] sm:$0xff]  ;;  %v8843_v2 = vmul.f32 -1.442695, %v2175_v41 }
 0x50f   :  { %v10782_v9 = vpop.eup %10781  ;;  %v2234_v28 = vadd.f32 1.0, %v10780_v24  ;;  %10801 = vrcp.f32 %v2231_v35  ;;  %v2183_v55 = vadd.f32 %v2123_v21, %v16250_v25  ;;  %v2187_v58 = vadd.f32 %v13582_v31, %v16251_v34 }
 0x510   :  { %v10784_v4 = vpop.eup %10783  ;;  %v2235_v59 = vadd.f32 1.0, %v10782_v9  ;;  %10803 = vrcp.f32 %v2232_v57  ;;  %v2139_v57 = vrot.slane %v13582_v31, 4  ;;  %v2117_v63 = vrot.slane %v13584_v32, 5 }
 0x511   :  { %v10786_v16 = vpop.eup %10785  ;;  %v2236_v39 = vadd.f32 1.0, %v10784_v4  ;;  %10805 = vrcp.f32 %v2234_v28  ;;  %v16252_v4 = vld [vmem:[#allocation67_spill] sm:$0xff]  ;;  %v8844_v18 = vmul.f32 -1.442695, %v2179_v49  ;;  %v2121_v21 = vrot.slane %v13584_v32, 6 }
 0x512   :  { %v10788_v24 = vpop.eup %10787  ;;  %v2237_v35 = vadd.f32 1.0, %v10786_v16  ;;  %10807 = vrcp.f32 %v2235_v59  ;;  %v2191_v28 = vadd.f32 %v2127_v20, %v16252_v4  ;;  %v16253_v59 = vld [vmem:[#allocation70_spill] sm:$0xff]  ;;  %v2199_v25 = vadd.f32 %v2135_v23, %v16214_v62 }
 0x513   :  { %v10790_v9 = vpop.eup %10789  ;;  %10809 = vrcp.f32 %v2236_v39  ;;  %v2195_v14 = vadd.f32 %v2131_v45, %v16253_v59  ;;  %v8845_v5 = vmul.f32 -1.442695, %v2183_v55  ;;  %v2125_v31 = vrot.slane %v13584_v32, 7 }
 0x514   :  { %v10792_v13 = vpop.eup %10791  ;;  %10811 = vrcp.f32 %v2237_v35  ;;  %v2203_v41 = vadd.f32 %v2139_v57, %v16175_v0  ;;  %v8846_v35 = vmul.f32 -1.442695, %v2187_v58  ;;  %v8847_v4 = vmul.f32 -1.442695, %v2191_v28  ;;  %v16254_v58 = vld [vmem:[#allocation65_spill] sm:$0xff] }
 0x515   :  { %v10794_v16 = vpop.eup %10793  ;;  %10813 = vtanh.f32 %v2196_v42  ;;  %v2129_v49 = vrot.slane %v13584_v32, 1  ;;  %v2177_v45 = vadd.f32 %v2117_v63, %v16176_v22  ;;  %v8848_v55 = vmul.f32 -1.442695, %v2195_v14 }
 0x516   :  { %v10796_v39 = vpop.eup %10795  ;;  %10815 = vtanh.f32 %v2200_v54  ;;  %v2181_v23 = vadd.f32 %v2121_v21, %v16215_v46  ;;  %v8849_v57 = vmul.f32 -1.442695, %v2199_v25  ;;  %v2185_v28 = vadd.f32 %v2125_v31, %v16254_v58 }
 0x517   :  { %v10798_v20 = vpop.eup %10797  ;;  %10817 = vtanh.f32 %v2204_v6  ;;  %v8851_v14 = vmul.f32 -1.442695, %v2177_v45 }
 0x518   :  { %v10800_v34 = vpop.eup %10799  ;;  %v13629_v42 = vmul.f32 %v10798_v20, %v10794_v16  ;;  %10819 = vpow2.f32 %v8843_v2  ;;  %v8850_v20 = vmul.f32 -1.442695, %v2203_v41  ;;  %v8853_v21 = vmul.f32 -1.442695, %v2185_v28 }
 0x519   :  { %v10802_v54 = vpop.eup %10801  ;;  %v13633_v59 = vmul.f32 %v10800_v34, %v10788_v24  ;;  %10821 = vpow2.f32 %v8844_v18  ;;  %v2189_v24 = vadd.f32 %v13584_v32, %v13080_v43  ;;  %v2193_v18 = vadd.f32 %v2129_v49, %v13094_v37 }
 0x51a   :  { %v10804_v6 = vpop.eup %10803  ;;  %v13636_v62 = vmul.f32 %v10802_v54, %v10790_v9  ;;  %10823 = vpow2.f32 %v8845_v5  ;;  %v8852_v5 = vmul.f32 -1.442695, %v2181_v23  ;;  %v2133_v49 = vrot.slane %v13584_v32, 2 }
 0x51b   :  { %v10806_v16 = vpop.eup %10805  ;;  %v13639_v2 = vmul.f32 %v10804_v6, %v10792_v13  ;;  %10825 = vpow2.f32 %v8846_v35  ;;  %v8854_v31 = vmul.f32 -1.442695, %v2189_v24  ;;  %v8855_v35 = vmul.f32 -1.442695, %v2193_v18 }
 0x51c   :  { %v10808_v34 = vpop.eup %10807  ;;  %10827 = vpow2.f32 %v8847_v4  ;;  %v13644_v63 = vmul.f32 %v10806_v16, %v10796_v39  ;;  %v2141_v28 = vrot.slane %v13584_v32, 4  ;;  %v2197_v18 = vadd.f32 %v2133_v49, %v13161_v33 }
 0x51d   :  { %v10810_v9 = vpop.eup %10809  ;;  %10829 = vpow2.f32 %v8848_v55  ;;  %v2137_v55 = vrot.slane %v13584_v32, 3 }
 0x51e   :  { %v10812_v25 = vpop.eup %10811  ;;  %10831 = vpow2.f32 %v8849_v57 }
 0x51f   :  { %v10814_v13 = vpop.eup %10813  ;;  %10833 = vpow2.f32 %v8850_v20 }
 0x520   :  { %v10816_v41 = vpop.eup %10815  ;;  %10835 = vpow2.f32 %v8851_v14  ;;  %v13646_v54 = vmul.f32 %v10814_v13, %v10808_v34  ;;  %v2205_v13 = vadd.f32 %v2141_v28, %v13175_v17 }
 0x521   :  { %v10818_v4 = vpop.eup %10817  ;;  %10837 = vpow2.f32 %v8852_v5  ;;  %v13649_v39 = vmul.f32 %v10816_v41, %v10810_v9  ;;  %v2201_v5 = vadd.f32 %v2137_v55, %v13168_v30 }
 0x522   :  { %v10820_v45 = vpop.eup %10819  ;;  %10839 = vpow2.f32 %v8853_v21  ;;  %v13652_v23 = vmul.f32 %v10818_v4, %v10812_v25  ;;  %v8856_v4 = vmul.f32 -1.442695, %v2197_v18  ;;  %v2367_v18 = vrot.slane %v13509_v29, 7 }
 0x523   :  { %v10822_v6 = vpop.eup %10821  ;;  %v2278_v57 = vadd.f32 1.0, %v10820_v45  ;;  %10841 = vpow2.f32 %v8854_v31  ;;  %v8857_v49 = vmul.f32 -1.442695, %v2201_v5 }
 0x524   :  { %v10824_v16 = vpop.eup %10823  ;;  %v2279_v20 = vadd.f32 1.0, %v10822_v6  ;;  %10843 = vpow2.f32 %v8855_v35 }
 0x525   :  { %v10826_v24 = vpop.eup %10825  ;;  %v2280_v34 = vadd.f32 1.0, %v10824_v16  ;;  %10845 = vrcp.f32 %v2278_v57  ;;  %v8858_v16 = vmul.f32 -1.442695, %v2205_v13 }
 0x526   :  { %v10828_v14 = vpop.eup %10827  ;;  %v2281_v9 = vadd.f32 1.0, %v10826_v24  ;;  %10847 = vrcp.f32 %v2279_v20 }
 0x527   :  { %v10830_v25 = vpop.eup %10829  ;;  %v2282_v21 = vadd.f32 1.0, %v10828_v14  ;;  %10849 = vrcp.f32 %v2280_v34  ;;  %v2366_v14 = vrot.slane %v13505_v3, 7  ;;  %v2370_v3 = vrot.slane %v13521_v15, 7 }
 0x528   :  { %v10832_v32 = vpop.eup %10831  ;;  %v2283_v31 = vadd.f32 1.0, %v10830_v25  ;;  %10851 = vrcp.f32 %v2281_v9 }
 0x529   :  { %v10834_v41 = vpop.eup %10833  ;;  %v2284_v35 = vadd.f32 1.0, %v10832_v32  ;;  %10853 = vrcp.f32 %v2282_v21  ;;  %v2368_v32 = vrot.slane %v13513_v36, 7 }
 0x52a   :  { %v10836_v45 = vpop.eup %10835  ;;  %v2285_v6 = vadd.f32 1.0, %v10834_v41  ;;  %10855 = vrcp.f32 %v2283_v31 }
 0x52b   :  { %v10838_v57 = vpop.eup %10837  ;;  %10857 = vrcp.f32 %v2284_v35  ;;  %v2334_v20 = vadd.f32 1.0, %v10836_v45 }
 0x52c   :  { %v10840_v55 = vpop.eup %10839  ;;  %10859 = vrcp.f32 %v2285_v6  ;;  %v2335_v28 = vadd.f32 1.0, %v10838_v57  ;;  %v2371_v57 = vrot.slane %v13525_v48, 7 }
 0x52d   :  { %v10842_v24 = vpop.eup %10841  ;;  %10861 = vpow2.f32 %v8856_v4  ;;  %v2336_v9 = vadd.f32 1.0, %v10840_v55  ;;  %v2369_v4 = vrot.slane %v13517_v61, 7 }
 0x52e   :  { %v10844_v34 = vpop.eup %10843  ;;  %10863 = vpow2.f32 %v8857_v49  ;;  %v2337_v21 = vadd.f32 1.0, %v10842_v24 }
 0x52f   :  { %v10846_v25 = vpop.eup %10845  ;;  %10865 = vpow2.f32 %v8858_v16  ;;  %v2338_v31 = vadd.f32 1.0, %v10844_v34 }
 0x530   :  { %v10848_v5 = vpop.eup %10847  ;;  %v2382_v13 = vmul.f32 %v10846_v25, %v2366_v14  ;;  %10867 = vrcp.f32 %v2334_v20  ;;  %v2372_v20 = vrot.slane %v13529_v40, 7 }
 0x531   :  { %v10850_v41 = vpop.eup %10849  ;;  %v2383_v35 = vmul.f32 %v10848_v5, %v2367_v18  ;;  %10869 = vrcp.f32 %v2335_v28 }
 0x532   :  { %v10852_v45 = vpop.eup %10851  ;;  %10871 = vrcp.f32 %v2336_v9  ;;  %v2384_v6 = vmul.f32 %v10850_v41, %v2368_v32  ;;  %v13664_v29 = vadd.f32 %v13633_v59, %v2382_v13  ;;  %v2373_v59 = vrot.slane %v13533_v38, 7 }
 0x533   :  { %v10854_v49 = vpop.eup %10853  ;;  %10873 = vrcp.f32 %v2337_v21  ;;  %v2385_v36 = vmul.f32 %v10852_v45, %v2369_v4  ;;  %v13668_v16 = vadd.f32 %v13636_v62, %v2383_v35 }
 0x534   :  { %v10856_v55 = vpop.eup %10855  ;;  %10875 = vrcp.f32 %v2338_v31  ;;  %v2386_v61 = vmul.f32 %v10854_v49, %v2370_v3  ;;  %v13672_v15 = vadd.f32 %v13639_v2, %v2384_v6 }
 0x535   :  { %v10858_v24 = vpop.eup %10857  ;;  %v2387_v28 = vmul.f32 %v10856_v55, %v2371_v57  ;;  %v13676_v34 = vadd.f32 %v13629_v42, %v2385_v36  ;;  %10877 = vtanh.f32 %v13664_v29 }
 0x536   :  { %v10860_v48 = vpop.eup %10859  ;;  %v2388_v62 = vmul.f32 %v10858_v24, %v2372_v20  ;;  %v13680_v14 = vadd.f32 %v13644_v63, %v2386_v61  ;;  %10879 = vtanh.f32 %v13668_v16 }
 0x537   :  { %v10862_v40 = vpop.eup %10861  ;;  %v2389_v9 = vmul.f32 %v10860_v48, %v2373_v59  ;;  %v13684_v2 = vadd.f32 %v13646_v54, %v2387_v28  ;;  %10881 = vtanh.f32 %v13672_v15 }
 0x538   :  { %v10864_v38 = vpop.eup %10863  ;;  %v2339_v25 = vadd.f32 1.0, %v10862_v40  ;;  %v13688_v42 = vadd.f32 %v13649_v39, %v2388_v62  ;;  %10883 = vtanh.f32 %v13676_v34 }
 0x539   :  { %v10866_v18 = vpop.eup %10865  ;;  %v2340_v21 = vadd.f32 1.0, %v10864_v38  ;;  %v13692_v63 = vadd.f32 %v13652_v23, %v2389_v9  ;;  %10885 = vtanh.f32 %v13680_v14 }
 0x53a   :  { %v10868_v5 = vpop.eup %10867  ;;  %v2341_v32 = vadd.f32 1.0, %v10866_v18  ;;  %10887 = vrcp.f32 %v2339_v25 }
 0x53b   :  { %v10870_v54 = vpop.eup %10869  ;;  %10889 = vrcp.f32 %v2340_v21 }
 0x53c   :  { %v10872_v13 = vpop.eup %10871  ;;  %10891 = vrcp.f32 %v2341_v32 }
 0x53d   :  { %v10874_v31 = vpop.eup %10873  ;;  %10893 = vtanh.f32 %v13684_v2 }
 0x53e   :  { %v10876_v39 = vpop.eup %10875  ;;  %10895 = vtanh.f32 %v13688_v42 }
 0x53f   :  { %v10878_v41 = vpop.eup %10877  ;;  %10897 = vtanh.f32 %v13692_v63 }
 0x540   :  { %v10880_v23 = vpop.eup %10879  ;;  %v2414_v35 = vmul.f32 %v10878_v41, %v10868_v5 }
 0x541   :  { %v10882_v4 = vpop.eup %10881  ;;  %v2415_v45 = vmul.f32 %v10880_v23, %v10870_v54 }
 0x542   :  { %v10884_v3 = vpop.eup %10883  ;;  %v2416_v6 = vmul.f32 %v10882_v4, %v10872_v13  ;;  %2422 = vst [vmem:[#allocation2] sm:$0x8] %v2414_v35  ;;  %v2438_v49 = vrot.slane %v2414_v35, 3  ;;  %v16255_v4 = vld [vmem:[#allocation31_spill] sm:$0xff] }
 0x543   :  { %v10886_v57 = vpop.eup %10885  ;;  %v2417_v36 = vmul.f32 %v10884_v3, %v10874_v31  ;;  %2423 = vst [vmem:[#allocation2 + $0x8] sm:$0x8] %v2415_v45  ;;  %v2439_v55 = vrot.slane %v2415_v45, 2  ;;  %v16256_v45 = vld [vmem:[#allocation32_spill] sm:$0xff]  ;;  %v16257_v3 = vld [vmem:[#allocation33_spill] sm:$0xff] }
 0x544   :  { %v10888_v20 = vpop.eup %10887  ;;  %v2418_v61 = vmul.f32 %v10886_v57, %v10876_v39  ;;  %2424 = vst [vmem:[#allocation2 + $0x10] sm:$0x8] %v2416_v6  ;;  %v2441_v24 = vrot.slane %v2416_v6, 1  ;;  %v16258_v6 = vld [vmem:[#allocation34_spill] sm:$0xff]  ;;  %v16260_v57 = vld [vmem:[#allocation36_spill] sm:$0xff] }
 0x545   :  { %v10890_v59 = vpop.eup %10889  ;;  %2425 = vst [vmem:[#allocation2 + $0x18] sm:$0x8] %v2417_v36  ;;  %v2440_v28 = vsel %vm977_vm0, %v2439_v55, %v2438_v49  ;;  %v16259_v49 = vld [vmem:[#allocation35_spill] sm:$0xff]  ;;  %v16262_v55 = vld [vmem:[#allocation38_spill] sm:$0xff] }
 0x546   :  { %v10892_v48 = vpop.eup %10891  ;;  %2426 = vst [vmem:[#allocation2 + $0x20] sm:$0x8] %v2418_v61  ;;  %v2442_v62 = vsel %vm980_vm1, %v2441_v24, %v2440_v28  ;;  %v2444_v40 = vrot.slane %v2418_v61, 7  ;;  %v16264_v61 = vld [vmem:[#allocation40_spill] sm:$0xff]  ;;  %v16265_v24 = vld [vmem:[#allocation41_spill] sm:$0xff]  ;;  %v16267_v28 = vld [vmem:[#allocation43_spill] sm:$0xff] }
 0x547   :  { %v10894_v9 = vpop.eup %10893  ;;  %v2443_v38 = vsel %vm983_vm2, %v2417_v36, %v2442_v62  ;;  %v16261_v36 = vld [vmem:[#allocation37_spill] sm:$0xff] }
 0x548   :  { %v10896_v25 = vpop.eup %10895  ;;  %v2419_v18 = vmul.f32 %v10894_v9, %v10888_v20  ;;  %v2445_v21 = vsel %vm986_vm3, %v2444_v40, %v2443_v38  ;;  %v16263_v20 = vld [vmem:[#allocation39_spill] sm:$0xff]  ;;  %v16269_v62 = vld [vmem:[#allocation45_spill] sm:$0xff]  ;;  %v16271_v9 = vld [vmem:[#allocation20_spill] sm:$0xff] }
 0x549   :  { %v10898_v5 = vpop.eup %10897  ;;  %v2420_v32 = vmul.f32 %v10896_v25, %v10890_v59  ;;  %v16266_v59 = vld [vmem:[#allocation42_spill] sm:$0xff]  ;;  %v16270_v40 = vld [vmem:[#allocation19_spill] sm:$0xff] }
 0x54a   :  { %v2421_v54 = vmul.f32 %v10898_v5, %v10892_v48  ;;  %2427 = vst [vmem:[#allocation2 + $0x28] sm:$0x8] %v2419_v18  ;;  %v2446_v13 = vrot.slane %v2419_v18, 6  ;;  %v16268_v48 = vld [vmem:[#allocation44_spill] sm:$0xff] }
 0x54b   :  { %2428 = vst [vmem:[#allocation2 + $0x30] sm:$0x8] %v2420_v32  ;;  %v2448_v31 = vrot.slane %v2420_v32, 5 }
 0x54c   :  { %2429 = vst [vmem:[#allocation2 + $0x38] sm:$0x8] %v2421_v54  ;;  %v2447_v39 = vsel %vm989_vm4, %v2446_v13, %v2445_v21  ;;  %v2450_v41 = vrot.slane %v2421_v54, 4 }
 0x54d   :  { %v2449_v23 = vsel %vm992_vm5, %v2448_v31, %v2447_v39 }
 0x54e   :  { %v2451_v35 = vsel %vm995_vm6, %v2450_v41, %v2449_v23 }
 0x54f   :  { %2518 = vmatmul.mubr.f32.vlgmr.msra.gmra.mrb[24].mxu0 %v2451_v35  ;;  %2589 = vmatmul.mubr.f32.vlgmr.msra.gmra.mrb[24].mxu1 %v2451_v35  ;;  %v16272_v35 = vld [vmem:[#allocation47_spill] sm:$0xff] }
 0x550   :  { %9587 = vmatpush1.bf16.msra.mxu0 %v12746_v47  ;;  %9619 = vmatpush1.bf16.msra.mxu1 %v12749_v50 }
 0x551   :  { %9589 = vmatprep.subr.bf16.mxu0 %v12752_v53  ;;  %9621 = vmatprep.subr.bf16.mxu1 %v12754_v56 }
 0x552   :  { %3002 = vmatprep.mubr.f32.mxu0 %v16143_v8  ;;  %3073 = vmatprep.mubr.f32.mxu1 %v16143_v8 }
 0x554   :  { %9591 = vmatpush1.bf16.msra.mxu0 %v12760_v60  ;;  %9623 = vmatpush1.bf16.msra.mxu1 %v16177_v1 }
 0x555   :  { %9593 = vmatprep.subr.bf16.mxu0 %v16178_v26  ;;  %9625 = vmatprep.subr.bf16.mxu1 %v16179_v44 }
 0x558   :  { %9595 = vmatpush1.bf16.msra.mxu0 %v16180_v12  ;;  %9627 = vmatpush1.bf16.msra.mxu1 %v16181_v7 }
 0x559   :  { %9597 = vmatprep.subr.bf16.mxu0 %v16182_v19  ;;  %9629 = vmatprep.subr.bf16.mxu1 %v16183_v27 }
 0x55c   :  { %9599 = vmatpush1.bf16.msra.mxu0 %v16216_v52  ;;  %9631 = vmatpush1.bf16.msra.mxu1 %v16217_v51 }
 0x55d   :  { %9601 = vmatprep.subr.bf16.mxu0 %v16218_v11  ;;  %9633 = vmatprep.subr.bf16.mxu1 %v16255_v4 }
 0x560   :  { %9603 = vmatpush1.bf16.msra.mxu0 %v16256_v45  ;;  %9635 = vmatpush1.bf16.msra.mxu1 %v16257_v3 }
 0x561   :  { %9605 = vmatprep.subr.bf16.mxu0 %v16258_v6  ;;  %9637 = vmatprep.subr.bf16.mxu1 %v16259_v49  ;;  %v16278_v49 = vld [vmem:[#allocation54_spill] sm:$0xff] }
 0x564   :  { %9607 = vmatpush1.bf16.msra.mxu0 %v16260_v57  ;;  %9639 = vmatpush1.bf16.msra.mxu1 %v16261_v36 }
 0x565   :  { %9609 = vmatprep.subr.bf16.mxu0 %v16262_v55  ;;  %9641 = vmatprep.subr.bf16.mxu1 %v16263_v20  ;;  %v16277_v55 = vld [vmem:[#allocation53_spill] sm:$0xff] }
 0x568   :  { %9611 = vmatpush1.bf16.msra.mxu0 %v16264_v61  ;;  %9643 = vmatpush1.bf16.msra.mxu1 %v16265_v24  ;;  %v16276_v61 = vld [vmem:[#allocation52_spill] sm:$0xff] }
 0x569   :  { %9613 = vmatprep.subr.bf16.mxu0 %v16266_v59  ;;  %9645 = vmatprep.subr.bf16.mxu1 %v16267_v28  ;;  %v16275_v59 = vld [vmem:[#allocation50_spill] sm:$0xff] }
 0x56c   :  { %9615 = vmatpush1.bf16.msra.mxu0 %v16268_v48  ;;  %9647 = vmatpush1.bf16.msra.mxu1 %v16269_v62  ;;  %v16273_v62 = vld [vmem:[#allocation48_spill] sm:$0xff]  ;;  %v16274_v48 = vld [vmem:[#allocation49_spill] sm:$0xff] }
 0x56d   :  { %9649 = vmatprep.subr.bf16.mxu0 %v16270_v40  ;;  %9681 = vmatprep.subr.bf16.mxu1 %v16271_v9 }
 0x622   :  { %v2519_v38 = vpop.f32.mrb[24].mxu0  ;;  %v13739_v25 = vpop.f32.mrb[24].mxu1 }
 0x623   :  { %v2599_v18 = vrot.slane %v2519_v38, 4  ;;  %v2603_v21 = vrot.slane %v2519_v38, 5  ;;  %v2607_v5 = vrot.slane %v2519_v38, 6  ;;  %v2611_v32 = vrot.slane %v2519_v38, 7  ;;  %v13741_v54 = vpop.f32.mrb[25].mxu0  ;;  %v13743_v13 = vpop.f32.mrb[25].mxu1 }
 0x624   :  { %v2615_v31 = vrot.slane %v2519_v38, 1  ;;  %v2619_v39 = vrot.slane %v2519_v38, 2  ;;  %v2623_v41 = vrot.slane %v2519_v38, 3  ;;  %v2675_v23 = vadd.f32 %v2519_v38, %v16236_v10 }
 0x625   :  { %v2659_v40 = vadd.f32 %v2599_v18, %v16272_v35  ;;  %v2663_v9 = vadd.f32 %v2603_v21, %v16273_v62  ;;  %v2667_v28 = vadd.f32 %v2607_v5, %v16274_v48  ;;  %v2671_v24 = vadd.f32 %v2611_v32, %v16275_v59  ;;  %v16292_v48 = vld [vmem:[#allocation70_spill] sm:$0xff] }
 0x626   :  { %v2679_v20 = vadd.f32 %v2615_v31, %v16276_v61  ;;  %v2683_v36 = vadd.f32 %v2619_v39, %v16277_v55  ;;  %v8863_v57 = vmul.f32 -1.442695, %v2675_v23  ;;  %v2687_v6 = vadd.f32 %v2623_v41, %v16278_v49  ;;  %v16287_v55 = vld [vmem:[#allocation62_spill] sm:$0xff] }
 0x627   :  { %v8859_v3 = vmul.f32 -1.442695, %v2659_v40  ;;  %v8860_v45 = vmul.f32 -1.442695, %v2663_v9  ;;  %v8861_v4 = vmul.f32 -1.442695, %v2667_v28 }
 0x628   :  { %v8862_v11 = vmul.f32 -1.442695, %v2671_v24  ;;  %10899 = vpow2.f32 %v8863_v57  ;;  %v8864_v38 = vmul.f32 -1.442695, %v2679_v20  ;;  %v2601_v18 = vrot.slane %v13739_v25, 4  ;;  %v16279_v40 = vld [vmem:[#allocation56_spill] sm:$0xff] }
 0x629   :  { %10901 = vpow2.f32 %v8859_v3  ;;  %v2605_v21 = vrot.slane %v13739_v25, 5  ;;  %v8865_v5 = vmul.f32 -1.442695, %v2683_v36  ;;  %v2609_v32 = vrot.slane %v13739_v25, 6  ;;  %v16280_v24 = vld [vmem:[#allocation57_spill] sm:$0xff]  ;;  %v16281_v3 = vld [vmem:[#allocation58_spill] sm:$0xff] }
 0x62a   :  { %10903 = vpow2.f32 %v8860_v45  ;;  %v8866_v31 = vmul.f32 -1.442695, %v2687_v6  ;;  %v2613_v39 = vrot.slane %v13739_v25, 7  ;;  %v2661_v9 = vadd.f32 %v2601_v18, %v16279_v40  ;;  %v16282_v28 = vld [vmem:[#allocation61_spill] sm:$0xff]  ;;  %v16283_v45 = vld [vmem:[#allocation59_spill] sm:$0xff] }
 0x62b   :  { %10905 = vpow2.f32 %v8861_v4  ;;  %v2665_v57 = vadd.f32 %v2605_v21, %v16280_v24  ;;  %v2669_v20 = vadd.f32 %v2609_v32, %v16281_v3  ;;  %v2677_v36 = vadd.f32 %v13739_v25, %v16283_v45  ;;  %v16286_v40 = vld [vmem:[#allocation55_spill] sm:$0xff] }
 0x62c   :  { %10907 = vpow2.f32 %v8862_v11  ;;  %v2673_v41 = vadd.f32 %v2613_v39, %v16282_v28  ;;  %v2617_v23 = vrot.slane %v13739_v25, 1  ;;  %v2621_v21 = vrot.slane %v13739_v25, 2 }
 0x62d   :  { %10909 = vpow2.f32 %v8864_v38  ;;  %v2604_v39 = vrot.slane %v13741_v54, 5 }
 0x62e   :  { %10911 = vpow2.f32 %v8865_v5  ;;  %v2600_v5 = vrot.slane %v13741_v54, 4 }
 0x62f   :  { %10913 = vpow2.f32 %v8866_v31  ;;  %v2664_v10 = vadd.f32 %v2604_v39, %v16287_v55 }
 0x630   :  { %10915 = vtanh.f32 %v2661_v9  ;;  %v2660_v49 = vadd.f32 %v2600_v5, %v16286_v40  ;;  %v2624_v5 = vrot.slane %v13741_v54, 3  ;;  %v16291_v40 = vld [vmem:[#allocation67_spill] sm:$0xff] }
 0x631   :  { %10917 = vtanh.f32 %v2665_v57  ;;  %v2676_v39 = vadd.f32 %v13741_v54, %v16291_v40  ;;  %v2614_v40 = vrot.slane %v13743_v13, 7 }
 0x632   :  { %v10900_v4 = vpop.eup %10899  ;;  %10919 = vtanh.f32 %v2669_v20  ;;  %v2625_v20 = vrot.slane %v13739_v25, 3  ;;  %v2616_v25 = vrot.slane %v13741_v54, 1  ;;  %v8867_v55 = vmul.f32 -1.442695, %v2660_v49 }
 0x633   :  { %v10902_v6 = vpop.eup %10901  ;;  %v2719_v11 = vadd.f32 1.0, %v10900_v4  ;;  %10921 = vtanh.f32 %v2673_v41  ;;  %v2608_v4 = vrot.slane %v13741_v54, 6  ;;  %v2688_v49 = vadd.f32 %v2624_v5, %v16175_v0 }
 0x634   :  { %v10904_v38 = vpop.eup %10903  ;;  %v2715_v18 = vadd.f32 1.0, %v10902_v6  ;;  %10923 = vtanh.f32 %v2677_v36  ;;  %v16284_v6 = vld [vmem:[#allocation68_spill] sm:$0xff]  ;;  %v2612_v36 = vrot.slane %v13741_v54, 7 }
 0x635   :  { %v10906_v32 = vpop.eup %10905  ;;  %v2716_v31 = vadd.f32 1.0, %v10904_v38  ;;  %10925 = vrcp.f32 %v2719_v11  ;;  %v2681_v28 = vadd.f32 %v2617_v23, %v16284_v6  ;;  %v16285_v11 = vld [vmem:[#allocation69_spill] sm:$0xff]  ;;  %v2620_v23 = vrot.slane %v13741_v54, 2  ;;  %v16288_v6 = vld [vmem:[#allocation64_spill] sm:$0xff] }
 0x636   :  { %v10908_v9 = vpop.eup %10907  ;;  %v2717_v57 = vadd.f32 1.0, %v10906_v32  ;;  %10927 = vrcp.f32 %v2715_v18  ;;  %v2685_v38 = vadd.f32 %v2621_v21, %v16285_v11  ;;  %v2668_v59 = vadd.f32 %v2608_v4, %v16288_v6  ;;  %v16290_v11 = vld [vmem:[#allocation66_spill] sm:$0xff] }
 0x637   :  { %v10910_v41 = vpop.eup %10909  ;;  %v2718_v45 = vadd.f32 1.0, %v10908_v9  ;;  %10929 = vrcp.f32 %v2716_v31  ;;  %v2680_v4 = vadd.f32 %v2616_v25, %v16292_v48  ;;  %v8868_v6 = vmul.f32 -1.442695, %v2664_v10 }
 0x638   :  { %v10912_v3 = vpop.eup %10911  ;;  %v2720_v24 = vadd.f32 1.0, %v10910_v41  ;;  %10931 = vrcp.f32 %v2717_v57  ;;  %v16289_v57 = vld [vmem:[#allocation72_spill] sm:$0xff]  ;;  %v8871_v25 = vmul.f32 -1.442695, %v2676_v39 }
 0x639   :  { %v10914_v32 = vpop.eup %10913  ;;  %v2721_v18 = vadd.f32 1.0, %v10912_v3  ;;  %10933 = vrcp.f32 %v2718_v45  ;;  %v2689_v21 = vadd.f32 %v2625_v20, %v16289_v57  ;;  %v2672_v3 = vadd.f32 %v2612_v36, %v16290_v11  ;;  %v16293_v57 = vld [vmem:[#allocation71_spill] sm:$0xff] }
 0x63a   :  { %v10916_v9 = vpop.eup %10915  ;;  %v2722_v31 = vadd.f32 1.0, %v10914_v32  ;;  %10935 = vrcp.f32 %v2720_v24  ;;  %v2602_v24 = vrot.slane %v13743_v13, 4  ;;  %v2684_v62 = vadd.f32 %v2620_v23, %v16293_v57 }
 0x63b   :  { %v10918_v41 = vpop.eup %10917  ;;  %10937 = vrcp.f32 %v2721_v18  ;;  %v2606_v18 = vrot.slane %v13743_v13, 5  ;;  %v8869_v36 = vmul.f32 -1.442695, %v2668_v59  ;;  %v8870_v54 = vmul.f32 -1.442695, %v2672_v3 }
 0x63c   :  { %v10920_v45 = vpop.eup %10919  ;;  %10939 = vrcp.f32 %v2722_v31  ;;  %v2610_v31 = vrot.slane %v13743_v13, 6  ;;  %v2662_v10 = vadd.f32 %v2602_v24, %v16176_v22  ;;  %v8872_v59 = vmul.f32 -1.442695, %v2680_v4 }
 0x63d   :  { %v10922_v32 = vpop.eup %10921  ;;  %10941 = vtanh.f32 %v2681_v28  ;;  %v2666_v23 = vadd.f32 %v2606_v18, %v16215_v46  ;;  %v8873_v5 = vmul.f32 -1.442695, %v2684_v62  ;;  %v2674_v24 = vadd.f32 %v2614_v40, %v13080_v43 }
 0x63e   :  { %v10924_v20 = vpop.eup %10923  ;;  %10943 = vtanh.f32 %v2685_v38  ;;  %v2670_v3 = vadd.f32 %v2610_v31, %v16254_v58 }
 0x63f   :  { %v10926_v11 = vpop.eup %10925  ;;  %10945 = vtanh.f32 %v2689_v21  ;;  %v8876_v62 = vmul.f32 -1.442695, %v2666_v23  ;;  %v8878_v31 = vmul.f32 -1.442695, %v2674_v24 }
 0x640   :  { %v10928_v28 = vpop.eup %10927  ;;  %10947 = vpow2.f32 %v8867_v55  ;;  %v13790_v48 = vmul.f32 %v10926_v11, %v10924_v20  ;;  %v8874_v11 = vmul.f32 -1.442695, %v2688_v49 }
 0x641   :  { %v10930_v38 = vpop.eup %10929  ;;  %v13792_v35 = vmul.f32 %v10928_v28, %v10916_v9  ;;  %10949 = vpow2.f32 %v8868_v6  ;;  %v2678_v6 = vadd.f32 %v13743_v13, %v13094_v37  ;;  %v2618_v28 = vrot.slane %v13743_v13, 1 }
 0x642   :  { %v10932_v21 = vpop.eup %10931  ;;  %v13795_v57 = vmul.f32 %v10930_v38, %v10918_v41  ;;  %10951 = vpow2.f32 %v8869_v36  ;;  %v8875_v41 = vmul.f32 -1.442695, %v2662_v10  ;;  %v8877_v36 = vmul.f32 -1.442695, %v2670_v3 }
 0x643   :  { %v10934_v55 = vpop.eup %10933  ;;  %v13798_v39 = vmul.f32 %v10932_v21, %v10920_v45  ;;  %10953 = vpow2.f32 %v8870_v54  ;;  %v8879_v40 = vmul.f32 -1.442695, %v2678_v6  ;;  %v2622_v38 = vrot.slane %v13743_v13, 2 }
 0x644   :  { %v10936_v9 = vpop.eup %10935  ;;  %v13801_v20 = vmul.f32 %v10934_v55, %v10922_v32  ;;  %10955 = vpow2.f32 %v8871_v25 }
 0x645   :  { %v10938_v4 = vpop.eup %10937  ;;  %10957 = vpow2.f32 %v8872_v59 }
 0x646   :  { %v10940_v18 = vpop.eup %10939  ;;  %10959 = vpow2.f32 %v8873_v5  ;;  %v2626_v5 = vrot.slane %v13743_v13, 3 }
 0x647   :  { %v10942_v45 = vpop.eup %10941  ;;  %10961 = vpow2.f32 %v8874_v11 }
 0x648   :  { %v10944_v49 = vpop.eup %10943  ;;  %10963 = vpow2.f32 %v8875_v41  ;;  %v13805_v54 = vmul.f32 %v10942_v45, %v10936_v9  ;;  %v2682_v9 = vadd.f32 %v2618_v28, %v13161_v33 }
 0x649   :  { %v10946_v32 = vpop.eup %10945  ;;  %10965 = vpow2.f32 %v8876_v62  ;;  %v13808_v25 = vmul.f32 %v10944_v49, %v10938_v4  ;;  %v2686_v4 = vadd.f32 %v2622_v38, %v13168_v30 }
 0x64a   :  { %v10948_v10 = vpop.eup %10947  ;;  %10967 = vpow2.f32 %v8877_v36  ;;  %v13811_v59 = vmul.f32 %v10946_v32, %v10940_v18  ;;  %v2690_v36 = vadd.f32 %v2626_v5, %v13175_v17 }
 0x64b   :  { %v10950_v23 = vpop.eup %10949  ;;  %v2763_v21 = vadd.f32 1.0, %v10948_v10  ;;  %10969 = vpow2.f32 %v8878_v31  ;;  %v8881_v28 = vmul.f32 -1.442695, %v2686_v4 }
 0x64c   :  { %v10952_v3 = vpop.eup %10951  ;;  %v2764_v55 = vadd.f32 1.0, %v10950_v23  ;;  %10971 = vpow2.f32 %v8879_v40  ;;  %v8880_v40 = vmul.f32 -1.442695, %v2682_v9  ;;  %v2852_v9 = vrot.slane %v13668_v16, 7 }
 0x64d   :  { %v10954_v11 = vpop.eup %10953  ;;  %v2765_v24 = vadd.f32 1.0, %v10952_v3  ;;  %10973 = vrcp.f32 %v2763_v21  ;;  %v8882_v21 = vmul.f32 -1.442695, %v2690_v36 }
 0x64e   :  { %v10956_v6 = vpop.eup %10955  ;;  %v2766_v41 = vadd.f32 1.0, %v10954_v11  ;;  %10975 = vrcp.f32 %v2764_v55 }
 0x64f   :  { %v10958_v62 = vpop.eup %10957  ;;  %v2767_v18 = vadd.f32 1.0, %v10956_v6  ;;  %10977 = vrcp.f32 %v2765_v24  ;;  %v2851_v24 = vrot.slane %v13664_v29, 7  ;;  %v2855_v29 = vrot.slane %v13680_v14, 7 }
 0x650   :  { %v10960_v13 = vpop.eup %10959  ;;  %v2768_v45 = vadd.f32 1.0, %v10958_v62  ;;  %10979 = vrcp.f32 %v2766_v41 }
 0x651   :  { %v10962_v31 = vpop.eup %10961  ;;  %v2769_v49 = vadd.f32 1.0, %v10960_v13  ;;  %10981 = vrcp.f32 %v2767_v18  ;;  %v2853_v18 = vrot.slane %v13672_v15, 7 }
 0x652   :  { %v10964_v32 = vpop.eup %10963  ;;  %v2770_v10 = vadd.f32 1.0, %v10962_v31  ;;  %10983 = vrcp.f32 %v2768_v45  ;;  %v2854_v31 = vrot.slane %v13676_v34, 7  ;;  %v2857_v34 = vrot.slane %v13688_v42, 7 }
 0x653   :  { %v10966_v23 = vpop.eup %10965  ;;  %10985 = vrcp.f32 %v2769_v49  ;;  %v2819_v3 = vadd.f32 1.0, %v10964_v32 }
 0x654   :  { %v10968_v38 = vpop.eup %10967  ;;  %10987 = vrcp.f32 %v2770_v10  ;;  %v2820_v5 = vadd.f32 1.0, %v10966_v23 }
 0x655   :  { %v10970_v55 = vpop.eup %10969  ;;  %10989 = vpow2.f32 %v8880_v40  ;;  %v2821_v6 = vadd.f32 1.0, %v10968_v38 }
 0x656   :  { %v10972_v11 = vpop.eup %10971  ;;  %10991 = vpow2.f32 %v8881_v28  ;;  %v2822_v62 = vadd.f32 1.0, %v10970_v55  ;;  %v2856_v28 = vrot.slane %v13684_v2, 7 }
 0x657   :  { %v10974_v41 = vpop.eup %10973  ;;  %10993 = vpow2.f32 %v8882_v21  ;;  %v2823_v13 = vadd.f32 1.0, %v10972_v11 }
 0x658   :  { %v10976_v4 = vpop.eup %10975  ;;  %v2867_v36 = vmul.f32 %v10974_v41, %v2851_v24  ;;  %10995 = vrcp.f32 %v2819_v3 }
 0x659   :  { %v10978_v45 = vpop.eup %10977  ;;  %v2868_v49 = vmul.f32 %v10976_v4, %v2852_v9  ;;  %10997 = vrcp.f32 %v2820_v5 }
 0x65a   :  { %v10980_v40 = vpop.eup %10979  ;;  %10999 = vrcp.f32 %v2821_v6  ;;  %v2869_v32 = vmul.f32 %v10978_v45, %v2853_v18  ;;  %v13823_v16 = vadd.f32 %v13792_v35, %v2867_v36  ;;  %v2858_v35 = vrot.slane %v13692_v63, 7 }
 0x65b   :  { %v10982_v10 = vpop.eup %10981  ;;  %11001 = vrcp.f32 %v2822_v62  ;;  %v2870_v15 = vmul.f32 %v10980_v40, %v2854_v31  ;;  %v13827_v23 = vadd.f32 %v13795_v57, %v2868_v49 }
 0x65c   :  { %v10984_v21 = vpop.eup %10983  ;;  %11003 = vrcp.f32 %v2823_v13  ;;  %v2871_v38 = vmul.f32 %v10982_v10, %v2855_v29  ;;  %v13831_v3 = vadd.f32 %v13798_v39, %v2869_v32 }
 0x65d   :  { %v10986_v14 = vpop.eup %10985  ;;  %v2872_v55 = vmul.f32 %v10984_v21, %v2856_v28  ;;  %v13835_v5 = vadd.f32 %v13801_v20, %v2870_v15  ;;  %11005 = vtanh.f32 %v13823_v16 }
 0x65e   :  { %v10988_v2 = vpop.eup %10987  ;;  %v2873_v57 = vmul.f32 %v10986_v14, %v2857_v34  ;;  %v13839_v11 = vadd.f32 %v13790_v48, %v2871_v38  ;;  %11007 = vtanh.f32 %v13827_v23 }
 0x65f   :  { %v10990_v42 = vpop.eup %10989  ;;  %v2874_v24 = vmul.f32 %v10988_v2, %v2858_v35  ;;  %v13843_v39 = vadd.f32 %v13805_v54, %v2872_v55  ;;  %11009 = vtanh.f32 %v13831_v3 }
 0x660   :  { %v10992_v63 = vpop.eup %10991  ;;  %v2824_v6 = vadd.f32 1.0, %v10990_v42  ;;  %v13847_v20 = vadd.f32 %v13808_v25, %v2873_v57  ;;  %11011 = vtanh.f32 %v13835_v5 }
 0x661   :  { %v10994_v41 = vpop.eup %10993  ;;  %v2825_v9 = vadd.f32 1.0, %v10992_v63  ;;  %v13851_v48 = vadd.f32 %v13811_v59, %v2874_v24  ;;  %11013 = vtanh.f32 %v13839_v11 }
 0x662   :  { %v10996_v62 = vpop.eup %10995  ;;  %v2826_v4 = vadd.f32 1.0, %v10994_v41  ;;  %11015 = vrcp.f32 %v2824_v6 }
 0x663   :  { %v10998_v54 = vpop.eup %10997  ;;  %11017 = vrcp.f32 %v2825_v9 }
 0x664   :  { %v11000_v18 = vpop.eup %10999  ;;  %11019 = vrcp.f32 %v2826_v4 }
 0x665   :  { %v11002_v36 = vpop.eup %11001  ;;  %11021 = vtanh.f32 %v13843_v39 }
 0x666   :  { %v11004_v25 = vpop.eup %11003  ;;  %11023 = vtanh.f32 %v13847_v20 }
 0x667   :  { %v11006_v13 = vpop.eup %11005  ;;  %11025 = vtanh.f32 %v13851_v48 }
 0x668   :  { %v11008_v59 = vpop.eup %11007  ;;  %v2899_v45 = vmul.f32 %v11006_v13, %v10996_v62 }
 0x669   :  { %v11010_v31 = vpop.eup %11009  ;;  %v2900_v49 = vmul.f32 %v11008_v59, %v10998_v54 }
 0x66a   :  { %v11012_v40 = vpop.eup %11011  ;;  %v2901_v29 = vmul.f32 %v11010_v31, %v11000_v18  ;;  %2907 = vst [vmem:[#allocation2] sm:$0x10] %v2899_v45  ;;  %v2923_v32 = vrot.slane %v2899_v45, 4  ;;  %v16294_v45 = vld [vmem:[#allocation30_spill] sm:$0xff]  ;;  %v16295_v31 = vld [vmem:[#allocation31_spill] sm:$0xff] }
 0x66b   :  { %v11014_v10 = vpop.eup %11013  ;;  %v2902_v28 = vmul.f32 %v11012_v40, %v11002_v36  ;;  %2908 = vst [vmem:[#allocation2 + $0x8] sm:$0x10] %v2900_v49  ;;  %v2924_v15 = vrot.slane %v2900_v49, 3  ;;  %v16296_v49 = vld [vmem:[#allocation32_spill] sm:$0xff]  ;;  %v16297_v40 = vld [vmem:[#allocation33_spill] sm:$0xff] }
 0x66c   :  { %v11016_v21 = vpop.eup %11015  ;;  %v2903_v34 = vmul.f32 %v11014_v10, %v11004_v25  ;;  %2909 = vst [vmem:[#allocation2 + $0x10] sm:$0x10] %v2901_v29  ;;  %v2926_v38 = vrot.slane %v2901_v29, 2  ;;  %v16298_v29 = vld [vmem:[#allocation34_spill] sm:$0xff]  ;;  %v16300_v10 = vld [vmem:[#allocation36_spill] sm:$0xff] }
 0x66d   :  { %v11018_v14 = vpop.eup %11017  ;;  %2910 = vst [vmem:[#allocation2 + $0x18] sm:$0x10] %v2902_v28  ;;  %v2925_v35 = vsel %vm977_vm0, %v2924_v15, %v2923_v32  ;;  %v2928_v55 = vrot.slane %v2902_v28, 1  ;;  %v16299_v32 = vld [vmem:[#allocation35_spill] sm:$0xff]  ;;  %v16301_v28 = vld [vmem:[#allocation37_spill] sm:$0xff]  ;;  %v16302_v15 = vld [vmem:[#allocation38_spill] sm:$0xff] }
 0x66e   :  { %v11020_v2 = vpop.eup %11019  ;;  %2911 = vst [vmem:[#allocation2 + $0x20] sm:$0x10] %v2903_v34  ;;  %v2927_v57 = vsel %vm980_vm1, %v2926_v38, %v2925_v35  ;;  %v16305_v38 = vld [vmem:[#allocation41_spill] sm:$0xff]  ;;  %v16307_v35 = vld [vmem:[#allocation43_spill] sm:$0xff] }
 0x66f   :  { %v11022_v42 = vpop.eup %11021  ;;  %v2929_v24 = vsel %vm983_vm2, %v2928_v55, %v2927_v57  ;;  %v16308_v55 = vld [vmem:[#allocation44_spill] sm:$0xff]  ;;  %v16310_v57 = vld [vmem:[#allocation19_spill] sm:$0xff] }
 0x670   :  { %v11024_v63 = vpop.eup %11023  ;;  %v2904_v6 = vmul.f32 %v11022_v42, %v11016_v21  ;;  %v2930_v41 = vsel %vm986_vm3, %v2903_v34, %v2929_v24  ;;  %v16303_v21 = vld [vmem:[#allocation39_spill] sm:$0xff]  ;;  %v16304_v34 = vld [vmem:[#allocation40_spill] sm:$0xff] }
 0x671   :  { %v11026_v9 = vpop.eup %11025  ;;  %v2905_v62 = vmul.f32 %v11024_v63, %v11018_v14  ;;  %v16306_v14 = vld [vmem:[#allocation42_spill] sm:$0xff]  ;;  %v16311_v42 = vld [vmem:[#allocation20_spill] sm:$0xff] }
 0x672   :  { %v2906_v4 = vmul.f32 %v11026_v9, %v11020_v2  ;;  %2912 = vst [vmem:[#allocation2 + $0x28] sm:$0x10] %v2904_v6  ;;  %v2931_v54 = vrot.slane %v2904_v6, 7  ;;  %v16309_v2 = vld [vmem:[#allocation45_spill] sm:$0xff] }
 0x673   :  { %2913 = vst [vmem:[#allocation2 + $0x30] sm:$0x10] %v2905_v62  ;;  %v2933_v18 = vrot.slane %v2905_v62, 6 }
 0x674   :  { %2914 = vst [vmem:[#allocation2 + $0x38] sm:$0x10] %v2906_v4  ;;  %v2932_v36 = vsel %vm989_vm4, %v2931_v54, %v2930_v41  ;;  %v2935_v25 = vrot.slane %v2906_v4, 5 }
 0x675   :  { %v2934_v13 = vsel %vm992_vm5, %v2933_v18, %v2932_v36 }
 0x676   :  { %v2936_v59 = vsel %vm995_vm6, %v2935_v25, %v2934_v13 }
 0x677   :  { %3003 = vmatmul.mubr.f32.vlgmr.msra.gmra.mrb[26].mxu0 %v2936_v59  ;;  %3074 = vmatmul.mubr.f32.vlgmr.msra.gmra.mrb[26].mxu1 %v2936_v59  ;;  %v16312_v59 = vld [vmem:[#allocation47_spill] sm:$0xff] }
 0x678   :  { %9651 = vmatpush1.bf16.msra.mxu0 %v12746_v47  ;;  %9683 = vmatpush1.bf16.msra.mxu1 %v12749_v50 }
 0x679   :  { %9653 = vmatprep.subr.bf16.mxu0 %v12752_v53  ;;  %9685 = vmatprep.subr.bf16.mxu1 %v12754_v56 }
 0x67a   :  { %3487 = vmatprep.mubr.f32.mxu0 %v16143_v8  ;;  %3558 = vmatprep.mubr.f32.mxu1 %v16143_v8 }
 0x67c   :  { %9655 = vmatpush1.bf16.msra.mxu0 %v12760_v60  ;;  %9687 = vmatpush1.bf16.msra.mxu1 %v16177_v1 }
 0x67d   :  { %9657 = vmatprep.subr.bf16.mxu0 %v16178_v26  ;;  %9689 = vmatprep.subr.bf16.mxu1 %v16179_v44 }
 0x680   :  { %9659 = vmatpush1.bf16.msra.mxu0 %v16180_v12  ;;  %9691 = vmatpush1.bf16.msra.mxu1 %v16181_v7 }
 0x681   :  { %9661 = vmatprep.subr.bf16.mxu0 %v16182_v19  ;;  %9693 = vmatprep.subr.bf16.mxu1 %v16183_v27 }
 0x684   :  { %9663 = vmatpush1.bf16.msra.mxu0 %v16216_v52  ;;  %9695 = vmatpush1.bf16.msra.mxu1 %v16217_v51 }
 0x685   :  { %9665 = vmatprep.subr.bf16.mxu0 %v16294_v45  ;;  %9697 = vmatprep.subr.bf16.mxu1 %v16295_v31 }
 0x688   :  { %9667 = vmatpush1.bf16.msra.mxu0 %v16296_v49  ;;  %9699 = vmatpush1.bf16.msra.mxu1 %v16297_v40 }
 0x689   :  { %9669 = vmatprep.subr.bf16.mxu0 %v16298_v29  ;;  %9701 = vmatprep.subr.bf16.mxu1 %v16299_v32  ;;  %v16318_v32 = vld [vmem:[#allocation54_spill] sm:$0xff] }
 0x68c   :  { %9671 = vmatpush1.bf16.msra.mxu0 %v16300_v10  ;;  %9703 = vmatpush1.bf16.msra.mxu1 %v16301_v28 }
 0x68d   :  { %9673 = vmatprep.subr.bf16.mxu0 %v16302_v15  ;;  %9705 = vmatprep.subr.bf16.mxu1 %v16303_v21  ;;  %v16317_v15 = vld [vmem:[#allocation53_spill] sm:$0xff] }
 0x690   :  { %9675 = vmatpush1.bf16.msra.mxu0 %v16304_v34  ;;  %9707 = vmatpush1.bf16.msra.mxu1 %v16305_v38  ;;  %v16316_v34 = vld [vmem:[#allocation51_spill] sm:$0xff] }
 0x691   :  { %9677 = vmatprep.subr.bf16.mxu0 %v16306_v14  ;;  %9709 = vmatprep.subr.bf16.mxu1 %v16307_v35  ;;  %v16315_v14 = vld [vmem:[#allocation50_spill] sm:$0xff] }
 0x694   :  { %9679 = vmatpush1.bf16.msra.mxu0 %v16308_v55  ;;  %9711 = vmatpush1.bf16.msra.mxu1 %v16309_v2  ;;  %v16313_v2 = vld [vmem:[#allocation48_spill] sm:$0xff]  ;;  %v16314_v55 = vld [vmem:[#allocation49_spill] sm:$0xff] }
 0x695   :  { %9713 = vmatprep.subr.bf16.mxu0 %v16310_v57  ;;  %9745 = vmatprep.subr.bf16.mxu1 %v16311_v42 }
 0x74a   :  { %v3004_v24 = vpop.f32.mrb[26].mxu0  ;;  %v13898_v63 = vpop.f32.mrb[26].mxu1 }
 0x74b   :  { %v3084_v6 = vrot.slane %v3004_v24, 3  ;;  %v3088_v41 = vrot.slane %v3004_v24, 4  ;;  %v3092_v9 = vrot.slane %v3004_v24, 5  ;;  %v3096_v62 = vrot.slane %v3004_v24, 6  ;;  %v13900_v4 = vpop.f32.mrb[27].mxu0  ;;  %v13902_v54 = vpop.f32.mrb[27].mxu1 }
 0x74c   :  { %v3100_v18 = vrot.slane %v3004_v24, 7  ;;  %v3104_v36 = vrot.slane %v3004_v24, 1  ;;  %v3108_v25 = vrot.slane %v3004_v24, 2  ;;  %v3164_v13 = vadd.f32 %v3004_v24, %v16276_v61 }
 0x74d   :  { %v3144_v57 = vadd.f32 %v3084_v6, %v16312_v59  ;;  %v3148_v42 = vadd.f32 %v3088_v41, %v16313_v2  ;;  %v3152_v35 = vadd.f32 %v3092_v9, %v16314_v55  ;;  %v3156_v38 = vadd.f32 %v3096_v62, %v16315_v14 }
 0x74e   :  { %v3160_v21 = vadd.f32 %v3100_v18, %v16316_v34  ;;  %v3168_v28 = vadd.f32 %v3104_v36, %v16317_v15  ;;  %v8888_v10 = vmul.f32 -1.442695, %v3164_v13  ;;  %v3172_v29 = vadd.f32 %v3108_v25, %v16318_v32  ;;  %v16328_v34 = vld [vmem:[#allocation64_spill] sm:$0xff] }
 0x74f   :  { %v8883_v40 = vmul.f32 -1.442695, %v3144_v57  ;;  %v8884_v49 = vmul.f32 -1.442695, %v3148_v42  ;;  %v8885_v31 = vmul.f32 -1.442695, %v3152_v35 }
 0x750   :  { %v8886_v45 = vmul.f32 -1.442695, %v3156_v38  ;;  %11027 = vpow2.f32 %v8888_v10  ;;  %v8887_v24 = vmul.f32 -1.442695, %v3160_v21  ;;  %v3086_v6 = vrot.slane %v13898_v63, 3  ;;  %v16319_v35 = vld [vmem:[#allocation56_spill] sm:$0xff] }
 0x751   :  { %11029 = vpow2.f32 %v8883_v40  ;;  %v3090_v41 = vrot.slane %v13898_v63, 4  ;;  %v8889_v9 = vmul.f32 -1.442695, %v3168_v28  ;;  %v3094_v62 = vrot.slane %v13898_v63, 5  ;;  %v16320_v40 = vld [vmem:[#allocation57_spill] sm:$0xff]  ;;  %v16321_v21 = vld [vmem:[#allocation58_spill] sm:$0xff] }
 0x752   :  { %11031 = vpow2.f32 %v8884_v49  ;;  %v8890_v18 = vmul.f32 -1.442695, %v3172_v29  ;;  %v3098_v36 = vrot.slane %v13898_v63, 6  ;;  %v3102_v25 = vrot.slane %v13898_v63, 7  ;;  %v16322_v49 = vld [vmem:[#allocation61_spill] sm:$0xff]  ;;  %v16323_v57 = vld [vmem:[#allocation59_spill] sm:$0xff] }
 0x753   :  { %11033 = vpow2.f32 %v8885_v31  ;;  %v3146_v38 = vadd.f32 %v3086_v6, %v16319_v35  ;;  %v3150_v10 = vadd.f32 %v3090_v41, %v16320_v40  ;;  %v3154_v13 = vadd.f32 %v3094_v62, %v16321_v21  ;;  %v16327_v35 = vld [vmem:[#allocation62_spill] sm:$0xff] }
 0x754   :  { %11035 = vpow2.f32 %v8886_v45  ;;  %v3158_v28 = vadd.f32 %v3098_v36, %v16322_v49  ;;  %v3162_v42 = vadd.f32 %v3102_v25, %v16323_v57  ;;  %v3106_v62 = vrot.slane %v13898_v63, 1  ;;  %v16325_v49 = vld [vmem:[#allocation55_spill] sm:$0xff] }
 0x755   :  { %11037 = vpow2.f32 %v8887_v24  ;;  %v3085_v24 = vrot.slane %v13900_v4, 3  ;;  %v3101_v57 = vrot.slane %v13900_v4, 7 }
 0x756   :  { %11039 = vpow2.f32 %v8889_v9 }
 0x757   :  { %11041 = vpow2.f32 %v8890_v18  ;;  %v3089_v18 = vrot.slane %v13900_v4, 4 }
 0x758   :  { %11043 = vtanh.f32 %v3146_v38  ;;  %v16324_v38 = vld [vmem:[#allocation68_spill] sm:$0xff] }
 0x759   :  { %11045 = vtanh.f32 %v3150_v10  ;;  %v3166_v10 = vadd.f32 %v13898_v63, %v16324_v38  ;;  %v16326_v38 = vld [vmem:[#allocation69_spill] sm:$0xff]  ;;  %v3149_v61 = vadd.f32 %v3089_v18, %v16327_v35  ;;  %v16332_v35 = vld [vmem:[#allocation70_spill] sm:$0xff] }
 0x75a   :  { %v11028_v31 = vpop.eup %11027  ;;  %11047 = vtanh.f32 %v3154_v13  ;;  %v3093_v13 = vrot.slane %v13900_v4, 5  ;;  %v3170_v40 = vadd.f32 %v3106_v62, %v16326_v38  ;;  %v16331_v62 = vld [vmem:[#allocation67_spill] sm:$0xff] }
 0x75b   :  { %v11030_v45 = vpop.eup %11029  ;;  %v3205_v29 = vadd.f32 1.0, %v11028_v31  ;;  %11049 = vtanh.f32 %v3158_v28  ;;  %v3161_v38 = vadd.f32 %v3101_v57, %v16331_v62 }
 0x75c   :  { %v11032_v32 = vpop.eup %11031  ;;  %v3200_v6 = vadd.f32 1.0, %v11030_v45  ;;  %11051 = vtanh.f32 %v3162_v42  ;;  %v3110_v42 = vrot.slane %v13898_v63, 2  ;;  %v3105_v63 = vrot.slane %v13900_v4, 1 }
 0x75d   :  { %v11034_v41 = vpop.eup %11033  ;;  %v3201_v9 = vadd.f32 1.0, %v11032_v32  ;;  %11053 = vrcp.f32 %v3205_v29  ;;  %v3097_v32 = vrot.slane %v13900_v4, 6  ;;  %v3153_v14 = vadd.f32 %v3093_v13, %v16328_v34 }
 0x75e   :  { %v11036_v36 = vpop.eup %11035  ;;  %v3202_v25 = vadd.f32 1.0, %v11034_v41  ;;  %11055 = vrcp.f32 %v3200_v6  ;;  %v3145_v41 = vadd.f32 %v3085_v24, %v16325_v49  ;;  %v3109_v24 = vrot.slane %v13900_v4, 2  ;;  %v16330_v49 = vld [vmem:[#allocation66_spill] sm:$0xff] }
 0x75f   :  { %v11038_v28 = vpop.eup %11037  ;;  %v3203_v31 = vadd.f32 1.0, %v11036_v36  ;;  %11057 = vrcp.f32 %v3201_v9  ;;  %v3165_v13 = vadd.f32 %v13900_v4, %v16332_v35  ;;  %v8892_v34 = vmul.f32 -1.442695, %v3149_v61 }
 0x760   :  { %v11040_v45 = vpop.eup %11039  ;;  %v3204_v29 = vadd.f32 1.0, %v11038_v28  ;;  %11059 = vrcp.f32 %v3202_v25  ;;  %v16329_v25 = vld [vmem:[#allocation72_spill] sm:$0xff]  ;;  %v8891_v18 = vmul.f32 -1.442695, %v3145_v41  ;;  %v3173_v57 = vadd.f32 %v3109_v24, %v16175_v0 }
 0x761   :  { %v11042_v6 = vpop.eup %11041  ;;  %v3206_v21 = vadd.f32 1.0, %v11040_v45  ;;  %11061 = vrcp.f32 %v3203_v31  ;;  %v3174_v55 = vadd.f32 %v3110_v42, %v16329_v25  ;;  %v3157_v45 = vadd.f32 %v3097_v32, %v16330_v49  ;;  %v16333_v25 = vld [vmem:[#allocation71_spill] sm:$0xff] }
 0x762   :  { %v11044_v36 = vpop.eup %11043  ;;  %v3207_v9 = vadd.f32 1.0, %v11042_v6  ;;  %11063 = vrcp.f32 %v3204_v29  ;;  %v3087_v6 = vrot.slane %v13902_v54, 3  ;;  %v3169_v2 = vadd.f32 %v3105_v63, %v16333_v25 }
 0x763   :  { %v11046_v28 = vpop.eup %11045  ;;  %11065 = vrcp.f32 %v3206_v21  ;;  %v3091_v21 = vrot.slane %v13902_v54, 4  ;;  %v8893_v32 = vmul.f32 -1.442695, %v3153_v14  ;;  %v8894_v41 = vmul.f32 -1.442695, %v3157_v45 }
 0x764   :  { %v11048_v31 = vpop.eup %11047  ;;  %11067 = vrcp.f32 %v3207_v9  ;;  %v3095_v9 = vrot.slane %v13902_v54, 5  ;;  %v8895_v4 = vmul.f32 -1.442695, %v3161_v38  ;;  %v3103_v61 = vrot.slane %v13902_v54, 7 }
 0x765   :  { %v11050_v29 = vpop.eup %11049  ;;  %11069 = vtanh.f32 %v3166_v10  ;;  %v3099_v10 = vrot.slane %v13902_v54, 6  ;;  %v3147_v35 = vadd.f32 %v3087_v6, %v16176_v22  ;;  %v8896_v14 = vmul.f32 -1.442695, %v3165_v13 }
 0x766   :  { %v11052_v42 = vpop.eup %11051  ;;  %11071 = vtanh.f32 %v3170_v40  ;;  %v3151_v63 = vadd.f32 %v3091_v21, %v16215_v46  ;;  %v8897_v24 = vmul.f32 -1.442695, %v3169_v2  ;;  %v3155_v45 = vadd.f32 %v3095_v9, %v16254_v58 }
 0x767   :  { %v11054_v49 = vpop.eup %11053  ;;  %11073 = vtanh.f32 %v3174_v55  ;;  %v8898_v0 = vmul.f32 -1.442695, %v3173_v57  ;;  %v3159_v6 = vadd.f32 %v3099_v10, %v13080_v43  ;;  %v8899_v13 = vmul.f32 -1.442695, %v3147_v35 }
 0x768   :  { %v11056_v62 = vpop.eup %11055  ;;  %11075 = vpow2.f32 %v8891_v18  ;;  %v8900_v21 = vmul.f32 -1.442695, %v3151_v63 }
 0x769   :  { %v11058_v40 = vpop.eup %11057  ;;  %v13950_v59 = vmul.f32 %v11056_v62, %v11044_v36  ;;  %11077 = vpow2.f32 %v8892_v34  ;;  %v3163_v34 = vadd.f32 %v3103_v61, %v13094_v37  ;;  %v8902_v57 = vmul.f32 -1.442695, %v3159_v6 }
 0x76a   :  { %v11060_v55 = vpop.eup %11059  ;;  %v13953_v25 = vmul.f32 %v11058_v40, %v11046_v28  ;;  %11079 = vpow2.f32 %v8893_v32  ;;  %v3107_v40 = vrot.slane %v13902_v54, 1 }
 0x76b   :  { %v11062_v18 = vpop.eup %11061  ;;  %v13956_v38 = vmul.f32 %v11060_v55, %v11048_v31  ;;  %11081 = vpow2.f32 %v8894_v41  ;;  %v8901_v31 = vmul.f32 -1.442695, %v3155_v45  ;;  %v8903_v10 = vmul.f32 -1.442695, %v3163_v34 }
 0x76c   :  { %v11064_v36 = vpop.eup %11063  ;;  %v13959_v62 = vmul.f32 %v11062_v18, %v11050_v29  ;;  %11083 = vpow2.f32 %v8895_v4  ;;  %v3167_v18 = vadd.f32 %v13902_v54, %v13161_v33  ;;  %v3171_v34 = vadd.f32 %v3107_v40, %v13168_v30 }
 0x76d   :  { %v11066_v28 = vpop.eup %11065  ;;  %11085 = vpow2.f32 %v8896_v14  ;;  %v13962_v2 = vmul.f32 %v11064_v36, %v11052_v42 }
 0x76e   :  { %v11068_v32 = vpop.eup %11067  ;;  %11087 = vpow2.f32 %v8897_v24 }
 0x76f   :  { %v11070_v9 = vpop.eup %11069  ;;  %11089 = vpow2.f32 %v8898_v0  ;;  %v3111_v0 = vrot.slane %v13902_v54, 2  ;;  %v8905_v54 = vmul.f32 -1.442695, %v3171_v34 }
 0x770   :  { %v11072_v41 = vpop.eup %11071  ;;  %11091 = vpow2.f32 %v8899_v13  ;;  %v13964_v29 = vmul.f32 %v11070_v9, %v11054_v49 }
 0x771   :  { %v11074_v4 = vpop.eup %11073  ;;  %11093 = vpow2.f32 %v8900_v21  ;;  %v13966_v61 = vmul.f32 %v11072_v41, %v11066_v28  ;;  %v3175_v21 = vadd.f32 %v3111_v0, %v13175_v17  ;;  %v8904_v41 = vmul.f32 -1.442695, %v3167_v18 }
 0x772   :  { %v11076_v35 = vpop.eup %11075  ;;  %11095 = vpow2.f32 %v8901_v31  ;;  %v13969_v42 = vmul.f32 %v11074_v4, %v11068_v32  ;;  %v3337_v18 = vrot.slane %v13827_v23, 7 }
 0x773   :  { %v11078_v14 = vpop.eup %11077  ;;  %v3248_v63 = vadd.f32 1.0, %v11076_v35  ;;  %11097 = vpow2.f32 %v8902_v57 }
 0x774   :  { %v11080_v55 = vpop.eup %11079  ;;  %v3249_v24 = vadd.f32 1.0, %v11078_v14  ;;  %11099 = vpow2.f32 %v8903_v10  ;;  %v8906_v14 = vmul.f32 -1.442695, %v3175_v21 }
 0x775   :  { %v11082_v49 = vpop.eup %11081  ;;  %v3250_v45 = vadd.f32 1.0, %v11080_v55  ;;  %11101 = vrcp.f32 %v3248_v63 }
 0x776   :  { %v11084_v6 = vpop.eup %11083  ;;  %v3251_v36 = vadd.f32 1.0, %v11082_v49  ;;  %11103 = vrcp.f32 %v3249_v24  ;;  %v3336_v49 = vrot.slane %v13823_v16, 7  ;;  %v3340_v16 = vrot.slane %v13839_v11, 7 }
 0x777   :  { %v11086_v13 = vpop.eup %11085  ;;  %v3252_v28 = vadd.f32 1.0, %v11084_v6  ;;  %11105 = vrcp.f32 %v3250_v45 }
 0x778   :  { %v11088_v32 = vpop.eup %11087  ;;  %v3253_v31 = vadd.f32 1.0, %v11086_v13  ;;  %11107 = vrcp.f32 %v3251_v36  ;;  %v3338_v13 = vrot.slane %v13831_v3, 7  ;;  %v3341_v3 = vrot.slane %v13843_v39, 7 }
 0x779   :  { %v11090_v9 = vpop.eup %11089  ;;  %v3254_v57 = vadd.f32 1.0, %v11088_v32  ;;  %11109 = vrcp.f32 %v3252_v28 }
 0x77a   :  { %v11092_v10 = vpop.eup %11091  ;;  %v3255_v4 = vadd.f32 1.0, %v11090_v9  ;;  %11111 = vrcp.f32 %v3253_v31  ;;  %v3339_v31 = vrot.slane %v13835_v5, 7  ;;  %v3342_v5 = vrot.slane %v13847_v20, 7 }
 0x77b   :  { %v11094_v35 = vpop.eup %11093  ;;  %11113 = vrcp.f32 %v3254_v57  ;;  %v3304_v63 = vadd.f32 1.0, %v11092_v10 }
 0x77c   :  { %v11096_v40 = vpop.eup %11095  ;;  %11115 = vrcp.f32 %v3255_v4  ;;  %v3305_v0 = vadd.f32 1.0, %v11094_v35 }
 0x77d   :  { %v11098_v55 = vpop.eup %11097  ;;  %11117 = vpow2.f32 %v8904_v41  ;;  %v3306_v45 = vadd.f32 1.0, %v11096_v40 }
 0x77e   :  { %v11100_v24 = vpop.eup %11099  ;;  %11119 = vpow2.f32 %v8905_v54  ;;  %v3307_v36 = vadd.f32 1.0, %v11098_v55 }
 0x77f   :  { %v11102_v6 = vpop.eup %11101  ;;  %11121 = vpow2.f32 %v8906_v14  ;;  %v3308_v21 = vadd.f32 1.0, %v11100_v24 }
 0x780   :  { %v11104_v34 = vpop.eup %11103  ;;  %v3352_v28 = vmul.f32 %v11102_v6, %v3336_v49  ;;  %11123 = vrcp.f32 %v3304_v63 }
 0x781   :  { %v11106_v32 = vpop.eup %11105  ;;  %v3353_v9 = vmul.f32 %v11104_v34, %v3337_v18  ;;  %11125 = vrcp.f32 %v3305_v0 }
 0x782   :  { %v11108_v57 = vpop.eup %11107  ;;  %11127 = vrcp.f32 %v3306_v45  ;;  %v3354_v41 = vmul.f32 %v11106_v32, %v3338_v13  ;;  %v13982_v23 = vadd.f32 %v13950_v59, %v3352_v28  ;;  %v3343_v59 = vrot.slane %v13851_v48, 7 }
 0x783   :  { %v11110_v10 = vpop.eup %11109  ;;  %11129 = vrcp.f32 %v3307_v36  ;;  %v3355_v4 = vmul.f32 %v11108_v57, %v3339_v31  ;;  %v13986_v54 = vadd.f32 %v13953_v25, %v3353_v9 }
 0x784   :  { %v11112_v35 = vpop.eup %11111  ;;  %11131 = vrcp.f32 %v3308_v21  ;;  %v3356_v14 = vmul.f32 %v11110_v10, %v3340_v16  ;;  %v13990_v11 = vadd.f32 %v13956_v38, %v3354_v41 }
 0x785   :  { %v11114_v40 = vpop.eup %11113  ;;  %v3357_v63 = vmul.f32 %v11112_v35, %v3341_v3  ;;  %v13994_v55 = vadd.f32 %v13959_v62, %v3355_v4  ;;  %11133 = vtanh.f32 %v13982_v23 }
 0x786   :  { %v11116_v39 = vpop.eup %11115  ;;  %v3358_v25 = vmul.f32 %v11114_v40, %v3342_v5  ;;  %v13998_v0 = vadd.f32 %v13962_v2, %v3356_v14  ;;  %11135 = vtanh.f32 %v13986_v54 }
 0x787   :  { %v11118_v20 = vpop.eup %11117  ;;  %v3359_v24 = vmul.f32 %v11116_v39, %v3343_v59  ;;  %v14002_v38 = vadd.f32 %v13964_v29, %v3357_v63  ;;  %11137 = vtanh.f32 %v13990_v11 }
 0x788   :  { %v11120_v48 = vpop.eup %11119  ;;  %v3309_v49 = vadd.f32 1.0, %v11118_v20  ;;  %v14006_v62 = vadd.f32 %v13966_v61, %v3358_v25  ;;  %11139 = vtanh.f32 %v13994_v55 }
 0x789   :  { %v11122_v45 = vpop.eup %11121  ;;  %v3310_v6 = vadd.f32 1.0, %v11120_v48  ;;  %v14010_v2 = vadd.f32 %v13969_v42, %v3359_v24  ;;  %11141 = vtanh.f32 %v13998_v0 }
 0x78a   :  { %v11124_v18 = vpop.eup %11123  ;;  %v3311_v36 = vadd.f32 1.0, %v11122_v45  ;;  %11143 = vrcp.f32 %v3309_v49 }
 0x78b   :  { %v11126_v29 = vpop.eup %11125  ;;  %11145 = vrcp.f32 %v3310_v6 }
 0x78c   :  { %v11128_v34 = vpop.eup %11127  ;;  %11147 = vrcp.f32 %v3311_v36 }
 0x78d   :  { %v11130_v13 = vpop.eup %11129  ;;  %11149 = vtanh.f32 %v14002_v38 }
 0x78e   :  { %v11132_v61 = vpop.eup %11131  ;;  %11151 = vtanh.f32 %v14006_v62 }
 0x78f   :  { %v11134_v28 = vpop.eup %11133  ;;  %11153 = vtanh.f32 %v14010_v2 }
 0x790   :  { %v11136_v42 = vpop.eup %11135  ;;  %v3384_v21 = vmul.f32 %v11134_v28, %v11124_v18 }
 0x791   :  { %v11138_v32 = vpop.eup %11137  ;;  %v3385_v31 = vmul.f32 %v11136_v42, %v11126_v29  ;;  %v16348_v42 = vld [vmem:[#allocation44_spill] sm:$0xff] }
 0x792   :  { %v11140_v9 = vpop.eup %11139  ;;  %v3386_v57 = vmul.f32 %v11138_v32, %v11128_v34  ;;  %3392 = vst [vmem:[#allocation2] sm:$0x20] %v3384_v21  ;;  %v3408_v16 = vrot.slane %v3384_v21, 5  ;;  %v16349_v21 = vld [vmem:[#allocation45_spill] sm:$0xff] }
 0x793   :  { %v11142_v41 = vpop.eup %11141  ;;  %v3387_v10 = vmul.f32 %v11140_v9, %v11130_v13  ;;  %3393 = vst [vmem:[#allocation2 + $0x8] sm:$0x20] %v3385_v31  ;;  %v3409_v3 = vrot.slane %v3385_v31, 4 }
 0x794   :  { %v11144_v4 = vpop.eup %11143  ;;  %v3388_v35 = vmul.f32 %v11142_v41, %v11132_v61  ;;  %3394 = vst [vmem:[#allocation2 + $0x10] sm:$0x20] %v3386_v57  ;;  %v3411_v5 = vrot.slane %v3386_v57, 3 }
 0x795   :  { %v11146_v14 = vpop.eup %11145  ;;  %3395 = vst [vmem:[#allocation2 + $0x18] sm:$0x20] %v3387_v10  ;;  %v3410_v40 = vsel %vm977_vm0, %v3409_v3, %v3408_v16  ;;  %v3413_v59 = vrot.slane %v3387_v10, 2 }
 0x796   :  { %v11148_v63 = vpop.eup %11147  ;;  %3396 = vst [vmem:[#allocation2 + $0x20] sm:$0x20] %v3388_v35  ;;  %v3412_v39 = vsel %vm980_vm1, %v3411_v5, %v3410_v40  ;;  %v3415_v25 = vrot.slane %v3388_v35, 1  ;;  %v16350_v40 = vld [vmem:[#allocation47_spill] sm:$0xff] }
 0x797   :  { %v11150_v20 = vpop.eup %11149  ;;  %v3414_v24 = vsel %vm983_vm2, %v3413_v59, %v3412_v39 }
 0x798   :  { %v11152_v48 = vpop.eup %11151  ;;  %v3389_v49 = vmul.f32 %v11150_v20, %v11144_v4  ;;  %v3416_v45 = vsel %vm986_vm3, %v3415_v25, %v3414_v24  ;;  %v16352_v25 = vld [vmem:[#allocation49_spill] sm:$0xff]  ;;  %v16353_v24 = vld [vmem:[#allocation50_spill] sm:$0xff] }
 0x799   :  { %v11154_v6 = vpop.eup %11153  ;;  %v3390_v18 = vmul.f32 %v11152_v48, %v11146_v14 }
 0x79a   :  { %v3391_v36 = vmul.f32 %v11154_v6, %v11148_v63  ;;  %3397 = vst [vmem:[#allocation2 + $0x28] sm:$0x20] %v3389_v49  ;;  %v3417_v29 = vsel %vm989_vm4, %v3389_v49, %v3416_v45  ;;  %v16351_v63 = vld [vmem:[#allocation48_spill] sm:$0xff]  ;;  %v16354_v49 = vld [vmem:[#allocation51_spill] sm:$0xff] }
 0x79b   :  { %3398 = vst [vmem:[#allocation2 + $0x30] sm:$0x20] %v3390_v18  ;;  %v3418_v34 = vrot.slane %v3390_v18, 7  ;;  %v16355_v6 = vld [vmem:[#allocation52_spill] sm:$0xff] }
 0x79c   :  { %3399 = vst [vmem:[#allocation2 + $0x38] sm:$0x20] %v3391_v36  ;;  %v3420_v13 = vrot.slane %v3391_v36, 6 }
 0x79d   :  { %v3419_v61 = vsel %vm992_vm5, %v3418_v34, %v3417_v29  ;;  %v16356_v29 = vld [vmem:[#allocation54_spill] sm:$0xff] }
 0x79e   :  { %v3421_v28 = vsel %vm995_vm6, %v3420_v13, %v3419_v61 }
 0x79f   :  { %3488 = vmatmul.mubr.f32.vlgmr.msra.gmra.mrb[28].mxu0 %v3421_v28  ;;  %3559 = vmatmul.mubr.f32.vlgmr.msra.gmra.mrb[28].mxu1 %v3421_v28 }
 0x7a0   :  { %9715 = vmatpush1.bf16.msra.mxu0 %v12746_v47  ;;  %9747 = vmatpush1.bf16.msra.mxu1 %v12749_v50  ;;  %v16334_v47 = vld [vmem:[#allocation30_spill] sm:$0xff]  ;;  %v16335_v50 = vld [vmem:[#allocation31_spill] sm:$0xff] }
 0x7a1   :  { %9717 = vmatprep.subr.bf16.mxu0 %v12752_v53  ;;  %9749 = vmatprep.subr.bf16.mxu1 %v12754_v56  ;;  %v16336_v53 = vld [vmem:[#allocation32_spill] sm:$0xff]  ;;  %v16337_v56 = vld [vmem:[#allocation33_spill] sm:$0xff] }
 0x7a2   :  { %3972 = vmatprep.mubr.f32.mxu0 %v16143_v8  ;;  %4043 = vmatprep.mubr.f32.mxu1 %v16143_v8 }
 0x7a4   :  { %9719 = vmatpush1.bf16.msra.mxu0 %v12760_v60  ;;  %9751 = vmatpush1.bf16.msra.mxu1 %v16177_v1  ;;  %v16338_v60 = vld [vmem:[#allocation34_spill] sm:$0xff]  ;;  %v16339_v1 = vld [vmem:[#allocation35_spill] sm:$0xff] }
 0x7a5   :  { %9721 = vmatprep.subr.bf16.mxu0 %v16178_v26  ;;  %9753 = vmatprep.subr.bf16.mxu1 %v16179_v44  ;;  %v16340_v26 = vld [vmem:[#allocation36_spill] sm:$0xff]  ;;  %v16341_v44 = vld [vmem:[#allocation37_spill] sm:$0xff] }
 0x7a8   :  { %9723 = vmatpush1.bf16.msra.mxu0 %v16180_v12  ;;  %9755 = vmatpush1.bf16.msra.mxu1 %v16181_v7  ;;  %v16342_v12 = vld [vmem:[#allocation38_spill] sm:$0xff]  ;;  %v16343_v7 = vld [vmem:[#allocation39_spill] sm:$0xff] }
 0x7a9   :  { %9725 = vmatprep.subr.bf16.mxu0 %v16182_v19  ;;  %9757 = vmatprep.subr.bf16.mxu1 %v16183_v27  ;;  %v16344_v19 = vld [vmem:[#allocation40_spill] sm:$0xff]  ;;  %v16345_v27 = vld [vmem:[#allocation41_spill] sm:$0xff] }
 0x7ac   :  { %9727 = vmatpush1.bf16.msra.mxu0 %v16216_v52  ;;  %9759 = vmatpush1.bf16.msra.mxu1 %v16217_v51  ;;  %v16346_v52 = vld [vmem:[#allocation42_spill] sm:$0xff]  ;;  %v16347_v51 = vld [vmem:[#allocation43_spill] sm:$0xff] }
 0x7ad   :  { %9729 = vmatprep.subr.bf16.mxu0 %v16334_v47  ;;  %9761 = vmatprep.subr.bf16.mxu1 %v16335_v50 }
 0x7b0   :  { %9731 = vmatpush1.bf16.msra.mxu0 %v16336_v53  ;;  %9763 = vmatpush1.bf16.msra.mxu1 %v16337_v56 }
 0x7b1   :  { %9733 = vmatprep.subr.bf16.mxu0 %v16338_v60  ;;  %9765 = vmatprep.subr.bf16.mxu1 %v16339_v1 }
 0x7b4   :  { %9735 = vmatpush1.bf16.msra.mxu0 %v16340_v26  ;;  %9767 = vmatpush1.bf16.msra.mxu1 %v16341_v44 }
 0x7b5   :  { %9737 = vmatprep.subr.bf16.mxu0 %v16342_v12  ;;  %9769 = vmatprep.subr.bf16.mxu1 %v16343_v7  ;;  %v16357_v7 = vld [vmem:[#allocation56_spill] sm:$0xff] }
 0x7b8   :  { %9739 = vmatpush1.bf16.msra.mxu0 %v16344_v19  ;;  %9771 = vmatpush1.bf16.msra.mxu1 %v16345_v27  ;;  %v16358_v27 = vld [vmem:[#allocation57_spill] sm:$0xff] }
 0x7b9   :  { %9741 = vmatprep.subr.bf16.mxu0 %v16346_v52  ;;  %9773 = vmatprep.subr.bf16.mxu1 %v16347_v51  ;;  %v16359_v51 = vld [vmem:[#allocation58_spill] sm:$0xff] }
 0x7bc   :  { %9743 = vmatpush1.bf16.msra.mxu0 %v16348_v42  ;;  %9775 = vmatpush1.bf16.msra.mxu1 %v16349_v21  ;;  %v16360_v21 = vld [vmem:[#allocation61_spill] sm:$0xff] }
 0x872   :  { %v3489_v32 = vpop.f32.mrb[28].mxu0  ;;  %v14055_v31 = vpop.f32.mrb[28].mxu1 }
 0x873   :  { %v3569_v9 = vrot.slane %v3489_v32, 2  ;;  %v3573_v57 = vrot.slane %v3489_v32, 3  ;;  %v3577_v16 = vrot.slane %v3489_v32, 4  ;;  %v3581_v41 = vrot.slane %v3489_v32, 5  ;;  %v14057_v10 = vpop.f32.mrb[29].mxu0  ;;  %v14059_v3 = vpop.f32.mrb[29].mxu1 }
 0x874   :  { %v3585_v4 = vrot.slane %v3489_v32, 6  ;;  %v3589_v35 = vrot.slane %v3489_v32, 7  ;;  %v3593_v5 = vrot.slane %v3489_v32, 1  ;;  %v3653_v14 = vadd.f32 %v3489_v32, %v16317_v15 }
 0x875   :  { %v3629_v59 = vadd.f32 %v3569_v9, %v16350_v40  ;;  %v3633_v39 = vadd.f32 %v3573_v57, %v16351_v63  ;;  %v3637_v20 = vadd.f32 %v3577_v16, %v16352_v25  ;;  %v3641_v48 = vadd.f32 %v3581_v41, %v16353_v24  ;;  %v16361_v9 = vld [vmem:[#allocation59_spill] sm:$0xff] }
 0x876   :  { %v3645_v45 = vadd.f32 %v3585_v4, %v16354_v49  ;;  %v3649_v18 = vadd.f32 %v3589_v35, %v16355_v6  ;;  %v8913_v36 = vmul.f32 -1.442695, %v3653_v14  ;;  %v3657_v34 = vadd.f32 %v3593_v5, %v16356_v29 }
 0x877   :  { %v8907_v13 = vmul.f32 -1.442695, %v3629_v59  ;;  %v8908_v61 = vmul.f32 -1.442695, %v3633_v39  ;;  %v8909_v28 = vmul.f32 -1.442695, %v3637_v20 }
 0x878   :  { %v8910_v47 = vmul.f32 -1.442695, %v3641_v48  ;;  %11155 = vpow2.f32 %v8913_v36  ;;  %v8911_v50 = vmul.f32 -1.442695, %v3645_v45  ;;  %v3571_v53 = vrot.slane %v14055_v31, 2 }
 0x879   :  { %11157 = vpow2.f32 %v8907_v13  ;;  %v3575_v56 = vrot.slane %v14055_v31, 3  ;;  %v8912_v60 = vmul.f32 -1.442695, %v3649_v18  ;;  %v3579_v1 = vrot.slane %v14055_v31, 4 }
 0x87a   :  { %11159 = vpow2.f32 %v8908_v61  ;;  %v8914_v26 = vmul.f32 -1.442695, %v3657_v34  ;;  %v3583_v44 = vrot.slane %v14055_v31, 5  ;;  %v3587_v12 = vrot.slane %v14055_v31, 6 }
 0x87b   :  { %11161 = vpow2.f32 %v8909_v28  ;;  %v3631_v19 = vadd.f32 %v3571_v53, %v16357_v7  ;;  %v3635_v52 = vadd.f32 %v3575_v56, %v16358_v27  ;;  %v3639_v42 = vadd.f32 %v3579_v1, %v16359_v51  ;;  %v16362_v28 = vld [vmem:[#allocation68_spill] sm:$0xff]  ;;  %v16363_v1 = vld [vmem:[#allocation55_spill] sm:$0xff] }
 0x87c   :  { %11163 = vpow2.f32 %v8910_v47  ;;  %v3643_v32 = vadd.f32 %v3583_v44, %v16360_v21  ;;  %v3647_v57 = vadd.f32 %v3587_v12, %v16361_v9  ;;  %v3591_v35 = vrot.slane %v14055_v31, 7 }
 0x87d   :  { %11165 = vpow2.f32 %v8911_v50  ;;  %v3570_v59 = vrot.slane %v14057_v10, 2  ;;  %v3574_v48 = vrot.slane %v14057_v10, 3  ;;  %v3595_v36 = vrot.slane %v14055_v31, 1 }
 0x87e   :  { %11167 = vpow2.f32 %v8912_v60  ;;  %v3578_v34 = vrot.slane %v14057_v10, 4  ;;  %v3651_v47 = vadd.f32 %v3591_v35, %v16362_v28  ;;  %v3582_v50 = vrot.slane %v14057_v10, 5 }
 0x87f   :  { %11169 = vpow2.f32 %v8914_v26  ;;  %v3586_v60 = vrot.slane %v14057_v10, 6  ;;  %v3630_v26 = vadd.f32 %v3570_v59, %v16363_v1  ;;  %v3594_v59 = vrot.slane %v14057_v10, 1 }
 0x880   :  { %11171 = vtanh.f32 %v3631_v19  ;;  %v3590_v19 = vrot.slane %v14057_v10, 7 }
 0x881   :  { %11173 = vtanh.f32 %v3635_v52  ;;  %v16364_v52 = vld [vmem:[#allocation62_spill] sm:$0xff] }
 0x882   :  { %v11156_v16 = vpop.eup %11155  ;;  %11175 = vtanh.f32 %v3639_v42  ;;  %v3634_v42 = vadd.f32 %v3574_v48, %v16364_v52 }
 0x883   :  { %v11158_v41 = vpop.eup %11157  ;;  %v3691_v4 = vadd.f32 1.0, %v11156_v16  ;;  %11177 = vtanh.f32 %v3643_v32  ;;  %v16365_v16 = vld [vmem:[#allocation69_spill] sm:$0xff] }
 0x884   :  { %v11160_v5 = vpop.eup %11159  ;;  %v3685_v14 = vadd.f32 1.0, %v11158_v41  ;;  %11179 = vtanh.f32 %v3647_v57  ;;  %v3655_v41 = vadd.f32 %v14055_v31, %v16365_v16  ;;  %v16370_v31 = vld [vmem:[#allocation70_spill] sm:$0xff] }
 0x885   :  { %v11162_v39 = vpop.eup %11161  ;;  %v3686_v20 = vadd.f32 1.0, %v11160_v5  ;;  %11181 = vrcp.f32 %v3691_v4  ;;  %v16366_v4 = vld [vmem:[#allocation64_spill] sm:$0xff] }
 0x886   :  { %v11164_v45 = vpop.eup %11163  ;;  %v3687_v18 = vadd.f32 1.0, %v11162_v39  ;;  %11183 = vrcp.f32 %v3685_v14  ;;  %v3638_v35 = vadd.f32 %v3578_v34, %v16366_v4  ;;  %v16367_v14 = vld [vmem:[#allocation72_spill] sm:$0xff]  ;;  %v8916_v34 = vmul.f32 -1.442695, %v3634_v42 }
 0x887   :  { %v11166_v13 = vpop.eup %11165  ;;  %v3688_v61 = vadd.f32 1.0, %v11164_v45  ;;  %11185 = vrcp.f32 %v3686_v20  ;;  %v3659_v39 = vadd.f32 %v3595_v36, %v16367_v14  ;;  %v16368_v20 = vld [vmem:[#allocation66_spill] sm:$0xff]  ;;  %v16371_v36 = vld [vmem:[#allocation71_spill] sm:$0xff]  ;;  %v3588_v42 = vrot.slane %v14059_v3, 6 }
 0x888   :  { %v11168_v53 = vpop.eup %11167  ;;  %v3689_v56 = vadd.f32 1.0, %v11166_v13  ;;  %11187 = vrcp.f32 %v3687_v18  ;;  %v3642_v45 = vadd.f32 %v3582_v50, %v16368_v20  ;;  %v16369_v13 = vld [vmem:[#allocation67_spill] sm:$0xff]  ;;  %v3654_v14 = vadd.f32 %v14057_v10, %v16371_v36 }
 0x889   :  { %v11170_v44 = vpop.eup %11169  ;;  %v3690_v12 = vadd.f32 1.0, %v11168_v53  ;;  %11189 = vrcp.f32 %v3688_v61  ;;  %v3646_v48 = vadd.f32 %v3586_v60, %v16369_v13  ;;  %v8915_v61 = vmul.f32 -1.442695, %v3630_v26  ;;  %v16372_v60 = vld [vmem:[#allocation73_spill] sm:$0xff] }
 0x88a   :  { %v11172_v32 = vpop.eup %11171  ;;  %v3692_v57 = vadd.f32 1.0, %v11170_v44  ;;  %11191 = vrcp.f32 %v3689_v56  ;;  %v3572_v53 = vrot.slane %v14059_v3, 2  ;;  %v3650_v44 = vadd.f32 %v3590_v19, %v16370_v31 }
 0x88b   :  { %v11174_v5 = vpop.eup %11173  ;;  %11193 = vrcp.f32 %v3690_v12  ;;  %v3576_v12 = vrot.slane %v14059_v3, 3  ;;  %v8917_v50 = vmul.f32 -1.442695, %v3638_v35  ;;  %v3658_v26 = vadd.f32 %v3594_v59, %v16372_v60 }
 0x88c   :  { %v11176_v18 = vpop.eup %11175  ;;  %11195 = vrcp.f32 %v3692_v57  ;;  %v3580_v57 = vrot.slane %v14059_v3, 4  ;;  %v8918_v13 = vmul.f32 -1.442695, %v3642_v45  ;;  %v8919_v19 = vmul.f32 -1.442695, %v3646_v48 }
 0x88d   :  { %v11178_v56 = vpop.eup %11177  ;;  %11197 = vtanh.f32 %v3651_v47  ;;  %v3584_v47 = vrot.slane %v14059_v3, 5  ;;  %v8920_v10 = vmul.f32 -1.442695, %v3650_v44  ;;  %v3636_v35 = vadd.f32 %v3576_v12, %v16215_v46 }
 0x88e   :  { %v11180_v4 = vpop.eup %11179  ;;  %11199 = vtanh.f32 %v3655_v41  ;;  %v3632_v41 = vadd.f32 %v3572_v53, %v16176_v22  ;;  %v8921_v59 = vmul.f32 -1.442695, %v3654_v14  ;;  %v3640_v45 = vadd.f32 %v3580_v57, %v16254_v58 }
 0x88f   :  { %v11182_v20 = vpop.eup %11181  ;;  %11201 = vtanh.f32 %v3659_v39  ;;  %v8922_v60 = vmul.f32 -1.442695, %v3658_v26  ;;  %v3644_v53 = vadd.f32 %v3584_v47, %v13080_v43  ;;  %v3648_v44 = vadd.f32 %v3588_v42, %v13094_v37 }
 0x890   :  { %v11184_v52 = vpop.eup %11183  ;;  %11203 = vpow2.f32 %v8915_v61 }
 0x891   :  { %v11186_v31 = vpop.eup %11185  ;;  %v14107_v1 = vmul.f32 %v11184_v52, %v11172_v32  ;;  %11205 = vpow2.f32 %v8916_v34  ;;  %v8923_v34 = vmul.f32 -1.442695, %v3632_v41  ;;  %v8927_v26 = vmul.f32 -1.442695, %v3648_v44 }
 0x892   :  { %v11188_v39 = vpop.eup %11187  ;;  %v14110_v36 = vmul.f32 %v11186_v31, %v11174_v5  ;;  %11207 = vpow2.f32 %v8917_v50  ;;  %v8924_v31 = vmul.f32 -1.442695, %v3636_v35  ;;  %v3656_v44 = vadd.f32 %v14059_v3, %v13168_v30 }
 0x893   :  { %v11190_v61 = vpop.eup %11189  ;;  %v14113_v48 = vmul.f32 %v11188_v39, %v11176_v18  ;;  %11209 = vpow2.f32 %v8918_v13  ;;  %v8925_v18 = vmul.f32 -1.442695, %v3640_v45  ;;  %v8926_v13 = vmul.f32 -1.442695, %v3644_v53 }
 0x894   :  { %v11192_v52 = vpop.eup %11191  ;;  %v14116_v32 = vmul.f32 %v11190_v61, %v11178_v56  ;;  %11211 = vpow2.f32 %v8919_v19  ;;  %v3592_v19 = vrot.slane %v14059_v3, 7 }
 0x895   :  { %v11194_v5 = vpop.eup %11193  ;;  %11213 = vpow2.f32 %v8920_v10  ;;  %v14119_v14 = vmul.f32 %v11192_v52, %v11180_v4 }
 0x896   :  { %v11196_v12 = vpop.eup %11195  ;;  %11215 = vpow2.f32 %v8921_v59  ;;  %v3652_v53 = vadd.f32 %v3592_v19, %v13161_v33  ;;  %v8929_v19 = vmul.f32 -1.442695, %v3656_v44 }
 0x897   :  { %v11198_v50 = vpop.eup %11197  ;;  %11217 = vpow2.f32 %v8922_v60  ;;  %v3596_v60 = vrot.slane %v14059_v3, 1 }
 0x898   :  { %v11200_v57 = vpop.eup %11199  ;;  %11219 = vpow2.f32 %v8923_v34  ;;  %v14121_v56 = vmul.f32 %v11198_v50, %v11194_v5 }
 0x899   :  { %v11202_v47 = vpop.eup %11201  ;;  %11221 = vpow2.f32 %v8924_v31  ;;  %v14124_v42 = vmul.f32 %v11200_v57, %v11182_v20  ;;  %v3660_v31 = vadd.f32 %v3596_v60, %v13175_v17  ;;  %v8928_v57 = vmul.f32 -1.442695, %v3652_v53 }
 0x89a   :  { %v11204_v41 = vpop.eup %11203  ;;  %11223 = vpow2.f32 %v8925_v18  ;;  %v14126_v4 = vmul.f32 %v11202_v47, %v11196_v12  ;;  %v3822_v53 = vrot.slane %v13986_v54, 7 }
 0x89b   :  { %v11206_v10 = vpop.eup %11205  ;;  %v3733_v35 = vadd.f32 1.0, %v11204_v41  ;;  %11225 = vpow2.f32 %v8926_v13 }
 0x89c   :  { %v11208_v39 = vpop.eup %11207  ;;  %v3734_v59 = vadd.f32 1.0, %v11206_v10  ;;  %11227 = vpow2.f32 %v8927_v26  ;;  %v8930_v10 = vmul.f32 -1.442695, %v3660_v31 }
 0x89d   :  { %v11210_v45 = vpop.eup %11209  ;;  %v3735_v61 = vadd.f32 1.0, %v11208_v39  ;;  %11229 = vrcp.f32 %v3733_v35 }
 0x89e   :  { %v11212_v52 = vpop.eup %11211  ;;  %v3736_v20 = vadd.f32 1.0, %v11210_v45  ;;  %11231 = vrcp.f32 %v3734_v59  ;;  %v3821_v45 = vrot.slane %v13982_v23, 7  ;;  %v3825_v23 = vrot.slane %v13998_v0, 7 }
 0x89f   :  { %v11214_v34 = vpop.eup %11213  ;;  %v3737_v5 = vadd.f32 1.0, %v11212_v52  ;;  %11233 = vrcp.f32 %v3735_v61 }
 0x8a0   :  { %v11216_v12 = vpop.eup %11215  ;;  %v3738_v18 = vadd.f32 1.0, %v11214_v34  ;;  %11235 = vrcp.f32 %v3736_v20  ;;  %v3823_v34 = vrot.slane %v13990_v11, 7 }
 0x8a1   :  { %v11218_v50 = vpop.eup %11217  ;;  %v3739_v13 = vadd.f32 1.0, %v11216_v12  ;;  %11237 = vrcp.f32 %v3737_v5 }
 0x8a2   :  { %v11220_v26 = vpop.eup %11219  ;;  %v3740_v47 = vadd.f32 1.0, %v11218_v50  ;;  %11239 = vrcp.f32 %v3738_v18  ;;  %v3824_v18 = vrot.slane %v13994_v55, 7  ;;  %v3827_v55 = vrot.slane %v14006_v62, 7 }
 0x8a3   :  { %v11222_v41 = vpop.eup %11221  ;;  %11241 = vrcp.f32 %v3739_v13  ;;  %v3789_v35 = vadd.f32 1.0, %v11220_v26 }
 0x8a4   :  { %v11224_v3 = vpop.eup %11223  ;;  %11243 = vrcp.f32 %v3740_v47  ;;  %v3790_v60 = vadd.f32 1.0, %v11222_v41  ;;  %v3826_v47 = vrot.slane %v14002_v38, 7 }
 0x8a5   :  { %v11226_v39 = vpop.eup %11225  ;;  %11245 = vpow2.f32 %v8928_v57  ;;  %v3791_v61 = vadd.f32 1.0, %v11224_v3 }
 0x8a6   :  { %v11228_v59 = vpop.eup %11227  ;;  %11247 = vpow2.f32 %v8929_v19  ;;  %v3792_v20 = vadd.f32 1.0, %v11226_v39 }
 0x8a7   :  { %v11230_v52 = vpop.eup %11229  ;;  %11249 = vpow2.f32 %v8930_v10  ;;  %v3793_v31 = vadd.f32 1.0, %v11228_v59 }
 0x8a8   :  { %v11232_v44 = vpop.eup %11231  ;;  %v3837_v5 = vmul.f32 %v11230_v52, %v3821_v45  ;;  %11251 = vrcp.f32 %v3789_v35 }
 0x8a9   :  { %v11234_v12 = vpop.eup %11233  ;;  %v3838_v50 = vmul.f32 %v11232_v44, %v3822_v53  ;;  %11253 = vrcp.f32 %v3790_v60 }
 0x8aa   :  { %v11236_v13 = vpop.eup %11235  ;;  %11255 = vrcp.f32 %v3791_v61  ;;  %v3839_v57 = vmul.f32 %v11234_v12, %v3823_v34  ;;  %v14139_v54 = vadd.f32 %v14107_v1, %v3837_v5  ;;  %v3828_v1 = vrot.slane %v14010_v2, 7 }
 0x8ab   :  { %v11238_v26 = vpop.eup %11237  ;;  %11257 = vrcp.f32 %v3792_v20  ;;  %v3840_v11 = vmul.f32 %v11236_v13, %v3824_v18  ;;  %v14143_v19 = vadd.f32 %v14110_v36, %v3838_v50 }
 0x8ac   :  { %v11240_v41 = vpop.eup %11239  ;;  %11259 = vrcp.f32 %v3793_v31  ;;  %v3841_v10 = vmul.f32 %v11238_v26, %v3825_v23  ;;  %v14147_v0 = vadd.f32 %v14113_v48, %v3839_v57 }
 0x8ad   :  { %v11242_v3 = vpop.eup %11241  ;;  %v3842_v35 = vmul.f32 %v11240_v41, %v3826_v47  ;;  %v14151_v39 = vadd.f32 %v14116_v32, %v3840_v11  ;;  %11261 = vtanh.f32 %v14139_v54 }
 0x8ae   :  { %v11244_v38 = vpop.eup %11243  ;;  %v3843_v36 = vmul.f32 %v11242_v3, %v3827_v55  ;;  %v14155_v60 = vadd.f32 %v14119_v14, %v3841_v10  ;;  %11263 = vtanh.f32 %v14143_v19 }
 0x8af   :  { %v11246_v62 = vpop.eup %11245  ;;  %v3844_v59 = vmul.f32 %v11244_v38, %v3828_v1  ;;  %v14159_v48 = vadd.f32 %v14121_v56, %v3842_v35  ;;  %11265 = vtanh.f32 %v14147_v0 }
 0x8b0   :  { %v11248_v2 = vpop.eup %11247  ;;  %v3794_v45 = vadd.f32 1.0, %v11246_v62  ;;  %v14163_v32 = vadd.f32 %v14124_v42, %v3843_v36  ;;  %11267 = vtanh.f32 %v14151_v39 }
 0x8b1   :  { %v11250_v61 = vpop.eup %11249  ;;  %v3795_v52 = vadd.f32 1.0, %v11248_v2  ;;  %v14167_v14 = vadd.f32 %v14126_v4, %v3844_v59  ;;  %11269 = vtanh.f32 %v14155_v60 }
 0x8b2   :  { %v11252_v53 = vpop.eup %11251  ;;  %v3796_v20 = vadd.f32 1.0, %v11250_v61  ;;  %11271 = vrcp.f32 %v3794_v45 }
 0x8b3   :  { %v11254_v56 = vpop.eup %11253  ;;  %11273 = vrcp.f32 %v3795_v52 }
 0x8b4   :  { %v11256_v44 = vpop.eup %11255  ;;  %11275 = vrcp.f32 %v3796_v20 }
 0x8b5   :  { %v11258_v34 = vpop.eup %11257  ;;  %11277 = vtanh.f32 %v14159_v48 }
 0x8b6   :  { %v11260_v42 = vpop.eup %11259  ;;  %11279 = vtanh.f32 %v14163_v32 }
 0x8b7   :  { %v11262_v5 = vpop.eup %11261  ;;  %11281 = vtanh.f32 %v14167_v14 }
 0x8b8   :  { %v11264_v4 = vpop.eup %11263  ;;  %v3869_v31 = vmul.f32 %v11262_v5, %v11252_v53 }
 0x8b9   :  { %v11266_v12 = vpop.eup %11265  ;;  %v3870_v18 = vmul.f32 %v11264_v4, %v11254_v56  ;;  %v4429_v4 = vld [vmem:[#allocation10 + $0x8] sm:$0xff] }
 0x8ba   :  { %v11268_v50 = vpop.eup %11267  ;;  %v3871_v13 = vmul.f32 %v11266_v12, %v11256_v44  ;;  %3877 = vst [vmem:[#allocation2] sm:$0x40] %v3869_v31  ;;  %v3893_v23 = vrot.slane %v3869_v31, 6  ;;  %v4433_v31 = vld [vmem:[#allocation10 + $0x28] sm:$0xff]  ;;  %v4431_v12 = vld [vmem:[#allocation10 + $0x18] sm:$0xff] }
 0x8bb   :  { %v11270_v57 = vpop.eup %11269  ;;  %v3872_v26 = vmul.f32 %v11268_v50, %v11258_v34  ;;  %3878 = vst [vmem:[#allocation2 + $0x8] sm:$0x40] %v3870_v18  ;;  %v3894_v47 = vrot.slane %v3870_v18, 5  ;;  %v9776_v18 = vpack.c.bf16 %v4433_v31, %v4429_v4  ;;  %v4435_v50 = vld [vmem:[#allocation10 + $0x38] sm:$0xff]  ;;  %v4446_v31 = vld [vmem:[#allocation10 + $0x90] sm:$0xff] }
 0x8bc   :  { %v11272_v11 = vpop.eup %11271  ;;  %v3873_v41 = vmul.f32 %v11270_v57, %v11260_v42  ;;  %3879 = vst [vmem:[#allocation2 + $0x10] sm:$0x40] %v3871_v13  ;;  %v3896_v55 = vrot.slane %v3871_v13, 4  ;;  %v4428_v13 = vld [vmem:[#allocation10] sm:$0xff]  ;;  %v9808_v57 = vpack.c.bf16 %v4435_v50, %v4431_v12  ;;  %v4450_v12 = vld [vmem:[#allocation10 + $0xb0] sm:$0xff] }
 0x8bd   :  { %v11274_v10 = vpop.eup %11273  ;;  %3880 = vst [vmem:[#allocation2 + $0x18] sm:$0x40] %v3872_v26  ;;  %v3895_v3 = vsel %vm977_vm0, %v3894_v47, %v3893_v23  ;;  %v3898_v1 = vrot.slane %v3872_v26, 3  ;;  %v4432_v23 = vld [vmem:[#allocation10 + $0x20] sm:$0xff]  ;;  %v4430_v47 = vld [vmem:[#allocation10 + $0x10] sm:$0xff]  ;;  %9777 = vmatprep.subr.bf16.mxu0 %v9776_v18  ;;  %v4453_v18 = vld [vmem:[#allocation10 + $0xc8] sm:$0xff]  ;;  %v9818_v50 = vpack.c.bf16 %v4450_v12, %v4446_v31 }
 0x8be   :  { %v11276_v35 = vpop.eup %11275  ;;  %3881 = vst [vmem:[#allocation2 + $0x20] sm:$0x40] %v3873_v41  ;;  %v3897_v38 = vsel %vm980_vm1, %v3896_v55, %v3895_v3  ;;  %v3900_v36 = vrot.slane %v3873_v41, 2  ;;  %v9778_v26 = vpack.c.bf16 %v4432_v23, %v4428_v13  ;;  %9809 = vmatprep.subr.bf16.mxu1 %v9808_v57  ;;  %v4437_v55 = vld [vmem:[#allocation10 + $0x48] sm:$0xff]  ;;  %v4439_v3 = vld [vmem:[#allocation10 + $0x58] sm:$0xff]  ;;  %v4468_v31 = vld [vmem:[#allocation10 + $0x140] sm:$0xff] }
 0x8bf   :  { %v11278_v62 = vpop.eup %11277  ;;  %v3899_v59 = vsel %vm983_vm2, %v3898_v1, %v3897_v38  ;;  %v4436_v38 = vld [vmem:[#allocation10 + $0x40] sm:$0xff]  ;;  %v4457_v13 = vld [vmem:[#allocation10 + $0xe8] sm:$0xff]  ;;  %v4455_v23 = vld [vmem:[#allocation10 + $0xd8] sm:$0xff] }
 0x8c0   :  { %v11280_v2 = vpop.eup %11279  ;;  %v3874_v45 = vmul.f32 %v11278_v62, %v11272_v11  ;;  %v3901_v61 = vsel %vm986_vm3, %v3900_v36, %v3899_v59  ;;  %v4434_v11 = vld [vmem:[#allocation10 + $0x30] sm:$0xff]  ;;  %v4440_v36 = vld [vmem:[#allocation10 + $0x60] sm:$0xff]  ;;  %v4459_v57 = vld [vmem:[#allocation10 + $0xf8] sm:$0xff] }
 0x8c1   :  { %v11282_v52 = vpop.eup %11281  ;;  %v3875_v53 = vmul.f32 %v11280_v2, %v11274_v10  ;;  %v9810_v41 = vpack.c.bf16 %v4434_v11, %v4430_v47  ;;  %v4441_v10 = vld [vmem:[#allocation10 + $0x68] sm:$0xff]  ;;  %v9782_v59 = vpack.c.bf16 %v4440_v36, %v4436_v38  ;;  %v4438_v2 = vld [vmem:[#allocation10 + $0x50] sm:$0xff]  ;;  %v9820_v47 = vpack.c.bf16 %v4459_v57, %v4455_v23  ;;  %v4452_v11 = vld [vmem:[#allocation10 + $0xc0] sm:$0xff] }
 0x8c2   :  { %v3876_v20 = vmul.f32 %v11282_v52, %v11276_v35  ;;  %3882 = vst [vmem:[#allocation2 + $0x28] sm:$0x40] %v3874_v45  ;;  %v3902_v56 = vrot.slane %v3874_v45, 1  ;;  %v9780_v1 = vpack.c.bf16 %v4441_v10, %v4437_v55  ;;  %v4443_v35 = vld [vmem:[#allocation10 + $0x78] sm:$0xff]  ;;  %v4442_v45 = vld [vmem:[#allocation10 + $0x70] sm:$0xff]  ;;  %v4445_v52 = vld [vmem:[#allocation10 + $0x88] sm:$0xff] }
 0x8c3   :  { %3883 = vst [vmem:[#allocation2 + $0x30] sm:$0x40] %v3875_v53  ;;  %v9812_v62 = vpack.c.bf16 %v4443_v35, %v4439_v3  ;;  %v4454_v55 = vld [vmem:[#allocation10 + $0xd0] sm:$0xff]  ;;  %v4465_v35 = vld [vmem:[#allocation10 + $0x128] sm:$0xff]  ;;  %v4472_v12 = vld [vmem:[#allocation10 + $0x160] sm:$0xff] }
 0x8c4   :  { %3884 = vst [vmem:[#allocation2 + $0x38] sm:$0x40] %v3876_v20  ;;  %v3903_v44 = vsel %vm989_vm4, %v3902_v56, %v3901_v61  ;;  %v3905_v34 = vrot.slane %v3876_v20, 7  ;;  %v9814_v61 = vpack.c.bf16 %v4442_v45, %v4438_v2  ;;  %v4447_v20 = vld [vmem:[#allocation10 + $0x98] sm:$0xff]  ;;  %v4458_v3 = vld [vmem:[#allocation10 + $0xf0] sm:$0xff]  ;;  %v4460_v2 = vld [vmem:[#allocation10 + $0x100] sm:$0xff] }
 0x8c5   :  { %v3904_v42 = vsel %vm992_vm5, %v3875_v53, %v3903_v44  ;;  %v4449_v53 = vld [vmem:[#allocation10 + $0xa8] sm:$0xff]  ;;  %v4451_v44 = vld [vmem:[#allocation10 + $0xb8] sm:$0xff]  ;;  %v9822_v38 = vpack.c.bf16 %v4458_v3, %v4454_v55  ;;  %v4480_v3 = vld [vmem:[#allocation10 + $0x1a0] sm:$0xff] }
 0x8c6   :  { %v3906_v5 = vsel %vm995_vm6, %v3905_v34, %v3904_v42  ;;  %v9784_v56 = vpack.c.bf16 %v4449_v53, %v4445_v52  ;;  %v4444_v34 = vld [vmem:[#allocation10 + $0x80] sm:$0xff]  ;;  %v4462_v52 = vld [vmem:[#allocation10 + $0x110] sm:$0xff]  ;;  %v4477_v23 = vld [vmem:[#allocation10 + $0x188] sm:$0xff] }
 0x8c7   :  { %3973 = vmatmul.mubr.f32.vlgmr.msra.gmra.mrb[30].mxu0 %v3906_v5  ;;  %4044 = vmatmul.mubr.f32.vlgmr.msra.gmra.mrb[30].mxu1 %v3906_v5  ;;  %v4448_v42 = vld [vmem:[#allocation10 + $0xa0] sm:$0xff]  ;;  %v9816_v5 = vpack.c.bf16 %v4451_v44, %v4447_v20  ;;  %v4466_v53 = vld [vmem:[#allocation10 + $0x130] sm:$0xff]  ;;  %v4473_v44 = vld [vmem:[#allocation10 + $0x168] sm:$0xff] }
 0x8c8   :  { %4578 = vmatprep.mubr.f32.mxu0 %v16143_v8  ;;  %4691 = vmatprep.mubr.f32.mxu1 %v16143_v8  ;;  %v9786_v4 = vpack.c.bf16 %v4448_v42, %v4444_v34  ;;  %v4471_v34 = vld [vmem:[#allocation10 + $0x158] sm:$0xff]  ;;  %v9826_v42 = vpack.c.bf16 %v4466_v53, %v4462_v52  ;;  %v4481_v57 = vld [vmem:[#allocation10 + $0x1a8] sm:$0xff]  ;;  %v4484_v53 = vld [vmem:[#allocation10 + $0x1c0] sm:$0xff] }
 0x8c9   :  { %9779 = vmatpush1.bf16.msra.mxu0 %v9778_v26  ;;  %9811 = vmatpush1.bf16.msra.mxu1 %v9810_v41  ;;  %v9788_v26 = vpack.c.bf16 %v4457_v13, %v4453_v18  ;;  %v4456_v41 = vld [vmem:[#allocation10 + $0xe0] sm:$0xff]  ;;  %v4474_v13 = vld [vmem:[#allocation10 + $0x170] sm:$0xff]  ;;  %v9800_v55 = vpack.c.bf16 %v4481_v57, %v4477_v23 }
 0x8ca   :  { %9781 = vmatprep.subr.bf16.mxu0 %v9780_v1  ;;  %9813 = vmatprep.subr.bf16.mxu1 %v9812_v62  ;;  %v9790_v10 = vpack.c.bf16 %v4456_v41, %v4452_v11  ;;  %v4461_v1 = vld [vmem:[#allocation10 + $0x108] sm:$0xff]  ;;  %v4463_v62 = vld [vmem:[#allocation10 + $0x118] sm:$0xff]  ;;  %v9798_v11 = vpack.c.bf16 %v4472_v12, %v4468_v31 }
 0x8cb   :  { %v9792_v36 = vpack.c.bf16 %v4465_v35, %v4461_v1  ;;  %v4478_v1 = vld [vmem:[#allocation10 + $0x190] sm:$0xff]  ;;  %v4747_v31 = vld [vmem:[#allocation12 + $0x38] sm:$0xff]  ;;  %v14191_v23 = vld [vmem:[%s15850_s7 + $0x8] sm:$0xff] }
 0x8cd   :  { %9783 = vmatpush1.bf16.msra.mxu0 %v9782_v59  ;;  %9815 = vmatpush1.bf16.msra.mxu1 %v9814_v61  ;;  %v4467_v59 = vld [vmem:[#allocation10 + $0x138] sm:$0xff]  ;;  %v4464_v61 = vld [vmem:[#allocation10 + $0x120] sm:$0xff] }
 0x8ce   :  { %9785 = vmatprep.subr.bf16.mxu0 %v9784_v56  ;;  %9817 = vmatprep.subr.bf16.mxu1 %v9816_v5  ;;  %v9824_v45 = vpack.c.bf16 %v4467_v59, %v4463_v62  ;;  %v9794_v20 = vpack.c.bf16 %v4464_v61, %v4460_v2  ;;  %v4469_v56 = vld [vmem:[#allocation10 + $0x148] sm:$0xff]  ;;  %v4487_v59 = vld [vmem:[#allocation10 + $0x1d8] sm:$0xff] }
 0x8cf   :  { %v9796_v5 = vpack.c.bf16 %v4473_v44, %v4469_v56  ;;  %v4489_v62 = vld [vmem:[#allocation10 + $0x1e8] sm:$0xff]  ;;  %v4491_v2 = vld [vmem:[#allocation10 + $0x1f8] sm:$0xff]  ;;  %v4486_v56 = vld [vmem:[#allocation10 + $0x1d0] sm:$0xff] }
 0x8d0   :  { %v9836_v44 = vpack.c.bf16 %v4491_v2, %v4487_v59 }
 0x8d1   :  { %9787 = vmatpush1.bf16.msra.mxu0 %v9786_v4  ;;  %9819 = vmatpush1.bf16.msra.mxu1 %v9818_v50  ;;  %v4475_v4 = vld [vmem:[#allocation10 + $0x178] sm:$0xff]  ;;  %v4470_v50 = vld [vmem:[#allocation10 + $0x150] sm:$0xff] }
 0x8d2   :  { %9789 = vmatprep.subr.bf16.mxu0 %v9788_v26  ;;  %9821 = vmatprep.subr.bf16.mxu1 %v9820_v47  ;;  %v9828_v18 = vpack.c.bf16 %v4475_v4, %v4471_v34  ;;  %v4479_v26 = vld [vmem:[#allocation10 + $0x198] sm:$0xff]  ;;  %v9830_v41 = vpack.c.bf16 %v4474_v13, %v4470_v50  ;;  %v4490_v34 = vld [vmem:[#allocation10 + $0x1f0] sm:$0xff] }
 0x8d3   :  { %v4483_v47 = vld [vmem:[#allocation10 + $0x1b8] sm:$0xff] }
 0x8d4   :  { %v9832_v35 = vpack.c.bf16 %v4483_v47, %v4479_v26  ;;  %v4743_v4 = vld [vmem:[#allocation12 + $0x18] sm:$0xff] }
 0x8d5   :  { %9791 = vmatpush1.bf16.msra.mxu0 %v9790_v10  ;;  %9823 = vmatpush1.bf16.msra.mxu1 %v9822_v38  ;;  %v4476_v10 = vld [vmem:[#allocation10 + $0x180] sm:$0xff]  ;;  %v4482_v38 = vld [vmem:[#allocation10 + $0x1b0] sm:$0xff]  ;;  %v14184_v13 = vpack.c.bf16 %v4747_v31, %v4743_v4 }
 0x8d6   :  { %9793 = vmatprep.subr.bf16.mxu0 %v9792_v36  ;;  %9825 = vmatprep.subr.bf16.mxu1 %v9824_v45  ;;  %v4485_v36 = vld [vmem:[#allocation10 + $0x1c8] sm:$0xff]  ;;  %v9802_v45 = vpack.c.bf16 %v4480_v3, %v4476_v10  ;;  %v9834_v61 = vpack.c.bf16 %v4482_v38, %v4478_v1 }
 0x8d7   :  { %v9804_v52 = vpack.c.bf16 %v4489_v62, %v4485_v36  ;;  %16374 = vst [vmem:[#allocation21_spill] sm:$0xff] %v14184_v13 }
 0x8d9   :  { %9795 = vmatpush1.bf16.msra.mxu0 %v9794_v20  ;;  %9827 = vmatpush1.bf16.msra.mxu1 %v9826_v42  ;;  %v4488_v20 = vld [vmem:[#allocation10 + $0x1e0] sm:$0xff]  ;;  %v4741_v42 = vld [vmem:[#allocation12 + $0x8] sm:$0xff] }
 0x8da   :  { %9797 = vmatprep.subr.bf16.mxu0 %v9796_v5  ;;  %9829 = vmatprep.subr.bf16.mxu1 %v9828_v18  ;;  %v4745_v5 = vld [vmem:[#allocation12 + $0x28] sm:$0xff]  ;;  %v9806_v12 = vpack.c.bf16 %v4488_v20, %v4484_v53  ;;  %v9838_v18 = vpack.c.bf16 %v4490_v34, %v4486_v56 }
 0x8db   :  { %v14182_v50 = vpack.c.bf16 %v4745_v5, %v4741_v42 }
 0x8dd   :  { %9799 = vmatpush1.bf16.msra.mxu0 %v9798_v11  ;;  %9831 = vmatpush1.bf16.msra.mxu1 %v9830_v41  ;;  %16373 = vst [vmem:[#allocation60_spill] sm:$0xff] %v14182_v50 }
 0x8de   :  { %9801 = vmatprep.subr.bf16.mxu0 %v9800_v55  ;;  %9833 = vmatprep.subr.bf16.mxu1 %v9832_v35 }
 0x8e1   :  { %9803 = vmatpush1.bf16.msra.mxu0 %v9802_v45  ;;  %9835 = vmatpush1.bf16.msra.mxu1 %v9834_v61 }
 0x8e2   :  { %9805 = vmatprep.subr.bf16.mxu0 %v9804_v52  ;;  %9837 = vmatprep.subr.bf16.mxu1 %v9836_v44 }
 0x8e5   :  { %9807 = vmatpush1.bf16.msra.mxu0 %v9806_v12  ;;  %9839 = vmatpush1.bf16.msra.mxu1 %v9838_v18 }
 0x8e6   :  { %9841 = vmatprep.subr.bf16.mxu0 %v14182_v50  ;;  %9873 = vmatprep.subr.bf16.mxu1 %v14184_v13 }
 0x99a   :  { %v3974_v57 = vpop.f32.mrb[30].mxu0  ;;  %v14193_v26 = vpop.f32.mrb[30].mxu1 }
 0x99b   :  { %v4054_v47 = vrot.slane %v3974_v57, 1  ;;  %v4058_v11 = vrot.slane %v3974_v57, 2  ;;  %v4062_v41 = vrot.slane %v3974_v57, 3  ;;  %v4066_v55 = vrot.slane %v3974_v57, 4  ;;  %v14195_v10 = vpop.f32.mrb[31].mxu0  ;;  %v14197_v3 = vpop.f32.mrb[31].mxu1 }
 0x99c   :  { %v4070_v1 = vrot.slane %v3974_v57, 5  ;;  %v4074_v35 = vrot.slane %v3974_v57, 6  ;;  %v4078_v38 = vrot.slane %v3974_v57, 7  ;;  %v4142_v36 = vadd.f32 %v3974_v57, %v16356_v29 }
 0x99d   :  { %v4114_v62 = vadd.f32 %v4054_v47, %v16350_v40  ;;  %v4118_v59 = vadd.f32 %v4058_v11, %v16351_v63  ;;  %v4122_v2 = vadd.f32 %v4062_v41, %v16352_v25  ;;  %v4126_v45 = vadd.f32 %v4066_v55, %v16353_v24 }
 0x99e   :  { %v4130_v61 = vadd.f32 %v4070_v1, %v16354_v49  ;;  %v4134_v52 = vadd.f32 %v4074_v35, %v16355_v6  ;;  %v8938_v53 = vmul.f32 -1.442695, %v4142_v36  ;;  %v4138_v20 = vadd.f32 %v4078_v38, %v16317_v15 }
 0x99f   :  { %v8931_v56 = vmul.f32 -1.442695, %v4114_v62  ;;  %v8932_v44 = vmul.f32 -1.442695, %v4118_v59  ;;  %v8933_v34 = vmul.f32 -1.442695, %v4122_v2 }
 0x9a0   :  { %v8934_v42 = vmul.f32 -1.442695, %v4126_v45  ;;  %11283 = vpow2.f32 %v8938_v53  ;;  %v8935_v40 = vmul.f32 -1.442695, %v4130_v61  ;;  %v4056_v63 = vrot.slane %v14193_v26, 1 }
 0x9a1   :  { %11285 = vpow2.f32 %v8931_v56  ;;  %v4060_v25 = vrot.slane %v14193_v26, 2  ;;  %v8936_v24 = vmul.f32 -1.442695, %v4134_v52  ;;  %v4064_v49 = vrot.slane %v14193_v26, 3  ;;  %v16375_v56 = vld [vmem:[#allocation55_spill] sm:$0xff] }
 0x9a2   :  { %11287 = vpow2.f32 %v8932_v44  ;;  %v8937_v6 = vmul.f32 -1.442695, %v4138_v20  ;;  %v4068_v29 = vrot.slane %v14193_v26, 4  ;;  %v4072_v15 = vrot.slane %v14193_v26, 5 }
 0x9a3   :  { %11289 = vpow2.f32 %v8933_v34  ;;  %v4116_v5 = vadd.f32 %v4056_v63, %v16357_v7  ;;  %v4120_v4 = vadd.f32 %v4060_v25, %v16358_v27  ;;  %v4124_v31 = vadd.f32 %v4064_v49, %v16359_v51  ;;  %v16377_v49 = vld [vmem:[#allocation64_spill] sm:$0xff] }
 0x9a4   :  { %11291 = vpow2.f32 %v8934_v42  ;;  %v4128_v12 = vadd.f32 %v4068_v29, %v16360_v21  ;;  %v4132_v18 = vadd.f32 %v4072_v15, %v16361_v9  ;;  %v4076_v47 = vrot.slane %v14193_v26, 6  ;;  %v16378_v15 = vld [vmem:[#allocation72_spill] sm:$0xff] }
 0x9a5   :  { %11293 = vpow2.f32 %v8935_v40  ;;  %v4080_v7 = vrot.slane %v14193_v26, 7  ;;  %v4055_v51 = vrot.slane %v14195_v10, 1  ;;  %v4059_v9 = vrot.slane %v14195_v10, 2  ;;  %v16376_v40 = vld [vmem:[#allocation62_spill] sm:$0xff] }
 0x9a6   :  { %11295 = vpow2.f32 %v8936_v24  ;;  %v4136_v36 = vadd.f32 %v4076_v47, %v16362_v28  ;;  %v4063_v62 = vrot.slane %v14195_v10, 3  ;;  %v4067_v61 = vrot.slane %v14195_v10, 4 }
 0x9a7   :  { %11297 = vpow2.f32 %v8937_v6  ;;  %v4140_v45 = vadd.f32 %v4080_v7, %v16365_v16  ;;  %v4071_v20 = vrot.slane %v14195_v10, 5  ;;  %v4115_v44 = vadd.f32 %v4055_v51, %v16375_v56  ;;  %v16381_v7 = vld [vmem:[#allocation70_spill] sm:$0xff] }
 0x9a8   :  { %11299 = vtanh.f32 %v4116_v5  ;;  %v4075_v28 = vrot.slane %v14195_v10, 6  ;;  %v4119_v63 = vadd.f32 %v4059_v9, %v16376_v40  ;;  %v4079_v16 = vrot.slane %v14195_v10, 7 }
 0x9a9   :  { %11301 = vtanh.f32 %v4120_v4  ;;  %v4123_v6 = vadd.f32 %v4063_v62, %v16377_v49  ;;  %v4144_v5 = vadd.f32 %v14193_v26, %v16378_v15  ;;  %v16379_v4 = vld [vmem:[#allocation66_spill] sm:$0xff]  ;;  %v8939_v47 = vmul.f32 -1.442695, %v4115_v44  ;;  %v16383_v62 = vld [vmem:[#allocation73_spill] sm:$0xff] }
 0x9aa   :  { %v11284_v57 = vpop.eup %11283  ;;  %11303 = vtanh.f32 %v4124_v31  ;;  %v4127_v31 = vadd.f32 %v4067_v61, %v16379_v4  ;;  %v4061_v51 = vrot.slane %v14197_v3, 2 }
 0x9ab   :  { %v11286_v11 = vpop.eup %11285  ;;  %v4177_v41 = vadd.f32 1.0, %v11284_v57  ;;  %11305 = vtanh.f32 %v4128_v12  ;;  %v8941_v9 = vmul.f32 -1.442695, %v4123_v6 }
 0x9ac   :  { %v11288_v27 = vpop.eup %11287  ;;  %v4170_v55 = vadd.f32 1.0, %v11286_v11  ;;  %11307 = vtanh.f32 %v4132_v18  ;;  %v16380_v18 = vld [vmem:[#allocation67_spill] sm:$0xff]  ;;  %v4057_v11 = vrot.slane %v14197_v3, 1 }
 0x9ad   :  { %v11290_v1 = vpop.eup %11289  ;;  %v4171_v21 = vadd.f32 1.0, %v11288_v27  ;;  %11309 = vrcp.f32 %v4177_v41  ;;  %v4131_v57 = vadd.f32 %v4071_v20, %v16380_v18  ;;  %v4135_v27 = vadd.f32 %v4075_v28, %v16381_v7 }
 0x9ae   :  { %v11292_v35 = vpop.eup %11291  ;;  %v4172_v38 = vadd.f32 1.0, %v11290_v1  ;;  %11311 = vrcp.f32 %v4170_v55  ;;  %v8940_v55 = vmul.f32 -1.442695, %v4119_v63 }
 0x9af   :  { %v11294_v59 = vpop.eup %11293  ;;  %v4173_v2 = vadd.f32 1.0, %v11292_v35  ;;  %11313 = vrcp.f32 %v4171_v21  ;;  %v16382_v21 = vld [vmem:[#allocation71_spill] sm:$0xff]  ;;  %v4065_v35 = vrot.slane %v14197_v3, 3  ;;  %v8944_v44 = vmul.f32 -1.442695, %v4135_v27 }
 0x9b0   :  { %v11296_v52 = vpop.eup %11295  ;;  %v4174_v53 = vadd.f32 1.0, %v11294_v59  ;;  %11315 = vrcp.f32 %v4172_v38  ;;  %v4139_v26 = vadd.f32 %v4079_v16, %v16382_v21  ;;  %v4143_v59 = vadd.f32 %v14195_v10, %v16383_v62 }
 0x9b1   :  { %v11298_v34 = vpop.eup %11297  ;;  %v4175_v42 = vadd.f32 1.0, %v11296_v52  ;;  %11317 = vrcp.f32 %v4173_v2  ;;  %v8942_v2 = vmul.f32 -1.442695, %v4127_v31  ;;  %v8943_v52 = vmul.f32 -1.442695, %v4131_v57 }
 0x9b2   :  { %v11300_v25 = vpop.eup %11299  ;;  %v4176_v24 = vadd.f32 1.0, %v11298_v34  ;;  %11319 = vrcp.f32 %v4174_v53  ;;  %v4073_v53 = vrot.slane %v14197_v3, 5  ;;  %v4121_v34 = vadd.f32 %v4061_v51, %v16215_v46 }
 0x9b3   :  { %v11302_v29 = vpop.eup %11301  ;;  %11321 = vrcp.f32 %v4175_v42  ;;  %v8945_v10 = vmul.f32 -1.442695, %v4139_v26  ;;  %v4125_v40 = vadd.f32 %v4065_v35, %v16254_v58  ;;  %v8946_v16 = vmul.f32 -1.442695, %v4143_v59 }
 0x9b4   :  { %v11304_v12 = vpop.eup %11303  ;;  %11323 = vrcp.f32 %v4176_v24  ;;  %v4133_v46 = vadd.f32 %v4073_v53, %v13094_v37  ;;  %v4077_v37 = vrot.slane %v14197_v3, 6  ;;  %v4081_v27 = vrot.slane %v14197_v3, 7 }
 0x9b5   :  { %v11306_v41 = vpop.eup %11305  ;;  %11325 = vtanh.f32 %v4136_v36  ;;  %v4069_v36 = vrot.slane %v14197_v3, 4  ;;  %v8949_v4 = vmul.f32 -1.442695, %v4125_v40 }
 0x9b6   :  { %v11308_v1 = vpop.eup %11307  ;;  %11327 = vtanh.f32 %v4140_v45  ;;  %v4117_v45 = vadd.f32 %v4057_v11, %v16176_v22  ;;  %v8951_v57 = vmul.f32 -1.442695, %v4133_v46  ;;  %v4137_v35 = vadd.f32 %v4077_v37, %v13161_v33 }
 0x9b7   :  { %v11310_v38 = vpop.eup %11309  ;;  %11329 = vtanh.f32 %v4144_v5  ;;  %v4129_v22 = vadd.f32 %v4069_v36, %v13080_v43  ;;  %v8948_v5 = vmul.f32 -1.442695, %v4121_v34  ;;  %v4312_v37 = vrot.slane %v14163_v32, 7 }
 0x9b8   :  { %v11312_v61 = vpop.eup %11311  ;;  %11331 = vpow2.f32 %v8939_v47  ;;  %v8947_v6 = vmul.f32 -1.442695, %v4117_v45 }
 0x9b9   :  { %v11314_v20 = vpop.eup %11313  ;;  %v14245_v56 = vmul.f32 %v11312_v61, %v11300_v25  ;;  %11333 = vpow2.f32 %v8940_v55  ;;  %v4145_v61 = vadd.f32 %v14197_v3, %v13175_v17 }
 0x9ba   :  { %v11316_v42 = vpop.eup %11315  ;;  %v14248_v28 = vmul.f32 %v11314_v20, %v11302_v29  ;;  %11335 = vpow2.f32 %v8941_v9 }
 0x9bb   :  { %v11318_v63 = vpop.eup %11317  ;;  %v14251_v24 = vmul.f32 %v11316_v42, %v11304_v12  ;;  %11337 = vpow2.f32 %v8942_v2  ;;  %v8950_v12 = vmul.f32 -1.442695, %v4129_v22  ;;  %v4306_v22 = vrot.slane %v14139_v54, 7 }
 0x9bc   :  { %v11320_v25 = vpop.eup %11319  ;;  %v14254_v49 = vmul.f32 %v11318_v63, %v11306_v41  ;;  %11339 = vpow2.f32 %v8943_v52 }
 0x9bd   :  { %v11322_v29 = vpop.eup %11321  ;;  %v14257_v15 = vmul.f32 %v11320_v25, %v11308_v1  ;;  %11341 = vpow2.f32 %v8944_v44  ;;  %v8952_v44 = vmul.f32 -1.442695, %v4137_v35 }
 0x9be   :  { %v11324_v58 = vpop.eup %11323  ;;  %11343 = vpow2.f32 %v8945_v10 }
 0x9bf   :  { %v11326_v31 = vpop.eup %11325  ;;  %11345 = vpow2.f32 %v8946_v16 }
 0x9c0   :  { %v11328_v18 = vpop.eup %11327  ;;  %v14259_v43 = vmul.f32 %v11326_v31, %v11322_v29  ;;  %11347 = vpow2.f32 %v8947_v6  ;;  %v4307_v6 = vrot.slane %v14143_v19, 7 }
 0x9c1   :  { %v11330_v47 = vpop.eup %11329  ;;  %v14261_v11 = vmul.f32 %v11328_v18, %v11324_v58  ;;  %11349 = vpow2.f32 %v8948_v5  ;;  %v4308_v58 = vrot.slane %v14147_v0, 7  ;;  %v4310_v18 = vrot.slane %v14155_v60, 7 }
 0x9c2   :  { %v11332_v41 = vpop.eup %11331  ;;  %v14264_v7 = vmul.f32 %v11330_v47, %v11310_v38  ;;  %11351 = vpow2.f32 %v8949_v4  ;;  %v4141_v38 = vadd.f32 %v4081_v27, %v13168_v30  ;;  %v8954_v30 = vmul.f32 -1.442695, %v4145_v61 }
 0x9c3   :  { %v11334_v55 = vpop.eup %11333  ;;  %v4218_v51 = vadd.f32 1.0, %v11332_v41  ;;  %11353 = vpow2.f32 %v8950_v12  ;;  %v4309_v4 = vrot.slane %v14151_v39, 7  ;;  %v4313_v0 = vrot.slane %v14167_v14, 7 }
 0x9c4   :  { %v11336_v1 = vpop.eup %11335  ;;  %v4219_v21 = vadd.f32 1.0, %v11334_v55  ;;  %11355 = vpow2.f32 %v8951_v57  ;;  %v8953_v42 = vmul.f32 -1.442695, %v4141_v38  ;;  %v4311_v57 = vrot.slane %v14159_v48, 7 }
 0x9c5   :  { %v11338_v26 = vpop.eup %11337  ;;  %v4220_v9 = vadd.f32 1.0, %v11336_v1  ;;  %11357 = vrcp.f32 %v4218_v51 }
 0x9c6   :  { %v11340_v62 = vpop.eup %11339  ;;  %v4221_v59 = vadd.f32 1.0, %v11338_v26  ;;  %11359 = vrcp.f32 %v4219_v21 }
 0x9c7   :  { %v11342_v2 = vpop.eup %11341  ;;  %v4222_v36 = vadd.f32 1.0, %v11340_v62  ;;  %11361 = vrcp.f32 %v4220_v9 }
 0x9c8   :  { %v11344_v52 = vpop.eup %11343  ;;  %v4223_v53 = vadd.f32 1.0, %v11342_v2  ;;  %11363 = vrcp.f32 %v4221_v59 }
 0x9c9   :  { %v11346_v45 = vpop.eup %11345  ;;  %v4224_v20 = vadd.f32 1.0, %v11344_v52  ;;  %11365 = vrcp.f32 %v4222_v36 }
 0x9ca   :  { %v11348_v34 = vpop.eup %11347  ;;  %v4225_v33 = vadd.f32 1.0, %v11346_v45  ;;  %11367 = vrcp.f32 %v4223_v53 }
 0x9cb   :  { %v11350_v10 = vpop.eup %11349  ;;  %11369 = vrcp.f32 %v4224_v20  ;;  %v4274_v63 = vadd.f32 1.0, %v11348_v34 }
 0x9cc   :  { %v11352_v40 = vpop.eup %11351  ;;  %11371 = vrcp.f32 %v4225_v33  ;;  %v4275_v17 = vadd.f32 1.0, %v11350_v10  ;;  %v4740_v10 = vld [vmem:[#allocation12] sm:$0xff] }
 0x9cd   :  { %v11354_v16 = vpop.eup %11353  ;;  %11373 = vpow2.f32 %v8952_v44  ;;  %v4276_v25 = vadd.f32 1.0, %v11352_v40 }
 0x9ce   :  { %v11356_v3 = vpop.eup %11355  ;;  %11375 = vpow2.f32 %v8953_v42  ;;  %v4277_v29 = vadd.f32 1.0, %v11354_v16  ;;  %v4742_v16 = vld [vmem:[#allocation12 + $0x10] sm:$0xff] }
 0x9cf   :  { %v11358_v46 = vpop.eup %11357  ;;  %11377 = vpow2.f32 %v8954_v30  ;;  %v4278_v1 = vadd.f32 1.0, %v11356_v3 }
 0x9d0   :  { %v11360_v5 = vpop.eup %11359  ;;  %v4322_v31 = vmul.f32 %v11358_v46, %v4306_v22  ;;  %11379 = vrcp.f32 %v4274_v63  ;;  %v4744_v63 = vld [vmem:[#allocation12 + $0x20] sm:$0xff]  ;;  %v4749_v22 = vld [vmem:[#allocation12 + $0x48] sm:$0xff] }
 0x9d1   :  { %v11362_v12 = vpop.eup %11361  ;;  %v4323_v54 = vmul.f32 %v11360_v5, %v4307_v6  ;;  %11381 = vrcp.f32 %v4275_v17  ;;  %v4746_v17 = vld [vmem:[#allocation12 + $0x30] sm:$0xff]  ;;  %v4753_v46 = vld [vmem:[#allocation12 + $0x68] sm:$0xff]  ;;  %v4751_v6 = vld [vmem:[#allocation12 + $0x58] sm:$0xff] }
 0x9d2   :  { %v11364_v47 = vpop.eup %11363  ;;  %v4324_v19 = vmul.f32 %v11362_v12, %v4308_v58  ;;  %v4338_v41 = vadd.f32 %v14245_v56, %v4322_v31  ;;  %11383 = vrcp.f32 %v4276_v25  ;;  %v14287_v58 = vpack.c.bf16 %v4744_v63, %v4740_v10  ;;  %v4748_v31 = vld [vmem:[#allocation12 + $0x40] sm:$0xff]  ;;  %v4774_v63 = vld [vmem:[#allocation12 + $0x110] sm:$0xff] }
 0x9d3   :  { %v11366_v27 = vpop.eup %11365  ;;  %v4325_v39 = vmul.f32 %v11364_v47, %v4309_v4  ;;  %v4339_v55 = vadd.f32 %v14248_v28, %v4323_v54  ;;  %11385 = vrcp.f32 %v4277_v29  ;;  %v4755_v29 = vld [vmem:[#allocation12 + $0x78] sm:$0xff]  ;;  %v14289_v4 = vpack.c.bf16 %v4746_v17, %v4742_v16  ;;  %v4754_v54 = vld [vmem:[#allocation12 + $0x70] sm:$0xff] }
 0x9d4   :  { %v11368_v51 = vpop.eup %11367  ;;  %v4326_v60 = vmul.f32 %v11366_v27, %v4310_v18  ;;  %v4340_v48 = vadd.f32 %v14251_v24, %v4324_v19  ;;  %11387 = vtanh.f32 %v4338_v41  ;;  %v4752_v18 = vld [vmem:[#allocation12 + $0x60] sm:$0xff]  ;;  %v14291_v41 = vpack.c.bf16 %v4753_v46, %v4749_v22  ;;  %v4778_v16 = vld [vmem:[#allocation12 + $0x130] sm:$0xff]  ;;  %v4785_v46 = vld [vmem:[#allocation12 + $0x168] sm:$0xff] }
 0x9d5   :  { %v11370_v21 = vpop.eup %11369  ;;  %v4327_v26 = vmul.f32 %v11368_v51, %v4311_v57  ;;  %v4341_v32 = vadd.f32 %v14254_v49, %v4325_v39  ;;  %11389 = vtanh.f32 %v4339_v55  ;;  %v4750_v57 = vld [vmem:[#allocation12 + $0x50] sm:$0xff]  ;;  %v14293_v27 = vpack.c.bf16 %v4755_v29, %v4751_v6  ;;  %v4761_v51 = vld [vmem:[#allocation12 + $0xa8] sm:$0xff]  ;;  %v4783_v6 = vld [vmem:[#allocation12 + $0x158] sm:$0xff] }
 0x9d6   :  { %v11372_v56 = vpop.eup %11371  ;;  %v4328_v9 = vmul.f32 %v11370_v21, %v4312_v37  ;;  %v4342_v35 = vadd.f32 %v14257_v15, %v4326_v60  ;;  %11391 = vtanh.f32 %v4340_v48  ;;  %v4759_v60 = vld [vmem:[#allocation12 + $0x98] sm:$0xff] }
 0x9d7   :  { %v11374_v14 = vpop.eup %11373  ;;  %v4329_v62 = vmul.f32 %v11372_v56, %v4313_v0  ;;  %v4343_v28 = vadd.f32 %v14259_v43, %v4327_v26  ;;  %11393 = vtanh.f32 %v4341_v32  ;;  %v4757_v0 = vld [vmem:[#allocation12 + $0x88] sm:$0xff]  ;;  %v4763_v48 = vld [vmem:[#allocation12 + $0xb8] sm:$0xff]  ;;  %v14297_v26 = vpack.c.bf16 %v4752_v18, %v4748_v31  ;;  %v4756_v56 = vld [vmem:[#allocation12 + $0x80] sm:$0xff] }
 0x9d8   :  { %v11376_v59 = vpop.eup %11375  ;;  %v4344_v24 = vadd.f32 %v14261_v11, %v4328_v9  ;;  %11395 = vtanh.f32 %v4342_v35  ;;  %v4279_v36 = vadd.f32 1.0, %v11374_v14  ;;  %v14299_v32 = vpack.c.bf16 %v4754_v54, %v4750_v57  ;;  %v4760_v9 = vld [vmem:[#allocation12 + $0xa0] sm:$0xff]  ;;  %v4758_v35 = vld [vmem:[#allocation12 + $0x90] sm:$0xff]  ;;  %v4787_v29 = vld [vmem:[#allocation12 + $0x178] sm:$0xff] }
 0x9d9   :  { %v11378_v38 = vpop.eup %11377  ;;  %v4345_v2 = vadd.f32 %v14264_v7, %v4329_v62  ;;  %11397 = vtanh.f32 %v4343_v28  ;;  %v4280_v15 = vadd.f32 1.0, %v11376_v59  ;;  %16384 = vst [vmem:[#allocation22_spill] sm:$0xff] %v14297_v26  ;;  %v4762_v14 = vld [vmem:[#allocation12 + $0xb0] sm:$0xff]  ;;  %v14305_v28 = vpack.c.bf16 %v4761_v51, %v4757_v0  ;;  %v4784_v18 = vld [vmem:[#allocation12 + $0x160] sm:$0xff]  ;;  %v4789_v0 = vld [vmem:[#allocation12 + $0x188] sm:$0xff] }
 0x9da   :  { %v11380_v49 = vpop.eup %11379  ;;  %11399 = vtanh.f32 %v4344_v24  ;;  %v4281_v53 = vadd.f32 1.0, %v11378_v38  ;;  %16385 = vst [vmem:[#allocation23_spill] sm:$0xff] %v14299_v32  ;;  %v14307_v59 = vpack.c.bf16 %v4763_v48, %v4759_v60  ;;  %v4765_v24 = vld [vmem:[#allocation12 + $0xc8] sm:$0xff]  ;;  %v14341_v31 = vpack.c.bf16 %v4778_v16, %v4774_v63  ;;  %v4782_v57 = vld [vmem:[#allocation12 + $0x150] sm:$0xff]  ;;  %v4795_v51 = vld [vmem:[#allocation12 + $0x1b8] sm:$0xff] }
 0x9db   :  { %v11382_v61 = vpop.eup %11381  ;;  %11401 = vtanh.f32 %v4345_v2  ;;  %16386 = vst [vmem:[#allocation24_spill] sm:$0xff] %v14305_v28  ;;  %v4769_v38 = vld [vmem:[#allocation12 + $0xe8] sm:$0xff]  ;;  %v4767_v2 = vld [vmem:[#allocation12 + $0xd8] sm:$0xff]  ;;  %v4786_v54 = vld [vmem:[#allocation12 + $0x170] sm:$0xff] }
 0x9dc   :  { %v11384_v52 = vpop.eup %11383  ;;  %11403 = vrcp.f32 %v4278_v1  ;;  %16387 = vst [vmem:[#allocation25_spill] sm:$0xff] %v14307_v59  ;;  %16397 = vst [vmem:[#allocation30_spill] sm:$0xff] %v14341_v31  ;;  %v14355_v48 = vpack.c.bf16 %v4786_v54, %v4782_v57 }
 0x9dd   :  { %v11386_v45 = vpop.eup %11385  ;;  %11405 = vrcp.f32 %v4279_v36  ;;  %v14311_v36 = vpack.c.bf16 %v4760_v9, %v4756_v56  ;;  %v4790_v56 = vld [vmem:[#allocation12 + $0x190] sm:$0xff] }
 0x9de   :  { %v11388_v43 = vpop.eup %11387  ;;  %11407 = vrcp.f32 %v4280_v15  ;;  %v4764_v15 = vld [vmem:[#allocation12 + $0xc0] sm:$0xff]  ;;  %16401 = vst [vmem:[#allocation34_spill] sm:$0xff] %v14355_v48  ;;  %v4794_v9 = vld [vmem:[#allocation12 + $0x1b0] sm:$0xff] }
 0x9df   :  { %v11390_v20 = vpop.eup %11389  ;;  %11409 = vrcp.f32 %v4281_v53  ;;  %v4354_v11 = vmul.f32 %v11388_v43, %v11380_v49  ;;  %v4771_v49 = vld [vmem:[#allocation12 + $0xf8] sm:$0xff]  ;;  %16388 = vst [vmem:[#allocation26_spill] sm:$0xff] %v14311_v36  ;;  %v4766_v53 = vld [vmem:[#allocation12 + $0xd0] sm:$0xff] }
 0x9e0   :  { %v11392_v44 = vpop.eup %11391  ;;  %v4355_v34 = vmul.f32 %v11390_v20, %v11382_v61  ;;  %v14313_v61 = vpack.c.bf16 %v4762_v14, %v4758_v35  ;;  %v14319_v20 = vpack.c.bf16 %v4769_v38, %v4765_v24  ;;  %v4797_v24 = vld [vmem:[#allocation12 + $0x1c8] sm:$0xff] }
 0x9e1   :  { %v11394_v7 = vpop.eup %11393  ;;  %4362 = vst [vmem:[#allocation2] sm:$0x80] %v4354_v11  ;;  %v4356_v33 = vmul.f32 %v11392_v44, %v11384_v52  ;;  %v4768_v52 = vld [vmem:[#allocation12 + $0xe0] sm:$0xff]  ;;  %v14321_v11 = vpack.c.bf16 %v4771_v49, %v4767_v2  ;;  %v4773_v44 = vld [vmem:[#allocation12 + $0x108] sm:$0xff]  ;;  %v4799_v2 = vld [vmem:[#allocation12 + $0x1d8] sm:$0xff] }
 0x9e2   :  { %v11396_v42 = vpop.eup %11395  ;;  %4363 = vst [vmem:[#allocation2 + $0x8] sm:$0x80] %v4355_v34  ;;  %v4357_v30 = vmul.f32 %v11394_v7, %v11386_v45  ;;  %16389 = vst [vmem:[#allocation27_spill] sm:$0xff] %v14313_v61  ;;  %v4770_v45 = vld [vmem:[#allocation12 + $0xf0] sm:$0xff]  ;;  %v4777_v34 = vld [vmem:[#allocation12 + $0x128] sm:$0xff] }
 0x9e3   :  { %v11398_v40 = vpop.eup %11397  ;;  %4364 = vst [vmem:[#allocation2 + $0x10] sm:$0x80] %v4356_v33  ;;  %16390 = vst [vmem:[#allocation63_spill] sm:$0xff] %v14319_v20  ;;  %v4775_v7 = vld [vmem:[#allocation12 + $0x118] sm:$0xff]  ;;  %v14327_v10 = vpack.c.bf16 %v4770_v45, %v4766_v53  ;;  %v4801_v38 = vld [vmem:[#allocation12 + $0x1e8] sm:$0xff] }
 0x9e4   :  { %v11400_v3 = vpop.eup %11399  ;;  %4365 = vst [vmem:[#allocation2 + $0x18] sm:$0x80] %v4357_v30  ;;  %16391 = vst [vmem:[#allocation28_spill] sm:$0xff] %v14321_v11  ;;  %v4779_v33 = vld [vmem:[#allocation12 + $0x138] sm:$0xff]  ;;  %v4772_v30 = vld [vmem:[#allocation12 + $0x100] sm:$0xff] }
 0x9e5   :  { %v11402_v25 = vpop.eup %11401  ;;  %16393 = vst [vmem:[#allocation65_spill] sm:$0xff] %v14327_v10  ;;  %v14335_v22 = vpack.c.bf16 %v4779_v33, %v4775_v7  ;;  %v4803_v49 = vld [vmem:[#allocation12 + $0x1f8] sm:$0xff]  ;;  %v4796_v53 = vld [vmem:[#allocation12 + $0x1c0] sm:$0xff]  ;;  %v14375_v7 = vpack.c.bf16 %v4801_v38, %v4797_v24 }
 0x9e6   :  { %v11404_v5 = vpop.eup %11403  ;;  %v4800_v45 = vld [vmem:[#allocation12 + $0x1e0] sm:$0xff]  ;;  %v14377_v33 = vpack.c.bf16 %v4803_v49, %v4799_v2 }
 0x9e7   :  { %v11406_v12 = vpop.eup %11405  ;;  %v4358_v47 = vmul.f32 %v11404_v5, %v11396_v42  ;;  %v14325_v42 = vpack.c.bf16 %v4768_v52, %v4764_v15  ;;  %16395 = vst [vmem:[#allocation20_spill] sm:$0xff] %v14335_v22  ;;  %v14369_v52 = vpack.c.bf16 %v4794_v9, %v4790_v56  ;;  %16406 = vst [vmem:[#allocation39_spill] sm:$0xff] %v14375_v7 }
 0x9e8   :  { %v11408_v37 = vpop.eup %11407  ;;  %v4420_v19 = vld [vmem:[#allocation2] sm:$0xff]  ;;  %v4359_v39 = vmul.f32 %v11406_v12, %v11398_v40  ;;  %16407 = vst [vmem:[#allocation40_spill] sm:$0xff] %v14377_v33 }
 0x9e9   :  { %v11410_v55 = vpop.eup %11409  ;;  %4579 = vmatmul.mubr.f32.vlgmr.msra.gmra.mrb[32].mxu0 %v4420_v19  ;;  %4692 = vmatmul.mubr.f32.vlgmr.msra.gmra.mrb[32].mxu1 %v4420_v19  ;;  %4366 = vst [vmem:[#allocation2 + $0x20] sm:$0x80] %v4358_v47  ;;  %v4360_v1 = vmul.f32 %v11408_v37, %v11400_v3  ;;  %v4421_v62 = vld [vmem:[#allocation2 + $0x8] sm:$0xff]  ;;  %16392 = vst [vmem:[#allocation29_spill] sm:$0xff] %v14325_v42  ;;  %v14333_v3 = vpack.c.bf16 %v4777_v34, %v4773_v44  ;;  %v4802_v44 = vld [vmem:[#allocation12 + $0x1f0] sm:$0xff] }
 0x9ea   :  { %v4361_v21 = vmul.f32 %v11410_v55, %v11402_v25  ;;  %9843 = vmatpush1.bf16.msra.mxu0 %v14287_v58  ;;  %9875 = vmatpush1.bf16.msra.mxu1 %v14289_v4  ;;  %4367 = vst [vmem:[#allocation2 + $0x28] sm:$0x80] %v4359_v39  ;;  %v4422_v43 = vld [vmem:[#allocation2 + $0x10] sm:$0xff]  ;;  %v4776_v40 = vld [vmem:[#allocation12 + $0x120] sm:$0xff]  ;;  %v14349_v19 = vpack.c.bf16 %v4787_v29, %v4783_v6  ;;  %v4791_v55 = vld [vmem:[#allocation12 + $0x198] sm:$0xff] }
 0x9eb   :  { %4584 = vmatprep.mubr.f32.mxu0 %v16143_v8  ;;  %4697 = vmatprep.mubr.f32.mxu1 %v16143_v8  ;;  %4368 = vst [vmem:[#allocation2 + $0x30] sm:$0x80] %v4360_v1  ;;  %v4423_v17 = vld [vmem:[#allocation2 + $0x18] sm:$0xff]  ;;  %16394 = vst [vmem:[#allocation19_spill] sm:$0xff] %v14333_v3  ;;  %v4781_v25 = vld [vmem:[#allocation12 + $0x148] sm:$0xff]  ;;  %v14339_v5 = vpack.c.bf16 %v4776_v40, %v4772_v30  ;;  %v14381_v30 = vpack.c.bf16 %v4800_v45, %v4796_v53 }
 0x9ec   :  { %4369 = vst [vmem:[#allocation2 + $0x38] sm:$0x80] %v4361_v21  ;;  %9845 = vmatprep.subr.bf16.mxu0 %v14291_v41  ;;  %9877 = vmatprep.subr.bf16.mxu1 %v14293_v27  ;;  %v4780_v12 = vld [vmem:[#allocation12 + $0x140] sm:$0xff]  ;;  %v14347_v37 = vpack.c.bf16 %v4785_v46, %v4781_v25  ;;  %16399 = vst [vmem:[#allocation32_spill] sm:$0xff] %v14349_v19  ;;  %v4793_v39 = vld [vmem:[#allocation12 + $0x1a8] sm:$0xff] }
 0x9ed   :  { %4585 = vmatmul.mubr.f32.gmra.mrb[34].mxu0 %v4421_v62  ;;  %4698 = vmatmul.mubr.f32.gmra.mrb[34].mxu1 %v4421_v62  ;;  %16396 = vst [vmem:[#allocation53_spill] sm:$0xff] %v14339_v5  ;;  %v14353_v60 = vpack.c.bf16 %v4784_v18, %v4780_v12  ;;  %v4788_v1 = vld [vmem:[#allocation12 + $0x180] sm:$0xff]  ;;  %v14361_v14 = vpack.c.bf16 %v4793_v39, %v4789_v0  ;;  %16405 = vst [vmem:[#allocation38_spill] sm:$0xff] %v14369_v52 }
 0x9ee   :  { %9847 = vmatpush1.bf16.msra.mxu0 %v14297_v26  ;;  %9879 = vmatpush1.bf16.msra.mxu1 %v14299_v32  ;;  %16398 = vst [vmem:[#allocation31_spill] sm:$0xff] %v14347_v37  ;;  %v4792_v21 = vld [vmem:[#allocation12 + $0x1a0] sm:$0xff]  ;;  %v14363_v62 = vpack.c.bf16 %v4795_v51, %v4791_v55  ;;  %16408 = vst [vmem:[#allocation41_spill] sm:$0xff] %v14381_v30 }
 0x9ef   :  { %4590 = vmatprep.mubr.f32.mxu0 %v16143_v8  ;;  %4703 = vmatprep.mubr.f32.mxu1 %v16143_v8  ;;  %16400 = vst [vmem:[#allocation33_spill] sm:$0xff] %v14353_v60  ;;  %16402 = vst [vmem:[#allocation35_spill] sm:$0xff] %v14361_v14  ;;  %v14367_v15 = vpack.c.bf16 %v4792_v21, %v4788_v1  ;;  %v4492_v53 = vld [vmem:[#allocation13] sm:$0xf] }
 0x9f0   :  { %9849 = vmatprep.subr.bf16.mxu0 %v14305_v28  ;;  %9881 = vmatprep.subr.bf16.mxu1 %v14307_v59  ;;  %v4424_v47 = vld [vmem:[#allocation2 + $0x20] sm:$0xff]  ;;  %16403 = vst [vmem:[#allocation36_spill] sm:$0xff] %v14363_v62 }
 0x9f1   :  { %4591 = vmatmul.mubr.f32.gmra.mrb[36].mxu0 %v4422_v43  ;;  %4704 = vmatmul.mubr.f32.gmra.mrb[36].mxu1 %v4422_v43  ;;  %v4425_v35 = vld [vmem:[#allocation2 + $0x28] sm:$0xff]  ;;  %16404 = vst [vmem:[#allocation37_spill] sm:$0xff] %v14367_v15  ;;  %v4798_v43 = vld [vmem:[#allocation12 + $0x1d0] sm:$0xff] }
 0x9f2   :  { %9851 = vmatpush1.bf16.msra.mxu0 %v14311_v36  ;;  %9883 = vmatpush1.bf16.msra.mxu1 %v14313_v61  ;;  %v4426_v34 = vld [vmem:[#allocation2 + $0x30] sm:$0xff]  ;;  %v14383_v40 = vpack.c.bf16 %v4802_v44, %v4798_v43 }
 0x9f3   :  { %4596 = vmatprep.mubr.f32.mxu0 %v16143_v8  ;;  %4709 = vmatprep.mubr.f32.mxu1 %v16143_v8  ;;  %v4427_v63 = vld [vmem:[#allocation2 + $0x38] sm:$0xff] }
 0x9f4   :  { %9853 = vmatprep.subr.bf16.mxu0 %v14319_v20  ;;  %9885 = vmatprep.subr.bf16.mxu1 %v14321_v11  ;;  %16409 = vst [vmem:[#allocation42_spill] sm:$0xff] %v14383_v40 }
 0x9f5   :  { %4597 = vmatmul.mubr.f32.gmra.mrb[38].mxu0 %v4423_v17  ;;  %4710 = vmatmul.mubr.f32.gmra.mrb[38].mxu1 %v4423_v17 }
 0x9f6   :  { %9855 = vmatpush1.bf16.msra.mxu0 %v14325_v42  ;;  %9887 = vmatpush1.bf16.msra.mxu1 %v14327_v10 }
 0x9f7   :  { %4602 = vmatprep.mubr.f32.mxu0 %v16143_v8  ;;  %4715 = vmatprep.mubr.f32.mxu1 %v16143_v8 }
 0x9f8   :  { %9857 = vmatprep.subr.bf16.mxu0 %v14333_v3  ;;  %9889 = vmatprep.subr.bf16.mxu1 %v14335_v22 }
 0x9f9   :  { %4603 = vmatmul.mubr.f32.gmra.mrb[40].mxu0 %v4424_v47  ;;  %4716 = vmatmul.mubr.f32.gmra.mrb[40].mxu1 %v4424_v47 }
 0x9fa   :  { %9859 = vmatpush1.bf16.msra.mxu0 %v14339_v5  ;;  %9891 = vmatpush1.bf16.msra.mxu1 %v14341_v31 }
 0x9fb   :  { %4608 = vmatprep.mubr.f32.mxu0 %v16143_v8  ;;  %4721 = vmatprep.mubr.f32.mxu1 %v16143_v8 }
 0x9fc   :  { %9861 = vmatprep.subr.bf16.mxu0 %v14347_v37  ;;  %9893 = vmatprep.subr.bf16.mxu1 %v14349_v19 }
 0x9fd   :  { %4609 = vmatmul.mubr.f32.gmra.mrb[42].mxu0 %v4425_v35  ;;  %4722 = vmatmul.mubr.f32.gmra.mrb[42].mxu1 %v4425_v35 }
 0x9fe   :  { %9863 = vmatpush1.bf16.msra.mxu0 %v14353_v60  ;;  %9895 = vmatpush1.bf16.msra.mxu1 %v14355_v48 }
 0x9ff   :  { %4614 = vmatprep.mubr.f32.mxu0 %v16143_v8  ;;  %4727 = vmatprep.mubr.f32.mxu1 %v16143_v8 }
 0xa00   :  { %9865 = vmatprep.subr.bf16.mxu0 %v14361_v14  ;;  %9897 = vmatprep.subr.bf16.mxu1 %v14363_v62 }
 0xa01   :  { %4615 = vmatmul.mubr.f32.gmra.mrb[44].mxu0 %v4426_v34  ;;  %4728 = vmatmul.mubr.f32.gmra.mrb[44].mxu1 %v4426_v34 }
 0xa02   :  { %9867 = vmatpush1.bf16.msra.mxu0 %v14367_v15  ;;  %9899 = vmatpush1.bf16.msra.mxu1 %v14369_v52 }
 0xa03   :  { %4620 = vmatprep.mubr.f32.mxu0 %v16143_v8  ;;  %4733 = vmatprep.mubr.f32.mxu1 %v16143_v8 }
 0xa04   :  { %9869 = vmatprep.subr.bf16.mxu0 %v14375_v7  ;;  %9901 = vmatprep.subr.bf16.mxu1 %v14377_v33 }
 0xa05   :  { %4621 = vmatmul.mubr.f32.gmra.mrb[46].mxu0 %v4427_v63  ;;  %4734 = vmatmul.mubr.f32.gmra.mrb[46].mxu1 %v4427_v63  ;;  %v16410_v63 = vld [vmem:[#allocation46_spill] sm:$0xff] }
 0xa06   :  { %9871 = vmatpush1.bf16.msra.mxu0 %v14381_v30  ;;  %9903 = vmatpush1.bf16.msra.mxu1 %v14383_v40 }
 0xa07   :  { %4872 = vmatprep.mubr.f32.mxu0 %v16143_v8  ;;  %4943 = vmatprep.mubr.f32.mxu1 %v16143_v8 }
 0xa08   :  { %9905 = vmatprep.subr.bf16.mxu0 %v14182_v50  ;;  %9937 = vmatprep.subr.bf16.mxu1 %v14184_v13 }
 0xa09   :  { %4873 = vmatmul.mubr.f32.vlgmr.msra.gmra.mrb[48].mxu0 %v14191_v23  ;;  %4944 = vmatmul.mubr.f32.vlgmr.msra.gmra.mrb[48].mxu1 %v14191_v23  ;;  %v14434_v23 = vld [vmem:[%s15851_s8 + $0x8] sm:$0xff] }
 0xa0a   :  { %9907 = vmatpush1.bf16.msra.mxu0 %v14287_v58  ;;  %9939 = vmatpush1.bf16.msra.mxu1 %v14289_v4 }
 0xa0b   :  { %9909 = vmatprep.subr.bf16.mxu0 %v14291_v41  ;;  %9941 = vmatprep.subr.bf16.mxu1 %v14293_v27 }
 0xa0c   :  { %5341 = vmatprep.mubr.f32.mxu0 %v16143_v8  ;;  %5412 = vmatprep.mubr.f32.mxu1 %v16143_v8 }
 0xa0e   :  { %9911 = vmatpush1.bf16.msra.mxu0 %v14297_v26  ;;  %9943 = vmatpush1.bf16.msra.mxu1 %v14299_v32 }
 0xa0f   :  { %9913 = vmatprep.subr.bf16.mxu0 %v14305_v28  ;;  %9945 = vmatprep.subr.bf16.mxu1 %v14307_v59 }
 0xa12   :  { %9915 = vmatpush1.bf16.msra.mxu0 %v14311_v36  ;;  %9947 = vmatpush1.bf16.msra.mxu1 %v14313_v61  ;;  %v16422_v61 = vsub.s32 3, %v16410_v63 }
 0xa13   :  { %9917 = vmatprep.subr.bf16.mxu0 %v14319_v20  ;;  %9949 = vmatprep.subr.bf16.mxu1 %v14321_v11 }
 0xa14   :  { %v14523_v36 = vrot.slane %v4492_v53, %v16422_v61 }
 0xa16   :  { %9919 = vmatpush1.bf16.msra.mxu0 %v14325_v42  ;;  %9951 = vmatpush1.bf16.msra.mxu1 %v14327_v10 }
 0xa17   :  { %9921 = vmatprep.subr.bf16.mxu0 %v14333_v3  ;;  %9953 = vmatprep.subr.bf16.mxu1 %v14335_v22 }
 0xa1a   :  { %9923 = vmatpush1.bf16.msra.mxu0 %v14339_v5  ;;  %9955 = vmatpush1.bf16.msra.mxu1 %v14341_v31 }
 0xa1b   :  { %9925 = vmatprep.subr.bf16.mxu0 %v14347_v37  ;;  %9957 = vmatprep.subr.bf16.mxu1 %v14349_v19 }
 0xa1e   :  { %9927 = vmatpush1.bf16.msra.mxu0 %v14353_v60  ;;  %9959 = vmatpush1.bf16.msra.mxu1 %v14355_v48 }
 0xa1f   :  { %9929 = vmatprep.subr.bf16.mxu0 %v14361_v14  ;;  %9961 = vmatprep.subr.bf16.mxu1 %v14363_v62  ;;  %v16413_v62 = vsub.s32 1, %v16410_v63 }
 0xa21   :  { %v14492_v14 = vrot.slane %v4492_v53, %v16413_v62 }
 0xa22   :  { %9931 = vmatpush1.bf16.msra.mxu0 %v14367_v15  ;;  %9963 = vmatpush1.bf16.msra.mxu1 %v14369_v52  ;;  %v16412_v52 = vsub.s32 2, %v16410_v63 }
 0xa23   :  { %9933 = vmatprep.subr.bf16.mxu0 %v14375_v7  ;;  %9965 = vmatprep.subr.bf16.mxu1 %v14377_v33 }
 0xa24   :  { %v14488_v15 = vrot.slane %v4492_v53, %v16412_v52 }
 0xa26   :  { %9935 = vmatpush1.bf16.msra.mxu0 %v14381_v30  ;;  %9967 = vmatpush1.bf16.msra.mxu1 %v14383_v40 }
 0xa27   :  { %9969 = vmatprep.subr.bf16.mxu0 %v14182_v50  ;;  %10001 = vmatprep.subr.bf16.mxu1 %v14184_v13  ;;  %v16411_v13 = vsub.s32 0, %v16410_v63 }
 0xa29   :  { %v4497_v50 = vrot.slane %v4492_v53, %v16411_v13 }
 0xabc   :  { %v4580_v16 = vpop.f32.mrb[32].mxu0  ;;  %v14436_v17 = vpop.f32.mrb[32].mxu1 }
 0xabd   :  { %v14438_v25 = vpop.f32.mrb[33].mxu0  ;;  %v14440_v46 = vpop.f32.mrb[33].mxu1  ;;  %v14494_v48 = vadd.f32 %v4580_v16, %v4497_v50 }
 0xabe   :  { %v14534_v61 = vadd.f32 %v14438_v25, %v14492_v14 }
 0xabf   :  { %16414 = vst [vmem:[#allocation43_spill] sm:$0xff] %v14494_v48 }
 0xac0   :  { %v4586_v6 = vpop.f32.mrb[34].mxu0  ;;  %v14442_v29 = vpop.f32.mrb[34].mxu1  ;;  %16424 = vst [vmem:[#allocation54_spill] sm:$0xff] %v14534_v61 }
 0xac1   :  { %v14444_v12 = vpop.f32.mrb[35].mxu0  ;;  %v14446_v18 = vpop.f32.mrb[35].mxu1  ;;  %v14496_v60 = vadd.f32 %v4586_v6, %v4497_v50 }
 0xac3   :  { %16415 = vst [vmem:[#allocation44_spill] sm:$0xff] %v14496_v60 }
 0xac4   :  { %v4592_v57 = vpop.f32.mrb[36].mxu0  ;;  %v14448_v54 = vpop.f32.mrb[36].mxu1 }
 0xac5   :  { %v14450_v47 = vpop.f32.mrb[37].mxu0  ;;  %v14452_v0 = vpop.f32.mrb[37].mxu1  ;;  %v14498_v13 = vadd.f32 %v4592_v57, %v4497_v50 }
 0xac7   :  { %16416 = vst [vmem:[#allocation45_spill] sm:$0xff] %v14498_v13 }
 0xac8   :  { %v4598_v39 = vpop.f32.mrb[38].mxu0  ;;  %v14454_v55 = vpop.f32.mrb[38].mxu1 }
 0xac9   :  { %v14456_v51 = vpop.f32.mrb[39].mxu0  ;;  %v14458_v1 = vpop.f32.mrb[39].mxu1  ;;  %v14500_v19 = vadd.f32 %v4598_v39, %v4497_v50 }
 0xacb   :  { %16417 = vst [vmem:[#allocation47_spill] sm:$0xff] %v14500_v19 }
 0xacc   :  { %v4604_v21 = vpop.f32.mrb[40].mxu0  ;;  %v14460_v56 = vpop.f32.mrb[40].mxu1 }
 0xacd   :  { %v14462_v9 = vpop.f32.mrb[41].mxu0  ;;  %v14464_v35 = vpop.f32.mrb[41].mxu1  ;;  %v14502_v37 = vadd.f32 %v4604_v21, %v4497_v50 }
 0xacf   :  { %16418 = vst [vmem:[#allocation48_spill] sm:$0xff] %v14502_v37 }
 0xad0   :  { %v4610_v24 = vpop.f32.mrb[42].mxu0  ;;  %v14466_v38 = vpop.f32.mrb[42].mxu1 }
 0xad1   :  { %v14468_v2 = vpop.f32.mrb[43].mxu0  ;;  %v14470_v49 = vpop.f32.mrb[43].mxu1  ;;  %v14504_v31 = vadd.f32 %v4610_v24, %v4497_v50 }
 0xad3   :  { %16419 = vst [vmem:[#allocation49_spill] sm:$0xff] %v14504_v31 }
 0xad4   :  { %v4616_v45 = vpop.f32.mrb[44].mxu0  ;;  %v14472_v43 = vpop.f32.mrb[44].mxu1 }
 0xad5   :  { %v14474_v44 = vpop.f32.mrb[45].mxu0  ;;  %v14476_v34 = vpop.f32.mrb[45].mxu1  ;;  %v14506_v5 = vadd.f32 %v4616_v45, %v4497_v50 }
 0xad7   :  { %16420 = vst [vmem:[#allocation50_spill] sm:$0xff] %v14506_v5 }
 0xad8   :  { %v4622_v40 = vpop.f32.mrb[46].mxu0  ;;  %v14480_v30 = vpop.f32.mrb[46].mxu1 }
 0xad9   :  { %v14482_v33 = vpop.f32.mrb[47].mxu0  ;;  %v14484_v7 = vpop.f32.mrb[47].mxu1  ;;  %v14508_v52 = vadd.f32 %v4622_v40, %v4497_v50 }
 0xadb   :  { %16421 = vst [vmem:[#allocation51_spill] sm:$0xff] %v14508_v52 }
 0xadc   :  { %v4874_v22 = vpop.f32.mrb[48].mxu0  ;;  %v14510_v3 = vpop.f32.mrb[48].mxu1 }
 0xadd   :  { %v4954_v62 = vrot.slane %v4874_v22, 1  ;;  %v4958_v16 = vrot.slane %v4874_v22, 2  ;;  %v4962_v10 = vrot.slane %v4874_v22, 3  ;;  %v4966_v6 = vrot.slane %v4874_v22, 4  ;;  %v14512_v42 = vpop.f32.mrb[49].mxu0  ;;  %v14514_v57 = vpop.f32.mrb[49].mxu1 }
 0xade   :  { %v4970_v39 = vrot.slane %v4874_v22, 5  ;;  %v4974_v21 = vrot.slane %v4874_v22, 6  ;;  %v4978_v11 = vrot.slane %v4874_v22, 7  ;;  %v5014_v24 = vadd.f32 %v4874_v22, %v14494_v48 }
 0xadf   :  { %v5018_v45 = vadd.f32 %v4954_v62, %v14496_v60  ;;  %v5022_v50 = vadd.f32 %v4958_v16, %v14498_v13  ;;  %v5026_v40 = vadd.f32 %v4962_v10, %v14500_v19  ;;  %v5030_v20 = vadd.f32 %v4966_v6, %v14502_v37 }
 0xae0   :  { %v5034_v59 = vadd.f32 %v4970_v39, %v14504_v31  ;;  %v5038_v28 = vadd.f32 %v4974_v21, %v14506_v5  ;;  %v8955_v32 = vmul.f32 -1.442695, %v5014_v24  ;;  %v5042_v26 = vadd.f32 %v4978_v11, %v14508_v52 }
 0xae1   :  { %v8956_v22 = vmul.f32 -1.442695, %v5018_v45  ;;  %v8957_v48 = vmul.f32 -1.442695, %v5022_v50  ;;  %v8958_v62 = vmul.f32 -1.442695, %v5026_v40  ;;  %v14530_v16 = vadd.f32 %v14436_v17, %v14488_v15 }
 0xae2   :  { %11411 = vpow2.f32 %v8955_v32  ;;  %v8959_v10 = vmul.f32 -1.442695, %v5030_v20  ;;  %v8960_v53 = vmul.f32 -1.442695, %v5034_v59  ;;  %v4956_v63 = vrot.slane %v14510_v3, 1 }
 0xae3   :  { %16423 = vst [vmem:[#allocation52_spill] sm:$0xff] %v14530_v16  ;;  %11413 = vpow2.f32 %v8956_v22  ;;  %v14539_v11 = vadd.f32 %v14440_v46, %v14523_v36  ;;  %v8961_v6 = vmul.f32 -1.442695, %v5038_v28  ;;  %v4960_v39 = vrot.slane %v14510_v3, 2 }
 0xae4   :  { %11415 = vpow2.f32 %v8957_v48  ;;  %v14544_v32 = vadd.f32 %v14442_v29, %v14488_v15  ;;  %v8962_v20 = vmul.f32 -1.442695, %v5042_v26  ;;  %v4964_v17 = vrot.slane %v14510_v3, 3 }
 0xae5   :  { %16425 = vst [vmem:[#allocation56_spill] sm:$0xff] %v14539_v11  ;;  %11417 = vpow2.f32 %v8958_v62  ;;  %v14549_v59 = vadd.f32 %v14448_v54, %v14488_v15  ;;  %v4968_v25 = vrot.slane %v14510_v3, 4  ;;  %v5016_v28 = vadd.f32 %v14510_v3, %v14530_v16 }
 0xae6   :  { %16426 = vst [vmem:[#allocation57_spill] sm:$0xff] %v14544_v32  ;;  %11419 = vpow2.f32 %v8959_v10  ;;  %v14556_v48 = vadd.f32 %v14444_v12, %v14492_v14  ;;  %v14560_v46 = vadd.f32 %v14454_v55, %v14488_v15  ;;  %v5020_v26 = vadd.f32 %v4956_v63, %v14544_v32 }
 0xae7   :  { %16427 = vst [vmem:[#allocation58_spill] sm:$0xff] %v14549_v59  ;;  %11421 = vpow2.f32 %v8960_v53  ;;  %v14565_v29 = vadd.f32 %v14446_v18, %v14523_v36  ;;  %v14569_v54 = vadd.f32 %v14460_v56, %v14488_v15  ;;  %v5024_v21 = vadd.f32 %v4960_v39, %v14549_v59 }
 0xae8   :  { %16428 = vst [vmem:[#allocation61_spill] sm:$0xff] %v14556_v48  ;;  %16429 = vst [vmem:[#allocation59_spill] sm:$0xff] %v14560_v46  ;;  %11423 = vpow2.f32 %v8961_v6  ;;  %v14574_v12 = vadd.f32 %v14450_v47, %v14492_v14  ;;  %v14578_v55 = vadd.f32 %v14452_v0, %v14523_v36  ;;  %v5028_v24 = vadd.f32 %v4964_v17, %v14560_v46 }
 0xae9   :  { %16430 = vst [vmem:[#allocation68_spill] sm:$0xff] %v14569_v54  ;;  %11425 = vpow2.f32 %v8962_v20  ;;  %v14583_v18 = vadd.f32 %v14456_v51, %v14492_v14  ;;  %v14587_v56 = vadd.f32 %v14458_v1, %v14523_v36  ;;  %v5032_v45 = vadd.f32 %v4968_v25, %v14569_v54 }
 0xaea   :  { %16431 = vst [vmem:[#allocation69_spill] sm:$0xff] %v14574_v12  ;;  %11427 = vtanh.f32 %v5016_v28  ;;  %v14592_v47 = vadd.f32 %v14462_v9, %v14492_v14  ;;  %v14596_v0 = vadd.f32 %v14464_v35, %v14523_v36  ;;  %v4972_v50 = vrot.slane %v14510_v3, 5 }
 0xaeb   :  { %16432 = vst [vmem:[#allocation55_spill] sm:$0xff] %v14583_v18  ;;  %11429 = vtanh.f32 %v5020_v26  ;;  %v14601_v40 = vadd.f32 %v14466_v38, %v14488_v15  ;;  %v14605_v1 = vadd.f32 %v14468_v2, %v14492_v14  ;;  %v4976_v22 = vrot.slane %v14510_v3, 6 }
 0xaec   :  { %16433 = vst [vmem:[#allocation62_spill] sm:$0xff] %v14592_v47  ;;  %v11412_v51 = vpop.eup %11411  ;;  %11431 = vtanh.f32 %v5024_v21  ;;  %v14610_v35 = vadd.f32 %v14472_v43, %v14488_v15  ;;  %v14614_v62 = vadd.f32 %v14474_v44, %v14492_v14  ;;  %v14618_v53 = vadd.f32 %v14480_v30, %v14488_v15 }
 0xaed   :  { %16434 = vst [vmem:[#allocation64_spill] sm:$0xff] %v14601_v40  ;;  %16435 = vst [vmem:[#allocation72_spill] sm:$0xff] %v14605_v1  ;;  %v11414_v9 = vpop.eup %11413  ;;  %v5070_v10 = vadd.f32 1.0, %v11412_v51  ;;  %11433 = vtanh.f32 %v5028_v24  ;;  %v4980_v63 = vrot.slane %v14510_v3, 7  ;;  %v5036_v43 = vadd.f32 %v4972_v50, %v14601_v40 }
 0xaee   :  { %16436 = vst [vmem:[#allocation66_spill] sm:$0xff] %v14610_v35  ;;  %16437 = vst [vmem:[#allocation67_spill] sm:$0xff] %v14614_v62  ;;  %v11416_v38 = vpop.eup %11415  ;;  %v5071_v2 = vadd.f32 1.0, %v11414_v9  ;;  %11435 = vtanh.f32 %v5032_v45  ;;  %v4955_v20 = vrot.slane %v14512_v42, 1  ;;  %v5040_v25 = vadd.f32 %v4976_v22, %v14610_v35 }
 0xaef   :  { %16438 = vst [vmem:[#allocation70_spill] sm:$0xff] %v14618_v53  ;;  %v11418_v6 = vpop.eup %11417  ;;  %v5072_v39 = vadd.f32 1.0, %v11416_v38  ;;  %11437 = vrcp.f32 %v5070_v10  ;;  %v4959_v28 = vrot.slane %v14512_v42, 2  ;;  %v4963_v3 = vrot.slane %v14512_v42, 3 }
 0xaf0   :  { %v11420_v44 = vpop.eup %11419  ;;  %v5073_v17 = vadd.f32 1.0, %v11418_v6  ;;  %11439 = vrcp.f32 %v5071_v2  ;;  %v4967_v26 = vrot.slane %v14512_v42, 4  ;;  %v4971_v45 = vrot.slane %v14512_v42, 5 }
 0xaf1   :  { %v11422_v15 = vpop.eup %11421  ;;  %v5074_v30 = vadd.f32 1.0, %v11420_v44  ;;  %11441 = vrcp.f32 %v5072_v39  ;;  %v5015_v50 = vadd.f32 %v14512_v42, %v14534_v61  ;;  %v4975_v22 = vrot.slane %v14512_v42, 6 }
 0xaf2   :  { %v11424_v21 = vpop.eup %11423  ;;  %v5075_v24 = vadd.f32 1.0, %v11422_v15  ;;  %11443 = vrcp.f32 %v5073_v17  ;;  %v5019_v10 = vadd.f32 %v4955_v20, %v14556_v48  ;;  %v4979_v6 = vrot.slane %v14512_v42, 7 }
 0xaf3   :  { %v11426_v51 = vpop.eup %11425  ;;  %v5076_v9 = vadd.f32 1.0, %v11424_v21  ;;  %11445 = vrcp.f32 %v5074_v30  ;;  %v5023_v39 = vadd.f32 %v4959_v28, %v14574_v12  ;;  %v5044_v17 = vadd.f32 %v4980_v63, %v14618_v53 }
 0xaf4   :  { %v11428_v38 = vpop.eup %11427  ;;  %v5077_v2 = vadd.f32 1.0, %v11426_v51  ;;  %11447 = vrcp.f32 %v5075_v24  ;;  %v5027_v15 = vadd.f32 %v4963_v3, %v14583_v18  ;;  %v5031_v21 = vadd.f32 %v4967_v26, %v14592_v47 }
 0xaf5   :  { %v11430_v44 = vpop.eup %11429  ;;  %11449 = vrcp.f32 %v5076_v9  ;;  %v14639_v61 = vadd.f32 %v14482_v33, %v14492_v14  ;;  %v5035_v20 = vadd.f32 %v4971_v45, %v14605_v1  ;;  %v8963_v24 = vmul.f32 -1.442695, %v5015_v50 }
 0xaf6   :  { %v11432_v30 = vpop.eup %11431  ;;  %11451 = vrcp.f32 %v5077_v2  ;;  %v5039_v28 = vadd.f32 %v4975_v22, %v14614_v62  ;;  %v8964_v51 = vmul.f32 -1.442695, %v5019_v10  ;;  %v4957_v63 = vrot.slane %v14514_v57, 1 }
 0xaf7   :  { %16439 = vst [vmem:[#allocation71_spill] sm:$0xff] %v14639_v61  ;;  %v11434_v42 = vpop.eup %11433  ;;  %11453 = vtanh.f32 %v5036_v43  ;;  %v5043_v3 = vadd.f32 %v4979_v6, %v14639_v61  ;;  %v8965_v26 = vmul.f32 -1.442695, %v5023_v39  ;;  %v4961_v47 = vrot.slane %v14514_v57, 2 }
 0xaf8   :  { %v11436_v9 = vpop.eup %11435  ;;  %11455 = vtanh.f32 %v5040_v25  ;;  %v8966_v33 = vmul.f32 -1.442695, %v5027_v15  ;;  %v8967_v2 = vmul.f32 -1.442695, %v5031_v21  ;;  %v4965_v45 = vrot.slane %v14514_v57, 3 }
 0xaf9   :  { %v11438_v14 = vpop.eup %11437  ;;  %11457 = vtanh.f32 %v5044_v17  ;;  %v4969_v22 = vrot.slane %v14514_v57, 4  ;;  %v5017_v25 = vadd.f32 %v14514_v57, %v14539_v11  ;;  %v8968_v39 = vmul.f32 -1.442695, %v5035_v20 }
 0xafa   :  { %v11440_v50 = vpop.eup %11439  ;;  %v14647_v43 = vmul.f32 %v11438_v14, %v11428_v38  ;;  %11459 = vpow2.f32 %v8963_v24  ;;  %v5021_v17 = vadd.f32 %v4957_v63, %v14565_v29  ;;  %v8969_v61 = vmul.f32 -1.442695, %v5039_v28 }
 0xafb   :  { %v11442_v10 = vpop.eup %11441  ;;  %v14652_v6 = vmul.f32 %v11440_v50, %v11430_v44  ;;  %11461 = vpow2.f32 %v8964_v51  ;;  %v5025_v38 = vadd.f32 %v4961_v47, %v14578_v55  ;;  %v8970_v14 = vmul.f32 -1.442695, %v5043_v3 }
 0xafc   :  { %v11444_v15 = vpop.eup %11443  ;;  %v14655_v21 = vmul.f32 %v11442_v10, %v11432_v30  ;;  %11463 = vpow2.f32 %v8965_v26  ;;  %v5029_v62 = vadd.f32 %v4965_v45, %v14587_v56  ;;  %v5033_v20 = vadd.f32 %v4969_v22, %v14596_v0 }
 0xafd   :  { %v11446_v24 = vpop.eup %11445  ;;  %11465 = vpow2.f32 %v8966_v33  ;;  %v14659_v11 = vmul.f32 %v11444_v15, %v11434_v42  ;;  %v8971_v51 = vmul.f32 -1.442695, %v5017_v25  ;;  %v8972_v26 = vmul.f32 -1.442695, %v5021_v17 }
 0xafe   :  { %v11448_v44 = vpop.eup %11447  ;;  %11467 = vpow2.f32 %v8967_v2  ;;  %v14662_v63 = vmul.f32 %v11446_v24, %v11436_v9  ;;  %v8973_v47 = vmul.f32 -1.442695, %v5025_v38  ;;  %v8974_v3 = vmul.f32 -1.442695, %v5029_v62 }
 0xaff   :  { %v11450_v30 = vpop.eup %11449  ;;  %11469 = vpow2.f32 %v8968_v39  ;;  %v8975_v42 = vmul.f32 -1.442695, %v5033_v20  ;;  %v4973_v22 = vrot.slane %v14514_v57, 5  ;;  %v4977_v10 = vrot.slane %v14514_v57, 6 }
 0xb00   :  { %v11452_v28 = vpop.eup %11451  ;;  %11471 = vpow2.f32 %v8969_v61  ;;  %v14674_v62 = vadd.f32 %v14470_v49, %v14523_v36  ;;  %v14678_v38 = vadd.f32 %v14476_v34, %v14523_v36  ;;  %v4981_v34 = vrot.slane %v14514_v57, 7 }
 0xb01   :  { %v11454_v50 = vpop.eup %11453  ;;  %11473 = vpow2.f32 %v8970_v14 }
 0xb02   :  { %v11456_v33 = vpop.eup %11455  ;;  %11475 = vpow2.f32 %v8971_v51  ;;  %v14664_v45 = vmul.f32 %v11454_v50, %v11448_v44  ;;  %v5037_v20 = vadd.f32 %v4973_v22, %v14674_v62  ;;  %v5041_v49 = vadd.f32 %v4977_v10, %v14678_v38 }
 0xb03   :  { %v11458_v2 = vpop.eup %11457  ;;  %11477 = vpow2.f32 %v8972_v26  ;;  %v14667_v9 = vmul.f32 %v11456_v33, %v11450_v30  ;;  %v14685_v22 = vadd.f32 %v14484_v7, %v14523_v36  ;;  %v5200_v7 = vrot.slane %v14434_v23, 2 }
 0xb04   :  { %v11460_v25 = vpop.eup %11459  ;;  %11479 = vpow2.f32 %v8973_v47  ;;  %v14670_v61 = vmul.f32 %v11458_v2, %v11452_v28  ;;  %v8977_v10 = vmul.f32 -1.442695, %v5041_v49 }
 0xb05   :  { %v11462_v39 = vpop.eup %11461  ;;  %v5118_v17 = vadd.f32 1.0, %v11460_v25  ;;  %11481 = vpow2.f32 %v8974_v3 }
 0xb06   :  { %v11464_v15 = vpop.eup %11463  ;;  %v5119_v24 = vadd.f32 1.0, %v11462_v39  ;;  %11483 = vpow2.f32 %v8975_v42  ;;  %v8976_v42 = vmul.f32 -1.442695, %v5037_v20  ;;  %v5199_v20 = vrot.slane %v14434_v23, 1 }
 0xb07   :  { %v11466_v14 = vpop.eup %11465  ;;  %v5120_v44 = vadd.f32 1.0, %v11464_v15  ;;  %11485 = vrcp.f32 %v5118_v17 }
 0xb08   :  { %v11468_v51 = vpop.eup %11467  ;;  %v5121_v30 = vadd.f32 1.0, %v11466_v14  ;;  %11487 = vrcp.f32 %v5119_v24  ;;  %v5045_v24 = vadd.f32 %v4981_v34, %v14685_v22  ;;  %v5202_v34 = vrot.slane %v14434_v23, 4 }
 0xb09   :  { %v11470_v26 = vpop.eup %11469  ;;  %v5122_v28 = vadd.f32 1.0, %v11468_v51  ;;  %11489 = vrcp.f32 %v5120_v44 }
 0xb0a   :  { %v11472_v47 = vpop.eup %11471  ;;  %v5123_v50 = vadd.f32 1.0, %v11470_v26  ;;  %11491 = vrcp.f32 %v5121_v30  ;;  %v5201_v26 = vrot.slane %v14434_v23, 3 }
 0xb0b   :  { %v11474_v3 = vpop.eup %11473  ;;  %v5124_v33 = vadd.f32 1.0, %v11472_v47  ;;  %11493 = vrcp.f32 %v5122_v28 }
 0xb0c   :  { %v11476_v2 = vpop.eup %11475  ;;  %v5125_v25 = vadd.f32 1.0, %v11474_v3  ;;  %11495 = vrcp.f32 %v5123_v50  ;;  %v8978_v50 = vmul.f32 -1.442695, %v5045_v24 }
 0xb0d   :  { %v11478_v39 = vpop.eup %11477  ;;  %11497 = vrcp.f32 %v5124_v33  ;;  %v5174_v17 = vadd.f32 1.0, %v11476_v2  ;;  %v5203_v33 = vrot.slane %v14434_v23, 5 }
 0xb0e   :  { %v11480_v15 = vpop.eup %11479  ;;  %11499 = vrcp.f32 %v5125_v25  ;;  %v5175_v57 = vadd.f32 1.0, %v11478_v39  ;;  %v5204_v25 = vrot.slane %v14434_v23, 6 }
 0xb0f   :  { %v11482_v14 = vpop.eup %11481  ;;  %11501 = vpow2.f32 %v8976_v42  ;;  %v5176_v44 = vadd.f32 1.0, %v11480_v15  ;;  %v5205_v15 = vrot.slane %v14434_v23, 7 }
 0xb10   :  { %v11484_v51 = vpop.eup %11483  ;;  %11503 = vpow2.f32 %v8977_v10  ;;  %v5177_v36 = vadd.f32 1.0, %v11482_v14 }
 0xb11   :  { %v11486_v30 = vpop.eup %11485  ;;  %v5178_v49 = vadd.f32 1.0, %v11484_v51  ;;  %11505 = vrcp.f32 %v5174_v17 }
 0xb12   :  { %v11488_v28 = vpop.eup %11487  ;;  %v5214_v47 = vmul.f32 %v11486_v30, %v14434_v23  ;;  %11507 = vrcp.f32 %v5175_v57 }
 0xb13   :  { %v11490_v3 = vpop.eup %11489  ;;  %11509 = vrcp.f32 %v5176_v44  ;;  %v5215_v42 = vmul.f32 %v11488_v28, %v5199_v20 }
 0xb14   :  { %v11492_v2 = vpop.eup %11491  ;;  %11511 = vrcp.f32 %v5177_v36  ;;  %v5216_v10 = vmul.f32 %v11490_v3, %v5200_v7  ;;  %v14696_v39 = vadd.f32 %v14647_v43, %v5214_v47 }
 0xb15   :  { %v11494_v17 = vpop.eup %11493  ;;  %11513 = vrcp.f32 %v5178_v49  ;;  %v5217_v24 = vmul.f32 %v11492_v2, %v5201_v26  ;;  %v14700_v57 = vadd.f32 %v14652_v6, %v5215_v42 }
 0xb16   :  { %v11496_v14 = vpop.eup %11495  ;;  %11515 = vpow2.f32 %v8978_v50  ;;  %v5218_v44 = vmul.f32 %v11494_v17, %v5202_v34  ;;  %v14703_v20 = vadd.f32 %v14655_v21, %v5216_v10 }
 0xb17   :  { %v11498_v51 = vpop.eup %11497  ;;  %v5219_v36 = vmul.f32 %v11496_v14, %v5203_v33  ;;  %v14706_v7 = vadd.f32 %v14659_v11, %v5217_v24  ;;  %11517 = vtanh.f32 %v14696_v39 }
 0xb18   :  { %v11500_v43 = vpop.eup %11499  ;;  %v5220_v30 = vmul.f32 %v11498_v51, %v5204_v25  ;;  %v14710_v23 = vadd.f32 %v14662_v63, %v5218_v44  ;;  %11519 = vtanh.f32 %v14700_v57 }
 0xb19   :  { %v11502_v6 = vpop.eup %11501  ;;  %v5221_v49 = vmul.f32 %v11500_v43, %v5205_v15  ;;  %v14714_v26 = vadd.f32 %v14664_v45, %v5219_v36  ;;  %11521 = vtanh.f32 %v14703_v20 }
 0xb1a   :  { %v11504_v21 = vpop.eup %11503  ;;  %v5179_v28 = vadd.f32 1.0, %v11502_v6  ;;  %v14718_v11 = vadd.f32 %v14667_v9, %v5220_v30  ;;  %11523 = vtanh.f32 %v14706_v7 }
 0xb1b   :  { %v11506_v47 = vpop.eup %11505  ;;  %v5180_v50 = vadd.f32 1.0, %v11504_v21  ;;  %v14722_v63 = vadd.f32 %v14670_v61, %v5221_v49  ;;  %11525 = vtanh.f32 %v14710_v23 }
 0xb1c   :  { %v11508_v34 = vpop.eup %11507  ;;  %11527 = vrcp.f32 %v5179_v28 }
 0xb1d   :  { %v11510_v45 = vpop.eup %11509  ;;  %11529 = vrcp.f32 %v5180_v50 }
 0xb1e   :  { %v11512_v3 = vpop.eup %11511  ;;  %11531 = vtanh.f32 %v14714_v26 }
 0xb1f   :  { %v11514_v33 = vpop.eup %11513  ;;  %11533 = vtanh.f32 %v14718_v11 }
 0xb20   :  { %v11516_v9 = vpop.eup %11515  ;;  %11535 = vtanh.f32 %v14722_v63 }
 0xb21   :  { %v11518_v42 = vpop.eup %11517  ;;  %v5181_v2 = vadd.f32 1.0, %v11516_v9 }
 0xb22   :  { %v11520_v25 = vpop.eup %11519  ;;  %v5246_v61 = vmul.f32 %v11518_v42, %v11506_v47 }
 0xb23   :  { %v11522_v10 = vpop.eup %11521  ;;  %11537 = vrcp.f32 %v5181_v2  ;;  %v5247_v17 = vmul.f32 %v11520_v25, %v11508_v34 }
 0xb24   :  { %v11524_v15 = vpop.eup %11523  ;;  %v5248_v24 = vmul.f32 %v11522_v10, %v11510_v45 }
 0xb25   :  { %v11526_v14 = vpop.eup %11525  ;;  %v5249_v44 = vmul.f32 %v11524_v15, %v11512_v3  ;;  %v5262_v51 = vrot.slane %v5247_v17, 7 }
 0xb26   :  { %v11528_v36 = vpop.eup %11527  ;;  %v5250_v43 = vmul.f32 %v11526_v14, %v11514_v33  ;;  %v5264_v30 = vrot.slane %v5248_v24, 6 }
 0xb27   :  { %v11530_v6 = vpop.eup %11529  ;;  %v5263_v49 = vsel %vm977_vm0, %v5262_v51, %v5246_v61  ;;  %v5266_v21 = vrot.slane %v5249_v44, 5  ;;  %v16440_v44 = vld [vmem:[#allocation22_spill] sm:$0xff]  ;;  %v16441_v51 = vld [vmem:[#allocation23_spill] sm:$0xff] }
 0xb28   :  { %v11532_v28 = vpop.eup %11531  ;;  %v5265_v50 = vsel %vm980_vm1, %v5264_v30, %v5263_v49  ;;  %v5268_v9 = vrot.slane %v5250_v43, 4  ;;  %v16443_v43 = vld [vmem:[#allocation25_spill] sm:$0xff]  ;;  %v16444_v30 = vld [vmem:[#allocation26_spill] sm:$0xff]  ;;  %v16446_v49 = vld [vmem:[#allocation63_spill] sm:$0xff] }
 0xb29   :  { %v11534_v47 = vpop.eup %11533  ;;  %v5251_v42 = vmul.f32 %v11532_v28, %v11528_v36  ;;  %v5267_v34 = vsel %vm983_vm2, %v5266_v21, %v5265_v50  ;;  %v16442_v36 = vld [vmem:[#allocation24_spill] sm:$0xff]  ;;  %v16448_v28 = vld [vmem:[#allocation29_spill] sm:$0xff] }
 0xb2a   :  { %v5252_v2 = vmul.f32 %v11534_v47, %v11530_v6  ;;  %v5269_v45 = vsel %vm986_vm3, %v5268_v9, %v5267_v34  ;;  %v11536_v3 = vpop.eup %11535  ;;  %v16445_v6 = vld [vmem:[#allocation27_spill] sm:$0xff]  ;;  %v16447_v21 = vld [vmem:[#allocation28_spill] sm:$0xff]  ;;  %v16449_v50 = vld [vmem:[#allocation65_spill] sm:$0xff] }
 0xb2b   :  { %v5270_v25 = vrot.slane %v5251_v42, 3  ;;  %v16450_v9 = vld [vmem:[#allocation19_spill] sm:$0xff]  ;;  %v16451_v47 = vld [vmem:[#allocation20_spill] sm:$0xff]  ;;  %v16452_v42 = vld [vmem:[#allocation53_spill] sm:$0xff] }
 0xb2c   :  { %v5272_v10 = vrot.slane %v5252_v2, 2  ;;  %v16453_v34 = vld [vmem:[#allocation30_spill] sm:$0xff]  ;;  %v16454_v2 = vld [vmem:[#allocation31_spill] sm:$0xff] }
 0xb2d   :  { %v11538_v33 = vpop.eup %11537  ;;  %v5271_v17 = vsel %vm989_vm4, %v5270_v25, %v5269_v45  ;;  %v16455_v45 = vld [vmem:[#allocation32_spill] sm:$0xff]  ;;  %v16457_v25 = vld [vmem:[#allocation34_spill] sm:$0xff] }
 0xb2e   :  { %v5253_v15 = vmul.f32 %v11538_v33, %v11536_v3  ;;  %v5273_v61 = vsel %vm992_vm5, %v5272_v10, %v5271_v17  ;;  %v16456_v3 = vld [vmem:[#allocation33_spill] sm:$0xff]  ;;  %v16458_v10 = vld [vmem:[#allocation35_spill] sm:$0xff]  ;;  %v16459_v33 = vld [vmem:[#allocation36_spill] sm:$0xff] }
 0xb2f   :  { %v16460_v17 = vld [vmem:[#allocation37_spill] sm:$0xff] }
 0xb30   :  { %v5274_v24 = vrot.slane %v5253_v15, 1  ;;  %v16461_v15 = vld [vmem:[#allocation38_spill] sm:$0xff] }
 0xb32   :  { %v5275_v14 = vsel %vm995_vm6, %v5274_v24, %v5273_v61  ;;  %v16462_v61 = vld [vmem:[#allocation39_spill] sm:$0xff]  ;;  %v16463_v24 = vld [vmem:[#allocation40_spill] sm:$0xff] }
 0xb33   :  { %5342 = vmatmul.mubr.f32.vlgmr.msra.gmra.mrb[50].mxu0 %v5275_v14  ;;  %5413 = vmatmul.mubr.f32.vlgmr.msra.gmra.mrb[50].mxu1 %v5275_v14  ;;  %v16464_v14 = vld [vmem:[#allocation41_spill] sm:$0xff] }
 0xb34   :  { %9971 = vmatpush1.bf16.msra.mxu0 %v14287_v58  ;;  %10003 = vmatpush1.bf16.msra.mxu1 %v14289_v4 }
 0xb35   :  { %9973 = vmatprep.subr.bf16.mxu0 %v14291_v41  ;;  %10005 = vmatprep.subr.bf16.mxu1 %v14293_v27 }
 0xb36   :  { %5818 = vmatprep.mubr.f32.mxu0 %v16143_v8  ;;  %5889 = vmatprep.mubr.f32.mxu1 %v16143_v8 }
 0xb38   :  { %9975 = vmatpush1.bf16.msra.mxu0 %v16440_v44  ;;  %10007 = vmatpush1.bf16.msra.mxu1 %v16441_v51 }
 0xb39   :  { %9977 = vmatprep.subr.bf16.mxu0 %v16442_v36  ;;  %10009 = vmatprep.subr.bf16.mxu1 %v16443_v43 }
 0xb3c   :  { %9979 = vmatpush1.bf16.msra.mxu0 %v16444_v30  ;;  %10011 = vmatpush1.bf16.msra.mxu1 %v16445_v6 }
 0xb3d   :  { %9981 = vmatprep.subr.bf16.mxu0 %v16446_v49  ;;  %10013 = vmatprep.subr.bf16.mxu1 %v16447_v21 }
 0xb40   :  { %9983 = vmatpush1.bf16.msra.mxu0 %v16448_v28  ;;  %10015 = vmatpush1.bf16.msra.mxu1 %v16449_v50 }
 0xb41   :  { %9985 = vmatprep.subr.bf16.mxu0 %v16450_v9  ;;  %10017 = vmatprep.subr.bf16.mxu1 %v16451_v47  ;;  %v16468_v9 = vld [vmem:[#allocation43_spill] sm:$0xff] }
 0xb44   :  { %9987 = vmatpush1.bf16.msra.mxu0 %v16452_v42  ;;  %10019 = vmatpush1.bf16.msra.mxu1 %v16453_v34 }
 0xb45   :  { %9989 = vmatprep.subr.bf16.mxu0 %v16454_v2  ;;  %10021 = vmatprep.subr.bf16.mxu1 %v16455_v45  ;;  %v16465_v2 = vld [vmem:[#allocation42_spill] sm:$0xff]  ;;  %v16466_v45 = vld [vmem:[#allocation60_spill] sm:$0xff] }
 0xb48   :  { %9991 = vmatpush1.bf16.msra.mxu0 %v16456_v3  ;;  %10023 = vmatpush1.bf16.msra.mxu1 %v16457_v25  ;;  %v16467_v3 = vld [vmem:[#allocation21_spill] sm:$0xff] }
 0xb49   :  { %9993 = vmatprep.subr.bf16.mxu0 %v16458_v10  ;;  %10025 = vmatprep.subr.bf16.mxu1 %v16459_v33 }
 0xb4c   :  { %9995 = vmatpush1.bf16.msra.mxu0 %v16460_v17  ;;  %10027 = vmatpush1.bf16.msra.mxu1 %v16461_v15 }
 0xb4d   :  { %9997 = vmatprep.subr.bf16.mxu0 %v16462_v61  ;;  %10029 = vmatprep.subr.bf16.mxu1 %v16463_v24 }
 0xb50   :  { %9999 = vmatpush1.bf16.msra.mxu0 %v16464_v14  ;;  %10031 = vmatpush1.bf16.msra.mxu1 %v16465_v2 }
 0xb51   :  { %10033 = vmatprep.subr.bf16.mxu0 %v16466_v45  ;;  %10065 = vmatprep.subr.bf16.mxu1 %v16467_v3 }
 0xc06   :  { %v5343_v25 = vpop.f32.mrb[50].mxu0  ;;  %v14769_v10 = vpop.f32.mrb[50].mxu1 }
 0xc07   :  { %v5423_v33 = vrot.slane %v5343_v25, 7  ;;  %v5427_v34 = vrot.slane %v5343_v25, 1  ;;  %v5431_v17 = vrot.slane %v5343_v25, 2  ;;  %v5435_v42 = vrot.slane %v5343_v25, 3  ;;  %v14771_v15 = vpop.f32.mrb[51].mxu0  ;;  %v14773_v61 = vpop.f32.mrb[51].mxu1 }
 0xc08   :  { %v5439_v24 = vrot.slane %v5343_v25, 4  ;;  %v5443_v47 = vrot.slane %v5343_v25, 5  ;;  %v5447_v14 = vrot.slane %v5343_v25, 6  ;;  %v5487_v2 = vadd.f32 %v5343_v25, %v14496_v60 }
 0xc09   :  { %v5483_v45 = vadd.f32 %v5423_v33, %v16468_v9  ;;  %v5491_v3 = vadd.f32 %v5427_v34, %v14498_v13  ;;  %v5495_v50 = vadd.f32 %v5431_v17, %v14500_v19  ;;  %v5499_v28 = vadd.f32 %v5435_v42, %v14502_v37 }
 0xc0a   :  { %v5503_v21 = vadd.f32 %v5439_v24, %v14504_v31  ;;  %v5507_v49 = vadd.f32 %v5443_v47, %v14506_v5  ;;  %v8980_v6 = vmul.f32 -1.442695, %v5487_v2  ;;  %v5511_v30 = vadd.f32 %v5447_v14, %v14508_v52 }
 0xc0b   :  { %v8979_v43 = vmul.f32 -1.442695, %v5483_v45  ;;  %v8981_v36 = vmul.f32 -1.442695, %v5491_v3  ;;  %v8982_v51 = vmul.f32 -1.442695, %v5495_v50 }
 0xc0c   :  { %11539 = vpow2.f32 %v8980_v6  ;;  %v8983_v25 = vmul.f32 -1.442695, %v5499_v28  ;;  %v8984_v33 = vmul.f32 -1.442695, %v5503_v21  ;;  %v5425_v34 = vrot.slane %v14769_v10, 7 }
 0xc0d   :  { %11541 = vpow2.f32 %v8979_v43  ;;  %v8985_v17 = vmul.f32 -1.442695, %v5507_v49  ;;  %v5429_v42 = vrot.slane %v14769_v10, 1  ;;  %v8986_v24 = vmul.f32 -1.442695, %v5511_v30 }
 0xc0e   :  { %11543 = vpow2.f32 %v8981_v36  ;;  %v5433_v47 = vrot.slane %v14769_v10, 2  ;;  %v5437_v2 = vrot.slane %v14769_v10, 3  ;;  %v5485_v45 = vadd.f32 %v5425_v34, %v14530_v16 }
 0xc0f   :  { %11545 = vpow2.f32 %v8982_v51  ;;  %v5489_v43 = vadd.f32 %v14769_v10, %v14544_v32  ;;  %v5493_v6 = vadd.f32 %v5429_v42, %v14549_v59  ;;  %v5441_v30 = vrot.slane %v14769_v10, 4 }
 0xc10   :  { %11547 = vpow2.f32 %v8983_v25  ;;  %v5497_v36 = vadd.f32 %v5433_v47, %v14560_v46  ;;  %v5501_v51 = vadd.f32 %v5437_v2, %v14569_v54  ;;  %v5445_v21 = vrot.slane %v14769_v10, 5 }
 0xc11   :  { %11549 = vpow2.f32 %v8984_v33  ;;  %v5424_v25 = vrot.slane %v14771_v15, 7  ;;  %v5505_v42 = vadd.f32 %v5441_v30, %v14601_v40  ;;  %v16469_v30 = vld [vmem:[#allocation54_spill] sm:$0xff] }
 0xc12   :  { %11551 = vpow2.f32 %v8985_v17  ;;  %v5449_v17 = vrot.slane %v14769_v10, 6  ;;  %v5509_v2 = vadd.f32 %v5445_v21, %v14610_v35  ;;  %v5440_v10 = vrot.slane %v14771_v15, 4 }
 0xc13   :  { %11553 = vpow2.f32 %v8986_v24  ;;  %v5444_v21 = vrot.slane %v14771_v15, 5  ;;  %v5448_v35 = vrot.slane %v14771_v15, 6 }
 0xc14   :  { %11555 = vtanh.f32 %v5485_v45  ;;  %v5428_v45 = vrot.slane %v14771_v15, 1  ;;  %v5513_v40 = vadd.f32 %v5449_v17, %v14618_v53 }
 0xc15   :  { %11557 = vtanh.f32 %v5489_v43 }
 0xc16   :  { %v11540_v49 = vpop.eup %11539  ;;  %11559 = vtanh.f32 %v5493_v6 }
 0xc17   :  { %v11542_v28 = vpop.eup %11541  ;;  %v5540_v50 = vadd.f32 1.0, %v11540_v49  ;;  %11561 = vtanh.f32 %v5497_v36  ;;  %v5432_v36 = vrot.slane %v14771_v15, 2 }
 0xc18   :  { %v11544_v3 = vpop.eup %11543  ;;  %v5539_v14 = vadd.f32 1.0, %v11542_v28  ;;  %11563 = vtanh.f32 %v5501_v51  ;;  %v5436_v51 = vrot.slane %v14771_v15, 3 }
 0xc19   :  { %v11546_v33 = vpop.eup %11545  ;;  %v5541_v34 = vadd.f32 1.0, %v11544_v3  ;;  %11565 = vrcp.f32 %v5540_v50  ;;  %v5484_v50 = vadd.f32 %v5424_v25, %v16469_v30  ;;  %v5496_v25 = vadd.f32 %v5432_v36, %v14583_v18 }
 0xc1a   :  { %v11548_v24 = vpop.eup %11547  ;;  %v5542_v47 = vadd.f32 1.0, %v11546_v33  ;;  %11567 = vrcp.f32 %v5539_v14  ;;  %v5488_v33 = vadd.f32 %v14771_v15, %v14556_v48  ;;  %v5426_v48 = vrot.slane %v14773_v61, 7  ;;  %v16471_v15 = vld [vmem:[#allocation67_spill] sm:$0xff] }
 0xc1b   :  { %v11550_v43 = vpop.eup %11549  ;;  %v5543_v6 = vadd.f32 1.0, %v11548_v24  ;;  %11569 = vrcp.f32 %v5541_v34  ;;  %v8987_v54 = vmul.f32 -1.442695, %v5484_v50  ;;  %v5430_v36 = vrot.slane %v14773_v61, 1 }
 0xc1c   :  { %v11552_v49 = vpop.eup %11551  ;;  %v5544_v28 = vadd.f32 1.0, %v11550_v43  ;;  %11571 = vrcp.f32 %v5542_v47  ;;  %v5492_v43 = vadd.f32 %v5428_v45, %v14574_v12  ;;  %v8988_v45 = vmul.f32 -1.442695, %v5488_v33 }
 0xc1d   :  { %v11554_v3 = vpop.eup %11553  ;;  %v5545_v14 = vadd.f32 1.0, %v11552_v49  ;;  %11573 = vrcp.f32 %v5543_v6  ;;  %v16470_v49 = vld [vmem:[#allocation62_spill] sm:$0xff] }
 0xc1e   :  { %v11556_v34 = vpop.eup %11555  ;;  %v5546_v24 = vadd.f32 1.0, %v11554_v3  ;;  %11575 = vrcp.f32 %v5544_v28  ;;  %v5500_v6 = vadd.f32 %v5436_v51, %v16470_v49  ;;  %v5504_v28 = vadd.f32 %v5440_v10, %v14605_v1 }
 0xc1f   :  { %v11558_v47 = vpop.eup %11557  ;;  %11577 = vrcp.f32 %v5545_v14  ;;  %v5508_v3 = vadd.f32 %v5444_v21, %v16471_v15  ;;  %v16472_v14 = vld [vmem:[#allocation71_spill] sm:$0xff]  ;;  %v8989_v53 = vmul.f32 -1.442695, %v5492_v43  ;;  %v5434_v49 = vrot.slane %v14773_v61, 2  ;;  %v16473_v21 = vld [vmem:[#allocation56_spill] sm:$0xff] }
 0xc20   :  { %v11560_v30 = vpop.eup %11559  ;;  %11579 = vrcp.f32 %v5546_v24  ;;  %v5512_v17 = vadd.f32 %v5448_v35, %v16472_v14  ;;  %v8990_v24 = vmul.f32 -1.442695, %v5496_v25  ;;  %v8991_v50 = vmul.f32 -1.442695, %v5500_v6 }
 0xc21   :  { %v11562_v46 = vpop.eup %11561  ;;  %11581 = vtanh.f32 %v5505_v42  ;;  %v5438_v10 = vrot.slane %v14773_v61, 3  ;;  %v5486_v33 = vadd.f32 %v5426_v48, %v16473_v21  ;;  %v8992_v35 = vmul.f32 -1.442695, %v5504_v28 }
 0xc22   :  { %v11564_v12 = vpop.eup %11563  ;;  %11583 = vtanh.f32 %v5509_v2  ;;  %v8993_v6 = vmul.f32 -1.442695, %v5508_v3  ;;  %v5498_v48 = vadd.f32 %v5434_v49, %v14587_v56 }
 0xc23   :  { %v11566_v51 = vpop.eup %11565  ;;  %11585 = vtanh.f32 %v5513_v40  ;;  %v5490_v40 = vadd.f32 %v14773_v61, %v14565_v29  ;;  %v8995_v28 = vmul.f32 -1.442695, %v5486_v33 }
 0xc24   :  { %v11568_v18 = vpop.eup %11567  ;;  %v14818_v42 = vmul.f32 %v11566_v51, %v11558_v47  ;;  %11587 = vpow2.f32 %v8987_v54  ;;  %v5494_v47 = vadd.f32 %v5430_v36, %v14578_v55  ;;  %v8994_v51 = vmul.f32 -1.442695, %v5512_v17 }
 0xc25   :  { %v11570_v2 = vpop.eup %11569  ;;  %v14822_v15 = vmul.f32 %v11568_v18, %v11556_v34  ;;  %11589 = vpow2.f32 %v8988_v45  ;;  %v5502_v34 = vadd.f32 %v5438_v10, %v14596_v0  ;;  %v8998_v17 = vmul.f32 -1.442695, %v5498_v48 }
 0xc26   :  { %v11572_v43 = vpop.eup %11571  ;;  %v14826_v25 = vmul.f32 %v11570_v2, %v11560_v30  ;;  %11591 = vpow2.f32 %v8989_v53  ;;  %v8996_v53 = vmul.f32 -1.442695, %v5490_v40  ;;  %v8997_v36 = vmul.f32 -1.442695, %v5494_v47 }
 0xc27   :  { %v11574_v54 = vpop.eup %11573  ;;  %11593 = vpow2.f32 %v8990_v24  ;;  %v14830_v21 = vmul.f32 %v11572_v43, %v11562_v46  ;;  %v8999_v46 = vmul.f32 -1.442695, %v5502_v34  ;;  %v5442_v10 = vrot.slane %v14773_v61, 4 }
 0xc28   :  { %v11576_v18 = vpop.eup %11575  ;;  %11595 = vpow2.f32 %v8991_v50  ;;  %v14833_v45 = vmul.f32 %v11574_v54, %v11564_v12 }
 0xc29   :  { %v11578_v30 = vpop.eup %11577  ;;  %11597 = vpow2.f32 %v8992_v35  ;;  %v5446_v35 = vrot.slane %v14773_v61, 5 }
 0xc2a   :  { %v11580_v3 = vpop.eup %11579  ;;  %11599 = vpow2.f32 %v8993_v6 }
 0xc2b   :  { %v11582_v2 = vpop.eup %11581  ;;  %11601 = vpow2.f32 %v8994_v51 }
 0xc2c   :  { %v11584_v24 = vpop.eup %11583  ;;  %11603 = vpow2.f32 %v8995_v28  ;;  %v14835_v49 = vmul.f32 %v11582_v2, %v11576_v18  ;;  %v5506_v18 = vadd.f32 %v5442_v10, %v14674_v62 }
 0xc2d   :  { %v11586_v50 = vpop.eup %11585  ;;  %11605 = vpow2.f32 %v8996_v53  ;;  %v14838_v12 = vmul.f32 %v11584_v24, %v11578_v30  ;;  %v5510_v30 = vadd.f32 %v5446_v35, %v14678_v38 }
 0xc2e   :  { %v11588_v33 = vpop.eup %11587  ;;  %11607 = vpow2.f32 %v8997_v36  ;;  %v14841_v40 = vmul.f32 %v11586_v50, %v11580_v3  ;;  %v9000_v50 = vmul.f32 -1.442695, %v5506_v18 }
 0xc2f   :  { %v11590_v43 = vpop.eup %11589  ;;  %v5587_v6 = vadd.f32 1.0, %v11588_v33  ;;  %11609 = vpow2.f32 %v8998_v17  ;;  %v5450_v17 = vrot.slane %v14773_v61, 6  ;;  %v9001_v10 = vmul.f32 -1.442695, %v5510_v30 }
 0xc30   :  { %v11592_v47 = vpop.eup %11591  ;;  %v5588_v54 = vadd.f32 1.0, %v11590_v43  ;;  %11611 = vpow2.f32 %v8999_v46 }
 0xc31   :  { %v11594_v51 = vpop.eup %11593  ;;  %v5589_v48 = vadd.f32 1.0, %v11592_v47  ;;  %11613 = vrcp.f32 %v5587_v6 }
 0xc32   :  { %v11596_v34 = vpop.eup %11595  ;;  %v5590_v28 = vadd.f32 1.0, %v11594_v51  ;;  %11615 = vrcp.f32 %v5588_v54  ;;  %v5514_v54 = vadd.f32 %v5450_v17, %v14685_v22 }
 0xc33   :  { %v11598_v53 = vpop.eup %11597  ;;  %v5591_v36 = vadd.f32 1.0, %v11596_v34  ;;  %11617 = vrcp.f32 %v5589_v48 }
 0xc34   :  { %v11600_v3 = vpop.eup %11599  ;;  %v5592_v2 = vadd.f32 1.0, %v11598_v53  ;;  %11619 = vrcp.f32 %v5590_v28  ;;  %v5675_v28 = vrot.slane %v14696_v39, 7  ;;  %v5679_v39 = vrot.slane %v14710_v23, 7 }
 0xc35   :  { %v11602_v24 = vpop.eup %11601  ;;  %v5593_v46 = vadd.f32 1.0, %v11600_v3  ;;  %11621 = vrcp.f32 %v5591_v36  ;;  %v5676_v36 = vrot.slane %v14700_v57, 7 }
 0xc36   :  { %v11604_v33 = vpop.eup %11603  ;;  %v5594_v43 = vadd.f32 1.0, %v11602_v24  ;;  %11623 = vrcp.f32 %v5592_v2  ;;  %v5677_v2 = vrot.slane %v14703_v20, 7  ;;  %v9002_v24 = vmul.f32 -1.442695, %v5514_v54 }
 0xc37   :  { %v11606_v6 = vpop.eup %11605  ;;  %11625 = vrcp.f32 %v5593_v46  ;;  %v5643_v47 = vadd.f32 1.0, %v11604_v33 }
 0xc38   :  { %v11608_v35 = vpop.eup %11607  ;;  %11627 = vrcp.f32 %v5594_v43  ;;  %v5644_v51 = vadd.f32 1.0, %v11606_v6 }
 0xc39   :  { %v11610_v48 = vpop.eup %11609  ;;  %11629 = vpow2.f32 %v9000_v50  ;;  %v5645_v34 = vadd.f32 1.0, %v11608_v35  ;;  %v5678_v50 = vrot.slane %v14706_v7, 7  ;;  %v5681_v7 = vrot.slane %v14718_v11, 7 }
 0xc3a   :  { %v11612_v61 = vpop.eup %11611  ;;  %11631 = vpow2.f32 %v9001_v10  ;;  %v5646_v18 = vadd.f32 1.0, %v11610_v48 }
 0xc3b   :  { %v11614_v53 = vpop.eup %11613  ;;  %v5647_v30 = vadd.f32 1.0, %v11612_v61  ;;  %11633 = vrcp.f32 %v5643_v47  ;;  %v5680_v47 = vrot.slane %v14714_v26, 7 }
 0xc3c   :  { %v11616_v3 = vpop.eup %11615  ;;  %11635 = vrcp.f32 %v5644_v51  ;;  %v5691_v17 = vmul.f32 %v11614_v53, %v5675_v28 }
 0xc3d   :  { %v11618_v46 = vpop.eup %11617  ;;  %v5692_v33 = vmul.f32 %v11616_v3, %v5676_v36  ;;  %11637 = vrcp.f32 %v5645_v34 }
 0xc3e   :  { %v11620_v43 = vpop.eup %11619  ;;  %11639 = vrcp.f32 %v5646_v18  ;;  %v5693_v10 = vmul.f32 %v11618_v46, %v5677_v2  ;;  %v14853_v57 = vadd.f32 %v14822_v15, %v5691_v17  ;;  %v5682_v15 = vrot.slane %v14722_v63, 7 }
 0xc3f   :  { %v11622_v6 = vpop.eup %11621  ;;  %11641 = vrcp.f32 %v5647_v30  ;;  %v5694_v20 = vmul.f32 %v11620_v43, %v5678_v50  ;;  %v14857_v35 = vadd.f32 %v14818_v42, %v5692_v33 }
 0xc40   :  { %v11624_v54 = vpop.eup %11623  ;;  %11643 = vpow2.f32 %v9002_v24  ;;  %v5695_v51 = vmul.f32 %v11622_v6, %v5679_v39  ;;  %v14861_v23 = vadd.f32 %v14826_v25, %v5693_v10 }
 0xc41   :  { %v11626_v48 = vpop.eup %11625  ;;  %v5696_v34 = vmul.f32 %v11624_v54, %v5680_v47  ;;  %v14865_v61 = vadd.f32 %v14830_v21, %v5694_v20  ;;  %11645 = vtanh.f32 %v14853_v57 }
 0xc42   :  { %v11628_v26 = vpop.eup %11627  ;;  %v5697_v42 = vmul.f32 %v11626_v48, %v5681_v7  ;;  %v14869_v28 = vadd.f32 %v14833_v45, %v5695_v51  ;;  %11647 = vtanh.f32 %v14857_v35 }
 0xc43   :  { %v11630_v11 = vpop.eup %11629  ;;  %v5698_v18 = vmul.f32 %v11628_v26, %v5682_v15  ;;  %v14873_v25 = vadd.f32 %v14835_v49, %v5696_v34  ;;  %11649 = vtanh.f32 %v14861_v23 }
 0xc44   :  { %v11632_v63 = vpop.eup %11631  ;;  %v5648_v53 = vadd.f32 1.0, %v11630_v11  ;;  %v14877_v21 = vadd.f32 %v14838_v12, %v5697_v42  ;;  %11651 = vtanh.f32 %v14865_v61 }
 0xc45   :  { %v11634_v36 = vpop.eup %11633  ;;  %v5649_v30 = vadd.f32 1.0, %v11632_v63  ;;  %v14881_v45 = vadd.f32 %v14841_v40, %v5698_v18  ;;  %11653 = vtanh.f32 %v14869_v28 }
 0xc46   :  { %v11636_v3 = vpop.eup %11635  ;;  %11655 = vrcp.f32 %v5648_v53 }
 0xc47   :  { %v11638_v49 = vpop.eup %11637  ;;  %11657 = vrcp.f32 %v5649_v30 }
 0xc48   :  { %v11640_v2 = vpop.eup %11639  ;;  %11659 = vtanh.f32 %v14873_v25 }
 0xc49   :  { %v11642_v24 = vpop.eup %11641  ;;  %11661 = vtanh.f32 %v14877_v21 }
 0xc4a   :  { %v11644_v12 = vpop.eup %11643  ;;  %11663 = vtanh.f32 %v14881_v45 }
 0xc4b   :  { %v11646_v17 = vpop.eup %11645  ;;  %v5650_v46 = vadd.f32 1.0, %v11644_v12 }
 0xc4c   :  { %v11648_v50 = vpop.eup %11647  ;;  %v5723_v40 = vmul.f32 %v11646_v17, %v11634_v36 }
 0xc4d   :  { %v11650_v33 = vpop.eup %11649  ;;  %11665 = vrcp.f32 %v5650_v46  ;;  %v5724_v43 = vmul.f32 %v11648_v50, %v11636_v3 }
 0xc4e   :  { %v11652_v39 = vpop.eup %11651  ;;  %v5725_v10 = vmul.f32 %v11650_v33, %v11638_v49  ;;  %v5739_v6 = vrot.slane %v5723_v40, 1  ;;  %v16474_v33 = vld [vmem:[#allocation23_spill] sm:$0xff] }
 0xc4f   :  { %v11654_v47 = vpop.eup %11653  ;;  %v5726_v20 = vmul.f32 %v11652_v39, %v11640_v2  ;;  %v16476_v39 = vld [vmem:[#allocation25_spill] sm:$0xff] }
 0xc50   :  { %v11656_v54 = vpop.eup %11655  ;;  %v5727_v7 = vmul.f32 %v11654_v47, %v11642_v24  ;;  %v5740_v51 = vsel %vm977_vm0, %v5724_v43, %v5739_v6  ;;  %v5741_v48 = vrot.slane %v5725_v10, 7  ;;  %v16475_v43 = vld [vmem:[#allocation24_spill] sm:$0xff]  ;;  %v16477_v10 = vld [vmem:[#allocation26_spill] sm:$0xff]  ;;  %v16478_v6 = vld [vmem:[#allocation27_spill] sm:$0xff] }
 0xc51   :  { %v11658_v15 = vpop.eup %11657  ;;  %v5743_v34 = vrot.slane %v5726_v20, 6  ;;  %v16479_v47 = vld [vmem:[#allocation63_spill] sm:$0xff]  ;;  %v16480_v20 = vld [vmem:[#allocation28_spill] sm:$0xff] }
 0xc52   :  { %v11660_v26 = vpop.eup %11659  ;;  %v5742_v42 = vsel %vm980_vm1, %v5741_v48, %v5740_v51  ;;  %v5745_v11 = vrot.slane %v5727_v7, 5  ;;  %v16482_v7 = vld [vmem:[#allocation65_spill] sm:$0xff]  ;;  %v16483_v51 = vld [vmem:[#allocation19_spill] sm:$0xff]  ;;  %v16484_v48 = vld [vmem:[#allocation20_spill] sm:$0xff] }
 0xc53   :  { %v11662_v18 = vpop.eup %11661  ;;  %v5728_v63 = vmul.f32 %v11660_v26, %v11656_v54  ;;  %v5744_v53 = vsel %vm983_vm2, %v5743_v34, %v5742_v42  ;;  %v16481_v54 = vld [vmem:[#allocation29_spill] sm:$0xff]  ;;  %v16486_v34 = vld [vmem:[#allocation30_spill] sm:$0xff]  ;;  %v16487_v26 = vld [vmem:[#allocation31_spill] sm:$0xff] }
 0xc54   :  { %v5729_v36 = vmul.f32 %v11662_v18, %v11658_v15  ;;  %v5746_v30 = vsel %vm986_vm3, %v5745_v11, %v5744_v53  ;;  %v11664_v3 = vpop.eup %11663  ;;  %v16485_v15 = vld [vmem:[#allocation53_spill] sm:$0xff]  ;;  %v16488_v42 = vld [vmem:[#allocation32_spill] sm:$0xff]  ;;  %v16490_v18 = vld [vmem:[#allocation34_spill] sm:$0xff] }
 0xc55   :  { %v5747_v49 = vrot.slane %v5728_v63, 4  ;;  %v16489_v11 = vld [vmem:[#allocation33_spill] sm:$0xff]  ;;  %v16491_v63 = vld [vmem:[#allocation35_spill] sm:$0xff]  ;;  %v16492_v53 = vld [vmem:[#allocation36_spill] sm:$0xff] }
 0xc56   :  { %v5749_v2 = vrot.slane %v5729_v36, 3  ;;  %v16493_v36 = vld [vmem:[#allocation37_spill] sm:$0xff] }
 0xc57   :  { %v11666_v24 = vpop.eup %11665  ;;  %v5748_v12 = vsel %vm989_vm4, %v5747_v49, %v5746_v30  ;;  %v16494_v30 = vld [vmem:[#allocation38_spill] sm:$0xff]  ;;  %v16496_v49 = vld [vmem:[#allocation40_spill] sm:$0xff] }
 0xc58   :  { %v5730_v17 = vmul.f32 %v11666_v24, %v11664_v3  ;;  %v5750_v46 = vsel %vm992_vm5, %v5749_v2, %v5748_v12  ;;  %v16495_v3 = vld [vmem:[#allocation39_spill] sm:$0xff]  ;;  %v16497_v2 = vld [vmem:[#allocation41_spill] sm:$0xff]  ;;  %v16498_v24 = vld [vmem:[#allocation42_spill] sm:$0xff] }
 0xc59   :  { %v16499_v12 = vld [vmem:[#allocation60_spill] sm:$0xff] }
 0xc5a   :  { %v5751_v50 = vrot.slane %v5730_v17, 2  ;;  %v16500_v17 = vld [vmem:[#allocation21_spill] sm:$0xff] }
 0xc5c   :  { %v5752_v40 = vsel %vm995_vm6, %v5751_v50, %v5750_v46 }
 0xc5d   :  { %5819 = vmatmul.mubr.f32.vlgmr.msra.gmra.mrb[52].mxu0 %v5752_v40  ;;  %5890 = vmatmul.mubr.f32.vlgmr.msra.gmra.mrb[52].mxu1 %v5752_v40 }
 0xc5e   :  { %10035 = vmatpush1.bf16.msra.mxu0 %v14287_v58  ;;  %10067 = vmatpush1.bf16.msra.mxu1 %v14289_v4 }
 0xc5f   :  { %10037 = vmatprep.subr.bf16.mxu0 %v14291_v41  ;;  %10069 = vmatprep.subr.bf16.mxu1 %v14293_v27 }
 0xc60   :  { %6295 = vmatprep.mubr.f32.mxu0 %v16143_v8  ;;  %6366 = vmatprep.mubr.f32.mxu1 %v16143_v8 }
 0xc62   :  { %10039 = vmatpush1.bf16.msra.mxu0 %v16440_v44  ;;  %10071 = vmatpush1.bf16.msra.mxu1 %v16474_v33 }
 0xc63   :  { %10041 = vmatprep.subr.bf16.mxu0 %v16475_v43  ;;  %10073 = vmatprep.subr.bf16.mxu1 %v16476_v39 }
 0xc66   :  { %10043 = vmatpush1.bf16.msra.mxu0 %v16477_v10  ;;  %10075 = vmatpush1.bf16.msra.mxu1 %v16478_v6 }
 0xc67   :  { %10045 = vmatprep.subr.bf16.mxu0 %v16479_v47  ;;  %10077 = vmatprep.subr.bf16.mxu1 %v16480_v20 }
 0xc6a   :  { %10047 = vmatpush1.bf16.msra.mxu0 %v16481_v54  ;;  %10079 = vmatpush1.bf16.msra.mxu1 %v16482_v7 }
 0xc6b   :  { %10049 = vmatprep.subr.bf16.mxu0 %v16483_v51  ;;  %10081 = vmatprep.subr.bf16.mxu1 %v16484_v48 }
 0xc6e   :  { %10051 = vmatpush1.bf16.msra.mxu0 %v16485_v15  ;;  %10083 = vmatpush1.bf16.msra.mxu1 %v16486_v34 }
 0xc6f   :  { %10053 = vmatprep.subr.bf16.mxu0 %v16487_v26  ;;  %10085 = vmatprep.subr.bf16.mxu1 %v16488_v42 }
 0xc72   :  { %10055 = vmatpush1.bf16.msra.mxu0 %v16489_v11  ;;  %10087 = vmatpush1.bf16.msra.mxu1 %v16490_v18 }
 0xc73   :  { %10057 = vmatprep.subr.bf16.mxu0 %v16491_v63  ;;  %10089 = vmatprep.subr.bf16.mxu1 %v16492_v53 }
 0xc76   :  { %10059 = vmatpush1.bf16.msra.mxu0 %v16493_v36  ;;  %10091 = vmatpush1.bf16.msra.mxu1 %v16494_v30 }
 0xc77   :  { %10061 = vmatprep.subr.bf16.mxu0 %v16495_v3  ;;  %10093 = vmatprep.subr.bf16.mxu1 %v16496_v49 }
 0xc7a   :  { %10063 = vmatpush1.bf16.msra.mxu0 %v16497_v2  ;;  %10095 = vmatpush1.bf16.msra.mxu1 %v16498_v24 }
 0xc7b   :  { %10097 = vmatprep.subr.bf16.mxu0 %v16499_v12  ;;  %10129 = vmatprep.subr.bf16.mxu1 %v16500_v17 }
 0xd30   :  { %v5820_v46 = vpop.f32.mrb[52].mxu0  ;;  %v14928_v50 = vpop.f32.mrb[52].mxu1 }
 0xd31   :  { %v5900_v40 = vrot.slane %v5820_v46, 6  ;;  %v5904_v53 = vrot.slane %v5820_v46, 7  ;;  %v5908_v36 = vrot.slane %v5820_v46, 1  ;;  %v5912_v63 = vrot.slane %v5820_v46, 2  ;;  %v14930_v30 = vpop.f32.mrb[53].mxu0  ;;  %v14932_v3 = vpop.f32.mrb[53].mxu1 }
 0xd32   :  { %v5916_v49 = vrot.slane %v5820_v46, 3  ;;  %v5920_v18 = vrot.slane %v5820_v46, 4  ;;  %v5924_v2 = vrot.slane %v5820_v46, 5  ;;  %v5968_v24 = vadd.f32 %v5820_v46, %v14498_v13 }
 0xd33   :  { %v5960_v12 = vadd.f32 %v5900_v40, %v16468_v9  ;;  %v5964_v17 = vadd.f32 %v5904_v53, %v14496_v60  ;;  %v5972_v11 = vadd.f32 %v5908_v36, %v14500_v19  ;;  %v5976_v42 = vadd.f32 %v5912_v63, %v14502_v37 }
 0xd34   :  { %v5980_v26 = vadd.f32 %v5916_v49, %v14504_v31  ;;  %v5984_v34 = vadd.f32 %v5920_v18, %v14506_v5  ;;  %v9005_v15 = vmul.f32 -1.442695, %v5968_v24  ;;  %v5988_v48 = vadd.f32 %v5924_v2, %v14508_v52  ;;  %v16508_v52 = vld [vmem:[#allocation70_spill] sm:$0xff] }
 0xd35   :  { %v9003_v51 = vmul.f32 -1.442695, %v5960_v12  ;;  %v9004_v7 = vmul.f32 -1.442695, %v5964_v17  ;;  %v9006_v54 = vmul.f32 -1.442695, %v5972_v11 }
 0xd36   :  { %11667 = vpow2.f32 %v9005_v15  ;;  %v9007_v46 = vmul.f32 -1.442695, %v5976_v42  ;;  %v9008_v40 = vmul.f32 -1.442695, %v5980_v26  ;;  %v5902_v53 = vrot.slane %v14928_v50, 6  ;;  %v16501_v26 = vld [vmem:[#allocation59_spill] sm:$0xff] }
 0xd37   :  { %11669 = vpow2.f32 %v9003_v51  ;;  %v5906_v36 = vrot.slane %v14928_v50, 7  ;;  %v9009_v63 = vmul.f32 -1.442695, %v5984_v34  ;;  %v9010_v49 = vmul.f32 -1.442695, %v5988_v48  ;;  %v16502_v34 = vld [vmem:[#allocation68_spill] sm:$0xff] }
 0xd38   :  { %11671 = vpow2.f32 %v9004_v7  ;;  %v5910_v18 = vrot.slane %v14928_v50, 1  ;;  %v5914_v2 = vrot.slane %v14928_v50, 2  ;;  %v5962_v24 = vadd.f32 %v5902_v53, %v14530_v16  ;;  %v16507_v16 = vld [vmem:[#allocation69_spill] sm:$0xff] }
 0xd39   :  { %11673 = vpow2.f32 %v9006_v54  ;;  %v5966_v15 = vadd.f32 %v5906_v36, %v14544_v32  ;;  %v5970_v51 = vadd.f32 %v14928_v50, %v14549_v59  ;;  %v5918_v42 = vrot.slane %v14928_v50, 3  ;;  %v16505_v59 = vld [vmem:[#allocation54_spill] sm:$0xff] }
 0xd3a   :  { %11675 = vpow2.f32 %v9007_v46  ;;  %v5974_v7 = vadd.f32 %v5910_v18, %v16501_v26  ;;  %v5978_v54 = vadd.f32 %v5914_v2, %v16502_v34  ;;  %v5922_v11 = vrot.slane %v14928_v50, 4  ;;  %v16504_v34 = vld [vmem:[#allocation66_spill] sm:$0xff] }
 0xd3b   :  { %11677 = vpow2.f32 %v9008_v40  ;;  %v5901_v53 = vrot.slane %v14930_v30, 6  ;;  %v5905_v18 = vrot.slane %v14930_v30, 7 }
 0xd3c   :  { %11679 = vpow2.f32 %v9009_v63 }
 0xd3d   :  { %11681 = vpow2.f32 %v9010_v49  ;;  %v5926_v49 = vrot.slane %v14928_v50, 5  ;;  %v5917_v50 = vrot.slane %v14930_v30, 3  ;;  %v5961_v32 = vadd.f32 %v5901_v53, %v16505_v59  ;;  %v16509_v53 = vld [vmem:[#allocation55_spill] sm:$0xff] }
 0xd3e   :  { %11683 = vtanh.f32 %v5962_v24 }
 0xd3f   :  { %11685 = vtanh.f32 %v5966_v15  ;;  %v16503_v15 = vld [vmem:[#allocation64_spill] sm:$0xff]  ;;  %v5990_v5 = vadd.f32 %v5926_v49, %v16508_v52  ;;  %v9011_v37 = vmul.f32 -1.442695, %v5961_v32 }
 0xd40   :  { %v11668_v48 = vpop.eup %11667  ;;  %11687 = vtanh.f32 %v5970_v51  ;;  %v5982_v51 = vadd.f32 %v5918_v42, %v16503_v15  ;;  %v5921_v42 = vrot.slane %v14930_v30, 4  ;;  %v5925_v15 = vrot.slane %v14930_v30, 5 }
 0xd41   :  { %v11670_v12 = vpop.eup %11669  ;;  %v6018_v17 = vadd.f32 1.0, %v11668_v48  ;;  %11689 = vtanh.f32 %v5974_v7  ;;  %v5986_v48 = vadd.f32 %v5922_v11, %v16504_v34  ;;  %v16506_v11 = vld [vmem:[#allocation61_spill] sm:$0xff] }
 0xd42   :  { %v11672_v46 = vpop.eup %11671  ;;  %v6016_v40 = vadd.f32 1.0, %v11670_v12  ;;  %11691 = vtanh.f32 %v5978_v54  ;;  %v5909_v54 = vrot.slane %v14930_v30, 1  ;;  %v5913_v12 = vrot.slane %v14930_v30, 2 }
 0xd43   :  { %v11674_v36 = vpop.eup %11673  ;;  %v6017_v63 = vadd.f32 1.0, %v11672_v46  ;;  %11693 = vrcp.f32 %v6018_v17  ;;  %v5965_v34 = vadd.f32 %v5905_v18, %v16506_v11  ;;  %v5903_v18 = vrot.slane %v14932_v3, 6 }
 0xd44   :  { %v11676_v2 = vpop.eup %11675  ;;  %v6019_v24 = vadd.f32 1.0, %v11674_v36  ;;  %11695 = vrcp.f32 %v6016_v40  ;;  %v5973_v59 = vadd.f32 %v5909_v54, %v16509_v53  ;;  %v5989_v54 = vadd.f32 %v5925_v15, %v16472_v14 }
 0xd45   :  { %v11678_v7 = vpop.eup %11677  ;;  %v6020_v26 = vadd.f32 1.0, %v11676_v2  ;;  %11697 = vrcp.f32 %v6017_v63  ;;  %v9012_v11 = vmul.f32 -1.442695, %v5965_v34  ;;  %v5915_v34 = vrot.slane %v14932_v3, 2 }
 0xd46   :  { %v11680_v46 = vpop.eup %11679  ;;  %v6021_v17 = vadd.f32 1.0, %v11678_v7  ;;  %11699 = vrcp.f32 %v6019_v24  ;;  %v5969_v7 = vadd.f32 %v14930_v30, %v16507_v16  ;;  %v5907_v30 = vrot.slane %v14932_v3, 7 }
 0xd47   :  { %v11682_v36 = vpop.eup %11681  ;;  %v6022_v40 = vadd.f32 1.0, %v11680_v46  ;;  %11701 = vrcp.f32 %v6020_v26  ;;  %v16510_v46 = vld [vmem:[#allocation62_spill] sm:$0xff] }
 0xd48   :  { %v11684_v2 = vpop.eup %11683  ;;  %v6023_v63 = vadd.f32 1.0, %v11682_v36  ;;  %11703 = vrcp.f32 %v6021_v17  ;;  %v5977_v26 = vadd.f32 %v5913_v12, %v16510_v46  ;;  %v5981_v17 = vadd.f32 %v5917_v50, %v14605_v1  ;;  %v16512_v50 = vld [vmem:[#allocation56_spill] sm:$0xff] }
 0xd49   :  { %v11686_v24 = vpop.eup %11685  ;;  %11705 = vrcp.f32 %v6022_v40  ;;  %v16511_v40 = vld [vmem:[#allocation67_spill] sm:$0xff]  ;;  %v9013_v53 = vmul.f32 -1.442695, %v5969_v7  ;;  %v5911_v46 = vrot.slane %v14932_v3, 1  ;;  %v5963_v1 = vadd.f32 %v5903_v18, %v16512_v50 }
 0xd4a   :  { %v11688_v31 = vpop.eup %11687  ;;  %11707 = vrcp.f32 %v6023_v63  ;;  %v5985_v49 = vadd.f32 %v5921_v42, %v16511_v40  ;;  %v9014_v63 = vmul.f32 -1.442695, %v5973_v59  ;;  %v9015_v32 = vmul.f32 -1.442695, %v5977_v26 }
 0xd4b   :  { %v11690_v36 = vpop.eup %11689  ;;  %11709 = vtanh.f32 %v5982_v51  ;;  %v9016_v15 = vmul.f32 -1.442695, %v5981_v17  ;;  %v5967_v42 = vadd.f32 %v5907_v30, %v14565_v29  ;;  %v9018_v26 = vmul.f32 -1.442695, %v5989_v54 }
 0xd4c   :  { %v11692_v16 = vpop.eup %11691  ;;  %11711 = vtanh.f32 %v5986_v48  ;;  %v9017_v7 = vmul.f32 -1.442695, %v5985_v49  ;;  %v5975_v18 = vadd.f32 %v5911_v46, %v14587_v56 }
 0xd4d   :  { %v11694_v12 = vpop.eup %11693  ;;  %11713 = vtanh.f32 %v5990_v5 }
 0xd4e   :  { %v11696_v52 = vpop.eup %11695  ;;  %v14977_v51 = vmul.f32 %v11694_v12, %v11688_v31  ;;  %11715 = vpow2.f32 %v9011_v37  ;;  %v5971_v31 = vadd.f32 %v14932_v3, %v14578_v55  ;;  %v9022_v54 = vmul.f32 -1.442695, %v5975_v18 }
 0xd4f   :  { %v11698_v48 = vpop.eup %11697  ;;  %v14981_v13 = vmul.f32 %v11696_v52, %v11684_v2  ;;  %11717 = vpow2.f32 %v9012_v11  ;;  %v5979_v11 = vadd.f32 %v5915_v34, %v14596_v0  ;;  %v9019_v2 = vmul.f32 -1.442695, %v5963_v1 }
 0xd50   :  { %v11700_v5 = vpop.eup %11699  ;;  %v14984_v59 = vmul.f32 %v11698_v48, %v11686_v24  ;;  %11719 = vpow2.f32 %v9013_v53  ;;  %v9020_v53 = vmul.f32 -1.442695, %v5967_v42  ;;  %v9021_v49 = vmul.f32 -1.442695, %v5971_v31 }
 0xd51   :  { %v11702_v37 = vpop.eup %11701  ;;  %11721 = vpow2.f32 %v9014_v63  ;;  %v14989_v12 = vmul.f32 %v11700_v5, %v11690_v36  ;;  %v9023_v46 = vmul.f32 -1.442695, %v5979_v11  ;;  %v5919_v34 = vrot.slane %v14932_v3, 3 }
 0xd52   :  { %v11704_v52 = vpop.eup %11703  ;;  %11723 = vpow2.f32 %v9015_v32  ;;  %v14992_v17 = vmul.f32 %v11702_v37, %v11692_v16 }
 0xd53   :  { %v11706_v24 = vpop.eup %11705  ;;  %11725 = vpow2.f32 %v9016_v15  ;;  %v5923_v15 = vrot.slane %v14932_v3, 4 }
 0xd54   :  { %v11708_v30 = vpop.eup %11707  ;;  %11727 = vpow2.f32 %v9017_v7 }
 0xd55   :  { %v11710_v48 = vpop.eup %11709  ;;  %11729 = vpow2.f32 %v9018_v26 }
 0xd56   :  { %v11712_v63 = vpop.eup %11711  ;;  %11731 = vpow2.f32 %v9019_v2  ;;  %v14994_v36 = vmul.f32 %v11710_v48, %v11704_v52  ;;  %v5983_v52 = vadd.f32 %v5919_v34, %v14674_v62 }
 0xd57   :  { %v11714_v32 = vpop.eup %11713  ;;  %11733 = vpow2.f32 %v9020_v53  ;;  %v14997_v16 = vmul.f32 %v11712_v63, %v11706_v24  ;;  %v5987_v24 = vadd.f32 %v5923_v15, %v14678_v38 }
 0xd58   :  { %v11716_v1 = vpop.eup %11715  ;;  %11735 = vpow2.f32 %v9021_v49  ;;  %v15000_v42 = vmul.f32 %v11714_v32, %v11708_v30  ;;  %v9024_v32 = vmul.f32 -1.442695, %v5983_v52 }
 0xd59   :  { %v11718_v5 = vpop.eup %11717  ;;  %v6064_v7 = vadd.f32 1.0, %v11716_v1  ;;  %11737 = vpow2.f32 %v9022_v54  ;;  %v5927_v54 = vrot.slane %v14932_v3, 5  ;;  %v9025_v34 = vmul.f32 -1.442695, %v5987_v24 }
 0xd5a   :  { %v11720_v31 = vpop.eup %11719  ;;  %v6065_v37 = vadd.f32 1.0, %v11718_v5  ;;  %11739 = vpow2.f32 %v9023_v46 }
 0xd5b   :  { %v11722_v26 = vpop.eup %11721  ;;  %v6066_v18 = vadd.f32 1.0, %v11720_v31  ;;  %11741 = vrcp.f32 %v6064_v7 }
 0xd5c   :  { %v11724_v11 = vpop.eup %11723  ;;  %v6067_v2 = vadd.f32 1.0, %v11722_v26  ;;  %11743 = vrcp.f32 %v6065_v37  ;;  %v5991_v37 = vadd.f32 %v5927_v54, %v14685_v22 }
 0xd5d   :  { %v11726_v53 = vpop.eup %11725  ;;  %v6068_v49 = vadd.f32 1.0, %v11724_v11  ;;  %11745 = vrcp.f32 %v6066_v18 }
 0xd5e   :  { %v11728_v30 = vpop.eup %11727  ;;  %v6069_v48 = vadd.f32 1.0, %v11726_v53  ;;  %11747 = vrcp.f32 %v6067_v2  ;;  %v6152_v2 = vrot.slane %v14853_v57, 7  ;;  %v6156_v57 = vrot.slane %v14869_v28, 7 }
 0xd5f   :  { %v11730_v63 = vpop.eup %11729  ;;  %v6070_v46 = vadd.f32 1.0, %v11728_v30  ;;  %11749 = vrcp.f32 %v6068_v49  ;;  %v6153_v49 = vrot.slane %v14857_v35, 7 }
 0xd60   :  { %v11732_v1 = vpop.eup %11731  ;;  %v6071_v5 = vadd.f32 1.0, %v11730_v63  ;;  %11751 = vrcp.f32 %v6069_v48  ;;  %v6154_v48 = vrot.slane %v14861_v23, 7  ;;  %v9026_v63 = vmul.f32 -1.442695, %v5991_v37 }
 0xd61   :  { %v11734_v7 = vpop.eup %11733  ;;  %11753 = vrcp.f32 %v6070_v46  ;;  %v6120_v31 = vadd.f32 1.0, %v11732_v1 }
 0xd62   :  { %v11736_v15 = vpop.eup %11735  ;;  %11755 = vrcp.f32 %v6071_v5  ;;  %v6121_v26 = vadd.f32 1.0, %v11734_v7 }
 0xd63   :  { %v11738_v18 = vpop.eup %11737  ;;  %11757 = vpow2.f32 %v9024_v32  ;;  %v6122_v11 = vadd.f32 1.0, %v11736_v15  ;;  %v6155_v32 = vrot.slane %v14865_v61, 7  ;;  %v6158_v61 = vrot.slane %v14877_v21, 7 }
 0xd64   :  { %v11740_v3 = vpop.eup %11739  ;;  %11759 = vpow2.f32 %v9025_v34  ;;  %v6123_v52 = vadd.f32 1.0, %v11738_v18 }
 0xd65   :  { %v11742_v53 = vpop.eup %11741  ;;  %v6124_v24 = vadd.f32 1.0, %v11740_v3  ;;  %11761 = vrcp.f32 %v6120_v31  ;;  %v6157_v31 = vrot.slane %v14873_v25, 7 }
 0xd66   :  { %v11744_v30 = vpop.eup %11743  ;;  %11763 = vrcp.f32 %v6121_v26  ;;  %v6168_v54 = vmul.f32 %v11742_v53, %v6152_v2 }
 0xd67   :  { %v11746_v46 = vpop.eup %11745  ;;  %11765 = vrcp.f32 %v6122_v11  ;;  %v6169_v1 = vmul.f32 %v11744_v30, %v6153_v49 }
 0xd68   :  { %v11748_v5 = vpop.eup %11747  ;;  %11767 = vrcp.f32 %v6123_v52  ;;  %v6170_v34 = vmul.f32 %v11746_v46, %v6154_v48  ;;  %v15012_v35 = vadd.f32 %v14981_v13, %v6168_v54  ;;  %v6159_v13 = vrot.slane %v14881_v45, 7 }
 0xd69   :  { %v11750_v7 = vpop.eup %11749  ;;  %11769 = vrcp.f32 %v6124_v24  ;;  %v6171_v23 = vmul.f32 %v11748_v5, %v6155_v32  ;;  %v15016_v15 = vadd.f32 %v14984_v59, %v6169_v1 }
 0xd6a   :  { %v11752_v37 = vpop.eup %11751  ;;  %11771 = vpow2.f32 %v9026_v63  ;;  %v6172_v26 = vmul.f32 %v11750_v7, %v6156_v57  ;;  %v15020_v28 = vadd.f32 %v14977_v51, %v6170_v34 }
 0xd6b   :  { %v11754_v18 = vpop.eup %11753  ;;  %v6173_v11 = vmul.f32 %v11752_v37, %v6157_v31  ;;  %v15024_v3 = vadd.f32 %v14989_v12, %v6171_v23  ;;  %11773 = vtanh.f32 %v15012_v35 }
 0xd6c   :  { %v11756_v25 = vpop.eup %11755  ;;  %v6174_v59 = vmul.f32 %v11754_v18, %v6158_v61  ;;  %v15028_v2 = vadd.f32 %v14992_v17, %v6172_v26  ;;  %11775 = vtanh.f32 %v15016_v15 }
 0xd6d   :  { %v11758_v21 = vpop.eup %11757  ;;  %v6175_v52 = vmul.f32 %v11756_v25, %v6159_v13  ;;  %v15032_v51 = vadd.f32 %v14994_v36, %v6173_v11  ;;  %11777 = vtanh.f32 %v15020_v28 }
 0xd6e   :  { %v11760_v45 = vpop.eup %11759  ;;  %v6125_v53 = vadd.f32 1.0, %v11758_v21  ;;  %v15036_v12 = vadd.f32 %v14997_v16, %v6174_v59  ;;  %11779 = vtanh.f32 %v15024_v3 }
 0xd6f   :  { %v11762_v49 = vpop.eup %11761  ;;  %v6126_v24 = vadd.f32 1.0, %v11760_v45  ;;  %v15040_v17 = vadd.f32 %v15000_v42, %v6175_v52  ;;  %11781 = vtanh.f32 %v15028_v2 }
 0xd70   :  { %v11764_v30 = vpop.eup %11763  ;;  %11783 = vrcp.f32 %v6125_v53 }
 0xd71   :  { %v11766_v36 = vpop.eup %11765  ;;  %11785 = vrcp.f32 %v6126_v24 }
 0xd72   :  { %v11768_v48 = vpop.eup %11767  ;;  %11787 = vtanh.f32 %v15032_v51 }
 0xd73   :  { %v11770_v63 = vpop.eup %11769  ;;  %11789 = vtanh.f32 %v15036_v12 }
 0xd74   :  { %v11772_v16 = vpop.eup %11771  ;;  %11791 = vtanh.f32 %v15040_v17 }
 0xd75   :  { %v11774_v54 = vpop.eup %11773  ;;  %v6127_v46 = vadd.f32 1.0, %v11772_v16 }
 0xd76   :  { %v11776_v32 = vpop.eup %11775  ;;  %v6200_v42 = vmul.f32 %v11774_v54, %v11762_v49 }
 0xd77   :  { %v11778_v1 = vpop.eup %11777  ;;  %11793 = vrcp.f32 %v6127_v46  ;;  %v6201_v5 = vmul.f32 %v11776_v32, %v11764_v30 }
 0xd78   :  { %v11780_v57 = vpop.eup %11779  ;;  %v6202_v34 = vmul.f32 %v11778_v1, %v11766_v36  ;;  %v6216_v7 = vrot.slane %v6200_v42, 2  ;;  %v16513_v1 = vld [vmem:[#allocation29_spill] sm:$0xff] }
 0xd79   :  { %v11782_v31 = vpop.eup %11781  ;;  %v6203_v23 = vmul.f32 %v11780_v57, %v11768_v48  ;;  %v6217_v37 = vrot.slane %v6201_v5, 1  ;;  %v16514_v5 = vld [vmem:[#allocation65_spill] sm:$0xff]  ;;  %v16515_v57 = vld [vmem:[#allocation19_spill] sm:$0xff] }
 0xd7a   :  { %v11784_v61 = vpop.eup %11783  ;;  %v6204_v26 = vmul.f32 %v11782_v31, %v11770_v63  ;;  %v16518_v31 = vld [vmem:[#allocation30_spill] sm:$0xff] }
 0xd7b   :  { %v11786_v18 = vpop.eup %11785  ;;  %v6218_v13 = vsel %vm977_vm0, %v6217_v37, %v6216_v7  ;;  %v6220_v11 = vrot.slane %v6203_v23, 7  ;;  %v16517_v7 = vld [vmem:[#allocation53_spill] sm:$0xff]  ;;  %v16519_v23 = vld [vmem:[#allocation31_spill] sm:$0xff]  ;;  %v16520_v37 = vld [vmem:[#allocation32_spill] sm:$0xff] }
 0xd7c   :  { %v11788_v25 = vpop.eup %11787  ;;  %v6219_v59 = vsel %vm980_vm1, %v6202_v34, %v6218_v13  ;;  %v6222_v21 = vrot.slane %v6204_v26, 6  ;;  %v16516_v34 = vld [vmem:[#allocation20_spill] sm:$0xff]  ;;  %v16522_v26 = vld [vmem:[#allocation34_spill] sm:$0xff] }
 0xd7d   :  { %v11790_v52 = vpop.eup %11789  ;;  %v6205_v45 = vmul.f32 %v11788_v25, %v11784_v61  ;;  %v6221_v53 = vsel %vm983_vm2, %v6220_v11, %v6219_v59  ;;  %v16521_v61 = vld [vmem:[#allocation33_spill] sm:$0xff]  ;;  %v16524_v13 = vld [vmem:[#allocation36_spill] sm:$0xff]  ;;  %v16526_v25 = vld [vmem:[#allocation38_spill] sm:$0xff] }
 0xd7e   :  { %v6206_v49 = vmul.f32 %v11790_v52, %v11786_v18  ;;  %v6223_v24 = vsel %vm986_vm3, %v6222_v21, %v6221_v53  ;;  %v11792_v30 = vpop.eup %11791  ;;  %v16523_v18 = vld [vmem:[#allocation35_spill] sm:$0xff]  ;;  %v16525_v11 = vld [vmem:[#allocation37_spill] sm:$0xff]  ;;  %v16528_v21 = vld [vmem:[#allocation40_spill] sm:$0xff] }
 0xd7f   :  { %v6224_v36 = vrot.slane %v6205_v45, 5  ;;  %v16527_v59 = vld [vmem:[#allocation39_spill] sm:$0xff]  ;;  %v16529_v52 = vld [vmem:[#allocation41_spill] sm:$0xff]  ;;  %v16530_v45 = vld [vmem:[#allocation42_spill] sm:$0xff] }
 0xd80   :  { %v6226_v48 = vrot.slane %v6206_v49, 4  ;;  %v16531_v53 = vld [vmem:[#allocation60_spill] sm:$0xff]  ;;  %v16532_v49 = vld [vmem:[#allocation21_spill] sm:$0xff] }
 0xd81   :  { %v11794_v16 = vpop.eup %11793  ;;  %v6225_v63 = vsel %vm989_vm4, %v6224_v36, %v6223_v24 }
 0xd82   :  { %v6207_v54 = vmul.f32 %v11794_v16, %v11792_v30  ;;  %v6227_v46 = vsel %vm992_vm5, %v6226_v48, %v6225_v63 }
 0xd84   :  { %v6228_v32 = vrot.slane %v6207_v54, 3 }
 0xd86   :  { %v6229_v42 = vsel %vm995_vm6, %v6228_v32, %v6227_v46 }
 0xd87   :  { %6296 = vmatmul.mubr.f32.vlgmr.msra.gmra.mrb[54].mxu0 %v6229_v42  ;;  %6367 = vmatmul.mubr.f32.vlgmr.msra.gmra.mrb[54].mxu1 %v6229_v42 }
 0xd88   :  { %10099 = vmatpush1.bf16.msra.mxu0 %v14287_v58  ;;  %10131 = vmatpush1.bf16.msra.mxu1 %v14289_v4 }
 0xd89   :  { %10101 = vmatprep.subr.bf16.mxu0 %v14291_v41  ;;  %10133 = vmatprep.subr.bf16.mxu1 %v14293_v27 }
 0xd8a   :  { %6772 = vmatprep.mubr.f32.mxu0 %v16143_v8  ;;  %6843 = vmatprep.mubr.f32.mxu1 %v16143_v8 }
 0xd8c   :  { %10103 = vmatpush1.bf16.msra.mxu0 %v16440_v44  ;;  %10135 = vmatpush1.bf16.msra.mxu1 %v16474_v33 }
 0xd8d   :  { %10105 = vmatprep.subr.bf16.mxu0 %v16475_v43  ;;  %10137 = vmatprep.subr.bf16.mxu1 %v16476_v39 }
 0xd90   :  { %10107 = vmatpush1.bf16.msra.mxu0 %v16477_v10  ;;  %10139 = vmatpush1.bf16.msra.mxu1 %v16478_v6 }
 0xd91   :  { %10109 = vmatprep.subr.bf16.mxu0 %v16479_v47  ;;  %10141 = vmatprep.subr.bf16.mxu1 %v16480_v20 }
 0xd94   :  { %10111 = vmatpush1.bf16.msra.mxu0 %v16513_v1  ;;  %10143 = vmatpush1.bf16.msra.mxu1 %v16514_v5 }
 0xd95   :  { %10113 = vmatprep.subr.bf16.mxu0 %v16515_v57  ;;  %10145 = vmatprep.subr.bf16.mxu1 %v16516_v34 }
 0xd98   :  { %10115 = vmatpush1.bf16.msra.mxu0 %v16517_v7  ;;  %10147 = vmatpush1.bf16.msra.mxu1 %v16518_v31 }
 0xd99   :  { %10117 = vmatprep.subr.bf16.mxu0 %v16519_v23  ;;  %10149 = vmatprep.subr.bf16.mxu1 %v16520_v37  ;;  %v16537_v23 = vld [vmem:[#allocation51_spill] sm:$0xff] }
 0xd9c   :  { %10119 = vmatpush1.bf16.msra.mxu0 %v16521_v61  ;;  %10151 = vmatpush1.bf16.msra.mxu1 %v16522_v26  ;;  %v16536_v26 = vld [vmem:[#allocation50_spill] sm:$0xff] }
 0xd9d   :  { %10121 = vmatprep.subr.bf16.mxu0 %v16523_v18  ;;  %10153 = vmatprep.subr.bf16.mxu1 %v16524_v13  ;;  %v16535_v13 = vld [vmem:[#allocation49_spill] sm:$0xff] }
 0xda0   :  { %10123 = vmatpush1.bf16.msra.mxu0 %v16525_v11  ;;  %10155 = vmatpush1.bf16.msra.mxu1 %v16526_v25  ;;  %v16534_v25 = vld [vmem:[#allocation48_spill] sm:$0xff] }
 0xda1   :  { %10125 = vmatprep.subr.bf16.mxu0 %v16527_v59  ;;  %10157 = vmatprep.subr.bf16.mxu1 %v16528_v21  ;;  %v16533_v21 = vld [vmem:[#allocation45_spill] sm:$0xff] }
 0xda4   :  { %10127 = vmatpush1.bf16.msra.mxu0 %v16529_v52  ;;  %10159 = vmatpush1.bf16.msra.mxu1 %v16530_v45 }
 0xda5   :  { %10161 = vmatprep.subr.bf16.mxu0 %v16531_v53  ;;  %10193 = vmatprep.subr.bf16.mxu1 %v16532_v49 }
 0xe5a   :  { %v6297_v24 = vpop.f32.mrb[54].mxu0  ;;  %v15087_v30 = vpop.f32.mrb[54].mxu1 }
 0xe5b   :  { %v6377_v36 = vrot.slane %v6297_v24, 5  ;;  %v6381_v48 = vrot.slane %v6297_v24, 6  ;;  %v6385_v16 = vrot.slane %v6297_v24, 7  ;;  %v6389_v63 = vrot.slane %v6297_v24, 1  ;;  %v15089_v54 = vpop.f32.mrb[55].mxu0  ;;  %v15091_v46 = vpop.f32.mrb[55].mxu1 }
 0xe5c   :  { %v6393_v32 = vrot.slane %v6297_v24, 2  ;;  %v6397_v42 = vrot.slane %v6297_v24, 3  ;;  %v6401_v52 = vrot.slane %v6297_v24, 4  ;;  %v6449_v45 = vadd.f32 %v6297_v24, %v14500_v19 }
 0xe5d   :  { %v6437_v53 = vadd.f32 %v6377_v36, %v16468_v9  ;;  %v6441_v49 = vadd.f32 %v6381_v48, %v14496_v60  ;;  %v6445_v59 = vadd.f32 %v6385_v16, %v16533_v21  ;;  %v6453_v11 = vadd.f32 %v6389_v63, %v16534_v25 }
 0xe5e   :  { %v6457_v18 = vadd.f32 %v6393_v32, %v16535_v13  ;;  %v6461_v61 = vadd.f32 %v6397_v42, %v16536_v26  ;;  %v9030_v37 = vmul.f32 -1.442695, %v6449_v45  ;;  %v6465_v31 = vadd.f32 %v6401_v52, %v16537_v23  ;;  %v16538_v45 = vld [vmem:[#allocation52_spill] sm:$0xff]  ;;  %v16546_v26 = vld [vmem:[#allocation54_spill] sm:$0xff] }
 0xe5f   :  { %v9027_v7 = vmul.f32 -1.442695, %v6437_v53  ;;  %v9028_v34 = vmul.f32 -1.442695, %v6441_v49  ;;  %v9029_v57 = vmul.f32 -1.442695, %v6445_v59 }
 0xe60   :  { %11795 = vpow2.f32 %v9030_v37  ;;  %v9031_v24 = vmul.f32 -1.442695, %v6453_v11  ;;  %v9032_v36 = vmul.f32 -1.442695, %v6457_v18  ;;  %v6379_v48 = vrot.slane %v15087_v30, 5  ;;  %v16539_v37 = vld [vmem:[#allocation57_spill] sm:$0xff] }
 0xe61   :  { %11797 = vpow2.f32 %v9027_v7  ;;  %v6383_v16 = vrot.slane %v15087_v30, 6  ;;  %v9033_v63 = vmul.f32 -1.442695, %v6461_v61  ;;  %v6387_v32 = vrot.slane %v15087_v30, 7  ;;  %v16540_v7 = vld [vmem:[#allocation58_spill] sm:$0xff]  ;;  %v16541_v59 = vld [vmem:[#allocation59_spill] sm:$0xff] }
 0xe62   :  { %11799 = vpow2.f32 %v9028_v34  ;;  %v9034_v42 = vmul.f32 -1.442695, %v6465_v31  ;;  %v6391_v52 = vrot.slane %v15087_v30, 1  ;;  %v6439_v53 = vadd.f32 %v6379_v48, %v16538_v45  ;;  %v16542_v61 = vld [vmem:[#allocation68_spill] sm:$0xff] }
 0xe63   :  { %11801 = vpow2.f32 %v9029_v57  ;;  %v6443_v11 = vadd.f32 %v6383_v16, %v16539_v37  ;;  %v6447_v18 = vadd.f32 %v6387_v32, %v16540_v7  ;;  %v6451_v34 = vadd.f32 %v15087_v30, %v16541_v59 }
 0xe64   :  { %11803 = vpow2.f32 %v9031_v24  ;;  %v6455_v49 = vadd.f32 %v6391_v52, %v16542_v61  ;;  %v6395_v31 = vrot.slane %v15087_v30, 2  ;;  %v6403_v32 = vrot.slane %v15087_v30, 4 }
 0xe65   :  { %11805 = vpow2.f32 %v9032_v36  ;;  %v6399_v36 = vrot.slane %v15087_v30, 3  ;;  %v6386_v7 = vrot.slane %v15089_v54, 7 }
 0xe66   :  { %11807 = vpow2.f32 %v9033_v63 }
 0xe67   :  { %11809 = vpow2.f32 %v9034_v42  ;;  %v6378_v42 = vrot.slane %v15089_v54, 5 }
 0xe68   :  { %11811 = vtanh.f32 %v6439_v53  ;;  %v6382_v53 = vrot.slane %v15089_v54, 6 }
 0xe69   :  { %11813 = vtanh.f32 %v6443_v11  ;;  %v6438_v13 = vadd.f32 %v6378_v42, %v16546_v26 }
 0xe6a   :  { %v11796_v57 = vpop.eup %11795  ;;  %11815 = vtanh.f32 %v6447_v18  ;;  %v16543_v18 = vld [vmem:[#allocation64_spill] sm:$0xff] }
 0xe6b   :  { %v11798_v24 = vpop.eup %11797  ;;  %v6496_v48 = vadd.f32 1.0, %v11796_v57  ;;  %11817 = vtanh.f32 %v6451_v34  ;;  %v6459_v57 = vadd.f32 %v6395_v31, %v16543_v18  ;;  %v6394_v31 = vrot.slane %v15089_v54, 2  ;;  %v16547_v18 = vld [vmem:[#allocation61_spill] sm:$0xff] }
 0xe6c   :  { %v11800_v16 = vpop.eup %11799  ;;  %v6493_v63 = vadd.f32 1.0, %v11798_v24  ;;  %11819 = vtanh.f32 %v6455_v49  ;;  %v16544_v24 = vld [vmem:[#allocation66_spill] sm:$0xff]  ;;  %v6390_v49 = vrot.slane %v15089_v54, 1  ;;  %v6442_v19 = vadd.f32 %v6382_v53, %v16547_v18 }
 0xe6d   :  { %v11802_v59 = vpop.eup %11801  ;;  %v6494_v52 = vadd.f32 1.0, %v11800_v16  ;;  %11821 = vrcp.f32 %v6496_v48  ;;  %v6463_v30 = vadd.f32 %v6399_v36, %v16544_v24  ;;  %v16545_v48 = vld [vmem:[#allocation70_spill] sm:$0xff]  ;;  %v6398_v36 = vrot.slane %v15089_v54, 3  ;;  %v16548_v24 = vld [vmem:[#allocation69_spill] sm:$0xff] }
 0xe6e   :  { %v11804_v11 = vpop.eup %11803  ;;  %v6495_v61 = vadd.f32 1.0, %v11802_v59  ;;  %11823 = vrcp.f32 %v6493_v63  ;;  %v6467_v16 = vadd.f32 %v6403_v32, %v16545_v48  ;;  %v6446_v21 = vadd.f32 %v6386_v7, %v16548_v24  ;;  %v16549_v32 = vld [vmem:[#allocation55_spill] sm:$0xff] }
 0xe6f   :  { %v11806_v34 = vpop.eup %11805  ;;  %v6497_v37 = vadd.f32 1.0, %v11804_v11  ;;  %11825 = vrcp.f32 %v6494_v52  ;;  %v6450_v42 = vadd.f32 %v15089_v54, %v16549_v32  ;;  %v9035_v26 = vmul.f32 -1.442695, %v6438_v13 }
 0xe70   :  { %v11808_v45 = vpop.eup %11807  ;;  %v6498_v23 = vadd.f32 1.0, %v11806_v34  ;;  %11827 = vrcp.f32 %v6495_v61  ;;  %v6402_v61 = vrot.slane %v15089_v54, 4  ;;  %v6380_v53 = vrot.slane %v15091_v46, 5 }
 0xe71   :  { %v11810_v59 = vpop.eup %11809  ;;  %v6499_v63 = vadd.f32 1.0, %v11808_v45  ;;  %11829 = vrcp.f32 %v6497_v37  ;;  %v16550_v45 = vld [vmem:[#allocation62_spill] sm:$0xff]  ;;  %v9036_v60 = vmul.f32 -1.442695, %v6442_v19  ;;  %v6384_v7 = vrot.slane %v15091_v46, 6 }
 0xe72   :  { %v11812_v11 = vpop.eup %11811  ;;  %v6500_v52 = vadd.f32 1.0, %v11810_v59  ;;  %11831 = vrcp.f32 %v6498_v23  ;;  %v6454_v37 = vadd.f32 %v6390_v49, %v16550_v45  ;;  %v16551_v23 = vld [vmem:[#allocation72_spill] sm:$0xff]  ;;  %v6462_v24 = vadd.f32 %v6398_v36, %v16511_v40 }
 0xe73   :  { %v11814_v34 = vpop.eup %11813  ;;  %11833 = vrcp.f32 %v6499_v63  ;;  %v6458_v18 = vadd.f32 %v6394_v31, %v16551_v23  ;;  %v9037_v9 = vmul.f32 -1.442695, %v6446_v21  ;;  %v6388_v54 = vrot.slane %v15091_v46, 7 }
 0xe74   :  { %v11816_v48 = vpop.eup %11815  ;;  %11835 = vrcp.f32 %v6500_v52  ;;  %v6466_v13 = vadd.f32 %v6402_v61, %v16472_v14  ;;  %v9038_v52 = vmul.f32 -1.442695, %v6450_v42  ;;  %v9039_v45 = vmul.f32 -1.442695, %v6454_v37 }
 0xe75   :  { %v11818_v59 = vpop.eup %11817  ;;  %11837 = vtanh.f32 %v6459_v57  ;;  %v6392_v19 = vrot.slane %v15091_v46, 1  ;;  %v6440_v31 = vadd.f32 %v6380_v53, %v16512_v50  ;;  %v9040_v21 = vmul.f32 -1.442695, %v6458_v18 }
 0xe76   :  { %v11820_v63 = vpop.eup %11819  ;;  %11839 = vtanh.f32 %v6463_v30  ;;  %v6444_v36 = vadd.f32 %v6384_v7, %v14565_v29  ;;  %v9041_v61 = vmul.f32 -1.442695, %v6462_v24  ;;  %v6448_v42 = vadd.f32 %v6388_v54, %v14578_v55 }
 0xe77   :  { %v11822_v49 = vpop.eup %11821  ;;  %11841 = vtanh.f32 %v6467_v16  ;;  %v9043_v18 = vmul.f32 -1.442695, %v6440_v31 }
 0xe78   :  { %v11824_v32 = vpop.eup %11823  ;;  %v15136_v57 = vmul.f32 %v11822_v49, %v11818_v59  ;;  %11843 = vpow2.f32 %v9035_v26  ;;  %v9042_v59 = vmul.f32 -1.442695, %v6466_v13  ;;  %v9045_v7 = vmul.f32 -1.442695, %v6448_v42 }
 0xe79   :  { %v11826_v30 = vpop.eup %11825  ;;  %v15140_v23 = vmul.f32 %v11824_v32, %v11812_v11  ;;  %11845 = vpow2.f32 %v9036_v60  ;;  %v6452_v11 = vadd.f32 %v15091_v46, %v14587_v56  ;;  %v6456_v60 = vadd.f32 %v6392_v19, %v14596_v0 }
 0xe7a   :  { %v11828_v16 = vpop.eup %11827  ;;  %v15143_v40 = vmul.f32 %v11826_v30, %v11814_v34  ;;  %11847 = vpow2.f32 %v9037_v9  ;;  %v9044_v9 = vmul.f32 -1.442695, %v6444_v36  ;;  %v6396_v19 = vrot.slane %v15091_v46, 2 }
 0xe7b   :  { %v11830_v37 = vpop.eup %11829  ;;  %v15146_v26 = vmul.f32 %v11828_v16, %v11816_v48  ;;  %11849 = vpow2.f32 %v9038_v52  ;;  %v9046_v54 = vmul.f32 -1.442695, %v6452_v11  ;;  %v9047_v13 = vmul.f32 -1.442695, %v6456_v60 }
 0xe7c   :  { %v11832_v32 = vpop.eup %11831  ;;  %11851 = vpow2.f32 %v9039_v45  ;;  %v15151_v53 = vmul.f32 %v11830_v37, %v11820_v63  ;;  %v6400_v30 = vrot.slane %v15091_v46, 3  ;;  %v6460_v11 = vadd.f32 %v6396_v19, %v14674_v62 }
 0xe7d   :  { %v11834_v34 = vpop.eup %11833  ;;  %11853 = vpow2.f32 %v9040_v21 }
 0xe7e   :  { %v11836_v24 = vpop.eup %11835  ;;  %11855 = vpow2.f32 %v9041_v61 }
 0xe7f   :  { %v11838_v48 = vpop.eup %11837  ;;  %11857 = vpow2.f32 %v9042_v59 }
 0xe80   :  { %v11840_v49 = vpop.eup %11839  ;;  %11859 = vpow2.f32 %v9043_v18  ;;  %v15153_v52 = vmul.f32 %v11838_v48, %v11832_v32  ;;  %v6464_v18 = vadd.f32 %v6400_v30, %v14678_v38  ;;  %v6404_v48 = vrot.slane %v15091_v46, 4 }
 0xe81   :  { %v11842_v45 = vpop.eup %11841  ;;  %11861 = vpow2.f32 %v9044_v9  ;;  %v15156_v63 = vmul.f32 %v11840_v49, %v11834_v34 }
 0xe82   :  { %v11844_v31 = vpop.eup %11843  ;;  %11863 = vpow2.f32 %v9045_v7  ;;  %v15159_v21 = vmul.f32 %v11842_v45, %v11836_v24  ;;  %v9049_v19 = vmul.f32 -1.442695, %v6464_v18 }
 0xe83   :  { %v11846_v36 = vpop.eup %11845  ;;  %v6541_v16 = vadd.f32 1.0, %v11844_v31  ;;  %11865 = vpow2.f32 %v9046_v54 }
 0xe84   :  { %v11848_v61 = vpop.eup %11847  ;;  %v6542_v42 = vadd.f32 1.0, %v11846_v36  ;;  %11867 = vpow2.f32 %v9047_v13  ;;  %v9048_v13 = vmul.f32 -1.442695, %v6460_v11 }
 0xe85   :  { %v11850_v37 = vpop.eup %11849  ;;  %v6543_v59 = vadd.f32 1.0, %v11848_v61  ;;  %11869 = vrcp.f32 %v6541_v16  ;;  %v6468_v61 = vadd.f32 %v6404_v48, %v14685_v22 }
 0xe86   :  { %v11852_v32 = vpop.eup %11851  ;;  %v6544_v60 = vadd.f32 1.0, %v11850_v37  ;;  %11871 = vrcp.f32 %v6542_v42 }
 0xe87   :  { %v11854_v34 = vpop.eup %11853  ;;  %v6545_v9 = vadd.f32 1.0, %v11852_v32  ;;  %11873 = vrcp.f32 %v6543_v59  ;;  %v6629_v32 = vrot.slane %v15012_v35, 7  ;;  %v6633_v35 = vrot.slane %v15028_v2, 7 }
 0xe88   :  { %v11856_v24 = vpop.eup %11855  ;;  %v6546_v7 = vadd.f32 1.0, %v11854_v34  ;;  %11875 = vrcp.f32 %v6544_v60  ;;  %v6630_v34 = vrot.slane %v15016_v15, 7 }
 0xe89   :  { %v11858_v54 = vpop.eup %11857  ;;  %v6547_v49 = vadd.f32 1.0, %v11856_v24  ;;  %11877 = vrcp.f32 %v6545_v9  ;;  %v6631_v24 = vrot.slane %v15020_v28, 7 }
 0xe8a   :  { %v11860_v45 = vpop.eup %11859  ;;  %v6548_v31 = vadd.f32 1.0, %v11858_v54  ;;  %11879 = vrcp.f32 %v6546_v7  ;;  %v9050_v7 = vmul.f32 -1.442695, %v6468_v61 }
 0xe8b   :  { %v11862_v36 = vpop.eup %11861  ;;  %11881 = vrcp.f32 %v6547_v49  ;;  %v6597_v16 = vadd.f32 1.0, %v11860_v45  ;;  %v6632_v49 = vrot.slane %v15024_v3, 7  ;;  %v6635_v3 = vrot.slane %v15036_v12, 7 }
 0xe8c   :  { %v11864_v30 = vpop.eup %11863  ;;  %11883 = vrcp.f32 %v6548_v31  ;;  %v6598_v42 = vadd.f32 1.0, %v11862_v36  ;;  %v6634_v36 = vrot.slane %v15032_v51, 7 }
 0xe8d   :  { %v11866_v37 = vpop.eup %11865  ;;  %11885 = vpow2.f32 %v9048_v13  ;;  %v6599_v59 = vadd.f32 1.0, %v11864_v30 }
 0xe8e   :  { %v11868_v46 = vpop.eup %11867  ;;  %11887 = vpow2.f32 %v9049_v19  ;;  %v6600_v11 = vadd.f32 1.0, %v11866_v37 }
 0xe8f   :  { %v11870_v60 = vpop.eup %11869  ;;  %v6601_v18 = vadd.f32 1.0, %v11868_v46  ;;  %11889 = vrcp.f32 %v6597_v16 }
 0xe90   :  { %v11872_v9 = vpop.eup %11871  ;;  %11891 = vrcp.f32 %v6598_v42  ;;  %v6645_v48 = vmul.f32 %v11870_v60, %v6629_v32 }
 0xe91   :  { %v11874_v54 = vpop.eup %11873  ;;  %11893 = vrcp.f32 %v6599_v59  ;;  %v6646_v13 = vmul.f32 %v11872_v9, %v6630_v34 }
 0xe92   :  { %v11876_v45 = vpop.eup %11875  ;;  %11895 = vrcp.f32 %v6600_v11  ;;  %v6647_v31 = vmul.f32 %v11874_v54, %v6631_v24  ;;  %v15171_v15 = vadd.f32 %v15140_v23, %v6645_v48  ;;  %v6636_v23 = vrot.slane %v15040_v17, 7 }
 0xe93   :  { %v11878_v19 = vpop.eup %11877  ;;  %11897 = vrcp.f32 %v6601_v18  ;;  %v6648_v28 = vmul.f32 %v11876_v45, %v6632_v49  ;;  %v15175_v16 = vadd.f32 %v15143_v40, %v6646_v13 }
 0xe94   :  { %v11880_v30 = vpop.eup %11879  ;;  %11899 = vpow2.f32 %v9050_v7  ;;  %v6649_v61 = vmul.f32 %v11878_v19, %v6633_v35  ;;  %v15179_v2 = vadd.f32 %v15146_v26, %v6647_v31 }
 0xe95   :  { %v11882_v42 = vpop.eup %11881  ;;  %v6650_v37 = vmul.f32 %v11880_v30, %v6634_v36  ;;  %v15183_v59 = vadd.f32 %v15136_v57, %v6648_v28  ;;  %11901 = vtanh.f32 %v15171_v15 }
 0xe96   :  { %v11884_v51 = vpop.eup %11883  ;;  %v6651_v40 = vmul.f32 %v11882_v42, %v6635_v3  ;;  %v15187_v46 = vadd.f32 %v15151_v53, %v6649_v61  ;;  %11903 = vtanh.f32 %v15175_v16 }
 0xe97   :  { %v11886_v12 = vpop.eup %11885  ;;  %v6652_v32 = vmul.f32 %v11884_v51, %v6636_v23  ;;  %v15191_v26 = vadd.f32 %v15153_v52, %v6650_v37  ;;  %11905 = vtanh.f32 %v15179_v2 }
 0xe98   :  { %v11888_v17 = vpop.eup %11887  ;;  %v6602_v11 = vadd.f32 1.0, %v11886_v12  ;;  %v15195_v57 = vadd.f32 %v15156_v63, %v6651_v40  ;;  %11907 = vtanh.f32 %v15183_v59 }
 0xe99   :  { %v11890_v60 = vpop.eup %11889  ;;  %v6603_v34 = vadd.f32 1.0, %v11888_v17  ;;  %v15199_v53 = vadd.f32 %v15159_v21, %v6652_v32  ;;  %11909 = vtanh.f32 %v15187_v46 }
 0xe9a   :  { %v11892_v18 = vpop.eup %11891  ;;  %11911 = vrcp.f32 %v6602_v11 }
 0xe9b   :  { %v11894_v52 = vpop.eup %11893  ;;  %11913 = vrcp.f32 %v6603_v34 }
 0xe9c   :  { %v11896_v9 = vpop.eup %11895  ;;  %11915 = vtanh.f32 %v15191_v26 }
 0xe9d   :  { %v11898_v24 = vpop.eup %11897  ;;  %11917 = vtanh.f32 %v15195_v57 }
 0xe9e   :  { %v11900_v63 = vpop.eup %11899  ;;  %11919 = vtanh.f32 %v15199_v53 }
 0xe9f   :  { %v11902_v7 = vpop.eup %11901  ;;  %v6604_v48 = vadd.f32 1.0, %v11900_v63 }
 0xea0   :  { %v11904_v54 = vpop.eup %11903  ;;  %v6677_v21 = vmul.f32 %v11902_v7, %v11890_v60 }
 0xea1   :  { %v11906_v49 = vpop.eup %11905  ;;  %11921 = vrcp.f32 %v6604_v48  ;;  %v6678_v13 = vmul.f32 %v11904_v54, %v11892_v18 }
 0xea2   :  { %v11908_v45 = vpop.eup %11907  ;;  %v6679_v35 = vmul.f32 %v11906_v49, %v11894_v52  ;;  %v6693_v31 = vrot.slane %v6677_v21, 3  ;;  %v16552_v21 = vld [vmem:[#allocation19_spill] sm:$0xff]  ;;  %v16553_v49 = vld [vmem:[#allocation20_spill] sm:$0xff] }
 0xea3   :  { %v11910_v19 = vpop.eup %11909  ;;  %v6680_v36 = vmul.f32 %v11908_v45, %v11896_v9  ;;  %v6694_v28 = vrot.slane %v6678_v13, 2  ;;  %v16554_v13 = vld [vmem:[#allocation53_spill] sm:$0xff]  ;;  %v16555_v45 = vld [vmem:[#allocation30_spill] sm:$0xff] }
 0xea4   :  { %v11912_v30 = vpop.eup %11911  ;;  %v6681_v3 = vmul.f32 %v11910_v19, %v11898_v24  ;;  %v6696_v61 = vrot.slane %v6679_v35, 1  ;;  %v16556_v35 = vld [vmem:[#allocation31_spill] sm:$0xff]  ;;  %v16558_v19 = vld [vmem:[#allocation33_spill] sm:$0xff] }
 0xea5   :  { %v11914_v42 = vpop.eup %11913  ;;  %v6695_v23 = vsel %vm977_vm0, %v6694_v28, %v6693_v31  ;;  %v16557_v31 = vld [vmem:[#allocation32_spill] sm:$0xff]  ;;  %v16560_v28 = vld [vmem:[#allocation35_spill] sm:$0xff] }
 0xea6   :  { %v11916_v37 = vpop.eup %11915  ;;  %v6697_v51 = vsel %vm980_vm1, %v6696_v61, %v6695_v23  ;;  %v6699_v40 = vrot.slane %v6681_v3, 7  ;;  %v16562_v3 = vld [vmem:[#allocation37_spill] sm:$0xff]  ;;  %v16563_v61 = vld [vmem:[#allocation38_spill] sm:$0xff]  ;;  %v16565_v23 = vld [vmem:[#allocation40_spill] sm:$0xff] }
 0xea7   :  { %v11918_v12 = vpop.eup %11917  ;;  %v6682_v32 = vmul.f32 %v11916_v37, %v11912_v30  ;;  %v6698_v17 = vsel %vm983_vm2, %v6680_v36, %v6697_v51  ;;  %v16559_v36 = vld [vmem:[#allocation34_spill] sm:$0xff]  ;;  %v16561_v30 = vld [vmem:[#allocation36_spill] sm:$0xff]  ;;  %v16566_v37 = vld [vmem:[#allocation41_spill] sm:$0xff] }
 0xea8   :  { %v6683_v11 = vmul.f32 %v11918_v12, %v11914_v42  ;;  %v6700_v60 = vsel %vm986_vm3, %v6699_v40, %v6698_v17  ;;  %v11920_v34 = vpop.eup %11919  ;;  %v16564_v42 = vld [vmem:[#allocation39_spill] sm:$0xff]  ;;  %v16567_v51 = vld [vmem:[#allocation42_spill] sm:$0xff]  ;;  %v16568_v40 = vld [vmem:[#allocation60_spill] sm:$0xff] }
 0xea9   :  { %v6701_v18 = vrot.slane %v6682_v32, 6  ;;  %v16569_v12 = vld [vmem:[#allocation21_spill] sm:$0xff] }
 0xeaa   :  { %v6703_v52 = vrot.slane %v6683_v11, 5 }
 0xeab   :  { %v11922_v9 = vpop.eup %11921  ;;  %v6702_v24 = vsel %vm989_vm4, %v6701_v18, %v6700_v60 }
 0xeac   :  { %v6684_v63 = vmul.f32 %v11922_v9, %v11920_v34  ;;  %v6704_v7 = vsel %vm992_vm5, %v6703_v52, %v6702_v24 }
 0xeae   :  { %v6705_v48 = vrot.slane %v6684_v63, 4 }
 0xeb0   :  { %v6706_v54 = vsel %vm995_vm6, %v6705_v48, %v6704_v7 }
 0xeb1   :  { %6773 = vmatmul.mubr.f32.vlgmr.msra.gmra.mrb[56].mxu0 %v6706_v54  ;;  %6844 = vmatmul.mubr.f32.vlgmr.msra.gmra.mrb[56].mxu1 %v6706_v54  ;;  %v16570_v54 = vld [vmem:[#allocation43_spill] sm:$0xff] }
 0xeb2   :  { %10163 = vmatpush1.bf16.msra.mxu0 %v14287_v58  ;;  %10195 = vmatpush1.bf16.msra.mxu1 %v14289_v4 }
 0xeb3   :  { %10165 = vmatprep.subr.bf16.mxu0 %v14291_v41  ;;  %10197 = vmatprep.subr.bf16.mxu1 %v14293_v27 }
 0xeb4   :  { %7249 = vmatprep.mubr.f32.mxu0 %v16143_v8  ;;  %7320 = vmatprep.mubr.f32.mxu1 %v16143_v8 }
 0xeb6   :  { %10167 = vmatpush1.bf16.msra.mxu0 %v16440_v44  ;;  %10199 = vmatpush1.bf16.msra.mxu1 %v16474_v33 }
 0xeb7   :  { %10169 = vmatprep.subr.bf16.mxu0 %v16475_v43  ;;  %10201 = vmatprep.subr.bf16.mxu1 %v16476_v39 }
 0xeba   :  { %10171 = vmatpush1.bf16.msra.mxu0 %v16477_v10  ;;  %10203 = vmatpush1.bf16.msra.mxu1 %v16478_v6 }
 0xebb   :  { %10173 = vmatprep.subr.bf16.mxu0 %v16479_v47  ;;  %10205 = vmatprep.subr.bf16.mxu1 %v16480_v20 }
 0xebe   :  { %10175 = vmatpush1.bf16.msra.mxu0 %v16513_v1  ;;  %10207 = vmatpush1.bf16.msra.mxu1 %v16514_v5 }
 0xebf   :  { %10177 = vmatprep.subr.bf16.mxu0 %v16552_v21  ;;  %10209 = vmatprep.subr.bf16.mxu1 %v16553_v49 }
 0xec2   :  { %10179 = vmatpush1.bf16.msra.mxu0 %v16554_v13  ;;  %10211 = vmatpush1.bf16.msra.mxu1 %v16555_v45 }
 0xec3   :  { %10181 = vmatprep.subr.bf16.mxu0 %v16556_v35  ;;  %10213 = vmatprep.subr.bf16.mxu1 %v16557_v31  ;;  %v16576_v31 = vld [vmem:[#allocation51_spill] sm:$0xff] }
 0xec6   :  { %10183 = vmatpush1.bf16.msra.mxu0 %v16558_v19  ;;  %10215 = vmatpush1.bf16.msra.mxu1 %v16559_v36 }
 0xec7   :  { %10185 = vmatprep.subr.bf16.mxu0 %v16560_v28  ;;  %10217 = vmatprep.subr.bf16.mxu1 %v16561_v30  ;;  %v16575_v28 = vld [vmem:[#allocation50_spill] sm:$0xff] }
 0xeca   :  { %10187 = vmatpush1.bf16.msra.mxu0 %v16562_v3  ;;  %10219 = vmatpush1.bf16.msra.mxu1 %v16563_v61  ;;  %v16574_v3 = vld [vmem:[#allocation49_spill] sm:$0xff] }
 0xecb   :  { %10189 = vmatprep.subr.bf16.mxu0 %v16564_v42  ;;  %10221 = vmatprep.subr.bf16.mxu1 %v16565_v23  ;;  %v16573_v42 = vld [vmem:[#allocation47_spill] sm:$0xff] }
 0xece   :  { %10191 = vmatpush1.bf16.msra.mxu0 %v16566_v37  ;;  %10223 = vmatpush1.bf16.msra.mxu1 %v16567_v51  ;;  %v16571_v51 = vld [vmem:[#allocation44_spill] sm:$0xff]  ;;  %v16572_v37 = vld [vmem:[#allocation45_spill] sm:$0xff] }
 0xecf   :  { %10225 = vmatprep.subr.bf16.mxu0 %v16568_v40  ;;  %10257 = vmatprep.subr.bf16.mxu1 %v16569_v12 }
 0xf84   :  { %v6774_v32 = vpop.f32.mrb[56].mxu0  ;;  %v15246_v17 = vpop.f32.mrb[56].mxu1 }
 0xf85   :  { %v6854_v11 = vrot.slane %v6774_v32, 4  ;;  %v6858_v60 = vrot.slane %v6774_v32, 5  ;;  %v6862_v34 = vrot.slane %v6774_v32, 6  ;;  %v6866_v18 = vrot.slane %v6774_v32, 7  ;;  %v15248_v52 = vpop.f32.mrb[57].mxu0  ;;  %v15250_v9 = vpop.f32.mrb[57].mxu1 }
 0xf86   :  { %v6870_v24 = vrot.slane %v6774_v32, 1  ;;  %v6874_v63 = vrot.slane %v6774_v32, 2  ;;  %v6878_v7 = vrot.slane %v6774_v32, 3  ;;  %v6930_v48 = vadd.f32 %v6774_v32, %v16534_v25 }
 0xf87   :  { %v6914_v40 = vadd.f32 %v6854_v11, %v16570_v54  ;;  %v6918_v12 = vadd.f32 %v6858_v60, %v16571_v51  ;;  %v6922_v23 = vadd.f32 %v6862_v34, %v16572_v37  ;;  %v6926_v61 = vadd.f32 %v6866_v18, %v16573_v42  ;;  %v16590_v37 = vld [vmem:[#allocation72_spill] sm:$0xff] }
 0xf88   :  { %v6934_v30 = vadd.f32 %v6870_v24, %v16574_v3  ;;  %v6938_v36 = vadd.f32 %v6874_v63, %v16575_v28  ;;  %v9055_v19 = vmul.f32 -1.442695, %v6930_v48  ;;  %v6942_v35 = vadd.f32 %v6878_v7, %v16576_v31  ;;  %v16585_v28 = vld [vmem:[#allocation61_spill] sm:$0xff] }
 0xf89   :  { %v9051_v45 = vmul.f32 -1.442695, %v6914_v40  ;;  %v9052_v13 = vmul.f32 -1.442695, %v6918_v12  ;;  %v9053_v49 = vmul.f32 -1.442695, %v6922_v23 }
 0xf8a   :  { %v9054_v21 = vmul.f32 -1.442695, %v6926_v61  ;;  %11923 = vpow2.f32 %v9055_v19  ;;  %v9056_v32 = vmul.f32 -1.442695, %v6934_v30  ;;  %v6856_v11 = vrot.slane %v15246_v17, 4  ;;  %v16577_v40 = vld [vmem:[#allocation52_spill] sm:$0xff] }
 0xf8b   :  { %11925 = vpow2.f32 %v9051_v45  ;;  %v6860_v60 = vrot.slane %v15246_v17, 5  ;;  %v9057_v34 = vmul.f32 -1.442695, %v6938_v36  ;;  %v6864_v18 = vrot.slane %v15246_v17, 6  ;;  %v16578_v61 = vld [vmem:[#allocation57_spill] sm:$0xff]  ;;  %v16579_v45 = vld [vmem:[#allocation58_spill] sm:$0xff] }
 0xf8c   :  { %11927 = vpow2.f32 %v9052_v13  ;;  %v9058_v24 = vmul.f32 -1.442695, %v6942_v35  ;;  %v6868_v63 = vrot.slane %v15246_v17, 7  ;;  %v6916_v12 = vadd.f32 %v6856_v11, %v16577_v40  ;;  %v16580_v23 = vld [vmem:[#allocation59_spill] sm:$0xff]  ;;  %v16581_v13 = vld [vmem:[#allocation68_spill] sm:$0xff]  ;;  %v16584_v40 = vld [vmem:[#allocation54_spill] sm:$0xff] }
 0xf8d   :  { %11929 = vpow2.f32 %v9053_v49  ;;  %v6920_v19 = vadd.f32 %v6860_v60, %v16578_v61  ;;  %v6924_v30 = vadd.f32 %v6864_v18, %v16579_v45  ;;  %v6932_v36 = vadd.f32 %v15246_v17, %v16581_v13 }
 0xf8e   :  { %11931 = vpow2.f32 %v9054_v21  ;;  %v6928_v7 = vadd.f32 %v6868_v63, %v16580_v23  ;;  %v6872_v48 = vrot.slane %v15246_v17, 1  ;;  %v6876_v60 = vrot.slane %v15246_v17, 2 }
 0xf8f   :  { %11933 = vpow2.f32 %v9056_v32  ;;  %v6859_v63 = vrot.slane %v15248_v52, 5 }
 0xf90   :  { %11935 = vpow2.f32 %v9057_v34  ;;  %v6855_v34 = vrot.slane %v15248_v52, 4 }
 0xf91   :  { %11937 = vpow2.f32 %v9058_v24  ;;  %v6919_v25 = vadd.f32 %v6859_v63, %v16585_v28 }
 0xf92   :  { %11939 = vtanh.f32 %v6916_v12  ;;  %v6915_v31 = vadd.f32 %v6855_v34, %v16584_v40  ;;  %v6879_v34 = vrot.slane %v15248_v52, 3  ;;  %v16589_v40 = vld [vmem:[#allocation62_spill] sm:$0xff] }
 0xf93   :  { %11941 = vtanh.f32 %v6920_v19  ;;  %v6931_v63 = vadd.f32 %v15248_v52, %v16589_v40  ;;  %v6869_v40 = vrot.slane %v15250_v9, 7 }
 0xf94   :  { %v11924_v49 = vpop.eup %11923  ;;  %11943 = vtanh.f32 %v6924_v30  ;;  %v6880_v30 = vrot.slane %v15246_v17, 3  ;;  %v6871_v17 = vrot.slane %v15248_v52, 1  ;;  %v9059_v28 = vmul.f32 -1.442695, %v6915_v31 }
 0xf95   :  { %v11926_v35 = vpop.eup %11925  ;;  %v6974_v21 = vadd.f32 1.0, %v11924_v49  ;;  %11945 = vtanh.f32 %v6928_v7  ;;  %v6863_v49 = vrot.slane %v15248_v52, 6  ;;  %v6943_v31 = vadd.f32 %v6879_v34, %v16472_v14 }
 0xf96   :  { %v11928_v32 = vpop.eup %11927  ;;  %v6970_v11 = vadd.f32 1.0, %v11926_v35  ;;  %11947 = vtanh.f32 %v6932_v36  ;;  %v16582_v35 = vld [vmem:[#allocation64_spill] sm:$0xff]  ;;  %v6867_v36 = vrot.slane %v15248_v52, 7 }
 0xf97   :  { %v11930_v18 = vpop.eup %11929  ;;  %v6971_v24 = vadd.f32 1.0, %v11928_v32  ;;  %11949 = vrcp.f32 %v6974_v21  ;;  %v6936_v23 = vadd.f32 %v6872_v48, %v16582_v35  ;;  %v16583_v21 = vld [vmem:[#allocation66_spill] sm:$0xff]  ;;  %v6875_v48 = vrot.slane %v15248_v52, 2  ;;  %v16586_v35 = vld [vmem:[#allocation69_spill] sm:$0xff] }
 0xf98   :  { %v11932_v12 = vpop.eup %11931  ;;  %v6972_v19 = vadd.f32 1.0, %v11930_v18  ;;  %11951 = vrcp.f32 %v6970_v11  ;;  %v6940_v32 = vadd.f32 %v6876_v60, %v16583_v21  ;;  %v6923_v42 = vadd.f32 %v6863_v49, %v16586_v35  ;;  %v16588_v21 = vld [vmem:[#allocation55_spill] sm:$0xff] }
 0xf99   :  { %v11934_v7 = vpop.eup %11933  ;;  %v6973_v13 = vadd.f32 1.0, %v11932_v12  ;;  %11953 = vrcp.f32 %v6971_v24  ;;  %v6935_v49 = vadd.f32 %v6871_v17, %v16590_v37  ;;  %v9060_v35 = vmul.f32 -1.442695, %v6919_v25 }
 0xf9a   :  { %v11936_v45 = vpop.eup %11935  ;;  %v6975_v61 = vadd.f32 1.0, %v11934_v7  ;;  %11955 = vrcp.f32 %v6972_v19  ;;  %v16587_v19 = vld [vmem:[#allocation70_spill] sm:$0xff]  ;;  %v9063_v17 = vmul.f32 -1.442695, %v6931_v63 }
 0xf9b   :  { %v11938_v18 = vpop.eup %11937  ;;  %v6976_v11 = vadd.f32 1.0, %v11936_v45  ;;  %11957 = vrcp.f32 %v6973_v13  ;;  %v6944_v60 = vadd.f32 %v6880_v30, %v16587_v19  ;;  %v6927_v45 = vadd.f32 %v6867_v36, %v16588_v21  ;;  %v16591_v19 = vld [vmem:[#allocation67_spill] sm:$0xff] }
 0xf9c   :  { %v11940_v12 = vpop.eup %11939  ;;  %v6977_v24 = vadd.f32 1.0, %v11938_v18  ;;  %11959 = vrcp.f32 %v6975_v61  ;;  %v6857_v61 = vrot.slane %v15250_v9, 4  ;;  %v6939_v51 = vadd.f32 %v6875_v48, %v16591_v19 }
 0xf9d   :  { %v11942_v7 = vpop.eup %11941  ;;  %11961 = vrcp.f32 %v6976_v11  ;;  %v6861_v11 = vrot.slane %v15250_v9, 5  ;;  %v9061_v36 = vmul.f32 -1.442695, %v6923_v42  ;;  %v9062_v52 = vmul.f32 -1.442695, %v6927_v45 }
 0xf9e   :  { %v11944_v13 = vpop.eup %11943  ;;  %11963 = vrcp.f32 %v6977_v24  ;;  %v6865_v24 = vrot.slane %v15250_v9, 6  ;;  %v6917_v25 = vadd.f32 %v6857_v61, %v16512_v50  ;;  %v9064_v42 = vmul.f32 -1.442695, %v6935_v49 }
 0xf9f   :  { %v11946_v18 = vpop.eup %11945  ;;  %11965 = vtanh.f32 %v6936_v23  ;;  %v6921_v48 = vadd.f32 %v6861_v11, %v14565_v29  ;;  %v9065_v34 = vmul.f32 -1.442695, %v6939_v51  ;;  %v6929_v61 = vadd.f32 %v6869_v40, %v14587_v56 }
 0xfa0   :  { %v11948_v30 = vpop.eup %11947  ;;  %11967 = vtanh.f32 %v6940_v32  ;;  %v6925_v45 = vadd.f32 %v6865_v24, %v14578_v55  ;;  %v9067_v49 = vmul.f32 -1.442695, %v6917_v25 }
 0xfa1   :  { %v11950_v21 = vpop.eup %11949  ;;  %11969 = vtanh.f32 %v6944_v60  ;;  %v9068_v51 = vmul.f32 -1.442695, %v6921_v48  ;;  %v9070_v24 = vmul.f32 -1.442695, %v6929_v61 }
 0xfa2   :  { %v11952_v23 = vpop.eup %11951  ;;  %11971 = vpow2.f32 %v9059_v28  ;;  %v15297_v37 = vmul.f32 %v11950_v21, %v11948_v30  ;;  %v9066_v21 = vmul.f32 -1.442695, %v6943_v31 }
 0xfa3   :  { %v11954_v32 = vpop.eup %11953  ;;  %v15299_v54 = vmul.f32 %v11952_v23, %v11940_v12  ;;  %11973 = vpow2.f32 %v9060_v35  ;;  %v6933_v35 = vadd.f32 %v15250_v9, %v14596_v0 }
 0xfa4   :  { %v11956_v60 = vpop.eup %11955  ;;  %v15302_v19 = vmul.f32 %v11954_v32, %v11942_v7  ;;  %11975 = vpow2.f32 %v9061_v36  ;;  %v9069_v36 = vmul.f32 -1.442695, %v6925_v45  ;;  %v6877_v32 = vrot.slane %v15250_v9, 2 }
 0xfa5   :  { %v11958_v28 = vpop.eup %11957  ;;  %v15305_v63 = vmul.f32 %v11956_v60, %v11944_v13  ;;  %11977 = vpow2.f32 %v9062_v52  ;;  %v9071_v40 = vmul.f32 -1.442695, %v6933_v35 }
 0xfa6   :  { %v11960_v12 = vpop.eup %11959  ;;  %11979 = vpow2.f32 %v9063_v17  ;;  %v15310_v11 = vmul.f32 %v11958_v28, %v11946_v18  ;;  %v6873_v17 = vrot.slane %v15250_v9, 1 }
 0xfa7   :  { %v11962_v7 = vpop.eup %11961  ;;  %11981 = vpow2.f32 %v9064_v42 }
 0xfa8   :  { %v11964_v30 = vpop.eup %11963  ;;  %11983 = vpow2.f32 %v9065_v34  ;;  %v6937_v61 = vadd.f32 %v6873_v17, %v14674_v62 }
 0xfa9   :  { %v11966_v13 = vpop.eup %11965  ;;  %11985 = vpow2.f32 %v9066_v21 }
 0xfaa   :  { %v11968_v31 = vpop.eup %11967  ;;  %11987 = vpow2.f32 %v9067_v49  ;;  %v15312_v52 = vmul.f32 %v11966_v13, %v11960_v12  ;;  %v6941_v49 = vadd.f32 %v6877_v32, %v14678_v38  ;;  %v6881_v13 = vrot.slane %v15250_v9, 3 }
 0xfab   :  { %v11970_v23 = vpop.eup %11969  ;;  %11989 = vpow2.f32 %v9068_v51  ;;  %v15315_v18 = vmul.f32 %v11968_v31, %v11962_v7 }
 0xfac   :  { %v11972_v25 = vpop.eup %11971  ;;  %11991 = vpow2.f32 %v9069_v36  ;;  %v15318_v42 = vmul.f32 %v11970_v23, %v11964_v30  ;;  %v9073_v17 = vmul.f32 -1.442695, %v6941_v49 }
 0xfad   :  { %v11974_v48 = vpop.eup %11973  ;;  %v7018_v60 = vadd.f32 1.0, %v11972_v25  ;;  %11993 = vpow2.f32 %v9070_v24 }
 0xfae   :  { %v11976_v34 = vpop.eup %11975  ;;  %v7019_v45 = vadd.f32 1.0, %v11974_v48  ;;  %11995 = vpow2.f32 %v9071_v40  ;;  %v9072_v40 = vmul.f32 -1.442695, %v6937_v61 }
 0xfaf   :  { %v11978_v28 = vpop.eup %11977  ;;  %v7020_v21 = vadd.f32 1.0, %v11976_v34  ;;  %11997 = vrcp.f32 %v7018_v60  ;;  %v6945_v34 = vadd.f32 %v6881_v13, %v14685_v22 }
 0xfb0   :  { %v11980_v12 = vpop.eup %11979  ;;  %v7021_v35 = vadd.f32 1.0, %v11978_v28  ;;  %11999 = vrcp.f32 %v7019_v45 }
 0xfb1   :  { %v11982_v7 = vpop.eup %11981  ;;  %v7022_v51 = vadd.f32 1.0, %v11980_v12  ;;  %12001 = vrcp.f32 %v7020_v21  ;;  %v7106_v12 = vrot.slane %v15171_v15, 7  ;;  %v7110_v15 = vrot.slane %v15187_v46, 7 }
 0xfb2   :  { %v11984_v30 = vpop.eup %11983  ;;  %v7023_v36 = vadd.f32 1.0, %v11982_v7  ;;  %12003 = vrcp.f32 %v7021_v35  ;;  %v7107_v7 = vrot.slane %v15175_v16, 7 }
 0xfb3   :  { %v11986_v24 = vpop.eup %11985  ;;  %v7024_v31 = vadd.f32 1.0, %v11984_v30  ;;  %12005 = vrcp.f32 %v7022_v51  ;;  %v7108_v30 = vrot.slane %v15179_v2, 7 }
 0xfb4   :  { %v11988_v23 = vpop.eup %11987  ;;  %v7025_v25 = vadd.f32 1.0, %v11986_v24  ;;  %12007 = vrcp.f32 %v7023_v36  ;;  %v9074_v36 = vmul.f32 -1.442695, %v6945_v34 }
 0xfb5   :  { %v11990_v48 = vpop.eup %11989  ;;  %12009 = vrcp.f32 %v7024_v31  ;;  %v7074_v60 = vadd.f32 1.0, %v11988_v23  ;;  %v7109_v31 = vrot.slane %v15183_v59, 7  ;;  %v7112_v59 = vrot.slane %v15195_v57, 7 }
 0xfb6   :  { %v11992_v32 = vpop.eup %11991  ;;  %12011 = vrcp.f32 %v7025_v25  ;;  %v7075_v45 = vadd.f32 1.0, %v11990_v48  ;;  %v7111_v48 = vrot.slane %v15191_v26, 7 }
 0xfb7   :  { %v11994_v28 = vpop.eup %11993  ;;  %12013 = vpow2.f32 %v9072_v40  ;;  %v7076_v21 = vadd.f32 1.0, %v11992_v32 }
 0xfb8   :  { %v11996_v9 = vpop.eup %11995  ;;  %12015 = vpow2.f32 %v9073_v17  ;;  %v7077_v61 = vadd.f32 1.0, %v11994_v28 }
 0xfb9   :  { %v11998_v35 = vpop.eup %11997  ;;  %v7078_v49 = vadd.f32 1.0, %v11996_v9  ;;  %12017 = vrcp.f32 %v7074_v60 }
 0xfba   :  { %v12000_v51 = vpop.eup %11999  ;;  %12019 = vrcp.f32 %v7075_v45  ;;  %v7122_v13 = vmul.f32 %v11998_v35, %v7106_v12 }
 0xfbb   :  { %v12002_v24 = vpop.eup %12001  ;;  %12021 = vrcp.f32 %v7076_v21  ;;  %v7123_v40 = vmul.f32 %v12000_v51, %v7107_v7 }
 0xfbc   :  { %v12004_v23 = vpop.eup %12003  ;;  %12023 = vrcp.f32 %v7077_v61  ;;  %v7124_v25 = vmul.f32 %v12002_v24, %v7108_v30  ;;  %v15330_v16 = vadd.f32 %v15299_v54, %v7122_v13  ;;  %v7113_v54 = vrot.slane %v15199_v53, 7 }
 0xfbd   :  { %v12006_v17 = vpop.eup %12005  ;;  %12025 = vrcp.f32 %v7078_v49  ;;  %v7125_v2 = vmul.f32 %v12004_v23, %v7109_v31  ;;  %v15334_v60 = vadd.f32 %v15302_v19, %v7123_v40 }
 0xfbe   :  { %v12008_v32 = vpop.eup %12007  ;;  %12027 = vpow2.f32 %v9074_v36  ;;  %v7126_v34 = vmul.f32 %v12006_v17, %v7110_v15  ;;  %v15338_v46 = vadd.f32 %v15305_v63, %v7124_v25 }
 0xfbf   :  { %v12010_v45 = vpop.eup %12009  ;;  %v7127_v28 = vmul.f32 %v12008_v32, %v7111_v48  ;;  %v15342_v21 = vadd.f32 %v15310_v11, %v7125_v2  ;;  %12029 = vtanh.f32 %v15330_v16 }
 0xfc0   :  { %v12012_v26 = vpop.eup %12011  ;;  %v7128_v19 = vmul.f32 %v12010_v45, %v7112_v59  ;;  %v15346_v9 = vadd.f32 %v15297_v37, %v7126_v34  ;;  %12031 = vtanh.f32 %v15334_v60 }
 0xfc1   :  { %v12014_v57 = vpop.eup %12013  ;;  %v7129_v12 = vmul.f32 %v12012_v26, %v7113_v54  ;;  %v15350_v63 = vadd.f32 %v15312_v52, %v7127_v28  ;;  %12033 = vtanh.f32 %v15338_v46 }
 0xfc2   :  { %v12016_v53 = vpop.eup %12015  ;;  %v7079_v61 = vadd.f32 1.0, %v12014_v57  ;;  %v15354_v11 = vadd.f32 %v15315_v18, %v7128_v19  ;;  %12035 = vtanh.f32 %v15342_v21 }
 0xfc3   :  { %v12018_v35 = vpop.eup %12017  ;;  %v7080_v7 = vadd.f32 1.0, %v12016_v53  ;;  %v15358_v37 = vadd.f32 %v15318_v42, %v7129_v12  ;;  %12037 = vtanh.f32 %v15346_v9 }
 0xfc4   :  { %v12020_v49 = vpop.eup %12019  ;;  %12039 = vrcp.f32 %v7079_v61 }
 0xfc5   :  { %v12022_v52 = vpop.eup %12021  ;;  %12041 = vrcp.f32 %v7080_v7 }
 0xfc6   :  { %v12024_v51 = vpop.eup %12023  ;;  %12043 = vtanh.f32 %v15350_v63 }
 0xfc7   :  { %v12026_v30 = vpop.eup %12025  ;;  %12045 = vtanh.f32 %v15354_v11 }
 0xfc8   :  { %v12028_v18 = vpop.eup %12027  ;;  %12047 = vtanh.f32 %v15358_v37 }
 0xfc9   :  { %v12030_v36 = vpop.eup %12029  ;;  %v7081_v13 = vadd.f32 1.0, %v12028_v18 }
 0xfca   :  { %v12032_v24 = vpop.eup %12031  ;;  %v7154_v42 = vmul.f32 %v12030_v36, %v12018_v35 }
 0xfcb   :  { %v12034_v31 = vpop.eup %12033  ;;  %12049 = vrcp.f32 %v7081_v13  ;;  %v7155_v40 = vmul.f32 %v12032_v24, %v12020_v49 }
 0xfcc   :  { %v12036_v23 = vpop.eup %12035  ;;  %v7156_v15 = vmul.f32 %v12034_v31, %v12022_v52  ;;  %v7170_v25 = vrot.slane %v7154_v42, 4  ;;  %v16592_v42 = vld [vmem:[#allocation19_spill] sm:$0xff]  ;;  %v16593_v31 = vld [vmem:[#allocation20_spill] sm:$0xff] }
 0xfcd   :  { %v12038_v17 = vpop.eup %12037  ;;  %v7157_v48 = vmul.f32 %v12036_v23, %v12024_v51  ;;  %v7171_v2 = vrot.slane %v7155_v40, 3  ;;  %v16594_v40 = vld [vmem:[#allocation53_spill] sm:$0xff]  ;;  %v16595_v23 = vld [vmem:[#allocation30_spill] sm:$0xff] }
 0xfce   :  { %v12040_v32 = vpop.eup %12039  ;;  %v7158_v59 = vmul.f32 %v12038_v17, %v12026_v30  ;;  %v7173_v34 = vrot.slane %v7156_v15, 2  ;;  %v16596_v15 = vld [vmem:[#allocation31_spill] sm:$0xff]  ;;  %v16598_v17 = vld [vmem:[#allocation33_spill] sm:$0xff] }
 0xfcf   :  { %v12042_v45 = vpop.eup %12041  ;;  %v7172_v54 = vsel %vm977_vm0, %v7171_v2, %v7170_v25  ;;  %v7175_v28 = vrot.slane %v7157_v48, 1  ;;  %v16597_v25 = vld [vmem:[#allocation32_spill] sm:$0xff]  ;;  %v16599_v48 = vld [vmem:[#allocation34_spill] sm:$0xff]  ;;  %v16600_v2 = vld [vmem:[#allocation35_spill] sm:$0xff] }
 0xfd0   :  { %v12044_v26 = vpop.eup %12043  ;;  %v7174_v19 = vsel %vm980_vm1, %v7173_v34, %v7172_v54  ;;  %v16603_v34 = vld [vmem:[#allocation38_spill] sm:$0xff]  ;;  %v16605_v54 = vld [vmem:[#allocation40_spill] sm:$0xff] }
 0xfd1   :  { %v12046_v57 = vpop.eup %12045  ;;  %v7159_v12 = vmul.f32 %v12044_v26, %v12040_v32  ;;  %v7176_v53 = vsel %vm983_vm2, %v7175_v28, %v7174_v19  ;;  %v16601_v32 = vld [vmem:[#allocation36_spill] sm:$0xff]  ;;  %v16606_v28 = vld [vmem:[#allocation41_spill] sm:$0xff]  ;;  %v16607_v26 = vld [vmem:[#allocation42_spill] sm:$0xff] }
 0xfd2   :  { %v7160_v61 = vmul.f32 %v12046_v57, %v12042_v45  ;;  %v7177_v35 = vsel %vm986_vm3, %v7158_v59, %v7176_v53  ;;  %v12048_v7 = vpop.eup %12047  ;;  %v16602_v59 = vld [vmem:[#allocation37_spill] sm:$0xff]  ;;  %v16604_v45 = vld [vmem:[#allocation39_spill] sm:$0xff]  ;;  %v16608_v19 = vld [vmem:[#allocation60_spill] sm:$0xff] }
 0xfd3   :  { %v7178_v49 = vrot.slane %v7159_v12, 7  ;;  %v16609_v57 = vld [vmem:[#allocation21_spill] sm:$0xff] }
 0xfd4   :  { %v7180_v52 = vrot.slane %v7160_v61, 6 }
 0xfd5   :  { %v12050_v51 = vpop.eup %12049  ;;  %v7179_v30 = vsel %vm989_vm4, %v7178_v49, %v7177_v35 }
 0xfd6   :  { %v7161_v18 = vmul.f32 %v12050_v51, %v12048_v7  ;;  %v7181_v36 = vsel %vm992_vm5, %v7180_v52, %v7179_v30 }
 0xfd8   :  { %v7182_v13 = vrot.slane %v7161_v18, 5 }
 0xfda   :  { %v7183_v24 = vsel %vm995_vm6, %v7182_v13, %v7181_v36 }
 0xfdb   :  { %7250 = vmatmul.mubr.f32.vlgmr.msra.gmra.mrb[58].mxu0 %v7183_v24  ;;  %7321 = vmatmul.mubr.f32.vlgmr.msra.gmra.mrb[58].mxu1 %v7183_v24  ;;  %v16610_v24 = vld [vmem:[#allocation43_spill] sm:$0xff] }
 0xfdc   :  { %10227 = vmatpush1.bf16.msra.mxu0 %v14287_v58  ;;  %10259 = vmatpush1.bf16.msra.mxu1 %v14289_v4 }
 0xfdd   :  { %10229 = vmatprep.subr.bf16.mxu0 %v14291_v41  ;;  %10261 = vmatprep.subr.bf16.mxu1 %v14293_v27 }
 0xfde   :  { %7726 = vmatprep.mubr.f32.mxu0 %v16143_v8  ;;  %7797 = vmatprep.mubr.f32.mxu1 %v16143_v8 }
 0xfe0   :  { %10231 = vmatpush1.bf16.msra.mxu0 %v16440_v44  ;;  %10263 = vmatpush1.bf16.msra.mxu1 %v16474_v33 }
 0xfe1   :  { %10233 = vmatprep.subr.bf16.mxu0 %v16475_v43  ;;  %10265 = vmatprep.subr.bf16.mxu1 %v16476_v39 }
 0xfe4   :  { %10235 = vmatpush1.bf16.msra.mxu0 %v16477_v10  ;;  %10267 = vmatpush1.bf16.msra.mxu1 %v16478_v6 }
 0xfe5   :  { %10237 = vmatprep.subr.bf16.mxu0 %v16479_v47  ;;  %10269 = vmatprep.subr.bf16.mxu1 %v16480_v20 }
 0xfe8   :  { %10239 = vmatpush1.bf16.msra.mxu0 %v16513_v1  ;;  %10271 = vmatpush1.bf16.msra.mxu1 %v16514_v5 }
 0xfe9   :  { %10241 = vmatprep.subr.bf16.mxu0 %v16592_v42  ;;  %10273 = vmatprep.subr.bf16.mxu1 %v16593_v31 }
 0xfec   :  { %10243 = vmatpush1.bf16.msra.mxu0 %v16594_v40  ;;  %10275 = vmatpush1.bf16.msra.mxu1 %v16595_v23 }
 0xfed   :  { %10245 = vmatprep.subr.bf16.mxu0 %v16596_v15  ;;  %10277 = vmatprep.subr.bf16.mxu1 %v16597_v25  ;;  %v16616_v25 = vld [vmem:[#allocation51_spill] sm:$0xff] }
 0xff0   :  { %10247 = vmatpush1.bf16.msra.mxu0 %v16598_v17  ;;  %10279 = vmatpush1.bf16.msra.mxu1 %v16599_v48 }
 0xff1   :  { %10249 = vmatprep.subr.bf16.mxu0 %v16600_v2  ;;  %10281 = vmatprep.subr.bf16.mxu1 %v16601_v32  ;;  %v16615_v2 = vld [vmem:[#allocation50_spill] sm:$0xff] }
 0xff4   :  { %10251 = vmatpush1.bf16.msra.mxu0 %v16602_v59  ;;  %10283 = vmatpush1.bf16.msra.mxu1 %v16603_v34  ;;  %v16614_v59 = vld [vmem:[#allocation48_spill] sm:$0xff] }
 0xff5   :  { %10253 = vmatprep.subr.bf16.mxu0 %v16604_v45  ;;  %10285 = vmatprep.subr.bf16.mxu1 %v16605_v54  ;;  %v16613_v45 = vld [vmem:[#allocation47_spill] sm:$0xff] }
 0xff8   :  { %10255 = vmatpush1.bf16.msra.mxu0 %v16606_v28  ;;  %10287 = vmatpush1.bf16.msra.mxu1 %v16607_v26  ;;  %v16611_v26 = vld [vmem:[#allocation44_spill] sm:$0xff]  ;;  %v16612_v28 = vld [vmem:[#allocation45_spill] sm:$0xff] }
 0xff9   :  { %10289 = vmatprep.subr.bf16.mxu0 %v16608_v19  ;;  %10321 = vmatprep.subr.bf16.mxu1 %v16609_v57 }
0x10ae   :  { %v7251_v12 = vpop.f32.mrb[58].mxu0  ;;  %v15405_v53 = vpop.f32.mrb[58].mxu1 }
0x10af   :  { %v7331_v61 = vrot.slane %v7251_v12, 3  ;;  %v7335_v35 = vrot.slane %v7251_v12, 4  ;;  %v7339_v7 = vrot.slane %v7251_v12, 5  ;;  %v7343_v49 = vrot.slane %v7251_v12, 6  ;;  %v15407_v52 = vpop.f32.mrb[59].mxu0  ;;  %v15409_v51 = vpop.f32.mrb[59].mxu1 }
0x10b0   :  { %v7347_v30 = vrot.slane %v7251_v12, 7  ;;  %v7351_v18 = vrot.slane %v7251_v12, 1  ;;  %v7355_v36 = vrot.slane %v7251_v12, 2  ;;  %v7411_v13 = vadd.f32 %v7251_v12, %v16574_v3 }
0x10b1   :  { %v7391_v19 = vadd.f32 %v7331_v61, %v16610_v24  ;;  %v7395_v57 = vadd.f32 %v7335_v35, %v16611_v26  ;;  %v7399_v54 = vadd.f32 %v7339_v7, %v16612_v28  ;;  %v7403_v34 = vadd.f32 %v7343_v49, %v16613_v45 }
0x10b2   :  { %v7407_v32 = vadd.f32 %v7347_v30, %v16614_v59  ;;  %v7415_v48 = vadd.f32 %v7351_v18, %v16615_v2  ;;  %v9080_v17 = vmul.f32 -1.442695, %v7411_v13  ;;  %v7419_v15 = vadd.f32 %v7355_v36, %v16616_v25  ;;  %v16626_v59 = vld [vmem:[#allocation69_spill] sm:$0xff] }
0x10b3   :  { %v9075_v23 = vmul.f32 -1.442695, %v7391_v19  ;;  %v9076_v40 = vmul.f32 -1.442695, %v7395_v57  ;;  %v9077_v31 = vmul.f32 -1.442695, %v7399_v54 }
0x10b4   :  { %v9078_v42 = vmul.f32 -1.442695, %v7403_v34  ;;  %12051 = vpow2.f32 %v9080_v17  ;;  %v9079_v12 = vmul.f32 -1.442695, %v7407_v32  ;;  %v7333_v61 = vrot.slane %v15405_v53, 3  ;;  %v16617_v54 = vld [vmem:[#allocation52_spill] sm:$0xff] }
0x10b5   :  { %12053 = vpow2.f32 %v9075_v23  ;;  %v7337_v35 = vrot.slane %v15405_v53, 4  ;;  %v9081_v7 = vmul.f32 -1.442695, %v7415_v48  ;;  %v7341_v49 = vrot.slane %v15405_v53, 5  ;;  %v16618_v23 = vld [vmem:[#allocation57_spill] sm:$0xff]  ;;  %v16619_v32 = vld [vmem:[#allocation58_spill] sm:$0xff] }
0x10b6   :  { %12055 = vpow2.f32 %v9076_v40  ;;  %v9082_v30 = vmul.f32 -1.442695, %v7419_v15  ;;  %v7345_v18 = vrot.slane %v15405_v53, 6  ;;  %v7349_v36 = vrot.slane %v15405_v53, 7  ;;  %v16620_v40 = vld [vmem:[#allocation59_spill] sm:$0xff]  ;;  %v16621_v19 = vld [vmem:[#allocation68_spill] sm:$0xff] }
0x10b7   :  { %12057 = vpow2.f32 %v9077_v31  ;;  %v7393_v34 = vadd.f32 %v7333_v61, %v16617_v54  ;;  %v7397_v17 = vadd.f32 %v7337_v35, %v16618_v23  ;;  %v7401_v13 = vadd.f32 %v7341_v49, %v16619_v32  ;;  %v16625_v54 = vld [vmem:[#allocation61_spill] sm:$0xff] }
0x10b8   :  { %12059 = vpow2.f32 %v9078_v42  ;;  %v7405_v48 = vadd.f32 %v7345_v18, %v16620_v40  ;;  %v7409_v57 = vadd.f32 %v7349_v36, %v16621_v19  ;;  %v7353_v49 = vrot.slane %v15405_v53, 1  ;;  %v16623_v40 = vld [vmem:[#allocation54_spill] sm:$0xff] }
0x10b9   :  { %12061 = vpow2.f32 %v9079_v12  ;;  %v7332_v12 = vrot.slane %v15407_v52, 3  ;;  %v7348_v19 = vrot.slane %v15407_v52, 7 }
0x10ba   :  { %12063 = vpow2.f32 %v9081_v7 }
0x10bb   :  { %12065 = vpow2.f32 %v9082_v30  ;;  %v7336_v30 = vrot.slane %v15407_v52, 4 }
0x10bc   :  { %12067 = vtanh.f32 %v7393_v34  ;;  %v16622_v34 = vld [vmem:[#allocation64_spill] sm:$0xff] }
0x10bd   :  { %12069 = vtanh.f32 %v7397_v17  ;;  %v7413_v17 = vadd.f32 %v15405_v53, %v16622_v34  ;;  %v16624_v34 = vld [vmem:[#allocation66_spill] sm:$0xff]  ;;  %v7396_v3 = vadd.f32 %v7336_v30, %v16625_v54  ;;  %v16630_v54 = vld [vmem:[#allocation72_spill] sm:$0xff] }
0x10be   :  { %v12052_v31 = vpop.eup %12051  ;;  %12071 = vtanh.f32 %v7401_v13  ;;  %v7340_v13 = vrot.slane %v15407_v52, 5  ;;  %v7417_v23 = vadd.f32 %v7353_v49, %v16624_v34  ;;  %v16629_v49 = vld [vmem:[#allocation62_spill] sm:$0xff] }
0x10bf   :  { %v12054_v42 = vpop.eup %12053  ;;  %v7452_v15 = vadd.f32 1.0, %v12052_v31  ;;  %12073 = vtanh.f32 %v7405_v48  ;;  %v7408_v34 = vadd.f32 %v7348_v19, %v16629_v49 }
0x10c0   :  { %v12056_v25 = vpop.eup %12055  ;;  %v7447_v61 = vadd.f32 1.0, %v12054_v42  ;;  %12075 = vtanh.f32 %v7409_v57  ;;  %v7357_v57 = vrot.slane %v15405_v53, 2  ;;  %v7352_v53 = vrot.slane %v15407_v52, 1 }
0x10c1   :  { %v12058_v35 = vpop.eup %12057  ;;  %v7448_v7 = vadd.f32 1.0, %v12056_v25  ;;  %12077 = vrcp.f32 %v7452_v15  ;;  %v7344_v25 = vrot.slane %v15407_v52, 6  ;;  %v7400_v45 = vadd.f32 %v7340_v13, %v16626_v59 }
0x10c2   :  { %v12060_v18 = vpop.eup %12059  ;;  %v7449_v36 = vadd.f32 1.0, %v12058_v35  ;;  %12079 = vrcp.f32 %v7447_v61  ;;  %v7392_v35 = vadd.f32 %v7332_v12, %v16623_v40  ;;  %v7356_v12 = vrot.slane %v15407_v52, 2  ;;  %v16628_v40 = vld [vmem:[#allocation55_spill] sm:$0xff] }
0x10c3   :  { %v12062_v48 = vpop.eup %12061  ;;  %v7450_v31 = vadd.f32 1.0, %v12060_v18  ;;  %12081 = vrcp.f32 %v7448_v7  ;;  %v7412_v13 = vadd.f32 %v15407_v52, %v16630_v54  ;;  %v9084_v59 = vmul.f32 -1.442695, %v7396_v3 }
0x10c4   :  { %v12064_v42 = vpop.eup %12063  ;;  %v7451_v15 = vadd.f32 1.0, %v12062_v48  ;;  %12083 = vrcp.f32 %v7449_v36  ;;  %v16627_v36 = vld [vmem:[#allocation70_spill] sm:$0xff]  ;;  %v9083_v30 = vmul.f32 -1.442695, %v7392_v35  ;;  %v7420_v19 = vadd.f32 %v7356_v12, %v16472_v14 }
0x10c5   :  { %v12066_v61 = vpop.eup %12065  ;;  %v7453_v32 = vadd.f32 1.0, %v12064_v42  ;;  %12085 = vrcp.f32 %v7450_v31  ;;  %v7421_v28 = vadd.f32 %v7357_v57, %v16627_v36  ;;  %v7404_v42 = vadd.f32 %v7344_v25, %v16628_v40  ;;  %v16631_v36 = vld [vmem:[#allocation67_spill] sm:$0xff] }
0x10c6   :  { %v12068_v18 = vpop.eup %12067  ;;  %v7454_v7 = vadd.f32 1.0, %v12066_v61  ;;  %12087 = vrcp.f32 %v7451_v15  ;;  %v7334_v61 = vrot.slane %v15409_v51, 3  ;;  %v7416_v26 = vadd.f32 %v7352_v53, %v16631_v36 }
0x10c7   :  { %v12070_v48 = vpop.eup %12069  ;;  %12089 = vrcp.f32 %v7453_v32  ;;  %v7338_v32 = vrot.slane %v15409_v51, 4  ;;  %v9085_v25 = vmul.f32 -1.442695, %v7400_v45  ;;  %v9086_v35 = vmul.f32 -1.442695, %v7404_v42 }
0x10c8   :  { %v12072_v31 = vpop.eup %12071  ;;  %12091 = vrcp.f32 %v7454_v7  ;;  %v7342_v7 = vrot.slane %v15409_v51, 5  ;;  %v9087_v52 = vmul.f32 -1.442695, %v7408_v34  ;;  %v7350_v3 = vrot.slane %v15409_v51, 7 }
0x10c9   :  { %v12074_v15 = vpop.eup %12073  ;;  %12093 = vtanh.f32 %v7413_v17  ;;  %v7346_v17 = vrot.slane %v15409_v51, 6  ;;  %v7394_v54 = vadd.f32 %v7334_v61, %v16512_v50  ;;  %v9088_v45 = vmul.f32 -1.442695, %v7412_v13 }
0x10ca   :  { %v12076_v57 = vpop.eup %12075  ;;  %12095 = vtanh.f32 %v7417_v23  ;;  %v7398_v53 = vadd.f32 %v7338_v32, %v14565_v29  ;;  %v9089_v12 = vmul.f32 -1.442695, %v7416_v26  ;;  %v7402_v42 = vadd.f32 %v7342_v7, %v14578_v55 }
0x10cb   :  { %v12078_v40 = vpop.eup %12077  ;;  %12097 = vtanh.f32 %v7421_v28  ;;  %v9090_v14 = vmul.f32 -1.442695, %v7420_v19  ;;  %v7406_v61 = vadd.f32 %v7346_v17, %v14587_v56 }
0x10cc   :  { %v12080_v49 = vpop.eup %12079  ;;  %12099 = vpow2.f32 %v9083_v30  ;;  %v9092_v32 = vmul.f32 -1.442695, %v7398_v53 }
0x10cd   :  { %v12082_v23 = vpop.eup %12081  ;;  %v15457_v24 = vmul.f32 %v12080_v49, %v12068_v18  ;;  %12101 = vpow2.f32 %v9084_v59  ;;  %v7410_v59 = vadd.f32 %v7350_v3, %v14596_v0  ;;  %v9091_v49 = vmul.f32 -1.442695, %v7394_v54 }
0x10ce   :  { %v12084_v28 = vpop.eup %12083  ;;  %v15460_v36 = vmul.f32 %v12082_v23, %v12070_v48  ;;  %12103 = vpow2.f32 %v9085_v25  ;;  %v9094_v19 = vmul.f32 -1.442695, %v7406_v61  ;;  %v7354_v23 = vrot.slane %v15409_v51, 1 }
0x10cf   :  { %v12086_v30 = vpop.eup %12085  ;;  %v15463_v34 = vmul.f32 %v12084_v28, %v12072_v31  ;;  %12105 = vpow2.f32 %v9086_v35  ;;  %v9093_v31 = vmul.f32 -1.442695, %v7402_v42  ;;  %v9095_v17 = vmul.f32 -1.442695, %v7410_v59 }
0x10d0   :  { %v12088_v18 = vpop.eup %12087  ;;  %12107 = vpow2.f32 %v9087_v52  ;;  %v15467_v13 = vmul.f32 %v12086_v30, %v12074_v15 }
0x10d1   :  { %v12090_v48 = vpop.eup %12089  ;;  %12109 = vpow2.f32 %v9088_v45  ;;  %v15469_v26 = vmul.f32 %v12088_v18, %v12076_v57  ;;  %v7418_v18 = vadd.f32 %v7354_v23, %v14678_v38 }
0x10d2   :  { %v12092_v25 = vpop.eup %12091  ;;  %12111 = vpow2.f32 %v9089_v12 }
0x10d3   :  { %v12094_v7 = vpop.eup %12093  ;;  %12113 = vpow2.f32 %v9090_v14 }
0x10d4   :  { %v12096_v35 = vpop.eup %12095  ;;  %12115 = vpow2.f32 %v9091_v49  ;;  %v15471_v52 = vmul.f32 %v12094_v7, %v12078_v40  ;;  %v7414_v40 = vadd.f32 %v15409_v51, %v14674_v62 }
0x10d5   :  { %v12098_v3 = vpop.eup %12097  ;;  %12117 = vpow2.f32 %v9092_v32  ;;  %v15473_v54 = vmul.f32 %v12096_v35, %v12090_v48 }
0x10d6   :  { %v12100_v15 = vpop.eup %12099  ;;  %12119 = vpow2.f32 %v9093_v31  ;;  %v15476_v57 = vmul.f32 %v12098_v3, %v12092_v25  ;;  %v7358_v25 = vrot.slane %v15409_v51, 2  ;;  %v9097_v3 = vmul.f32 -1.442695, %v7418_v18 }
0x10d7   :  { %v12102_v45 = vpop.eup %12101  ;;  %v7495_v53 = vadd.f32 1.0, %v12100_v15  ;;  %12121 = vpow2.f32 %v9094_v19  ;;  %v9096_v19 = vmul.f32 -1.442695, %v7414_v40 }
0x10d8   :  { %v12104_v14 = vpop.eup %12103  ;;  %v7496_v28 = vadd.f32 1.0, %v12102_v45  ;;  %12123 = vpow2.f32 %v9095_v17 }
0x10d9   :  { %v12106_v12 = vpop.eup %12105  ;;  %v7497_v42 = vadd.f32 1.0, %v12104_v14  ;;  %12125 = vrcp.f32 %v7495_v53  ;;  %v7422_v53 = vadd.f32 %v7358_v25, %v14685_v22 }
0x10da   :  { %v12108_v30 = vpop.eup %12107  ;;  %v7498_v61 = vadd.f32 1.0, %v12106_v12  ;;  %12127 = vrcp.f32 %v7496_v28 }
0x10db   :  { %v12110_v59 = vpop.eup %12109  ;;  %v7499_v49 = vadd.f32 1.0, %v12108_v30  ;;  %12129 = vrcp.f32 %v7497_v42  ;;  %v7583_v42 = vrot.slane %v15330_v16, 7  ;;  %v7587_v16 = vrot.slane %v15346_v9, 7 }
0x10dc   :  { %v12112_v48 = vpop.eup %12111  ;;  %v7500_v32 = vadd.f32 1.0, %v12110_v59  ;;  %12131 = vrcp.f32 %v7498_v61  ;;  %v7584_v61 = vrot.slane %v15334_v60, 7 }
0x10dd   :  { %v12114_v31 = vpop.eup %12113  ;;  %v7501_v7 = vadd.f32 1.0, %v12112_v48  ;;  %12133 = vrcp.f32 %v7499_v49  ;;  %v7585_v49 = vrot.slane %v15338_v46, 7  ;;  %v9098_v48 = vmul.f32 -1.442695, %v7422_v53 }
0x10de   :  { %v12116_v35 = vpop.eup %12115  ;;  %v7502_v17 = vadd.f32 1.0, %v12114_v31  ;;  %12135 = vrcp.f32 %v7500_v32  ;;  %v7586_v31 = vrot.slane %v15342_v21, 7  ;;  %v7589_v21 = vrot.slane %v15354_v11, 7 }
0x10df   :  { %v12118_v15 = vpop.eup %12117  ;;  %12137 = vrcp.f32 %v7501_v7  ;;  %v7551_v45 = vadd.f32 1.0, %v12116_v35 }
0x10e0   :  { %v12120_v23 = vpop.eup %12119  ;;  %12139 = vrcp.f32 %v7502_v17  ;;  %v7552_v14 = vadd.f32 1.0, %v12118_v15 }
0x10e1   :  { %v12122_v28 = vpop.eup %12121  ;;  %12141 = vpow2.f32 %v9096_v19  ;;  %v7553_v12 = vadd.f32 1.0, %v12120_v23 }
0x10e2   :  { %v12124_v51 = vpop.eup %12123  ;;  %12143 = vpow2.f32 %v9097_v3  ;;  %v7554_v40 = vadd.f32 1.0, %v12122_v28  ;;  %v7588_v3 = vrot.slane %v15350_v63, 7 }
0x10e3   :  { %v12126_v30 = vpop.eup %12125  ;;  %v7555_v18 = vadd.f32 1.0, %v12124_v51  ;;  %12145 = vrcp.f32 %v7551_v45 }
0x10e4   :  { %v12128_v59 = vpop.eup %12127  ;;  %12147 = vrcp.f32 %v7552_v14  ;;  %v7599_v32 = vmul.f32 %v12126_v30, %v7583_v42 }
0x10e5   :  { %v12130_v25 = vpop.eup %12129  ;;  %12149 = vrcp.f32 %v7553_v12  ;;  %v7600_v7 = vmul.f32 %v12128_v59, %v7584_v61 }
0x10e6   :  { %v12132_v19 = vpop.eup %12131  ;;  %12151 = vrcp.f32 %v7554_v40  ;;  %v7601_v35 = vmul.f32 %v12130_v25, %v7585_v49  ;;  %v15489_v60 = vadd.f32 %v15457_v24, %v7599_v32  ;;  %v7590_v24 = vrot.slane %v15358_v37, 7 }
0x10e7   :  { %v12134_v17 = vpop.eup %12133  ;;  %12153 = vrcp.f32 %v7555_v18  ;;  %v7602_v46 = vmul.f32 %v12132_v19, %v7586_v31  ;;  %v15493_v15 = vadd.f32 %v15460_v36, %v7600_v7 }
0x10e8   :  { %v12136_v45 = vpop.eup %12135  ;;  %12155 = vpow2.f32 %v9098_v48  ;;  %v7603_v23 = vmul.f32 %v12134_v17, %v7587_v16  ;;  %v15497_v9 = vadd.f32 %v15463_v34, %v7601_v35 }
0x10e9   :  { %v12138_v53 = vpop.eup %12137  ;;  %v7604_v14 = vmul.f32 %v12136_v45, %v7588_v3  ;;  %v15501_v28 = vadd.f32 %v15467_v13, %v7602_v46  ;;  %12157 = vtanh.f32 %v15489_v60 }
0x10ea   :  { %v12140_v63 = vpop.eup %12139  ;;  %v7605_v36 = vmul.f32 %v12138_v53, %v7589_v21  ;;  %v15505_v12 = vadd.f32 %v15469_v26, %v7603_v23  ;;  %12159 = vtanh.f32 %v15493_v15 }
0x10eb   :  { %v12142_v11 = vpop.eup %12141  ;;  %v7606_v51 = vmul.f32 %v12140_v63, %v7590_v24  ;;  %v15509_v34 = vadd.f32 %v15471_v52, %v7604_v14  ;;  %12161 = vtanh.f32 %v15497_v9 }
0x10ec   :  { %v12144_v37 = vpop.eup %12143  ;;  %v7556_v42 = vadd.f32 1.0, %v12142_v11  ;;  %v15513_v13 = vadd.f32 %v15473_v54, %v7605_v36  ;;  %12163 = vtanh.f32 %v15501_v28 }
0x10ed   :  { %v12146_v40 = vpop.eup %12145  ;;  %v7557_v30 = vadd.f32 1.0, %v12144_v37  ;;  %v15517_v26 = vadd.f32 %v15476_v57, %v7606_v51  ;;  %12165 = vtanh.f32 %v15505_v12 }
0x10ee   :  { %v12148_v61 = vpop.eup %12147  ;;  %12167 = vrcp.f32 %v7556_v42 }
0x10ef   :  { %v12150_v52 = vpop.eup %12149  ;;  %12169 = vrcp.f32 %v7557_v30 }
0x10f0   :  { %v12152_v18 = vpop.eup %12151  ;;  %12171 = vtanh.f32 %v15509_v34 }
0x10f1   :  { %v12154_v59 = vpop.eup %12153  ;;  %12173 = vtanh.f32 %v15513_v13 }
0x10f2   :  { %v12156_v54 = vpop.eup %12155  ;;  %12175 = vtanh.f32 %v15517_v26 }
0x10f3   :  { %v12158_v49 = vpop.eup %12157  ;;  %v7558_v48 = vadd.f32 1.0, %v12156_v54 }
0x10f4   :  { %v12160_v32 = vpop.eup %12159  ;;  %v7631_v57 = vmul.f32 %v12158_v49, %v12146_v40 }
0x10f5   :  { %v12162_v25 = vpop.eup %12161  ;;  %12177 = vrcp.f32 %v7558_v48  ;;  %v7632_v31 = vmul.f32 %v12160_v32, %v12148_v61  ;;  %v16646_v32 = vld [vmem:[#allocation41_spill] sm:$0xff] }
0x10f6   :  { %v12164_v7 = vpop.eup %12163  ;;  %v7633_v19 = vmul.f32 %v12162_v25, %v12150_v52  ;;  %v7647_v16 = vrot.slane %v7631_v57, 5  ;;  %v16647_v57 = vld [vmem:[#allocation42_spill] sm:$0xff] }
0x10f7   :  { %v12166_v35 = vpop.eup %12165  ;;  %v7634_v17 = vmul.f32 %v12164_v7, %v12152_v18  ;;  %v7648_v3 = vrot.slane %v7632_v31, 4 }
0x10f8   :  { %v12168_v46 = vpop.eup %12167  ;;  %v7635_v45 = vmul.f32 %v12166_v35, %v12154_v59  ;;  %v7650_v21 = vrot.slane %v7633_v19, 3 }
0x10f9   :  { %v12170_v23 = vpop.eup %12169  ;;  %v7649_v53 = vsel %vm977_vm0, %v7648_v3, %v7647_v16  ;;  %v7652_v24 = vrot.slane %v7634_v17, 2 }
0x10fa   :  { %v12172_v14 = vpop.eup %12171  ;;  %v7651_v63 = vsel %vm980_vm1, %v7650_v21, %v7649_v53  ;;  %v7654_v36 = vrot.slane %v7635_v45, 1  ;;  %v16648_v53 = vld [vmem:[#allocation43_spill] sm:$0xff] }
0x10fb   :  { %v12174_v11 = vpop.eup %12173  ;;  %v7636_v51 = vmul.f32 %v12172_v14, %v12168_v46  ;;  %v7653_v37 = vsel %vm983_vm2, %v7652_v24, %v7651_v63  ;;  %v16649_v14 = vld [vmem:[#allocation44_spill] sm:$0xff] }
0x10fc   :  { %v7637_v42 = vmul.f32 %v12174_v11, %v12170_v23  ;;  %v7655_v40 = vsel %vm986_vm3, %v7654_v36, %v7653_v37  ;;  %v12176_v30 = vpop.eup %12175  ;;  %v16650_v36 = vld [vmem:[#allocation45_spill] sm:$0xff] }
0x10fd   :  { %v7656_v61 = vsel %vm989_vm4, %v7636_v51, %v7655_v40  ;;  %v16651_v51 = vld [vmem:[#allocation47_spill] sm:$0xff] }
0x10fe   :  { %v7657_v52 = vrot.slane %v7637_v42, 7  ;;  %v16652_v42 = vld [vmem:[#allocation48_spill] sm:$0xff] }
0x10ff   :  { %v12178_v18 = vpop.eup %12177 }
0x1100   :  { %v7638_v59 = vmul.f32 %v12178_v18, %v12176_v30  ;;  %v7658_v54 = vsel %vm992_vm5, %v7657_v52, %v7656_v61  ;;  %v16653_v30 = vld [vmem:[#allocation49_spill] sm:$0xff]  ;;  %v16654_v18 = vld [vmem:[#allocation51_spill] sm:$0xff] }
0x1102   :  { %v7659_v49 = vrot.slane %v7638_v59, 6 }
0x1104   :  { %v7660_v48 = vsel %vm995_vm6, %v7659_v49, %v7658_v54 }
0x1105   :  { %7727 = vmatmul.mubr.f32.vlgmr.msra.gmra.mrb[60].mxu0 %v7660_v48  ;;  %7798 = vmatmul.mubr.f32.vlgmr.msra.gmra.mrb[60].mxu1 %v7660_v48 }
0x1106   :  { %10291 = vmatpush1.bf16.msra.mxu0 %v14287_v58  ;;  %10323 = vmatpush1.bf16.msra.mxu1 %v14289_v4  ;;  %v16632_v58 = vld [vmem:[#allocation19_spill] sm:$0xff]  ;;  %v16633_v4 = vld [vmem:[#allocation20_spill] sm:$0xff] }
0x1107   :  { %10293 = vmatprep.subr.bf16.mxu0 %v14291_v41  ;;  %10325 = vmatprep.subr.bf16.mxu1 %v14293_v27  ;;  %v16634_v41 = vld [vmem:[#allocation53_spill] sm:$0xff]  ;;  %v16635_v27 = vld [vmem:[#allocation30_spill] sm:$0xff] }
0x1108   :  { %8203 = vmatprep.mubr.f32.mxu0 %v16143_v8  ;;  %8274 = vmatprep.mubr.f32.mxu1 %v16143_v8 }
0x110a   :  { %10295 = vmatpush1.bf16.msra.mxu0 %v16440_v44  ;;  %10327 = vmatpush1.bf16.msra.mxu1 %v16474_v33  ;;  %v16636_v44 = vld [vmem:[#allocation31_spill] sm:$0xff]  ;;  %v16637_v33 = vld [vmem:[#allocation32_spill] sm:$0xff] }
0x110b   :  { %10297 = vmatprep.subr.bf16.mxu0 %v16475_v43  ;;  %10329 = vmatprep.subr.bf16.mxu1 %v16476_v39  ;;  %v16638_v43 = vld [vmem:[#allocation33_spill] sm:$0xff]  ;;  %v16639_v39 = vld [vmem:[#allocation34_spill] sm:$0xff] }
0x110e   :  { %10299 = vmatpush1.bf16.msra.mxu0 %v16477_v10  ;;  %10331 = vmatpush1.bf16.msra.mxu1 %v16478_v6  ;;  %v16640_v10 = vld [vmem:[#allocation35_spill] sm:$0xff]  ;;  %v16641_v6 = vld [vmem:[#allocation36_spill] sm:$0xff] }
0x110f   :  { %10301 = vmatprep.subr.bf16.mxu0 %v16479_v47  ;;  %10333 = vmatprep.subr.bf16.mxu1 %v16480_v20  ;;  %v16642_v47 = vld [vmem:[#allocation37_spill] sm:$0xff]  ;;  %v16643_v20 = vld [vmem:[#allocation38_spill] sm:$0xff] }
0x1112   :  { %10303 = vmatpush1.bf16.msra.mxu0 %v16513_v1  ;;  %10335 = vmatpush1.bf16.msra.mxu1 %v16514_v5  ;;  %v16644_v1 = vld [vmem:[#allocation39_spill] sm:$0xff]  ;;  %v16645_v5 = vld [vmem:[#allocation40_spill] sm:$0xff] }
0x1113   :  { %10305 = vmatprep.subr.bf16.mxu0 %v16632_v58  ;;  %10337 = vmatprep.subr.bf16.mxu1 %v16633_v4 }
0x1116   :  { %10307 = vmatpush1.bf16.msra.mxu0 %v16634_v41  ;;  %10339 = vmatpush1.bf16.msra.mxu1 %v16635_v27 }
0x1117   :  { %10309 = vmatprep.subr.bf16.mxu0 %v16636_v44  ;;  %10341 = vmatprep.subr.bf16.mxu1 %v16637_v33 }
0x111a   :  { %10311 = vmatpush1.bf16.msra.mxu0 %v16638_v43  ;;  %10343 = vmatpush1.bf16.msra.mxu1 %v16639_v39 }
0x111b   :  { %10313 = vmatprep.subr.bf16.mxu0 %v16640_v10  ;;  %10345 = vmatprep.subr.bf16.mxu1 %v16641_v6  ;;  %v16655_v6 = vld [vmem:[#allocation52_spill] sm:$0xff] }
0x111e   :  { %10315 = vmatpush1.bf16.msra.mxu0 %v16642_v47  ;;  %10347 = vmatpush1.bf16.msra.mxu1 %v16643_v20  ;;  %v16656_v20 = vld [vmem:[#allocation57_spill] sm:$0xff] }
0x111f   :  { %10317 = vmatprep.subr.bf16.mxu0 %v16644_v1  ;;  %10349 = vmatprep.subr.bf16.mxu1 %v16645_v5  ;;  %v16657_v5 = vld [vmem:[#allocation58_spill] sm:$0xff] }
0x1122   :  { %10319 = vmatpush1.bf16.msra.mxu0 %v16646_v32  ;;  %10351 = vmatpush1.bf16.msra.mxu1 %v16647_v57  ;;  %v16658_v57 = vld [vmem:[#allocation59_spill] sm:$0xff] }
0x11d8   :  { %v7728_v25 = vpop.f32.mrb[60].mxu0  ;;  %v15562_v31 = vpop.f32.mrb[60].mxu1 }
0x11d9   :  { %v7808_v7 = vrot.slane %v7728_v25, 2  ;;  %v7812_v19 = vrot.slane %v7728_v25, 3  ;;  %v7816_v16 = vrot.slane %v7728_v25, 4  ;;  %v7820_v35 = vrot.slane %v7728_v25, 5  ;;  %v15564_v17 = vpop.f32.mrb[61].mxu0  ;;  %v15566_v3 = vpop.f32.mrb[61].mxu1 }
0x11da   :  { %v7824_v46 = vrot.slane %v7728_v25, 6  ;;  %v7828_v45 = vrot.slane %v7728_v25, 7  ;;  %v7832_v21 = vrot.slane %v7728_v25, 1  ;;  %v7892_v23 = vadd.f32 %v7728_v25, %v16615_v2 }
0x11db   :  { %v7868_v24 = vadd.f32 %v7808_v7, %v16648_v53  ;;  %v7872_v63 = vadd.f32 %v7812_v19, %v16649_v14  ;;  %v7876_v11 = vadd.f32 %v7816_v16, %v16650_v36  ;;  %v7880_v37 = vadd.f32 %v7820_v35, %v16651_v51  ;;  %v16659_v7 = vld [vmem:[#allocation68_spill] sm:$0xff] }
0x11dc   :  { %v7884_v40 = vadd.f32 %v7824_v46, %v16652_v42  ;;  %v7888_v61 = vadd.f32 %v7828_v45, %v16653_v30  ;;  %v9105_v52 = vmul.f32 -1.442695, %v7892_v23  ;;  %v7896_v59 = vadd.f32 %v7832_v21, %v16654_v18 }
0x11dd   :  { %v9099_v54 = vmul.f32 -1.442695, %v7868_v24  ;;  %v9100_v49 = vmul.f32 -1.442695, %v7872_v63  ;;  %v9101_v48 = vmul.f32 -1.442695, %v7876_v11 }
0x11de   :  { %v9102_v58 = vmul.f32 -1.442695, %v7880_v37  ;;  %12179 = vpow2.f32 %v9105_v52  ;;  %v9103_v4 = vmul.f32 -1.442695, %v7884_v40  ;;  %v7810_v41 = vrot.slane %v15562_v31, 2 }
0x11df   :  { %12181 = vpow2.f32 %v9099_v54  ;;  %v7814_v27 = vrot.slane %v15562_v31, 3  ;;  %v9104_v44 = vmul.f32 -1.442695, %v7888_v61  ;;  %v7818_v33 = vrot.slane %v15562_v31, 4 }
0x11e0   :  { %12183 = vpow2.f32 %v9100_v49  ;;  %v9106_v43 = vmul.f32 -1.442695, %v7896_v59  ;;  %v7822_v39 = vrot.slane %v15562_v31, 5  ;;  %v7826_v10 = vrot.slane %v15562_v31, 6 }
0x11e1   :  { %12185 = vpow2.f32 %v9101_v48  ;;  %v7870_v47 = vadd.f32 %v7810_v41, %v16655_v6  ;;  %v7874_v1 = vadd.f32 %v7814_v27, %v16656_v20  ;;  %v7878_v32 = vadd.f32 %v7818_v33, %v16657_v5  ;;  %v16660_v48 = vld [vmem:[#allocation64_spill] sm:$0xff]  ;;  %v16661_v33 = vld [vmem:[#allocation54_spill] sm:$0xff] }
0x11e2   :  { %12187 = vpow2.f32 %v9102_v58  ;;  %v7882_v25 = vadd.f32 %v7822_v39, %v16658_v57  ;;  %v7886_v19 = vadd.f32 %v7826_v10, %v16659_v7  ;;  %v7830_v45 = vrot.slane %v15562_v31, 7 }
0x11e3   :  { %12189 = vpow2.f32 %v9103_v4  ;;  %v7809_v24 = vrot.slane %v15564_v17, 2  ;;  %v7813_v37 = vrot.slane %v15564_v17, 3  ;;  %v7834_v52 = vrot.slane %v15562_v31, 1 }
0x11e4   :  { %12191 = vpow2.f32 %v9104_v44  ;;  %v7817_v59 = vrot.slane %v15564_v17, 4  ;;  %v7890_v58 = vadd.f32 %v7830_v45, %v16660_v48  ;;  %v7821_v4 = vrot.slane %v15564_v17, 5 }
0x11e5   :  { %12193 = vpow2.f32 %v9106_v43  ;;  %v7825_v44 = vrot.slane %v15564_v17, 6  ;;  %v7869_v43 = vadd.f32 %v7809_v24, %v16661_v33  ;;  %v7833_v24 = vrot.slane %v15564_v17, 1 }
0x11e6   :  { %12195 = vtanh.f32 %v7870_v47  ;;  %v7829_v47 = vrot.slane %v15564_v17, 7 }
0x11e7   :  { %12197 = vtanh.f32 %v7874_v1  ;;  %v16662_v1 = vld [vmem:[#allocation61_spill] sm:$0xff] }
0x11e8   :  { %v12180_v16 = vpop.eup %12179  ;;  %12199 = vtanh.f32 %v7878_v32  ;;  %v7873_v32 = vadd.f32 %v7813_v37, %v16662_v1 }
0x11e9   :  { %v12182_v35 = vpop.eup %12181  ;;  %v7930_v46 = vadd.f32 1.0, %v12180_v16  ;;  %12201 = vtanh.f32 %v7882_v25  ;;  %v16663_v16 = vld [vmem:[#allocation66_spill] sm:$0xff] }
0x11ea   :  { %v12184_v21 = vpop.eup %12183  ;;  %v7924_v23 = vadd.f32 1.0, %v12182_v35  ;;  %12203 = vtanh.f32 %v7886_v19  ;;  %v7894_v35 = vadd.f32 %v15562_v31, %v16663_v16  ;;  %v16668_v31 = vld [vmem:[#allocation72_spill] sm:$0xff] }
0x11eb   :  { %v12186_v63 = vpop.eup %12185  ;;  %v7925_v11 = vadd.f32 1.0, %v12184_v21  ;;  %12205 = vrcp.f32 %v7930_v46  ;;  %v16664_v46 = vld [vmem:[#allocation69_spill] sm:$0xff] }
0x11ec   :  { %v12188_v40 = vpop.eup %12187  ;;  %v7926_v61 = vadd.f32 1.0, %v12186_v63  ;;  %12207 = vrcp.f32 %v7924_v23  ;;  %v7877_v45 = vadd.f32 %v7817_v59, %v16664_v46  ;;  %v16665_v23 = vld [vmem:[#allocation70_spill] sm:$0xff]  ;;  %v9108_v59 = vmul.f32 -1.442695, %v7873_v32 }
0x11ed   :  { %v12190_v54 = vpop.eup %12189  ;;  %v7927_v49 = vadd.f32 1.0, %v12188_v40  ;;  %12209 = vrcp.f32 %v7925_v11  ;;  %v7898_v63 = vadd.f32 %v7834_v52, %v16665_v23  ;;  %v16666_v11 = vld [vmem:[#allocation55_spill] sm:$0xff]  ;;  %v7827_v32 = vrot.slane %v15566_v3, 6 }
0x11ee   :  { %v12192_v41 = vpop.eup %12191  ;;  %v7928_v27 = vadd.f32 1.0, %v12190_v54  ;;  %12211 = vrcp.f32 %v7926_v61  ;;  %v7881_v40 = vadd.f32 %v7821_v4, %v16666_v11  ;;  %v16667_v54 = vld [vmem:[#allocation62_spill] sm:$0xff]  ;;  %v16669_v52 = vld [vmem:[#allocation67_spill] sm:$0xff]  ;;  %v9109_v4 = vmul.f32 -1.442695, %v7877_v45 }
0x11ef   :  { %v12194_v39 = vpop.eup %12193  ;;  %v7929_v10 = vadd.f32 1.0, %v12192_v41  ;;  %12213 = vrcp.f32 %v7927_v49  ;;  %v7885_v37 = vadd.f32 %v7825_v44, %v16667_v54  ;;  %v9107_v49 = vmul.f32 -1.442695, %v7869_v43  ;;  %v16670_v44 = vld [vmem:[#allocation71_spill] sm:$0xff] }
0x11f0   :  { %v12196_v25 = vpop.eup %12195  ;;  %v7931_v19 = vadd.f32 1.0, %v12194_v39  ;;  %12215 = vrcp.f32 %v7928_v27  ;;  %v7811_v41 = vrot.slane %v15566_v3, 2  ;;  %v7889_v39 = vadd.f32 %v7829_v47, %v16668_v31 }
0x11f1   :  { %v12198_v21 = vpop.eup %12197  ;;  %12217 = vrcp.f32 %v7929_v10  ;;  %v7815_v10 = vrot.slane %v15566_v3, 3  ;;  %v7893_v23 = vadd.f32 %v15564_v17, %v16669_v52  ;;  %v7897_v43 = vadd.f32 %v7833_v24, %v16670_v44 }
0x11f2   :  { %v12200_v61 = vpop.eup %12199  ;;  %12219 = vrcp.f32 %v7931_v19  ;;  %v7819_v19 = vrot.slane %v15566_v3, 4  ;;  %v9110_v54 = vmul.f32 -1.442695, %v7881_v40  ;;  %v9111_v47 = vmul.f32 -1.442695, %v7885_v37 }
0x11f3   :  { %v12202_v27 = vpop.eup %12201  ;;  %12221 = vtanh.f32 %v7890_v58  ;;  %v7823_v58 = vrot.slane %v15566_v3, 5  ;;  %v9112_v17 = vmul.f32 -1.442695, %v7889_v39  ;;  %v7875_v45 = vadd.f32 %v7815_v10, %v14565_v29 }
0x11f4   :  { %v12204_v46 = vpop.eup %12203  ;;  %12223 = vtanh.f32 %v7894_v35  ;;  %v7871_v35 = vadd.f32 %v7811_v41, %v16512_v50  ;;  %v9113_v24 = vmul.f32 -1.442695, %v7893_v23  ;;  %v7879_v40 = vadd.f32 %v7819_v19, %v14578_v55 }
0x11f5   :  { %v12206_v11 = vpop.eup %12205  ;;  %12225 = vtanh.f32 %v7898_v63  ;;  %v9114_v44 = vmul.f32 -1.442695, %v7897_v43  ;;  %v7883_v41 = vadd.f32 %v7823_v58, %v14587_v56 }
0x11f6   :  { %v12208_v1 = vpop.eup %12207  ;;  %12227 = vpow2.f32 %v9107_v49  ;;  %v9115_v39 = vmul.f32 -1.442695, %v7871_v35 }
0x11f7   :  { %v12210_v31 = vpop.eup %12209  ;;  %v15614_v33 = vmul.f32 %v12208_v1, %v12196_v25  ;;  %12229 = vpow2.f32 %v9108_v59  ;;  %v7887_v25 = vadd.f32 %v7827_v32, %v14596_v0 }
0x11f8   :  { %v12212_v63 = vpop.eup %12211  ;;  %v15617_v52 = vmul.f32 %v12210_v31, %v12198_v21  ;;  %12231 = vpow2.f32 %v9109_v4  ;;  %v9116_v31 = vmul.f32 -1.442695, %v7875_v45 }
0x11f9   :  { %v12214_v49 = vpop.eup %12213  ;;  %v15620_v37 = vmul.f32 %v12212_v63, %v12200_v61  ;;  %12233 = vpow2.f32 %v9110_v54  ;;  %v9117_v61 = vmul.f32 -1.442695, %v7879_v40  ;;  %v9118_v54 = vmul.f32 -1.442695, %v7883_v41 }
0x11fa   :  { %v12216_v1 = vpop.eup %12215  ;;  %12235 = vpow2.f32 %v9111_v47  ;;  %v15624_v59 = vmul.f32 %v12214_v49, %v12202_v27  ;;  %v9119_v43 = vmul.f32 -1.442695, %v7887_v25  ;;  %v7831_v27 = vrot.slane %v15566_v3, 7 }
0x11fb   :  { %v12218_v21 = vpop.eup %12217  ;;  %12237 = vpow2.f32 %v9112_v17  ;;  %v15626_v23 = vmul.f32 %v12216_v1, %v12204_v46 }
0x11fc   :  { %v12220_v10 = vpop.eup %12219  ;;  %12239 = vpow2.f32 %v9113_v24  ;;  %v7891_v49 = vadd.f32 %v7831_v27, %v14674_v62 }
0x11fd   :  { %v12222_v4 = vpop.eup %12221  ;;  %12241 = vpow2.f32 %v9114_v44 }
0x11fe   :  { %v12224_v19 = vpop.eup %12223  ;;  %12243 = vpow2.f32 %v9115_v39  ;;  %v15628_v58 = vmul.f32 %v12222_v4, %v12218_v21 }
0x11ff   :  { %v12226_v47 = vpop.eup %12225  ;;  %12245 = vpow2.f32 %v9116_v31  ;;  %v15631_v32 = vmul.f32 %v12224_v19, %v12206_v11  ;;  %v7895_v11 = vadd.f32 %v15566_v3, %v14678_v38 }
0x1200   :  { %v12228_v35 = vpop.eup %12227  ;;  %12247 = vpow2.f32 %v9117_v61  ;;  %v15633_v46 = vmul.f32 %v12226_v47, %v12220_v10  ;;  %v7835_v10 = vrot.slane %v15566_v3, 1 }
0x1201   :  { %v12230_v17 = vpop.eup %12229  ;;  %v7972_v45 = vadd.f32 1.0, %v12228_v35  ;;  %12249 = vpow2.f32 %v9118_v54  ;;  %v9120_v54 = vmul.f32 -1.442695, %v7891_v49  ;;  %v9121_v47 = vmul.f32 -1.442695, %v7895_v11 }
0x1202   :  { %v12232_v44 = vpop.eup %12231  ;;  %v7973_v63 = vadd.f32 1.0, %v12230_v17  ;;  %12251 = vpow2.f32 %v9119_v43 }
0x1203   :  { %v12234_v24 = vpop.eup %12233  ;;  %v7974_v40 = vadd.f32 1.0, %v12232_v44  ;;  %12253 = vrcp.f32 %v7972_v45  ;;  %v7899_v45 = vadd.f32 %v7835_v10, %v14685_v22 }
0x1204   :  { %v12236_v41 = vpop.eup %12235  ;;  %v7975_v1 = vadd.f32 1.0, %v12234_v24  ;;  %12255 = vrcp.f32 %v7973_v63 }
0x1205   :  { %v12238_v25 = vpop.eup %12237  ;;  %v7976_v39 = vadd.f32 1.0, %v12236_v41  ;;  %12257 = vrcp.f32 %v7974_v40  ;;  %v8060_v40 = vrot.slane %v15489_v60, 7  ;;  %v8064_v60 = vrot.slane %v15505_v12, 7 }
0x1206   :  { %v12240_v21 = vpop.eup %12239  ;;  %v7977_v31 = vadd.f32 1.0, %v12238_v25  ;;  %12259 = vrcp.f32 %v7975_v1  ;;  %v8061_v1 = vrot.slane %v15493_v15, 7 }
0x1207   :  { %v12242_v61 = vpop.eup %12241  ;;  %v7978_v4 = vadd.f32 1.0, %v12240_v21  ;;  %12261 = vrcp.f32 %v7976_v39  ;;  %v8062_v39 = vrot.slane %v15497_v9, 7  ;;  %v9122_v21 = vmul.f32 -1.442695, %v7899_v45 }
0x1208   :  { %v12244_v19 = vpop.eup %12243  ;;  %v7979_v43 = vadd.f32 1.0, %v12242_v61  ;;  %12263 = vrcp.f32 %v7977_v31  ;;  %v8063_v61 = vrot.slane %v15501_v28, 7  ;;  %v8066_v28 = vrot.slane %v15513_v13, 7 }
0x1209   :  { %v12246_v27 = vpop.eup %12245  ;;  %12265 = vrcp.f32 %v7978_v4  ;;  %v8028_v35 = vadd.f32 1.0, %v12244_v19 }
0x120a   :  { %v12248_v17 = vpop.eup %12247  ;;  %12267 = vrcp.f32 %v7979_v43  ;;  %v8029_v44 = vadd.f32 1.0, %v12246_v27 }
0x120b   :  { %v12250_v63 = vpop.eup %12249  ;;  %12269 = vpow2.f32 %v9120_v54  ;;  %v8030_v24 = vadd.f32 1.0, %v12248_v17 }
0x120c   :  { %v12252_v3 = vpop.eup %12251  ;;  %12271 = vpow2.f32 %v9121_v47  ;;  %v8031_v49 = vadd.f32 1.0, %v12250_v63  ;;  %v8065_v47 = vrot.slane %v15509_v34, 7 }
0x120d   :  { %v12254_v41 = vpop.eup %12253  ;;  %v8032_v11 = vadd.f32 1.0, %v12252_v3  ;;  %12273 = vrcp.f32 %v8028_v35 }
0x120e   :  { %v12256_v25 = vpop.eup %12255  ;;  %12275 = vrcp.f32 %v8029_v44  ;;  %v8076_v31 = vmul.f32 %v12254_v41, %v8060_v40 }
0x120f   :  { %v12258_v10 = vpop.eup %12257  ;;  %12277 = vrcp.f32 %v8030_v24  ;;  %v8077_v4 = vmul.f32 %v12256_v25, %v8061_v1 }
0x1210   :  { %v12260_v54 = vpop.eup %12259  ;;  %12279 = vrcp.f32 %v8031_v49  ;;  %v8078_v19 = vmul.f32 %v12258_v10, %v8062_v39  ;;  %v15646_v15 = vadd.f32 %v15614_v33, %v8076_v31  ;;  %v8067_v33 = vrot.slane %v15517_v26, 7 }
0x1211   :  { %v12262_v43 = vpop.eup %12261  ;;  %12281 = vrcp.f32 %v8032_v11  ;;  %v8079_v9 = vmul.f32 %v12260_v54, %v8063_v61  ;;  %v15650_v27 = vadd.f32 %v15617_v52, %v8077_v4 }
0x1212   :  { %v12264_v35 = vpop.eup %12263  ;;  %12283 = vpow2.f32 %v9122_v21  ;;  %v8080_v17 = vmul.f32 %v12262_v43, %v8064_v60  ;;  %v15654_v12 = vadd.f32 %v15620_v37, %v8078_v19 }
0x1213   :  { %v12266_v45 = vpop.eup %12265  ;;  %v8081_v44 = vmul.f32 %v12264_v35, %v8065_v47  ;;  %v15658_v63 = vadd.f32 %v15624_v59, %v8079_v9  ;;  %12285 = vtanh.f32 %v15646_v15 }
0x1214   :  { %v12268_v34 = vpop.eup %12267  ;;  %v8082_v52 = vmul.f32 %v12266_v45, %v8066_v28  ;;  %v15662_v24 = vadd.f32 %v15626_v23, %v8080_v17  ;;  %12287 = vtanh.f32 %v15650_v27 }
0x1215   :  { %v12270_v13 = vpop.eup %12269  ;;  %v8083_v3 = vmul.f32 %v12268_v34, %v8067_v33  ;;  %v15666_v37 = vadd.f32 %v15628_v58, %v8081_v44  ;;  %12289 = vtanh.f32 %v15654_v12 }
0x1216   :  { %v12272_v26 = vpop.eup %12271  ;;  %v8033_v40 = vadd.f32 1.0, %v12270_v13  ;;  %v15670_v59 = vadd.f32 %v15631_v32, %v8082_v52  ;;  %12291 = vtanh.f32 %v15658_v63 }
0x1217   :  { %v12274_v49 = vpop.eup %12273  ;;  %v8034_v41 = vadd.f32 1.0, %v12272_v26  ;;  %v15674_v23 = vadd.f32 %v15633_v46, %v8083_v3  ;;  %12293 = vtanh.f32 %v15662_v24 }
0x1218   :  { %v12276_v1 = vpop.eup %12275  ;;  %12295 = vrcp.f32 %v8033_v40 }
0x1219   :  { %v12278_v58 = vpop.eup %12277  ;;  %12297 = vrcp.f32 %v8034_v41 }
0x121a   :  { %v12280_v11 = vpop.eup %12279  ;;  %12299 = vtanh.f32 %v15666_v37 }
0x121b   :  { %v12282_v25 = vpop.eup %12281  ;;  %12301 = vtanh.f32 %v15670_v59 }
0x121c   :  { %v12284_v32 = vpop.eup %12283  ;;  %12303 = vtanh.f32 %v15674_v23 }
0x121d   :  { %v12286_v39 = vpop.eup %12285  ;;  %v8035_v21 = vadd.f32 1.0, %v12284_v32 }
0x121e   :  { %v12288_v31 = vpop.eup %12287  ;;  %v8108_v46 = vmul.f32 %v12286_v39, %v12274_v49 }
0x121f   :  { %v12290_v10 = vpop.eup %12289  ;;  %12305 = vrcp.f32 %v8035_v21  ;;  %v8109_v61 = vmul.f32 %v12288_v31, %v12276_v1  ;;  %v8646_v31 = vld [vmem:[%s15852_s9] sm:$0xff] }
0x1220   :  { %v12292_v4 = vpop.eup %12291  ;;  %v8110_v54 = vmul.f32 %v12290_v10, %v12278_v58  ;;  %v8124_v60 = vrot.slane %v8108_v46, 6  ;;  %v8647_v46 = vld [vmem:[%s15852_s9 + $0x8] sm:$0xff]  ;;  %v8648_v10 = vld [vmem:[%s15852_s9 + $0x10] sm:$0xff] }
0x1221   :  { %v12294_v19 = vpop.eup %12293  ;;  %v8111_v43 = vmul.f32 %v12292_v4, %v12280_v11  ;;  %v8125_v47 = vrot.slane %v8109_v61, 5  ;;  %v12584_v61 = vmov 0.0|0.0   ;;  %v10353_v4 = vpack.c.bf16 %v8647_v46, %v8646_v31 }
0x1222   :  { %v12296_v9 = vpop.eup %12295  ;;  %v8112_v35 = vmul.f32 %v12294_v19, %v12282_v25  ;;  %v8127_v28 = vrot.slane %v8110_v54, 4  ;;  %10352 = vmatprep.subr.bf16.mxu0 %v12584_v61  ;;  %v8649_v54 = vld [vmem:[%s15852_s9 + $0x18] sm:$0xff]  ;;  %v8650_v19 = vld [vmem:[%s15852_s9 + $0x20] sm:$0xff] }
0x1223   :  { %v12298_v17 = vpop.eup %12297  ;;  %v8126_v45 = vsel %vm977_vm0, %v8125_v47, %v8124_v60  ;;  %v8129_v33 = vrot.slane %v8111_v43, 3  ;;  %v10356_v60 = vpack.c.bf16 %v8649_v54, %v8648_v10  ;;  %v8651_v43 = vld [vmem:[%s15852_s9 + $0x28] sm:$0xff] }
0x1224   :  { %v12300_v44 = vpop.eup %12299  ;;  %v8128_v34 = vsel %vm980_vm1, %v8127_v28, %v8126_v45  ;;  %v8131_v52 = vrot.slane %v8112_v35, 2  ;;  %v10359_v47 = vpack.c.bf16 %v8651_v43, %v8650_v19  ;;  %v8654_v28 = vld [vmem:[%s15852_s9 + $0x40] sm:$0xff] }
0x1225   :  { %v12302_v13 = vpop.eup %12301  ;;  %v8113_v3 = vmul.f32 %v12300_v44, %v12296_v9  ;;  %v8130_v26 = vsel %vm983_vm2, %v8129_v33, %v8128_v34  ;;  %v8652_v9 = vld [vmem:[%s15852_s9 + $0x30] sm:$0xff]  ;;  %v8657_v44 = vld [vmem:[%s15852_s9 + $0x58] sm:$0xff] }
0x1226   :  { %v8114_v40 = vmul.f32 %v12302_v13, %v12298_v17  ;;  %v8132_v49 = vsel %vm986_vm3, %v8131_v52, %v8130_v26  ;;  %v12304_v41 = vpop.eup %12303  ;;  %v8655_v17 = vld [vmem:[%s15852_s9 + $0x48] sm:$0xff]  ;;  %v8656_v33 = vld [vmem:[%s15852_s9 + $0x50] sm:$0xff]  ;;  %v8658_v52 = vld [vmem:[%s15852_s9 + $0x60] sm:$0xff] }
0x1227   :  { %v8133_v1 = vrot.slane %v8113_v3, 1  ;;  %v10365_v45 = vpack.c.bf16 %v8655_v17, %v8654_v28  ;;  %v10368_v34 = vpack.c.bf16 %v8657_v44, %v8656_v33  ;;  %v8659_v13 = vld [vmem:[%s15852_s9 + $0x68] sm:$0xff]  ;;  %v8660_v26 = vld [vmem:[%s15852_s9 + $0x70] sm:$0xff] }
0x1228   :  { %v10371_v3 = vpack.c.bf16 %v8659_v13, %v8658_v52 }
0x1229   :  { %v12306_v58 = vpop.eup %12305  ;;  %v8134_v11 = vsel %vm989_vm4, %v8133_v1, %v8132_v49 }
0x122a   :  { %v8115_v25 = vmul.f32 %v12306_v58, %v12304_v41  ;;  %v8135_v32 = vsel %vm992_vm5, %v8114_v40, %v8134_v11  ;;  %v8661_v40 = vld [vmem:[%s15852_s9 + $0x78] sm:$0xff] }
0x122b   :  { %v10374_v49 = vpack.c.bf16 %v8661_v40, %v8660_v26 }
0x122c   :  { %v8136_v39 = vrot.slane %v8115_v25, 7 }
0x122e   :  { %v8137_v21 = vsel %vm995_vm6, %v8136_v39, %v8135_v32 }
0x122f   :  { %8204 = vmatmul.mubr.f32.vlgmr.msra.gmra.mrb[62].mxu0 %v8137_v21  ;;  %8275 = vmatmul.mubr.f32.vlgmr.msra.gmra.mrb[62].mxu1 %v8137_v21 }
0x1230   :  { %9197 = vmatprep.mubr.msk.f32.mxu0 %vm12585_vm7, %v16143_v8  ;;  %10354 = vmatpush3.bf16.msra.mxu0 %v10353_v4  ;;  %v8653_v8 = vld [vmem:[%s15852_s9 + $0x38] sm:$0xff] }
0x1231   :  { %10355 = vmatprep.subr.bf16.mxu0 %v12584_v61  ;;  %v10362_v35 = vpack.c.bf16 %v8653_v8, %v8652_v9 }
0x1234   :  { %10357 = vmatpush3.bf16.msra.mxu0 %v10356_v60 }
0x1235   :  { %10358 = vmatprep.subr.bf16.mxu0 %v12584_v61 }
0x1238   :  { %10360 = vmatpush3.bf16.msra.mxu0 %v10359_v47 }
0x1239   :  { %10361 = vmatprep.subr.bf16.mxu0 %v12584_v61 }
0x123c   :  { %10363 = vmatpush3.bf16.msra.mxu0 %v10362_v35 }
0x123d   :  { %10364 = vmatprep.subr.bf16.mxu0 %v12584_v61 }
0x1240   :  { %10366 = vmatpush3.bf16.msra.mxu0 %v10365_v45 }
0x1241   :  { %10367 = vmatprep.subr.bf16.mxu0 %v12584_v61 }
0x1244   :  { %10369 = vmatpush3.bf16.msra.mxu0 %v10368_v34 }
0x1245   :  { %10370 = vmatprep.subr.bf16.mxu0 %v12584_v61 }
0x1248   :  { %10372 = vmatpush3.bf16.msra.mxu0 %v10371_v3 }
0x1249   :  { %10373 = vmatprep.subr.bf16.mxu0 %v12584_v61 }
0x124c   :  { %10375 = vmatpush3.bf16.msra.mxu0 %v10374_v49 }
0x1302   :  { %v8205_v41 = vpop.f32.mrb[62].mxu0  ;;  %v15736_v1 = vpop.f32.mrb[62].mxu1 }
0x1303   :  { %v8285_v58 = vrot.slane %v8205_v41, 1  ;;  %v8289_v11 = vrot.slane %v8205_v41, 2  ;;  %v8293_v25 = vrot.slane %v8205_v41, 3  ;;  %v8297_v32 = vrot.slane %v8205_v41, 4  ;;  %v15738_v39 = vpop.f32.mrb[63].mxu0  ;;  %v15740_v21 = vpop.f32.mrb[63].mxu1 }
0x1304   :  { %v8301_v31 = vrot.slane %v8205_v41, 5  ;;  %v8305_v46 = vrot.slane %v8205_v41, 6  ;;  %v8309_v10 = vrot.slane %v8205_v41, 7  ;;  %v8373_v4 = vadd.f32 %v8205_v41, %v16654_v18 }
0x1305   :  { %v8345_v54 = vadd.f32 %v8285_v58, %v16648_v53  ;;  %v8349_v61 = vadd.f32 %v8289_v11, %v16649_v14  ;;  %v8353_v60 = vadd.f32 %v8293_v25, %v16650_v36  ;;  %v8357_v19 = vadd.f32 %v8297_v32, %v16651_v51 }
0x1306   :  { %v8361_v43 = vadd.f32 %v8301_v31, %v16652_v42  ;;  %v8365_v47 = vadd.f32 %v8305_v46, %v16653_v30  ;;  %v9130_v9 = vmul.f32 -1.442695, %v8373_v4  ;;  %v8369_v8 = vadd.f32 %v8309_v10, %v16615_v2 }
0x1307   :  { %v9123_v35 = vmul.f32 -1.442695, %v8345_v54  ;;  %v9124_v28 = vmul.f32 -1.442695, %v8349_v61  ;;  %v9125_v17 = vmul.f32 -1.442695, %v8353_v60 }
0x1308   :  { %v9126_v45 = vmul.f32 -1.442695, %v8357_v19  ;;  %12307 = vpow2.f32 %v9130_v9  ;;  %v9127_v53 = vmul.f32 -1.442695, %v8361_v43  ;;  %v8287_v14 = vrot.slane %v15736_v1, 1  ;;  %v16671_v43 = vld [vmem:[#allocation54_spill] sm:$0xff] }
0x1309   :  { %12309 = vpow2.f32 %v9123_v35  ;;  %v8291_v36 = vrot.slane %v15736_v1, 2  ;;  %v9128_v51 = vmul.f32 -1.442695, %v8365_v47  ;;  %v8295_v42 = vrot.slane %v15736_v1, 3  ;;  %v16672_v35 = vld [vmem:[#allocation61_spill] sm:$0xff] }
0x130a   :  { %12311 = vpow2.f32 %v9124_v28  ;;  %v9129_v30 = vmul.f32 -1.442695, %v8369_v8  ;;  %v8299_v18 = vrot.slane %v15736_v1, 4  ;;  %v8303_v2 = vrot.slane %v15736_v1, 5 }
0x130b   :  { %12313 = vpow2.f32 %v9125_v17  ;;  %v8347_v33 = vadd.f32 %v8287_v14, %v16655_v6  ;;  %v8351_v44 = vadd.f32 %v8291_v36, %v16656_v20  ;;  %v8355_v34 = vadd.f32 %v8295_v42, %v16657_v5 }
0x130c   :  { %12315 = vpow2.f32 %v9126_v45  ;;  %v8359_v52 = vadd.f32 %v8299_v18, %v16658_v57  ;;  %v8363_v13 = vadd.f32 %v8303_v2, %v16659_v7  ;;  %v8307_v26 = vrot.slane %v15736_v1, 6 }
0x130d   :  { %12317 = vpow2.f32 %v9127_v53  ;;  %v8311_v6 = vrot.slane %v15736_v1, 7  ;;  %v8286_v5 = vrot.slane %v15738_v39, 1  ;;  %v8290_v7 = vrot.slane %v15738_v39, 2  ;;  %v16673_v53 = vld [vmem:[#allocation69_spill] sm:$0xff] }
0x130e   :  { %12319 = vpow2.f32 %v9128_v51  ;;  %v8367_v32 = vadd.f32 %v8307_v26, %v16660_v48  ;;  %v8294_v31 = vrot.slane %v15738_v39, 3  ;;  %v8298_v54 = vrot.slane %v15738_v39, 4  ;;  %v16674_v51 = vld [vmem:[#allocation70_spill] sm:$0xff] }
0x130f   :  { %12321 = vpow2.f32 %v9129_v30  ;;  %v8371_v4 = vadd.f32 %v8311_v6, %v16663_v16  ;;  %v8302_v19 = vrot.slane %v15738_v39, 5  ;;  %v8346_v47 = vadd.f32 %v8286_v5, %v16671_v43  ;;  %v16675_v30 = vld [vmem:[#allocation55_spill] sm:$0xff] }
0x1310   :  { %12323 = vtanh.f32 %v8347_v33  ;;  %v8306_v48 = vrot.slane %v15738_v39, 6  ;;  %v8350_v28 = vadd.f32 %v8290_v7, %v16672_v35  ;;  %v8310_v16 = vrot.slane %v15738_v39, 7  ;;  %v16676_v33 = vld [vmem:[#allocation62_spill] sm:$0xff] }
0x1311   :  { %12325 = vtanh.f32 %v8351_v44  ;;  %v8354_v14 = vadd.f32 %v8294_v31, %v16673_v53  ;;  %v8375_v42 = vadd.f32 %v15736_v1, %v16674_v51  ;;  %v8358_v18 = vadd.f32 %v8298_v54, %v16675_v30 }
0x1312   :  { %v12308_v3 = vpop.eup %12307  ;;  %12327 = vtanh.f32 %v8355_v34  ;;  %v8362_v44 = vadd.f32 %v8302_v19, %v16676_v33  ;;  %v9131_v34 = vmul.f32 -1.442695, %v8346_v47  ;;  %v8296_v5 = vrot.slane %v15740_v21, 3 }
0x1313   :  { %v12310_v40 = vpop.eup %12309  ;;  %v8408_v49 = vadd.f32 1.0, %v12308_v3  ;;  %12329 = vtanh.f32 %v8359_v52  ;;  %v8288_v52 = vrot.slane %v15740_v21, 1  ;;  %v16677_v3 = vld [vmem:[#allocation72_spill] sm:$0xff] }
0x1314   :  { %v12312_v20 = vpop.eup %12311  ;;  %v8401_v41 = vadd.f32 1.0, %v12310_v40  ;;  %12331 = vtanh.f32 %v8363_v13  ;;  %v8366_v26 = vadd.f32 %v8306_v48, %v16677_v3  ;;  %v9132_v40 = vmul.f32 -1.442695, %v8350_v28 }
0x1315   :  { %v12314_v58 = vpop.eup %12313  ;;  %v8402_v57 = vadd.f32 1.0, %v12312_v20  ;;  %12333 = vrcp.f32 %v8408_v49  ;;  %v8292_v49 = vrot.slane %v15740_v21, 2  ;;  %v16678_v20 = vld [vmem:[#allocation67_spill] sm:$0xff]  ;;  %v9135_v31 = vmul.f32 -1.442695, %v8362_v44 }
0x1316   :  { %v12316_v11 = vpop.eup %12315  ;;  %v8403_v25 = vadd.f32 1.0, %v12314_v58  ;;  %12335 = vrcp.f32 %v8401_v41  ;;  %v8370_v1 = vadd.f32 %v8310_v16, %v16678_v20  ;;  %v9133_v41 = vmul.f32 -1.442695, %v8354_v14 }
0x1317   :  { %v12318_v46 = vpop.eup %12317  ;;  %v8404_v10 = vadd.f32 1.0, %v12316_v11  ;;  %12337 = vrcp.f32 %v8402_v57  ;;  %v16679_v57 = vld [vmem:[#allocation71_spill] sm:$0xff]  ;;  %v9134_v11 = vmul.f32 -1.442695, %v8358_v18  ;;  %v8356_v47 = vadd.f32 %v8296_v5, %v14578_v55 }
0x1318   :  { %v12320_v61 = vpop.eup %12319  ;;  %v8405_v60 = vadd.f32 1.0, %v12318_v46  ;;  %12339 = vrcp.f32 %v8403_v25  ;;  %v8374_v7 = vadd.f32 %v15738_v39, %v16679_v57  ;;  %v8300_v25 = vrot.slane %v15740_v21, 4 }
0x1319   :  { %v12322_v9 = vpop.eup %12321  ;;  %v8406_v8 = vadd.f32 1.0, %v12320_v61  ;;  %12341 = vrcp.f32 %v8404_v10  ;;  %v8304_v46 = vrot.slane %v15740_v21, 5  ;;  %v8348_v10 = vadd.f32 %v8288_v52, %v16512_v50 }
0x131a   :  { %v12324_v17 = vpop.eup %12323  ;;  %v8407_v45 = vadd.f32 1.0, %v12322_v9  ;;  %12343 = vrcp.f32 %v8405_v60  ;;  %v9136_v61 = vmul.f32 -1.442695, %v8366_v26  ;;  %v8352_v60 = vadd.f32 %v8292_v49, %v14565_v29 }
0x131b   :  { %v12326_v36 = vpop.eup %12325  ;;  %12345 = vrcp.f32 %v8406_v8  ;;  %v9137_v39 = vmul.f32 -1.442695, %v8370_v1  ;;  %v9138_v48 = vmul.f32 -1.442695, %v8374_v7  ;;  %v8360_v50 = vadd.f32 %v8300_v25, %v14587_v56 }
0x131c   :  { %v12328_v2 = vpop.eup %12327  ;;  %12347 = vrcp.f32 %v8407_v45  ;;  %v8364_v29 = vadd.f32 %v8304_v46, %v14596_v0  ;;  %v9140_v16 = vmul.f32 -1.442695, %v8352_v60  ;;  %v9141_v14 = vmul.f32 -1.442695, %v8356_v47 }
0x131d   :  { %v12330_v13 = vpop.eup %12329  ;;  %12349 = vtanh.f32 %v8367_v32  ;;  %v9142_v51 = vmul.f32 -1.442695, %v8360_v50  ;;  %v8308_v0 = vrot.slane %v15740_v21, 6  ;;  %v8312_v44 = vrot.slane %v15740_v21, 7 }
0x131e   :  { %v12332_v6 = vpop.eup %12331  ;;  %12351 = vtanh.f32 %v8371_v4  ;;  %v9143_v56 = vmul.f32 -1.442695, %v8364_v29  ;;  %v8539_v29 = vrot.slane %v15654_v12, 7  ;;  %v8543_v12 = vrot.slane %v15670_v59, 7 }
0x131f   :  { %v12334_v58 = vpop.eup %12333  ;;  %12353 = vtanh.f32 %v8375_v42 }
0x1320   :  { %v12336_v32 = vpop.eup %12335  ;;  %12355 = vpow2.f32 %v9131_v34 }
0x1321   :  { %v12338_v4 = vpop.eup %12337  ;;  %v15788_v54 = vmul.f32 %v12336_v32, %v12324_v17  ;;  %12357 = vpow2.f32 %v9132_v40  ;;  %v9139_v17 = vmul.f32 -1.442695, %v8348_v10 }
0x1322   :  { %v12340_v19 = vpop.eup %12339  ;;  %v15791_v43 = vmul.f32 %v12338_v4, %v12326_v36  ;;  %12359 = vpow2.f32 %v9133_v41  ;;  %v8372_v41 = vadd.f32 %v8312_v44, %v14678_v38 }
0x1323   :  { %v12342_v9 = vpop.eup %12341  ;;  %v15794_v8 = vmul.f32 %v12340_v19, %v12328_v2  ;;  %12361 = vpow2.f32 %v9134_v11 }
0x1324   :  { %v12344_v35 = vpop.eup %12343  ;;  %v15797_v28 = vmul.f32 %v12342_v9, %v12330_v13  ;;  %12363 = vpow2.f32 %v9135_v31  ;;  %v9145_v10 = vmul.f32 -1.442695, %v8372_v41 }
0x1325   :  { %v12346_v45 = vpop.eup %12345  ;;  %12365 = vpow2.f32 %v9136_v61  ;;  %v15800_v53 = vmul.f32 %v12344_v35, %v12332_v6  ;;  %v8368_v6 = vadd.f32 %v8308_v0, %v14674_v62 }
0x1326   :  { %v12348_v55 = vpop.eup %12347  ;;  %12367 = vpow2.f32 %v9137_v39  ;;  %v8537_v39 = vrot.slane %v15646_v15, 7 }
0x1327   :  { %v12350_v36 = vpop.eup %12349  ;;  %12369 = vpow2.f32 %v9138_v48  ;;  %v9144_v31 = vmul.f32 -1.442695, %v8368_v6  ;;  %v8538_v48 = vrot.slane %v15650_v27, 7 }
0x1328   :  { %v12352_v42 = vpop.eup %12351  ;;  %12371 = vpow2.f32 %v9139_v17  ;;  %v15802_v30 = vmul.f32 %v12350_v36, %v12346_v45 }
0x1329   :  { %v12354_v18 = vpop.eup %12353  ;;  %12373 = vpow2.f32 %v9140_v16  ;;  %v15805_v2 = vmul.f32 %v12352_v42, %v12348_v55  ;;  %v8540_v55 = vrot.slane %v15658_v63, 7  ;;  %v8544_v63 = vrot.slane %v15674_v23, 7 }
0x132a   :  { %v12356_v33 = vpop.eup %12355  ;;  %12375 = vpow2.f32 %v9141_v14  ;;  %v15808_v34 = vmul.f32 %v12354_v18, %v12334_v58  ;;  %v8376_v58 = vadd.f32 %v15740_v21, %v14685_v22  ;;  %v8541_v14 = vrot.slane %v15662_v24, 7 }
0x132b   :  { %v12358_v52 = vpop.eup %12357  ;;  %v8449_v13 = vadd.f32 1.0, %v12356_v33  ;;  %12377 = vpow2.f32 %v9142_v51  ;;  %v8542_v51 = vrot.slane %v15666_v37, 7 }
0x132c   :  { %v12360_v3 = vpop.eup %12359  ;;  %v8450_v26 = vadd.f32 1.0, %v12358_v52  ;;  %12379 = vpow2.f32 %v9143_v56  ;;  %v9146_v38 = vmul.f32 -1.442695, %v8376_v58 }
0x132d   :  { %v12362_v40 = vpop.eup %12361  ;;  %v8451_v49 = vadd.f32 1.0, %v12360_v3  ;;  %12381 = vrcp.f32 %v8449_v13 }
0x132e   :  { %v12364_v20 = vpop.eup %12363  ;;  %v8452_v1 = vadd.f32 1.0, %v12362_v40  ;;  %12383 = vrcp.f32 %v8450_v26 }
0x132f   :  { %v12366_v5 = vpop.eup %12365  ;;  %v8453_v57 = vadd.f32 1.0, %v12364_v20  ;;  %12385 = vrcp.f32 %v8451_v49 }
0x1330   :  { %v12368_v7 = vpop.eup %12367  ;;  %v8454_v11 = vadd.f32 1.0, %v12366_v5  ;;  %12387 = vrcp.f32 %v8452_v1 }
0x1331   :  { %v12370_v25 = vpop.eup %12369  ;;  %v8455_v32 = vadd.f32 1.0, %v12368_v7  ;;  %12389 = vrcp.f32 %v8453_v57 }
0x1332   :  { %v12372_v46 = vpop.eup %12371  ;;  %v8456_v62 = vadd.f32 1.0, %v12370_v25  ;;  %12391 = vrcp.f32 %v8454_v11 }
0x1333   :  { %v12374_v4 = vpop.eup %12373  ;;  %12393 = vrcp.f32 %v8455_v32  ;;  %v8505_v60 = vadd.f32 1.0, %v12372_v46 }
0x1334   :  { %v12376_v61 = vpop.eup %12375  ;;  %12395 = vrcp.f32 %v8456_v62  ;;  %v8506_v22 = vadd.f32 1.0, %v12374_v4 }
0x1335   :  { %v12378_v19 = vpop.eup %12377  ;;  %12397 = vpow2.f32 %v9144_v31  ;;  %v8507_v47 = vadd.f32 1.0, %v12376_v61 }
0x1336   :  { %v12380_v21 = vpop.eup %12379  ;;  %12399 = vpow2.f32 %v9145_v10  ;;  %v8508_v50 = vadd.f32 1.0, %v12378_v19 }
0x1337   :  { %v12382_v9 = vpop.eup %12381  ;;  %12401 = vpow2.f32 %v9146_v38  ;;  %v8509_v45 = vadd.f32 1.0, %v12380_v21 }
0x1338   :  { %v12384_v35 = vpop.eup %12383  ;;  %v8553_v17 = vmul.f32 %v12382_v9, %v8537_v39  ;;  %12403 = vrcp.f32 %v8505_v60 }
0x1339   :  { %v12386_v16 = vpop.eup %12385  ;;  %v8554_v36 = vmul.f32 %v12384_v35, %v8538_v48  ;;  %12405 = vrcp.f32 %v8506_v22 }
0x133a   :  { %v12388_v15 = vpop.eup %12387  ;;  %12407 = vrcp.f32 %v8507_v47  ;;  %v8555_v27 = vmul.f32 %v12386_v16, %v8539_v29  ;;  %v8569_v42 = vadd.f32 %v15788_v54, %v8553_v17 }
0x133b   :  { %v12390_v56 = vpop.eup %12389  ;;  %12409 = vrcp.f32 %v8508_v50  ;;  %v8556_v18 = vmul.f32 %v12388_v15, %v8540_v55  ;;  %v8570_v0 = vadd.f32 %v15791_v43, %v8554_v36 }
0x133c   :  { %v12392_v33 = vpop.eup %12391  ;;  %12411 = vrcp.f32 %v8509_v45  ;;  %v8557_v24 = vmul.f32 %v12390_v56, %v8541_v14  ;;  %v8571_v44 = vadd.f32 %v15794_v8, %v8555_v27  ;;  %v9147_v27 = vld [vmem:[%s15853_s10] ss:$0 sm:$0xff] }
0x133d   :  { %v12394_v52 = vpop.eup %12393  ;;  %v8558_v37 = vmul.f32 %v12392_v33, %v8542_v51  ;;  %v8572_v13 = vadd.f32 %v15797_v28, %v8556_v18  ;;  %12413 = vtanh.f32 %v8569_v42 }
0x133e   :  { %v12396_v54 = vpop.eup %12395  ;;  %v8559_v3 = vmul.f32 %v12394_v52, %v8543_v12  ;;  %v8573_v59 = vadd.f32 %v15800_v53, %v8557_v24  ;;  %12415 = vtanh.f32 %v8570_v0 }
0x133f   :  { %v12398_v26 = vpop.eup %12397  ;;  %v8560_v40 = vmul.f32 %v12396_v54, %v8544_v63  ;;  %v8574_v43 = vadd.f32 %v15802_v30, %v8558_v37  ;;  %12417 = vtanh.f32 %v8571_v44 }
0x1340   :  { %v12400_v23 = vpop.eup %12399  ;;  %v8510_v49 = vadd.f32 1.0, %v12398_v26  ;;  %v8575_v6 = vadd.f32 %v15805_v2, %v8559_v3  ;;  %12419 = vtanh.f32 %v8572_v13 }
0x1341   :  { %v12402_v8 = vpop.eup %12401  ;;  %v8511_v20 = vadd.f32 1.0, %v12400_v23  ;;  %v8576_v28 = vadd.f32 %v15808_v34, %v8560_v40  ;;  %12421 = vtanh.f32 %v8573_v59 }
0x1342   :  { %v12404_v1 = vpop.eup %12403  ;;  %v8512_v41 = vadd.f32 1.0, %v12402_v8  ;;  %12423 = vrcp.f32 %v8510_v49 }
0x1343   :  { %v12406_v53 = vpop.eup %12405  ;;  %12425 = vrcp.f32 %v8511_v20 }
0x1344   :  { %v12408_v5 = vpop.eup %12407  ;;  %12427 = vrcp.f32 %v8512_v41 }
0x1345   :  { %v12410_v57 = vpop.eup %12409  ;;  %12429 = vtanh.f32 %v8574_v43 }
0x1346   :  { %v12412_v30 = vpop.eup %12411  ;;  %12431 = vtanh.f32 %v8575_v6 }
0x1347   :  { %v12414_v58 = vpop.eup %12413  ;;  %12433 = vtanh.f32 %v8576_v28 }
0x1348   :  { %v12416_v2 = vpop.eup %12415  ;;  %v8585_v7 = vmul.f32 %v12414_v58, %v12404_v1 }
0x1349   :  { %v12418_v11 = vpop.eup %12417  ;;  %v8586_v25 = vmul.f32 %v12416_v2, %v12406_v53 }
0x134a   :  { %v12420_v32 = vpop.eup %12419  ;;  %v8587_v34 = vmul.f32 %v12418_v11, %v12408_v5  ;;  %v8669_v31 = vrot.slane %v8585_v7, 7 }
0x134b   :  { %v12422_v46 = vpop.eup %12421  ;;  %v8588_v62 = vmul.f32 %v12420_v32, %v12410_v57  ;;  %v8670_v10 = vrot.slane %v8586_v25, 6 }
0x134c   :  { %v12424_v4 = vpop.eup %12423  ;;  %v8589_v38 = vmul.f32 %v12422_v46, %v12412_v30  ;;  %v8672_v61 = vrot.slane %v8587_v34, 5 }
0x134d   :  { %v12426_v60 = vpop.eup %12425  ;;  %v8671_v19 = vsel %vm977_vm0, %v8670_v10, %v8669_v31  ;;  %v8674_v22 = vrot.slane %v8588_v62, 4 }
0x134e   :  { %v12428_v21 = vpop.eup %12427  ;;  %v8673_v39 = vsel %vm980_vm1, %v8672_v61, %v8671_v19  ;;  %v8676_v47 = vrot.slane %v8589_v38, 3 }
0x134f   :  { %v12430_v9 = vpop.eup %12429  ;;  %v8675_v48 = vsel %vm983_vm2, %v8674_v22, %v8673_v39 }
0x1350   :  { %v12432_v50 = vpop.eup %12431  ;;  %v8590_v35 = vmul.f32 %v12430_v9, %v12424_v4  ;;  %v8677_v29 = vsel %vm986_vm3, %v8676_v47, %v8675_v48 }
0x1351   :  { %v12434_v17 = vpop.eup %12433  ;;  %v8591_v45 = vmul.f32 %v12432_v50, %v12426_v60 }
0x1352   :  { %v8592_v16 = vmul.f32 %v12434_v17, %v12428_v21  ;;  %v8678_v55 = vrot.slane %v8590_v35, 2 }
0x1353   :  { %v8680_v14 = vrot.slane %v8591_v45, 1 }
0x1354   :  { %v8679_v36 = vsel %vm989_vm4, %v8678_v55, %v8677_v29 }
0x1355   :  { %v8681_v15 = vsel %vm992_vm5, %v8680_v14, %v8679_v36 }
0x1356   :  { %v8682_v51 = vsel %vm995_vm6, %v8592_v16, %v8681_v15 }
0x1357   :  { %9198 = vmatmul.mubr.f32.vlgmr.msra.gmra.mrb[64].mxu0 %v8682_v51 }
0x142a   :  { %v8750_v42 = vpop.f32.mrb[64].mxu0 }
0x142b   :  { %v8751_v56 = vadd.f32 %v9147_v27, %v8750_v42  ;;  %v9199_v12 = vpop.f32.mrb[65].mxu0 }
0x142d   :  { %8754 = vst [vmem:[%s15854_s11] sm:$0xff] %v8751_v56 }
0x142e   :  { %8759 = vsyncpa [#allocation6], 1 }
0x142f   :  { %8760 = vsyncpa [#allocation8], 1 }
0x1430   :  { %8761 = vsyncpa [#allocation11], 1 }
0x1431   :  { %8762 = vsyncpa [#allocation14], 1 }

</bundles_post_ra>
